<compile_context>
chip_gen: v7x
topology: tpu7x:2x2x1
jax: 0.10.0
libtpu: 0.0.40
codegen_flags: <defaults>
</compile_context>

<pallas_src>
import functools

import jax
import jax.numpy as jnp
from jax import lax
from jax.experimental import pallas as pl
from jax.experimental.pallas import tpu as pltpu


def _round_up(x, m):
    return ((x + m - 1) // m) * m


def _reflect(i, n):
    """PyTorch 'reflect' index mapping (edge not repeated), valid for pad<n."""
    if i < 0:
        return -i
    if i >= n:
        return 2 * (n - 1) - i
    return i


def _sa_cga_kernel(x_ref, w_ref, b_ref, o_ref, sum_ref, max_ref, pad_ref, *,
                   c_total, H, W, Wp, row_strip):
    # x_ref:   (Bt, Ct, HW)   VMEM, input dtype (lane-dense flat spatial)
    # w_ref:   (98,)          SMEM f32 (flattened (1,2,7,7) OIHW weight)
    # b_ref:   (1,)           SMEM f32
    # o_ref:   (Bt, 1, H, W)  VMEM, output dtype (exact width, compute at Wp)
    # sum_ref: (Bt, 1, HW)    VMEM f32 channel-sum accumulator
    # max_ref: (Bt, 1, HW)    VMEM f32 channel-max accumulator
    # pad_ref: (2, Hp, Wpad)  VMEM f32 reflect-padded avg/max planes (per bb)
    Bt = x_ref.shape[0]
    c_idx = pl.program_id(1)
    nc = pl.num_programs(1)

    # ---- init accumulators on the first channel chunk ----
    @pl.when(c_idx == 0)
    def _init():
        sum_ref[...] = jnp.zeros(sum_ref.shape, sum_ref.dtype)
        max_ref[...] = jnp.full(max_ref.shape, -jnp.inf, dtype=max_ref.dtype)

    # ---- partial channel reduction (HBM-bound, full 8x128 vregs) ----
    for bb in range(Bt):
        xb = x_ref[bb]                                            # (Ct, HW)
        psum = jnp.sum(xb.astype(jnp.float32), axis=0, keepdims=True)
        pmax = jnp.max(xb, axis=0, keepdims=True).astype(jnp.float32)
        sum_ref[bb, :, :] = sum_ref[bb, :, :] + psum
        max_ref[bb, :, :] = jnp.maximum(max_ref[bb, :, :], pmax)

    # ---- finalize on the last channel chunk: reflect pad + 7x7 conv ----
    @pl.when(c_idx == nc - 1)
    def _finalize():
        inv_c = jnp.float32(1.0 / c_total)
        bias = b_ref[0]
        HH = H + 6
        for bb in range(Bt):
            # (1) Build the two reflect-padded f32 planes from the flat
            # accumulators: per-row interior stores + 6 thin column-halo
            # copies.  Pad columns [W+6, Wpad) are intentionally left
            # unwritten: they only reach conv outputs at columns >= W which
            # are sliced away below, so no zero-fill is needed.
            for p, src in ((0, sum_ref), (1, max_ref)):
                for pr in range(HH):
                    r = _reflect(pr - 3, H)
                    row = src[bb, 0:1, r * W:r * W + W]           # (1, W) f32
                    if p == 0:
                        row = row * inv_c
                    pad_ref[p, pr:pr + 1, 3:3 + W] = row
                for j in range(3):  # reflect column halos (left / right)
                    pad_ref[p, 0:HH, j:j + 1] = pad_ref[p, 0:HH, 6 - j:7 - j]
                    pad_ref[p, 0:HH, W + 3 + j:W + 4 + j] = (
                        pad_ref[p, 0:HH, W + 1 - j:W + 2 - j])

            # (2) 7x7 conv, 2 in-channels -> 1 out-channel.  Row strips keep
            # the 4 f32 accumulators register-resident; the kx lane shift is
            # hoisted: one shifted (rs+6, Wp) load per (channel, kx) instead
            # of 98 lane-misaligned per-tap reads.
            r0 = 0
            while r0 < H:
                rs = min(row_strip, H - r0)
                accs = [None, None, None, None]
                t = 0
                for p in range(2):
                    for kx in range(7):
                        sh = pad_ref[p, r0:r0 + rs + 6, kx:kx + Wp]  # (rs+6,Wp)
                        for ky in range(7):
                            wv = w_ref[p * 49 + ky * 7 + kx]
                            term = wv * sh[ky:ky + rs, :]
                            j = t % 4
                            accs[j] = term if accs[j] is None else accs[j] + term
                            t += 1
                acc = (accs[0] + accs[1]) + (accs[2] + accs[3])
                out = acc[:, 0:W] + bias          # drop garbage cols >= W
                o_ref[bb, 0, r0:r0 + rs, :] = out.astype(o_ref.dtype)
                r0 += rs


def _vmem_info():
    """(block budget bytes, vmem_limit cap bytes) for this TPU generation."""
    try:
        vmem = int(pltpu.get_tpu_info().vmem_capacity_bytes)
    except Exception:
        vmem = 64 << 20
    if vmem >= (100 << 20):            # v5e / v6e: 128 MiB physical VMEM
        return (12 << 20), (96 << 20)
    return (6 << 20), (48 << 20)       # v7x: 64 MiB physical VMEM


def _pick_tiles(B, C, HW, itemsize, budget_bytes):
    """Pick (Bt, Ct): fold batches per step, tile channels if needed."""
    per_c = HW * itemsize
    Bt = 1
    for cand in range(min(B, 8), 0, -1):
        if B % cand:
            continue
        if B >= 2 and (B // cand) < 2:
            continue                   # keep >= 2 steps on the parallel axis
        if cand > 1 and cand * C * per_c > budget_bytes:
            continue
        Bt = cand
        break
    if Bt * C * per_c <= budget_bytes:
        Ct = C
    else:
        # Block's second-minor dim must be a multiple of 8 or equal C.
        Ct = None
        for cand in range(C - (C % 8), 0, -8):
            if C % cand == 0 and Bt * cand * per_c <= budget_bytes:
                Ct = cand
                break
        if Ct is None:
            mult8 = [d for d in range(8, C, 8) if C % d == 0]
            Ct = min(mult8) if mult8 else C
    return Bt, Ct


def spatial_attention_cga(x, weight, bias):
    """x: (B, C, H, W); weight: (1, 2, 7, 7); bias: (1,) -> (B, 1, H, W)."""
    B, C, H, W = x.shape
    assert H >= 4 and W >= 4, "reflect padding of 3 requires H >= 4 and W >= 4"
    out_dtype = x.dtype
    in_itemsize = jnp.dtype(x.dtype).itemsize
    out_itemsize = jnp.dtype(out_dtype).itemsize
    HW = H * W

    Wp = _round_up(W, 128)        # lane-dense conv compute width
    Wpad = Wp + 128               # padded-plane width (room for kx<=6 windows)
    Hp = _round_up(H + 6, 8)

    budget, vmem_cap = _vmem_info()
    Bt, Ct = _pick_tiles(B, C, HW, in_itemsize, budget)
    nb, nc = B // Bt, C // Ct
    row_strip = min(32, H)

    x_flat = x.reshape(B, C, HW)                       # free (contiguous) view
    w_flat = weight.reshape(-1).astype(jnp.float32)    # (98,)
    b_vec = bias.reshape(-1).astype(jnp.float32)       # (1,)

    # VMEM accounting (padded to the native (8,128) tiling; inputs are
    # double-buffered by the pipeline).
    def _lane(n):
        return _round_up(n, 128)

    def _sub(n):
        return _round_up(n, 8)

    in_block = Bt * _sub(Ct) * _lane(HW) * in_itemsize
    out_block = Bt * _sub(H) * _lane(W) * out_itemsize
    acc_scratch = 2 * Bt * 8 * _lane(HW) * 4
    pad_scratch = 2 * Hp * _lane(Wpad) * 4
    vmem_need = 2 * (in_block + out_block) + acc_scratch + pad_scratch + (4 << 20)
    vmem_limit = int(min(max(vmem_need, 32 << 20), vmem_cap))

    cost = pl.CostEstimate(
        flops=int(B * HW * (2 * C + 2 * 98)),
        transcendentals=0,
        bytes_accessed=int(B * C * HW * in_itemsize + B * HW * out_itemsize
                           + (98 + 1) * 4),
    )

    kernel = functools.partial(_sa_cga_kernel, c_total=C, H=H, W=W, Wp=Wp,
                               row_strip=row_strip)

    out = pl.pallas_call(
        kernel,
        out_shape=jax.ShapeDtypeStruct((B, 1, H, W), out_dtype),
        grid=(nb, nc),
        in_specs=[
            pl.BlockSpec((Bt, Ct, HW), lambda b, c: (b, c, 0)),
            pl.BlockSpec(memory_space=pltpu.MemorySpace.SMEM),
            pl.BlockSpec(memory_space=pltpu.MemorySpace.SMEM),
        ],
        out_specs=pl.BlockSpec((Bt, 1, H, W), lambda b, c: (b, 0, 0, 0)),
        scratch_shapes=[
            pltpu.VMEM((Bt, 1, HW), jnp.float32),
            pltpu.VMEM((Bt, 1, HW), jnp.float32),
            pltpu.VMEM((2, Hp, Wpad), jnp.float32),
        ],
        compiler_params=pltpu.CompilerParams(
            dimension_semantics=("parallel", "arbitrary"),
            vmem_limit_bytes=vmem_limit,
        ),
        cost_estimate=cost,
    )(x_flat, w_flat, b_vec)

    return out


def _reference(x, weight, bias):
    """Pure-JAX reference mirroring the PyTorch module."""
    x_avg = jnp.mean(x, axis=1, keepdims=True)
    x_max = jnp.max(x, axis=1, keepdims=True)
    x2 = jnp.concatenate([x_avg, x_max], axis=1)                     # (B,2,H,W)
    x2p = jnp.pad(x2, ((0, 0), (0, 0), (3, 3), (3, 3)), mode="reflect")
    out = lax.conv_general_dilated(
        x2p, weight, window_strides=(1, 1), padding="VALID",
        dimension_numbers=("NCHW", "OIHW", "NCHW"))
    return out + bias.reshape(1, 1, 1, 1)


if __name__ == "__main__":
    B, C, H, W = 2, 4, 16, 16

    key = jax.random.PRNGKey(0)
    kx_, kw_, kb_ = jax.random.split(key, 3)
    x = jax.random.normal(kx_, (B, C, H, W), dtype=jnp.float32)

    # Deterministic parameter init (shapes from nn.Conv2d(2, 1, 7, bias=True)).
    fan_in = 2 * 7 * 7
    bound = 1.0 / (fan_in ** 0.5)
    weight = jax.random.uniform(kw_, (1, 2, 7, 7), jnp.float32, -bound, bound)
    bias = jax.random.uniform(kb_, (1,), jnp.float32, -bound, bound)

    out = spatial_attention_cga(x, weight, bias)
    out = jax.block_until_ready(out)

    ref = _reference(x, weight, bias)
    assert out.shape == (B, 1, H, W), out.shape
    assert out.dtype == x.dtype, out.dtype
    err = float(jnp.max(jnp.abs(out.astype(jnp.float32) - ref)))
    assert err < 1e-4, err

    print("KERNEL_OK")
</pallas_src>

<mosaic_0001>
module attributes {stable_mosaic.version = 11 : i64} {
  func.func @_sa_cga_kernel(%arg0: i32, %arg1: i32, %arg2: memref<1x4x256xf32, #tpu.memory_space<vmem>>, %arg3: memref<98xf32, #tpu.memory_space<smem>>, %arg4: memref<1xf32, #tpu.memory_space<smem>>, %arg5: memref<1x1x16x16xf32, #tpu.memory_space<vmem>>, %arg6: memref<1x1x256xf32, #tpu.memory_space<vmem>>, %arg7: memref<1x1x256xf32, #tpu.memory_space<vmem>>, %arg8: memref<2x24x256xf32, #tpu.memory_space<vmem>>) attributes {dimension_semantics = [#tpu.dimension_semantics<parallel>, #tpu.dimension_semantics<arbitrary>], iteration_bounds = array<i64: 2, 1>, scalar_prefetch = 0 : i64, scratch_operands = 3 : i64, tpu.core_type = #tpu.core_type<tc>, window_params = [{transform_indices = @transform_0, window_bounds = array<i64: 1, 4, 256>}, {transform_indices = @transform_1, window_bounds = array<i64: 98>}, {transform_indices = @transform_2, window_bounds = array<i64: 1>}, {transform_indices = @transform_3, window_bounds = array<i64: 1, 1, 16, 16>}]} {
    %c0_i32 = arith.constant 0 : i32
    %0 = arith.cmpi eq, %arg1, %c0_i32 : i32
    %1 = arith.extui %0 : i1 to i32
    %c0_i32_0 = arith.constant 0 : i32
    %2 = arith.cmpi ne, %1, %c0_i32_0 : i32
    scf.if %2 {
      %cst_18 = arith.constant 0.000000e+00 : f32
      %24 = vector.broadcast %cst_18 : f32 to vector<1x1x256xf32>
      %c0_19 = arith.constant 0 : index
      %c0_20 = arith.constant 0 : index
      %c0_21 = arith.constant 0 : index
      %25 = vector.load %arg6[%c0_19, %c0_20, %c0_21] : memref<1x1x256xf32, #tpu.memory_space<vmem>>, vector<1x1x256xf32>
      tpu.vector_store %arg6[%c0_19, %c0_20, %c0_21], %24 {strides = array<i32>} : memref<1x1x256xf32, #tpu.memory_space<vmem>>, vector<1x1x256xf32>,
      %cst_22 = arith.constant 0xFF800000 : f32
      %26 = vector.broadcast %cst_22 : f32 to vector<1x1x256xf32>
      %c0_23 = arith.constant 0 : index
      %c0_24 = arith.constant 0 : index
      %c0_25 = arith.constant 0 : index
      %27 = vector.load %arg7[%c0_23, %c0_24, %c0_25] : memref<1x1x256xf32, #tpu.memory_space<vmem>>, vector<1x1x256xf32>
      tpu.vector_store %arg7[%c0_23, %c0_24, %c0_25], %26 {strides = array<i32>} : memref<1x1x256xf32, #tpu.memory_space<vmem>>, vector<1x1x256xf32>,
    } else {
    }
    %c0 = arith.constant 0 : index
    %c0_1 = arith.constant 0 : index
    %c0_2 = arith.constant 0 : index
    %3 = vector.load %arg2[%c0, %c0_1, %c0_2] : memref<1x4x256xf32, #tpu.memory_space<vmem>>, vector<1x4x256xf32>
    %4 = vector.shape_cast %3 : vector<1x4x256xf32> to vector<4x256xf32>
    %cst = arith.constant dense<0.000000e+00> : vector<256xf32>
    %5 = vector.multi_reduction <add>, %4, %cst [0] : vector<4x256xf32> to vector<256xf32>
    %6 = vector.shape_cast %5 : vector<256xf32> to vector<1x256xf32>
    %cst_3 = arith.constant dense<0xFF800000> : vector<256xf32>
    %7 = vector.multi_reduction <maximumf>, %4, %cst_3 [0] : vector<4x256xf32> to vector<256xf32>
    %8 = vector.shape_cast %7 : vector<256xf32> to vector<1x256xf32>
    %c0_4 = arith.constant 0 : index
    %c0_5 = arith.constant 0 : index
    %c0_6 = arith.constant 0 : index
    %9 = vector.load %arg6[%c0_4, %c0_5, %c0_6] : memref<1x1x256xf32, #tpu.memory_space<vmem>>, vector<1x1x256xf32>
    %10 = vector.shape_cast %9 : vector<1x1x256xf32> to vector<1x256xf32>
    %11 = arith.addf %10, %6 : vector<1x256xf32>
    %c0_7 = arith.constant 0 : index
    %c0_8 = arith.constant 0 : index
    %c0_9 = arith.constant 0 : index
    %12 = vector.load %arg6[%c0_7, %c0_8, %c0_9] : memref<1x1x256xf32, #tpu.memory_space<vmem>>, vector<1x1x256xf32>
    %13 = vector.shape_cast %12 : vector<1x1x256xf32> to vector<1x256xf32>
    %14 = vector.shape_cast %11 : vector<1x256xf32> to vector<1x1x256xf32>
    tpu.vector_store %arg6[%c0_7, %c0_8, %c0_9], %14 {strides = array<i32>} : memref<1x1x256xf32, #tpu.memory_space<vmem>>, vector<1x1x256xf32>,
    %c0_10 = arith.constant 0 : index
    %c0_11 = arith.constant 0 : index
    %c0_12 = arith.constant 0 : index
    %15 = vector.load %arg7[%c0_10, %c0_11, %c0_12] : memref<1x1x256xf32, #tpu.memory_space<vmem>>, vector<1x1x256xf32>
    %16 = vector.shape_cast %15 : vector<1x1x256xf32> to vector<1x256xf32>
    %17 = arith.maximumf %16, %8 : vector<1x256xf32>
    %c0_13 = arith.constant 0 : index
    %c0_14 = arith.constant 0 : index
    %c0_15 = arith.constant 0 : index
    %18 = vector.load %arg7[%c0_13, %c0_14, %c0_15] : memref<1x1x256xf32, #tpu.memory_space<vmem>>, vector<1x1x256xf32>
    %19 = vector.shape_cast %18 : vector<1x1x256xf32> to vector<1x256xf32>
    %20 = vector.shape_cast %17 : vector<1x256xf32> to vector<1x1x256xf32>
    tpu.vector_store %arg7[%c0_13, %c0_14, %c0_15], %20 {strides = array<i32>} : memref<1x1x256xf32, #tpu.memory_space<vmem>>, vector<1x1x256xf32>,
    %c0_i32_16 = arith.constant 0 : i32
    %21 = arith.cmpi eq, %arg1, %c0_i32_16 : i32
    %22 = arith.extui %21 : i1 to i32
    %c0_i32_17 = arith.constant 0 : i32
    %23 = arith.cmpi ne, %22, %c0_i32_17 : i32
    scf.if %23 {
      %c0_18 = arith.constant 0 : index
      %24 = memref.load %arg4[%c0_18] : memref<1xf32, #tpu.memory_space<smem>>
      %c0_19 = arith.constant 0 : index
      %c0_20 = arith.constant 0 : index
      %c48 = arith.constant 48 : index
      %25 = vector.load %arg6[%c0_19, %c0_20, %c48] : memref<1x1x256xf32, #tpu.memory_space<vmem>>, vector<1x1x16xf32>
      %26 = vector.shape_cast %25 : vector<1x1x16xf32> to vector<1x16xf32>
      %cst_21 = arith.constant 2.500000e-01 : f32
      %27 = vector.broadcast %cst_21 : f32 to vector<1x16xf32>
      %28 = arith.mulf %26, %27 : vector<1x16xf32>
      %c0_22 = arith.constant 0 : index
      %c0_23 = arith.constant 0 : index
      %c3 = arith.constant 3 : index
      %29 = vector.load %arg8[%c0_22, %c0_23, %c3] : memref<2x24x256xf32, #tpu.memory_space<vmem>>, vector<1x1x16xf32>
      %30 = vector.shape_cast %29 : vector<1x1x16xf32> to vector<1x16xf32>
      %31 = vector.shape_cast %28 : vector<1x16xf32> to vector<1x1x16xf32>
      tpu.vector_store %arg8[%c0_22, %c0_23, %c3], %31 {strides = array<i32>} : memref<2x24x256xf32, #tpu.memory_space<vmem>>, vector<1x1x16xf32>,
      %c0_24 = arith.constant 0 : index
      %c0_25 = arith.constant 0 : index
      %c32 = arith.constant 32 : index
      %32 = vector.load %arg6[%c0_24, %c0_25, %c32] : memref<1x1x256xf32, #tpu.memory_space<vmem>>, vector<1x1x16xf32>
      %33 = vector.shape_cast %32 : vector<1x1x16xf32> to vector<1x16xf32>
      %cst_26 = arith.constant 2.500000e-01 : f32
      %34 = vector.broadcast %cst_26 : f32 to vector<1x16xf32>
      %35 = arith.mulf %33, %34 : vector<1x16xf32>
      %c0_27 = arith.constant 0 : index
      %c1 = arith.constant 1 : index
      %c3_28 = arith.constant 3 : index
      %36 = vector.load %arg8[%c0_27, %c1, %c3_28] : memref<2x24x256xf32, #tpu.memory_space<vmem>>, vector<1x1x16xf32>
      %37 = vector.shape_cast %36 : vector<1x1x16xf32> to vector<1x16xf32>
      %38 = vector.shape_cast %35 : vector<1x16xf32> to vector<1x1x16xf32>
      tpu.vector_store %arg8[%c0_27, %c1, %c3_28], %38 {strides = array<i32>} : memref<2x24x256xf32, #tpu.memory_space<vmem>>, vector<1x1x16xf32>,
      %c0_29 = arith.constant 0 : index
      %c0_30 = arith.constant 0 : index
      %c16 = arith.constant 16 : index
      %39 = vector.load %arg6[%c0_29, %c0_30, %c16] : memref<1x1x256xf32, #tpu.memory_space<vmem>>, vector<1x1x16xf32>
      %40 = vector.shape_cast %39 : vector<1x1x16xf32> to vector<1x16xf32>
      %cst_31 = arith.constant 2.500000e-01 : f32
      %41 = vector.broadcast %cst_31 : f32 to vector<1x16xf32>
      %42 = arith.mulf %40, %41 : vector<1x16xf32>
      %c0_32 = arith.constant 0 : index
      %c2 = arith.constant 2 : index
      %c3_33 = arith.constant 3 : index
      %43 = vector.load %arg8[%c0_32, %c2, %c3_33] : memref<2x24x256xf32, #tpu.memory_space<vmem>>, vector<1x1x16xf32>
      %44 = vector.shape_cast %43 : vector<1x1x16xf32> to vector<1x16xf32>
      %45 = vector.shape_cast %42 : vector<1x16xf32> to vector<1x1x16xf32>
      tpu.vector_store %arg8[%c0_32, %c2, %c3_33], %45 {strides = array<i32>} : memref<2x24x256xf32, #tpu.memory_space<vmem>>, vector<1x1x16xf32>,
      %c0_34 = arith.constant 0 : index
      %c0_35 = arith.constant 0 : index
      %c0_36 = arith.constant 0 : index
      %46 = vector.load %arg6[%c0_34, %c0_35, %c0_36] : memref<1x1x256xf32, #tpu.memory_space<vmem>>, vector<1x1x16xf32>
      %47 = vector.shape_cast %46 : vector<1x1x16xf32> to vector<1x16xf32>
      %cst_37 = arith.constant 2.500000e-01 : f32
      %48 = vector.broadcast %cst_37 : f32 to vector<1x16xf32>
      %49 = arith.mulf %47, %48 : vector<1x16xf32>
      %c0_38 = arith.constant 0 : index
      %c3_39 = arith.constant 3 : index
      %c3_40 = arith.constant 3 : index
      %50 = vector.load %arg8[%c0_38, %c3_39, %c3_40] : memref<2x24x256xf32, #tpu.memory_space<vmem>>, vector<1x1x16xf32>
      %51 = vector.shape_cast %50 : vector<1x1x16xf32> to vector<1x16xf32>
      %52 = vector.shape_cast %49 : vector<1x16xf32> to vector<1x1x16xf32>
      tpu.vector_store %arg8[%c0_38, %c3_39, %c3_40], %52 {strides = array<i32>} : memref<2x24x256xf32, #tpu.memory_space<vmem>>, vector<1x1x16xf32>,
      %c0_41 = arith.constant 0 : index
      %c0_42 = arith.constant 0 : index
      %c16_43 = arith.constant 16 : index
      %53 = vector.load %arg6[%c0_41, %c0_42, %c16_43] : memref<1x1x256xf32, #tpu.memory_space<vmem>>, vector<1x1x16xf32>
      %54 = vector.shape_cast %53 : vector<1x1x16xf32> to vector<1x16xf32>
      %cst_44 = arith.constant 2.500000e-01 : f32
      %55 = vector.broadcast %cst_44 : f32 to vector<1x16xf32>
      %56 = arith.mulf %54, %55 : vector<1x16xf32>
      %c0_45 = arith.constant 0 : index
      %c4 = arith.constant 4 : index
      %c3_46 = arith.constant 3 : index
      %57 = vector.load %arg8[%c0_45, %c4, %c3_46] : memref<2x24x256xf32, #tpu.memory_space<vmem>>, vector<1x1x16xf32>
      %58 = vector.shape_cast %57 : vector<1x1x16xf32> to vector<1x16xf32>
      %59 = vector.shape_cast %56 : vector<1x16xf32> to vector<1x1x16xf32>
      tpu.vector_store %arg8[%c0_45, %c4, %c3_46], %59 {strides = array<i32>} : memref<2x24x256xf32, #tpu.memory_space<vmem>>, vector<1x1x16xf32>,
      %c0_47 = arith.constant 0 : index
      %c0_48 = arith.constant 0 : index
      %c32_49 = arith.constant 32 : index
      %60 = vector.load %arg6[%c0_47, %c0_48, %c32_49] : memref<1x1x256xf32, #tpu.memory_space<vmem>>, vector<1x1x16xf32>
      %61 = vector.shape_cast %60 : vector<1x1x16xf32> to vector<1x16xf32>
      %cst_50 = arith.constant 2.500000e-01 : f32
      %62 = vector.broadcast %cst_50 : f32 to vector<1x16xf32>
      %63 = arith.mulf %61, %62 : vector<1x16xf32>
      %c0_51 = arith.constant 0 : index
      %c5 = arith.constant 5 : index
      %c3_52 = arith.constant 3 : index
      %64 = vector.load %arg8[%c0_51, %c5, %c3_52] : memref<2x24x256xf32, #tpu.memory_space<vmem>>, vector<1x1x16xf32>
      %65 = vector.shape_cast %64 : vector<1x1x16xf32> to vector<1x16xf32>
      %66 = vector.shape_cast %63 : vector<1x16xf32> to vector<1x1x16xf32>
      tpu.vector_store %arg8[%c0_51, %c5, %c3_52], %66 {strides = array<i32>} : memref<2x24x256xf32, #tpu.memory_space<vmem>>, vector<1x1x16xf32>,
      %c0_53 = arith.constant 0 : index
      %c0_54 = arith.constant 0 : index
      %c48_55 = arith.constant 48 : index
      %67 = vector.load %arg6[%c0_53, %c0_54, %c48_55] : memref<1x1x256xf32, #tpu.memory_space<vmem>>, vector<1x1x16xf32>
      %68 = vector.shape_cast %67 : vector<1x1x16xf32> to vector<1x16xf32>
      %cst_56 = arith.constant 2.500000e-01 : f32
      %69 = vector.broadcast %cst_56 : f32 to vector<1x16xf32>
      %70 = arith.mulf %68, %69 : vector<1x16xf32>
      %c0_57 = arith.constant 0 : index
      %c6 = arith.constant 6 : index
      %c3_58 = arith.constant 3 : index
      %71 = vector.load %arg8[%c0_57, %c6, %c3_58] : memref<2x24x256xf32, #tpu.memory_space<vmem>>, vector<1x1x16xf32>
      %72 = vector.shape_cast %71 : vector<1x1x16xf32> to vector<1x16xf32>
      %73 = vector.shape_cast %70 : vector<1x16xf32> to vector<1x1x16xf32>
      tpu.vector_store %arg8[%c0_57, %c6, %c3_58], %73 {strides = array<i32>} : memref<2x24x256xf32, #tpu.memory_space<vmem>>, vector<1x1x16xf32>,
      %c0_59 = arith.constant 0 : index
      %c0_60 = arith.constant 0 : index
      %c64 = arith.constant 64 : index
      %74 = vector.load %arg6[%c0_59, %c0_60, %c64] : memref<1x1x256xf32, #tpu.memory_space<vmem>>, vector<1x1x16xf32>
      %75 = vector.shape_cast %74 : vector<1x1x16xf32> to vector<1x16xf32>
      %cst_61 = arith.constant 2.500000e-01 : f32
      %76 = vector.broadcast %cst_61 : f32 to vector<1x16xf32>
      %77 = arith.mulf %75, %76 : vector<1x16xf32>
      %c0_62 = arith.constant 0 : index
      %c7 = arith.constant 7 : index
      %c3_63 = arith.constant 3 : index
      %78 = vector.load %arg8[%c0_62, %c7, %c3_63] : memref<2x24x256xf32, #tpu.memory_space<vmem>>, vector<1x1x16xf32>
      %79 = vector.shape_cast %78 : vector<1x1x16xf32> to vector<1x16xf32>
      %80 = vector.shape_cast %77 : vector<1x16xf32> to vector<1x1x16xf32>
      tpu.vector_store %arg8[%c0_62, %c7, %c3_63], %80 {strides = array<i32>} : memref<2x24x256xf32, #tpu.memory_space<vmem>>, vector<1x1x16xf32>,
      %c0_64 = arith.constant 0 : index
      %c0_65 = arith.constant 0 : index
      %c80 = arith.constant 80 : index
      %81 = vector.load %arg6[%c0_64, %c0_65, %c80] : memref<1x1x256xf32, #tpu.memory_space<vmem>>, vector<1x1x16xf32>
      %82 = vector.shape_cast %81 : vector<1x1x16xf32> to vector<1x16xf32>
      %cst_66 = arith.constant 2.500000e-01 : f32
      %83 = vector.broadcast %cst_66 : f32 to vector<1x16xf32>
      %84 = arith.mulf %82, %83 : vector<1x16xf32>
      %c0_67 = arith.constant 0 : index
      %c8 = arith.constant 8 : index
      %c3_68 = arith.constant 3 : index
      %85 = vector.load %arg8[%c0_67, %c8, %c3_68] : memref<2x24x256xf32, #tpu.memory_space<vmem>>, vector<1x1x16xf32>
      %86 = vector.shape_cast %85 : vector<1x1x16xf32> to vector<1x16xf32>
      %87 = vector.shape_cast %84 : vector<1x16xf32> to vector<1x1x16xf32>
      tpu.vector_store %arg8[%c0_67, %c8, %c3_68], %87 {strides = array<i32>} : memref<2x24x256xf32, #tpu.memory_space<vmem>>, vector<1x1x16xf32>,
      %c0_69 = arith.constant 0 : index
      %c0_70 = arith.constant 0 : index
      %c96 = arith.constant 96 : index
      %88 = vector.load %arg6[%c0_69, %c0_70, %c96] : memref<1x1x256xf32, #tpu.memory_space<vmem>>, vector<1x1x16xf32>
      %89 = vector.shape_cast %88 : vector<1x1x16xf32> to vector<1x16xf32>
      %cst_71 = arith.constant 2.500000e-01 : f32
      %90 = vector.broadcast %cst_71 : f32 to vector<1x16xf32>
      %91 = arith.mulf %89, %90 : vector<1x16xf32>
      %c0_72 = arith.constant 0 : index
      %c9 = arith.constant 9 : index
      %c3_73 = arith.constant 3 : index
      %92 = vector.load %arg8[%c0_72, %c9, %c3_73] : memref<2x24x256xf32, #tpu.memory_space<vmem>>, vector<1x1x16xf32>
      %93 = vector.shape_cast %92 : vector<1x1x16xf32> to vector<1x16xf32>
      %94 = vector.shape_cast %91 : vector<1x16xf32> to vector<1x1x16xf32>
      tpu.vector_store %arg8[%c0_72, %c9, %c3_73], %94 {strides = array<i32>} : memref<2x24x256xf32, #tpu.memory_space<vmem>>, vector<1x1x16xf32>,
      %c0_74 = arith.constant 0 : index
      %c0_75 = arith.constant 0 : index
      %c112 = arith.constant 112 : index
      %95 = vector.load %arg6[%c0_74, %c0_75, %c112] : memref<1x1x256xf32, #tpu.memory_space<vmem>>, vector<1x1x16xf32>
      %96 = vector.shape_cast %95 : vector<1x1x16xf32> to vector<1x16xf32>
      %cst_76 = arith.constant 2.500000e-01 : f32
      %97 = vector.broadcast %cst_76 : f32 to vector<1x16xf32>
      %98 = arith.mulf %96, %97 : vector<1x16xf32>
      %c0_77 = arith.constant 0 : index
      %c10 = arith.constant 10 : index
      %c3_78 = arith.constant 3 : index
      %99 = vector.load %arg8[%c0_77, %c10, %c3_78] : memref<2x24x256xf32, #tpu.memory_space<vmem>>, vector<1x1x16xf32>
      %100 = vector.shape_cast %99 : vector<1x1x16xf32> to vector<1x16xf32>
      %101 = vector.shape_cast %98 : vector<1x16xf32> to vector<1x1x16xf32>
      tpu.vector_store %arg8[%c0_77, %c10, %c3_78], %101 {strides = array<i32>} : memref<2x24x256xf32, #tpu.memory_space<vmem>>, vector<1x1x16xf32>,
      %c0_79 = arith.constant 0 : index
      %c0_80 = arith.constant 0 : index
      %c128 = arith.constant 128 : index
      %102 = vector.load %arg6[%c0_79, %c0_80, %c128] : memref<1x1x256xf32, #tpu.memory_space<vmem>>, vector<1x1x16xf32>
      %103 = vector.shape_cast %102 : vector<1x1x16xf32> to vector<1x16xf32>
      %cst_81 = arith.constant 2.500000e-01 : f32
      %104 = vector.broadcast %cst_81 : f32 to vector<1x16xf32>
      %105 = arith.mulf %103, %104 : vector<1x16xf32>
      %c0_82 = arith.constant 0 : index
      %c11 = arith.constant 11 : index
      %c3_83 = arith.constant 3 : index
      %106 = vector.load %arg8[%c0_82, %c11, %c3_83] : memref<2x24x256xf32, #tpu.memory_space<vmem>>, vector<1x1x16xf32>
      %107 = vector.shape_cast %106 : vector<1x1x16xf32> to vector<1x16xf32>
      %108 = vector.shape_cast %105 : vector<1x16xf32> to vector<1x1x16xf32>
      tpu.vector_store %arg8[%c0_82, %c11, %c3_83], %108 {strides = array<i32>} : memref<2x24x256xf32, #tpu.memory_space<vmem>>, vector<1x1x16xf32>,
      %c0_84 = arith.constant 0 : index
      %c0_85 = arith.constant 0 : index
      %c144 = arith.constant 144 : index
      %109 = vector.load %arg6[%c0_84, %c0_85, %c144] : memref<1x1x256xf32, #tpu.memory_space<vmem>>, vector<1x1x16xf32>
      %110 = vector.shape_cast %109 : vector<1x1x16xf32> to vector<1x16xf32>
      %cst_86 = arith.constant 2.500000e-01 : f32
      %111 = vector.broadcast %cst_86 : f32 to vector<1x16xf32>
      %112 = arith.mulf %110, %111 : vector<1x16xf32>
      %c0_87 = arith.constant 0 : index
      %c12 = arith.constant 12 : index
      %c3_88 = arith.constant 3 : index
      %113 = vector.load %arg8[%c0_87, %c12, %c3_88] : memref<2x24x256xf32, #tpu.memory_space<vmem>>, vector<1x1x16xf32>
      %114 = vector.shape_cast %113 : vector<1x1x16xf32> to vector<1x16xf32>
      %115 = vector.shape_cast %112 : vector<1x16xf32> to vector<1x1x16xf32>
      tpu.vector_store %arg8[%c0_87, %c12, %c3_88], %115 {strides = array<i32>} : memref<2x24x256xf32, #tpu.memory_space<vmem>>, vector<1x1x16xf32>,
      %c0_89 = arith.constant 0 : index
      %c0_90 = arith.constant 0 : index
      %c160 = arith.constant 160 : index
      %116 = vector.load %arg6[%c0_89, %c0_90, %c160] : memref<1x1x256xf32, #tpu.memory_space<vmem>>, vector<1x1x16xf32>
      %117 = vector.shape_cast %116 : vector<1x1x16xf32> to vector<1x16xf32>
      %cst_91 = arith.constant 2.500000e-01 : f32
      %118 = vector.broadcast %cst_91 : f32 to vector<1x16xf32>
      %119 = arith.mulf %117, %118 : vector<1x16xf32>
      %c0_92 = arith.constant 0 : index
      %c13 = arith.constant 13 : index
      %c3_93 = arith.constant 3 : index
      %120 = vector.load %arg8[%c0_92, %c13, %c3_93] : memref<2x24x256xf32, #tpu.memory_space<vmem>>, vector<1x1x16xf32>
      %121 = vector.shape_cast %120 : vector<1x1x16xf32> to vector<1x16xf32>
      %122 = vector.shape_cast %119 : vector<1x16xf32> to vector<1x1x16xf32>
      tpu.vector_store %arg8[%c0_92, %c13, %c3_93], %122 {strides = array<i32>} : memref<2x24x256xf32, #tpu.memory_space<vmem>>, vector<1x1x16xf32>,
      %c0_94 = arith.constant 0 : index
      %c0_95 = arith.constant 0 : index
      %c176 = arith.constant 176 : index
      %123 = vector.load %arg6[%c0_94, %c0_95, %c176] : memref<1x1x256xf32, #tpu.memory_space<vmem>>, vector<1x1x16xf32>
      %124 = vector.shape_cast %123 : vector<1x1x16xf32> to vector<1x16xf32>
      %cst_96 = arith.constant 2.500000e-01 : f32
      %125 = vector.broadcast %cst_96 : f32 to vector<1x16xf32>
      %126 = arith.mulf %124, %125 : vector<1x16xf32>
      %c0_97 = arith.constant 0 : index
      %c14 = arith.constant 14 : index
      %c3_98 = arith.constant 3 : index
      %127 = vector.load %arg8[%c0_97, %c14, %c3_98] : memref<2x24x256xf32, #tpu.memory_space<vmem>>, vector<1x1x16xf32>
      %128 = vector.shape_cast %127 : vector<1x1x16xf32> to vector<1x16xf32>
      %129 = vector.shape_cast %126 : vector<1x16xf32> to vector<1x1x16xf32>
      tpu.vector_store %arg8[%c0_97, %c14, %c3_98], %129 {strides = array<i32>} : memref<2x24x256xf32, #tpu.memory_space<vmem>>, vector<1x1x16xf32>,
      %c0_99 = arith.constant 0 : index
      %c0_100 = arith.constant 0 : index
      %c192 = arith.constant 192 : index
      %130 = vector.load %arg6[%c0_99, %c0_100, %c192] : memref<1x1x256xf32, #tpu.memory_space<vmem>>, vector<1x1x16xf32>
      %131 = vector.shape_cast %130 : vector<1x1x16xf32> to vector<1x16xf32>
      %cst_101 = arith.constant 2.500000e-01 : f32
      %132 = vector.broadcast %cst_101 : f32 to vector<1x16xf32>
      %133 = arith.mulf %131, %132 : vector<1x16xf32>
      %c0_102 = arith.constant 0 : index
      %c15 = arith.constant 15 : index
      %c3_103 = arith.constant 3 : index
      %134 = vector.load %arg8[%c0_102, %c15, %c3_103] : memref<2x24x256xf32, #tpu.memory_space<vmem>>, vector<1x1x16xf32>
      %135 = vector.shape_cast %134 : vector<1x1x16xf32> to vector<1x16xf32>
      %136 = vector.shape_cast %133 : vector<1x16xf32> to vector<1x1x16xf32>
      tpu.vector_store %arg8[%c0_102, %c15, %c3_103], %136 {strides = array<i32>} : memref<2x24x256xf32, #tpu.memory_space<vmem>>, vector<1x1x16xf32>,
      %c0_104 = arith.constant 0 : index
      %c0_105 = arith.constant 0 : index
      %c208 = arith.constant 208 : index
      %137 = vector.load %arg6[%c0_104, %c0_105, %c208] : memref<1x1x256xf32, #tpu.memory_space<vmem>>, vector<1x1x16xf32>
      %138 = vector.shape_cast %137 : vector<1x1x16xf32> to vector<1x16xf32>
      %cst_106 = arith.constant 2.500000e-01 : f32
      %139 = vector.broadcast %cst_106 : f32 to vector<1x16xf32>
      %140 = arith.mulf %138, %139 : vector<1x16xf32>
      %c0_107 = arith.constant 0 : index
      %c16_108 = arith.constant 16 : index
      %c3_109 = arith.constant 3 : index
      %141 = vector.load %arg8[%c0_107, %c16_108, %c3_109] : memref<2x24x256xf32, #tpu.memory_space<vmem>>, vector<1x1x16xf32>
      %142 = vector.shape_cast %141 : vector<1x1x16xf32> to vector<1x16xf32>
      %143 = vector.shape_cast %140 : vector<1x16xf32> to vector<1x1x16xf32>
      tpu.vector_store %arg8[%c0_107, %c16_108, %c3_109], %143 {strides = array<i32>} : memref<2x24x256xf32, #tpu.memory_space<vmem>>, vector<1x1x16xf32>,
      %c0_110 = arith.constant 0 : index
      %c0_111 = arith.constant 0 : index
      %c224 = arith.constant 224 : index
      %144 = vector.load %arg6[%c0_110, %c0_111, %c224] : memref<1x1x256xf32, #tpu.memory_space<vmem>>, vector<1x1x16xf32>
      %145 = vector.shape_cast %144 : vector<1x1x16xf32> to vector<1x16xf32>
      %cst_112 = arith.constant 2.500000e-01 : f32
      %146 = vector.broadcast %cst_112 : f32 to vector<1x16xf32>
      %147 = arith.mulf %145, %146 : vector<1x16xf32>
      %c0_113 = arith.constant 0 : index
      %c17 = arith.constant 17 : index
      %c3_114 = arith.constant 3 : index
      %148 = vector.load %arg8[%c0_113, %c17, %c3_114] : memref<2x24x256xf32, #tpu.memory_space<vmem>>, vector<1x1x16xf32>
      %149 = vector.shape_cast %148 : vector<1x1x16xf32> to vector<1x16xf32>
      %150 = vector.shape_cast %147 : vector<1x16xf32> to vector<1x1x16xf32>
      tpu.vector_store %arg8[%c0_113, %c17, %c3_114], %150 {strides = array<i32>} : memref<2x24x256xf32, #tpu.memory_space<vmem>>, vector<1x1x16xf32>,
      %c0_115 = arith.constant 0 : index
      %c0_116 = arith.constant 0 : index
      %c240 = arith.constant 240 : index
      %151 = vector.load %arg6[%c0_115, %c0_116, %c240] : memref<1x1x256xf32, #tpu.memory_space<vmem>>, vector<1x1x16xf32>
      %152 = vector.shape_cast %151 : vector<1x1x16xf32> to vector<1x16xf32>
      %cst_117 = arith.constant 2.500000e-01 : f32
      %153 = vector.broadcast %cst_117 : f32 to vector<1x16xf32>
      %154 = arith.mulf %152, %153 : vector<1x16xf32>
      %c0_118 = arith.constant 0 : index
      %c18 = arith.constant 18 : index
      %c3_119 = arith.constant 3 : index
      %155 = vector.load %arg8[%c0_118, %c18, %c3_119] : memref<2x24x256xf32, #tpu.memory_space<vmem>>, vector<1x1x16xf32>
      %156 = vector.shape_cast %155 : vector<1x1x16xf32> to vector<1x16xf32>
      %157 = vector.shape_cast %154 : vector<1x16xf32> to vector<1x1x16xf32>
      tpu.vector_store %arg8[%c0_118, %c18, %c3_119], %157 {strides = array<i32>} : memref<2x24x256xf32, #tpu.memory_space<vmem>>, vector<1x1x16xf32>,
      %c0_120 = arith.constant 0 : index
      %c0_121 = arith.constant 0 : index
      %c224_122 = arith.constant 224 : index
      %158 = vector.load %arg6[%c0_120, %c0_121, %c224_122] : memref<1x1x256xf32, #tpu.memory_space<vmem>>, vector<1x1x16xf32>
      %159 = vector.shape_cast %158 : vector<1x1x16xf32> to vector<1x16xf32>
      %cst_123 = arith.constant 2.500000e-01 : f32
      %160 = vector.broadcast %cst_123 : f32 to vector<1x16xf32>
      %161 = arith.mulf %159, %160 : vector<1x16xf32>
      %c0_124 = arith.constant 0 : index
      %c19 = arith.constant 19 : index
      %c3_125 = arith.constant 3 : index
      %162 = vector.load %arg8[%c0_124, %c19, %c3_125] : memref<2x24x256xf32, #tpu.memory_space<vmem>>, vector<1x1x16xf32>
      %163 = vector.shape_cast %162 : vector<1x1x16xf32> to vector<1x16xf32>
      %164 = vector.shape_cast %161 : vector<1x16xf32> to vector<1x1x16xf32>
      tpu.vector_store %arg8[%c0_124, %c19, %c3_125], %164 {strides = array<i32>} : memref<2x24x256xf32, #tpu.memory_space<vmem>>, vector<1x1x16xf32>,
      %c0_126 = arith.constant 0 : index
      %c0_127 = arith.constant 0 : index
      %c208_128 = arith.constant 208 : index
      %165 = vector.load %arg6[%c0_126, %c0_127, %c208_128] : memref<1x1x256xf32, #tpu.memory_space<vmem>>, vector<1x1x16xf32>
      %166 = vector.shape_cast %165 : vector<1x1x16xf32> to vector<1x16xf32>
      %cst_129 = arith.constant 2.500000e-01 : f32
      %167 = vector.broadcast %cst_129 : f32 to vector<1x16xf32>
      %168 = arith.mulf %166, %167 : vector<1x16xf32>
      %c0_130 = arith.constant 0 : index
      %c20 = arith.constant 20 : index
      %c3_131 = arith.constant 3 : index
      %169 = vector.load %arg8[%c0_130, %c20, %c3_131] : memref<2x24x256xf32, #tpu.memory_space<vmem>>, vector<1x1x16xf32>
      %170 = vector.shape_cast %169 : vector<1x1x16xf32> to vector<1x16xf32>
      %171 = vector.shape_cast %168 : vector<1x16xf32> to vector<1x1x16xf32>
      tpu.vector_store %arg8[%c0_130, %c20, %c3_131], %171 {strides = array<i32>} : memref<2x24x256xf32, #tpu.memory_space<vmem>>, vector<1x1x16xf32>,
      %c0_132 = arith.constant 0 : index
      %c0_133 = arith.constant 0 : index
      %c192_134 = arith.constant 192 : index
      %172 = vector.load %arg6[%c0_132, %c0_133, %c192_134] : memref<1x1x256xf32, #tpu.memory_space<vmem>>, vector<1x1x16xf32>
      %173 = vector.shape_cast %172 : vector<1x1x16xf32> to vector<1x16xf32>
      %cst_135 = arith.constant 2.500000e-01 : f32
      %174 = vector.broadcast %cst_135 : f32 to vector<1x16xf32>
      %175 = arith.mulf %173, %174 : vector<1x16xf32>
      %c0_136 = arith.constant 0 : index
      %c21 = arith.constant 21 : index
      %c3_137 = arith.constant 3 : index
      %176 = vector.load %arg8[%c0_136, %c21, %c3_137] : memref<2x24x256xf32, #tpu.memory_space<vmem>>, vector<1x1x16xf32>
      %177 = vector.shape_cast %176 : vector<1x1x16xf32> to vector<1x16xf32>
      %178 = vector.shape_cast %175 : vector<1x16xf32> to vector<1x1x16xf32>
      tpu.vector_store %arg8[%c0_136, %c21, %c3_137], %178 {strides = array<i32>} : memref<2x24x256xf32, #tpu.memory_space<vmem>>, vector<1x1x16xf32>,
      %c0_138 = arith.constant 0 : index
      %c0_139 = arith.constant 0 : index
      %c6_140 = arith.constant 6 : index
      %179 = vector.load %arg8[%c0_138, %c0_139, %c6_140] : memref<2x24x256xf32, #tpu.memory_space<vmem>>, vector<1x22x1xf32>
      %180 = vector.shape_cast %179 : vector<1x22x1xf32> to vector<22x1xf32>
      %c0_141 = arith.constant 0 : index
      %c0_142 = arith.constant 0 : index
      %c0_143 = arith.constant 0 : index
      %181 = vector.load %arg8[%c0_141, %c0_142, %c0_143] : memref<2x24x256xf32, #tpu.memory_space<vmem>>, vector<1x22x1xf32>
      %182 = vector.shape_cast %181 : vector<1x22x1xf32> to vector<22x1xf32>
      %183 = vector.shape_cast %180 : vector<22x1xf32> to vector<1x22x1xf32>
      tpu.vector_store %arg8[%c0_141, %c0_142, %c0_143], %183 {strides = array<i32>} : memref<2x24x256xf32, #tpu.memory_space<vmem>>, vector<1x22x1xf32>,
      %c0_144 = arith.constant 0 : index
      %c0_145 = arith.constant 0 : index
      %c17_146 = arith.constant 17 : index
      %184 = vector.load %arg8[%c0_144, %c0_145, %c17_146] : memref<2x24x256xf32, #tpu.memory_space<vmem>>, vector<1x22x1xf32>
      %185 = vector.shape_cast %184 : vector<1x22x1xf32> to vector<22x1xf32>
      %c0_147 = arith.constant 0 : index
      %c0_148 = arith.constant 0 : index
      %c19_149 = arith.constant 19 : index
      %186 = vector.load %arg8[%c0_147, %c0_148, %c19_149] : memref<2x24x256xf32, #tpu.memory_space<vmem>>, vector<1x22x1xf32>
      %187 = vector.shape_cast %186 : vector<1x22x1xf32> to vector<22x1xf32>
      %188 = vector.shape_cast %185 : vector<22x1xf32> to vector<1x22x1xf32>
      tpu.vector_store %arg8[%c0_147, %c0_148, %c19_149], %188 {strides = array<i32>} : memref<2x24x256xf32, #tpu.memory_space<vmem>>, vector<1x22x1xf32>,
      %c0_150 = arith.constant 0 : index
      %c0_151 = arith.constant 0 : index
      %c5_152 = arith.constant 5 : index
      %189 = vector.load %arg8[%c0_150, %c0_151, %c5_152] : memref<2x24x256xf32, #tpu.memory_space<vmem>>, vector<1x22x1xf32>
      %190 = vector.shape_cast %189 : vector<1x22x1xf32> to vector<22x1xf32>
      %c0_153 = arith.constant 0 : index
      %c0_154 = arith.constant 0 : index
      %c1_155 = arith.constant 1 : index
      %191 = vector.load %arg8[%c0_153, %c0_154, %c1_155] : memref<2x24x256xf32, #tpu.memory_space<vmem>>, vector<1x22x1xf32>
      %192 = vector.shape_cast %191 : vector<1x22x1xf32> to vector<22x1xf32>
      %193 = vector.shape_cast %190 : vector<22x1xf32> to vector<1x22x1xf32>
      tpu.vector_store %arg8[%c0_153, %c0_154, %c1_155], %193 {strides = array<i32>} : memref<2x24x256xf32, #tpu.memory_space<vmem>>, vector<1x22x1xf32>,
      %c0_156 = arith.constant 0 : index
      %c0_157 = arith.constant 0 : index
      %c16_158 = arith.constant 16 : index
      %194 = vector.load %arg8[%c0_156, %c0_157, %c16_158] : memref<2x24x256xf32, #tpu.memory_space<vmem>>, vector<1x22x1xf32>
      %195 = vector.shape_cast %194 : vector<1x22x1xf32> to vector<22x1xf32>
      %c0_159 = arith.constant 0 : index
      %c0_160 = arith.constant 0 : index
      %c20_161 = arith.constant 20 : index
      %196 = vector.load %arg8[%c0_159, %c0_160, %c20_161] : memref<2x24x256xf32, #tpu.memory_space<vmem>>, vector<1x22x1xf32>
      %197 = vector.shape_cast %196 : vector<1x22x1xf32> to vector<22x1xf32>
      %198 = vector.shape_cast %195 : vector<22x1xf32> to vector<1x22x1xf32>
      tpu.vector_store %arg8[%c0_159, %c0_160, %c20_161], %198 {strides = array<i32>} : memref<2x24x256xf32, #tpu.memory_space<vmem>>, vector<1x22x1xf32>,
      %c0_162 = arith.constant 0 : index
      %c0_163 = arith.constant 0 : index
      %c4_164 = arith.constant 4 : index
      %199 = vector.load %arg8[%c0_162, %c0_163, %c4_164] : memref<2x24x256xf32, #tpu.memory_space<vmem>>, vector<1x22x1xf32>
      %200 = vector.shape_cast %199 : vector<1x22x1xf32> to vector<22x1xf32>
      %c0_165 = arith.constant 0 : index
      %c0_166 = arith.constant 0 : index
      %c2_167 = arith.constant 2 : index
      %201 = vector.load %arg8[%c0_165, %c0_166, %c2_167] : memref<2x24x256xf32, #tpu.memory_space<vmem>>, vector<1x22x1xf32>
      %202 = vector.shape_cast %201 : vector<1x22x1xf32> to vector<22x1xf32>
      %203 = vector.shape_cast %200 : vector<22x1xf32> to vector<1x22x1xf32>
      tpu.vector_store %arg8[%c0_165, %c0_166, %c2_167], %203 {strides = array<i32>} : memref<2x24x256xf32, #tpu.memory_space<vmem>>, vector<1x22x1xf32>,
      %c0_168 = arith.constant 0 : index
      %c0_169 = arith.constant 0 : index
      %c15_170 = arith.constant 15 : index
      %204 = vector.load %arg8[%c0_168, %c0_169, %c15_170] : memref<2x24x256xf32, #tpu.memory_space<vmem>>, vector<1x22x1xf32>
      %205 = vector.shape_cast %204 : vector<1x22x1xf32> to vector<22x1xf32>
      %c0_171 = arith.constant 0 : index
      %c0_172 = arith.constant 0 : index
      %c21_173 = arith.constant 21 : index
      %206 = vector.load %arg8[%c0_171, %c0_172, %c21_173] : memref<2x24x256xf32, #tpu.memory_space<vmem>>, vector<1x22x1xf32>
      %207 = vector.shape_cast %206 : vector<1x22x1xf32> to vector<22x1xf32>
      %208 = vector.shape_cast %205 : vector<22x1xf32> to vector<1x22x1xf32>
      tpu.vector_store %arg8[%c0_171, %c0_172, %c21_173], %208 {strides = array<i32>} : memref<2x24x256xf32, #tpu.memory_space<vmem>>, vector<1x22x1xf32>,
      %c0_174 = arith.constant 0 : index
      %c0_175 = arith.constant 0 : index
      %c48_176 = arith.constant 48 : index
      %209 = vector.load %arg7[%c0_174, %c0_175, %c48_176] : memref<1x1x256xf32, #tpu.memory_space<vmem>>, vector<1x1x16xf32>
      %210 = vector.shape_cast %209 : vector<1x1x16xf32> to vector<1x16xf32>
      %c1_177 = arith.constant 1 : index
      %c0_178 = arith.constant 0 : index
      %c3_179 = arith.constant 3 : index
      %211 = vector.load %arg8[%c1_177, %c0_178, %c3_179] : memref<2x24x256xf32, #tpu.memory_space<vmem>>, vector<1x1x16xf32>
      %212 = vector.shape_cast %211 : vector<1x1x16xf32> to vector<1x16xf32>
      %213 = vector.shape_cast %210 : vector<1x16xf32> to vector<1x1x16xf32>
      tpu.vector_store %arg8[%c1_177, %c0_178, %c3_179], %213 {strides = array<i32>} : memref<2x24x256xf32, #tpu.memory_space<vmem>>, vector<1x1x16xf32>,
      %c0_180 = arith.constant 0 : index
      %c0_181 = arith.constant 0 : index
      %c32_182 = arith.constant 32 : index
      %214 = vector.load %arg7[%c0_180, %c0_181, %c32_182] : memref<1x1x256xf32, #tpu.memory_space<vmem>>, vector<1x1x16xf32>
      %215 = vector.shape_cast %214 : vector<1x1x16xf32> to vector<1x16xf32>
      %c1_183 = arith.constant 1 : index
      %c1_184 = arith.constant 1 : index
      %c3_185 = arith.constant 3 : index
      %216 = vector.load %arg8[%c1_183, %c1_184, %c3_185] : memref<2x24x256xf32, #tpu.memory_space<vmem>>, vector<1x1x16xf32>
      %217 = vector.shape_cast %216 : vector<1x1x16xf32> to vector<1x16xf32>
      %218 = vector.shape_cast %215 : vector<1x16xf32> to vector<1x1x16xf32>
      tpu.vector_store %arg8[%c1_183, %c1_184, %c3_185], %218 {strides = array<i32>} : memref<2x24x256xf32, #tpu.memory_space<vmem>>, vector<1x1x16xf32>,
      %c0_186 = arith.constant 0 : index
      %c0_187 = arith.constant 0 : index
      %c16_188 = arith.constant 16 : index
      %219 = vector.load %arg7[%c0_186, %c0_187, %c16_188] : memref<1x1x256xf32, #tpu.memory_space<vmem>>, vector<1x1x16xf32>
      %220 = vector.shape_cast %219 : vector<1x1x16xf32> to vector<1x16xf32>
      %c1_189 = arith.constant 1 : index
      %c2_190 = arith.constant 2 : index
      %c3_191 = arith.constant 3 : index
      %221 = vector.load %arg8[%c1_189, %c2_190, %c3_191] : memref<2x24x256xf32, #tpu.memory_space<vmem>>, vector<1x1x16xf32>
      %222 = vector.shape_cast %221 : vector<1x1x16xf32> to vector<1x16xf32>
      %223 = vector.shape_cast %220 : vector<1x16xf32> to vector<1x1x16xf32>
      tpu.vector_store %arg8[%c1_189, %c2_190, %c3_191], %223 {strides = array<i32>} : memref<2x24x256xf32, #tpu.memory_space<vmem>>, vector<1x1x16xf32>,
      %c0_192 = arith.constant 0 : index
      %c0_193 = arith.constant 0 : index
      %c0_194 = arith.constant 0 : index
      %224 = vector.load %arg7[%c0_192, %c0_193, %c0_194] : memref<1x1x256xf32, #tpu.memory_space<vmem>>, vector<1x1x16xf32>
      %225 = vector.shape_cast %224 : vector<1x1x16xf32> to vector<1x16xf32>
      %c1_195 = arith.constant 1 : index
      %c3_196 = arith.constant 3 : index
      %c3_197 = arith.constant 3 : index
      %226 = vector.load %arg8[%c1_195, %c3_196, %c3_197] : memref<2x24x256xf32, #tpu.memory_space<vmem>>, vector<1x1x16xf32>
      %227 = vector.shape_cast %226 : vector<1x1x16xf32> to vector<1x16xf32>
      %228 = vector.shape_cast %225 : vector<1x16xf32> to vector<1x1x16xf32>
      tpu.vector_store %arg8[%c1_195, %c3_196, %c3_197], %228 {strides = array<i32>} : memref<2x24x256xf32, #tpu.memory_space<vmem>>, vector<1x1x16xf32>,
      %c0_198 = arith.constant 0 : index
      %c0_199 = arith.constant 0 : index
      %c16_200 = arith.constant 16 : index
      %229 = vector.load %arg7[%c0_198, %c0_199, %c16_200] : memref<1x1x256xf32, #tpu.memory_space<vmem>>, vector<1x1x16xf32>
      %230 = vector.shape_cast %229 : vector<1x1x16xf32> to vector<1x16xf32>
      %c1_201 = arith.constant 1 : index
      %c4_202 = arith.constant 4 : index
      %c3_203 = arith.constant 3 : index
      %231 = vector.load %arg8[%c1_201, %c4_202, %c3_203] : memref<2x24x256xf32, #tpu.memory_space<vmem>>, vector<1x1x16xf32>
      %232 = vector.shape_cast %231 : vector<1x1x16xf32> to vector<1x16xf32>
      %233 = vector.shape_cast %230 : vector<1x16xf32> to vector<1x1x16xf32>
      tpu.vector_store %arg8[%c1_201, %c4_202, %c3_203], %233 {strides = array<i32>} : memref<2x24x256xf32, #tpu.memory_space<vmem>>, vector<1x1x16xf32>,
      %c0_204 = arith.constant 0 : index
      %c0_205 = arith.constant 0 : index
      %c32_206 = arith.constant 32 : index
      %234 = vector.load %arg7[%c0_204, %c0_205, %c32_206] : memref<1x1x256xf32, #tpu.memory_space<vmem>>, vector<1x1x16xf32>
      %235 = vector.shape_cast %234 : vector<1x1x16xf32> to vector<1x16xf32>
      %c1_207 = arith.constant 1 : index
      %c5_208 = arith.constant 5 : index
      %c3_209 = arith.constant 3 : index
      %236 = vector.load %arg8[%c1_207, %c5_208, %c3_209] : memref<2x24x256xf32, #tpu.memory_space<vmem>>, vector<1x1x16xf32>
      %237 = vector.shape_cast %236 : vector<1x1x16xf32> to vector<1x16xf32>
      %238 = vector.shape_cast %235 : vector<1x16xf32> to vector<1x1x16xf32>
      tpu.vector_store %arg8[%c1_207, %c5_208, %c3_209], %238 {strides = array<i32>} : memref<2x24x256xf32, #tpu.memory_space<vmem>>, vector<1x1x16xf32>,
      %c0_210 = arith.constant 0 : index
      %c0_211 = arith.constant 0 : index
      %c48_212 = arith.constant 48 : index
      %239 = vector.load %arg7[%c0_210, %c0_211, %c48_212] : memref<1x1x256xf32, #tpu.memory_space<vmem>>, vector<1x1x16xf32>
      %240 = vector.shape_cast %239 : vector<1x1x16xf32> to vector<1x16xf32>
      %c1_213 = arith.constant 1 : index
      %c6_214 = arith.constant 6 : index
      %c3_215 = arith.constant 3 : index
      %241 = vector.load %arg8[%c1_213, %c6_214, %c3_215] : memref<2x24x256xf32, #tpu.memory_space<vmem>>, vector<1x1x16xf32>
      %242 = vector.shape_cast %241 : vector<1x1x16xf32> to vector<1x16xf32>
      %243 = vector.shape_cast %240 : vector<1x16xf32> to vector<1x1x16xf32>
      tpu.vector_store %arg8[%c1_213, %c6_214, %c3_215], %243 {strides = array<i32>} : memref<2x24x256xf32, #tpu.memory_space<vmem>>, vector<1x1x16xf32>,
      %c0_216 = arith.constant 0 : index
      %c0_217 = arith.constant 0 : index
      %c64_218 = arith.constant 64 : index
      %244 = vector.load %arg7[%c0_216, %c0_217, %c64_218] : memref<1x1x256xf32, #tpu.memory_space<vmem>>, vector<1x1x16xf32>
      %245 = vector.shape_cast %244 : vector<1x1x16xf32> to vector<1x16xf32>
      %c1_219 = arith.constant 1 : index
      %c7_220 = arith.constant 7 : index
      %c3_221 = arith.constant 3 : index
      %246 = vector.load %arg8[%c1_219, %c7_220, %c3_221] : memref<2x24x256xf32, #tpu.memory_space<vmem>>, vector<1x1x16xf32>
      %247 = vector.shape_cast %246 : vector<1x1x16xf32> to vector<1x16xf32>
      %248 = vector.shape_cast %245 : vector<1x16xf32> to vector<1x1x16xf32>
      tpu.vector_store %arg8[%c1_219, %c7_220, %c3_221], %248 {strides = array<i32>} : memref<2x24x256xf32, #tpu.memory_space<vmem>>, vector<1x1x16xf32>,
      %c0_222 = arith.constant 0 : index
      %c0_223 = arith.constant 0 : index
      %c80_224 = arith.constant 80 : index
      %249 = vector.load %arg7[%c0_222, %c0_223, %c80_224] : memref<1x1x256xf32, #tpu.memory_space<vmem>>, vector<1x1x16xf32>
      %250 = vector.shape_cast %249 : vector<1x1x16xf32> to vector<1x16xf32>
      %c1_225 = arith.constant 1 : index
      %c8_226 = arith.constant 8 : index
      %c3_227 = arith.constant 3 : index
      %251 = vector.load %arg8[%c1_225, %c8_226, %c3_227] : memref<2x24x256xf32, #tpu.memory_space<vmem>>, vector<1x1x16xf32>
      %252 = vector.shape_cast %251 : vector<1x1x16xf32> to vector<1x16xf32>
      %253 = vector.shape_cast %250 : vector<1x16xf32> to vector<1x1x16xf32>
      tpu.vector_store %arg8[%c1_225, %c8_226, %c3_227], %253 {strides = array<i32>} : memref<2x24x256xf32, #tpu.memory_space<vmem>>, vector<1x1x16xf32>,
      %c0_228 = arith.constant 0 : index
      %c0_229 = arith.constant 0 : index
      %c96_230 = arith.constant 96 : index
      %254 = vector.load %arg7[%c0_228, %c0_229, %c96_230] : memref<1x1x256xf32, #tpu.memory_space<vmem>>, vector<1x1x16xf32>
      %255 = vector.shape_cast %254 : vector<1x1x16xf32> to vector<1x16xf32>
      %c1_231 = arith.constant 1 : index
      %c9_232 = arith.constant 9 : index
      %c3_233 = arith.constant 3 : index
      %256 = vector.load %arg8[%c1_231, %c9_232, %c3_233] : memref<2x24x256xf32, #tpu.memory_space<vmem>>, vector<1x1x16xf32>
      %257 = vector.shape_cast %256 : vector<1x1x16xf32> to vector<1x16xf32>
      %258 = vector.shape_cast %255 : vector<1x16xf32> to vector<1x1x16xf32>
      tpu.vector_store %arg8[%c1_231, %c9_232, %c3_233], %258 {strides = array<i32>} : memref<2x24x256xf32, #tpu.memory_space<vmem>>, vector<1x1x16xf32>,
      %c0_234 = arith.constant 0 : index
      %c0_235 = arith.constant 0 : index
      %c112_236 = arith.constant 112 : index
      %259 = vector.load %arg7[%c0_234, %c0_235, %c112_236] : memref<1x1x256xf32, #tpu.memory_space<vmem>>, vector<1x1x16xf32>
      %260 = vector.shape_cast %259 : vector<1x1x16xf32> to vector<1x16xf32>
      %c1_237 = arith.constant 1 : index
      %c10_238 = arith.constant 10 : index
      %c3_239 = arith.constant 3 : index
      %261 = vector.load %arg8[%c1_237, %c10_238, %c3_239] : memref<2x24x256xf32, #tpu.memory_space<vmem>>, vector<1x1x16xf32>
      %262 = vector.shape_cast %261 : vector<1x1x16xf32> to vector<1x16xf32>
      %263 = vector.shape_cast %260 : vector<1x16xf32> to vector<1x1x16xf32>
      tpu.vector_store %arg8[%c1_237, %c10_238, %c3_239], %263 {strides = array<i32>} : memref<2x24x256xf32, #tpu.memory_space<vmem>>, vector<1x1x16xf32>,
      %c0_240 = arith.constant 0 : index
      %c0_241 = arith.constant 0 : index
      %c128_242 = arith.constant 128 : index
      %264 = vector.load %arg7[%c0_240, %c0_241, %c128_242] : memref<1x1x256xf32, #tpu.memory_space<vmem>>, vector<1x1x16xf32>
      %265 = vector.shape_cast %264 : vector<1x1x16xf32> to vector<1x16xf32>
      %c1_243 = arith.constant 1 : index
      %c11_244 = arith.constant 11 : index
      %c3_245 = arith.constant 3 : index
      %266 = vector.load %arg8[%c1_243, %c11_244, %c3_245] : memref<2x24x256xf32, #tpu.memory_space<vmem>>, vector<1x1x16xf32>
      %267 = vector.shape_cast %266 : vector<1x1x16xf32> to vector<1x16xf32>
      %268 = vector.shape_cast %265 : vector<1x16xf32> to vector<1x1x16xf32>
      tpu.vector_store %arg8[%c1_243, %c11_244, %c3_245], %268 {strides = array<i32>} : memref<2x24x256xf32, #tpu.memory_space<vmem>>, vector<1x1x16xf32>,
      %c0_246 = arith.constant 0 : index
      %c0_247 = arith.constant 0 : index
      %c144_248 = arith.constant 144 : index
      %269 = vector.load %arg7[%c0_246, %c0_247, %c144_248] : memref<1x1x256xf32, #tpu.memory_space<vmem>>, vector<1x1x16xf32>
      %270 = vector.shape_cast %269 : vector<1x1x16xf32> to vector<1x16xf32>
      %c1_249 = arith.constant 1 : index
      %c12_250 = arith.constant 12 : index
      %c3_251 = arith.constant 3 : index
      %271 = vector.load %arg8[%c1_249, %c12_250, %c3_251] : memref<2x24x256xf32, #tpu.memory_space<vmem>>, vector<1x1x16xf32>
      %272 = vector.shape_cast %271 : vector<1x1x16xf32> to vector<1x16xf32>
      %273 = vector.shape_cast %270 : vector<1x16xf32> to vector<1x1x16xf32>
      tpu.vector_store %arg8[%c1_249, %c12_250, %c3_251], %273 {strides = array<i32>} : memref<2x24x256xf32, #tpu.memory_space<vmem>>, vector<1x1x16xf32>,
      %c0_252 = arith.constant 0 : index
      %c0_253 = arith.constant 0 : index
      %c160_254 = arith.constant 160 : index
      %274 = vector.load %arg7[%c0_252, %c0_253, %c160_254] : memref<1x1x256xf32, #tpu.memory_space<vmem>>, vector<1x1x16xf32>
      %275 = vector.shape_cast %274 : vector<1x1x16xf32> to vector<1x16xf32>
      %c1_255 = arith.constant 1 : index
      %c13_256 = arith.constant 13 : index
      %c3_257 = arith.constant 3 : index
      %276 = vector.load %arg8[%c1_255, %c13_256, %c3_257] : memref<2x24x256xf32, #tpu.memory_space<vmem>>, vector<1x1x16xf32>
      %277 = vector.shape_cast %276 : vector<1x1x16xf32> to vector<1x16xf32>
      %278 = vector.shape_cast %275 : vector<1x16xf32> to vector<1x1x16xf32>
      tpu.vector_store %arg8[%c1_255, %c13_256, %c3_257], %278 {strides = array<i32>} : memref<2x24x256xf32, #tpu.memory_space<vmem>>, vector<1x1x16xf32>,
      %c0_258 = arith.constant 0 : index
      %c0_259 = arith.constant 0 : index
      %c176_260 = arith.constant 176 : index
      %279 = vector.load %arg7[%c0_258, %c0_259, %c176_260] : memref<1x1x256xf32, #tpu.memory_space<vmem>>, vector<1x1x16xf32>
      %280 = vector.shape_cast %279 : vector<1x1x16xf32> to vector<1x16xf32>
      %c1_261 = arith.constant 1 : index
      %c14_262 = arith.constant 14 : index
      %c3_263 = arith.constant 3 : index
      %281 = vector.load %arg8[%c1_261, %c14_262, %c3_263] : memref<2x24x256xf32, #tpu.memory_space<vmem>>, vector<1x1x16xf32>
      %282 = vector.shape_cast %281 : vector<1x1x16xf32> to vector<1x16xf32>
      %283 = vector.shape_cast %280 : vector<1x16xf32> to vector<1x1x16xf32>
      tpu.vector_store %arg8[%c1_261, %c14_262, %c3_263], %283 {strides = array<i32>} : memref<2x24x256xf32, #tpu.memory_space<vmem>>, vector<1x1x16xf32>,
      %c0_264 = arith.constant 0 : index
      %c0_265 = arith.constant 0 : index
      %c192_266 = arith.constant 192 : index
      %284 = vector.load %arg7[%c0_264, %c0_265, %c192_266] : memref<1x1x256xf32, #tpu.memory_space<vmem>>, vector<1x1x16xf32>
      %285 = vector.shape_cast %284 : vector<1x1x16xf32> to vector<1x16xf32>
      %c1_267 = arith.constant 1 : index
      %c15_268 = arith.constant 15 : index
      %c3_269 = arith.constant 3 : index
      %286 = vector.load %arg8[%c1_267, %c15_268, %c3_269] : memref<2x24x256xf32, #tpu.memory_space<vmem>>, vector<1x1x16xf32>
      %287 = vector.shape_cast %286 : vector<1x1x16xf32> to vector<1x16xf32>
      %288 = vector.shape_cast %285 : vector<1x16xf32> to vector<1x1x16xf32>
      tpu.vector_store %arg8[%c1_267, %c15_268, %c3_269], %288 {strides = array<i32>} : memref<2x24x256xf32, #tpu.memory_space<vmem>>, vector<1x1x16xf32>,
      %c0_270 = arith.constant 0 : index
      %c0_271 = arith.constant 0 : index
      %c208_272 = arith.constant 208 : index
      %289 = vector.load %arg7[%c0_270, %c0_271, %c208_272] : memref<1x1x256xf32, #tpu.memory_space<vmem>>, vector<1x1x16xf32>
      %290 = vector.shape_cast %289 : vector<1x1x16xf32> to vector<1x16xf32>
      %c1_273 = arith.constant 1 : index
      %c16_274 = arith.constant 16 : index
      %c3_275 = arith.constant 3 : index
      %291 = vector.load %arg8[%c1_273, %c16_274, %c3_275] : memref<2x24x256xf32, #tpu.memory_space<vmem>>, vector<1x1x16xf32>
      %292 = vector.shape_cast %291 : vector<1x1x16xf32> to vector<1x16xf32>
      %293 = vector.shape_cast %290 : vector<1x16xf32> to vector<1x1x16xf32>
      tpu.vector_store %arg8[%c1_273, %c16_274, %c3_275], %293 {strides = array<i32>} : memref<2x24x256xf32, #tpu.memory_space<vmem>>, vector<1x1x16xf32>,
      %c0_276 = arith.constant 0 : index
      %c0_277 = arith.constant 0 : index
      %c224_278 = arith.constant 224 : index
      %294 = vector.load %arg7[%c0_276, %c0_277, %c224_278] : memref<1x1x256xf32, #tpu.memory_space<vmem>>, vector<1x1x16xf32>
      %295 = vector.shape_cast %294 : vector<1x1x16xf32> to vector<1x16xf32>
      %c1_279 = arith.constant 1 : index
      %c17_280 = arith.constant 17 : index
      %c3_281 = arith.constant 3 : index
      %296 = vector.load %arg8[%c1_279, %c17_280, %c3_281] : memref<2x24x256xf32, #tpu.memory_space<vmem>>, vector<1x1x16xf32>
      %297 = vector.shape_cast %296 : vector<1x1x16xf32> to vector<1x16xf32>
      %298 = vector.shape_cast %295 : vector<1x16xf32> to vector<1x1x16xf32>
      tpu.vector_store %arg8[%c1_279, %c17_280, %c3_281], %298 {strides = array<i32>} : memref<2x24x256xf32, #tpu.memory_space<vmem>>, vector<1x1x16xf32>,
      %c0_282 = arith.constant 0 : index
      %c0_283 = arith.constant 0 : index
      %c240_284 = arith.constant 240 : index
      %299 = vector.load %arg7[%c0_282, %c0_283, %c240_284] : memref<1x1x256xf32, #tpu.memory_space<vmem>>, vector<1x1x16xf32>
      %300 = vector.shape_cast %299 : vector<1x1x16xf32> to vector<1x16xf32>
      %c1_285 = arith.constant 1 : index
      %c18_286 = arith.constant 18 : index
      %c3_287 = arith.constant 3 : index
      %301 = vector.load %arg8[%c1_285, %c18_286, %c3_287] : memref<2x24x256xf32, #tpu.memory_space<vmem>>, vector<1x1x16xf32>
      %302 = vector.shape_cast %301 : vector<1x1x16xf32> to vector<1x16xf32>
      %303 = vector.shape_cast %300 : vector<1x16xf32> to vector<1x1x16xf32>
      tpu.vector_store %arg8[%c1_285, %c18_286, %c3_287], %303 {strides = array<i32>} : memref<2x24x256xf32, #tpu.memory_space<vmem>>, vector<1x1x16xf32>,
      %c0_288 = arith.constant 0 : index
      %c0_289 = arith.constant 0 : index
      %c224_290 = arith.constant 224 : index
      %304 = vector.load %arg7[%c0_288, %c0_289, %c224_290] : memref<1x1x256xf32, #tpu.memory_space<vmem>>, vector<1x1x16xf32>
      %305 = vector.shape_cast %304 : vector<1x1x16xf32> to vector<1x16xf32>
      %c1_291 = arith.constant 1 : index
      %c19_292 = arith.constant 19 : index
      %c3_293 = arith.constant 3 : index
      %306 = vector.load %arg8[%c1_291, %c19_292, %c3_293] : memref<2x24x256xf32, #tpu.memory_space<vmem>>, vector<1x1x16xf32>
      %307 = vector.shape_cast %306 : vector<1x1x16xf32> to vector<1x16xf32>
      %308 = vector.shape_cast %305 : vector<1x16xf32> to vector<1x1x16xf32>
      tpu.vector_store %arg8[%c1_291, %c19_292, %c3_293], %308 {strides = array<i32>} : memref<2x24x256xf32, #tpu.memory_space<vmem>>, vector<1x1x16xf32>,
      %c0_294 = arith.constant 0 : index
      %c0_295 = arith.constant 0 : index
      %c208_296 = arith.constant 208 : index
      %309 = vector.load %arg7[%c0_294, %c0_295, %c208_296] : memref<1x1x256xf32, #tpu.memory_space<vmem>>, vector<1x1x16xf32>
      %310 = vector.shape_cast %309 : vector<1x1x16xf32> to vector<1x16xf32>
      %c1_297 = arith.constant 1 : index
      %c20_298 = arith.constant 20 : index
      %c3_299 = arith.constant 3 : index
      %311 = vector.load %arg8[%c1_297, %c20_298, %c3_299] : memref<2x24x256xf32, #tpu.memory_space<vmem>>, vector<1x1x16xf32>
      %312 = vector.shape_cast %311 : vector<1x1x16xf32> to vector<1x16xf32>
      %313 = vector.shape_cast %310 : vector<1x16xf32> to vector<1x1x16xf32>
      tpu.vector_store %arg8[%c1_297, %c20_298, %c3_299], %313 {strides = array<i32>} : memref<2x24x256xf32, #tpu.memory_space<vmem>>, vector<1x1x16xf32>,
      %c0_300 = arith.constant 0 : index
      %c0_301 = arith.constant 0 : index
      %c192_302 = arith.constant 192 : index
      %314 = vector.load %arg7[%c0_300, %c0_301, %c192_302] : memref<1x1x256xf32, #tpu.memory_space<vmem>>, vector<1x1x16xf32>
      %315 = vector.shape_cast %314 : vector<1x1x16xf32> to vector<1x16xf32>
      %c1_303 = arith.constant 1 : index
      %c21_304 = arith.constant 21 : index
      %c3_305 = arith.constant 3 : index
      %316 = vector.load %arg8[%c1_303, %c21_304, %c3_305] : memref<2x24x256xf32, #tpu.memory_space<vmem>>, vector<1x1x16xf32>
      %317 = vector.shape_cast %316 : vector<1x1x16xf32> to vector<1x16xf32>
      %318 = vector.shape_cast %315 : vector<1x16xf32> to vector<1x1x16xf32>
      tpu.vector_store %arg8[%c1_303, %c21_304, %c3_305], %318 {strides = array<i32>} : memref<2x24x256xf32, #tpu.memory_space<vmem>>, vector<1x1x16xf32>,
      %c1_306 = arith.constant 1 : index
      %c0_307 = arith.constant 0 : index
      %c6_308 = arith.constant 6 : index
      %319 = vector.load %arg8[%c1_306, %c0_307, %c6_308] : memref<2x24x256xf32, #tpu.memory_space<vmem>>, vector<1x22x1xf32>
      %320 = vector.shape_cast %319 : vector<1x22x1xf32> to vector<22x1xf32>
      %c1_309 = arith.constant 1 : index
      %c0_310 = arith.constant 0 : index
      %c0_311 = arith.constant 0 : index
      %321 = vector.load %arg8[%c1_309, %c0_310, %c0_311] : memref<2x24x256xf32, #tpu.memory_space<vmem>>, vector<1x22x1xf32>
      %322 = vector.shape_cast %321 : vector<1x22x1xf32> to vector<22x1xf32>
      %323 = vector.shape_cast %320 : vector<22x1xf32> to vector<1x22x1xf32>
      tpu.vector_store %arg8[%c1_309, %c0_310, %c0_311], %323 {strides = array<i32>} : memref<2x24x256xf32, #tpu.memory_space<vmem>>, vector<1x22x1xf32>,
      %c1_312 = arith.constant 1 : index
      %c0_313 = arith.constant 0 : index
      %c17_314 = arith.constant 17 : index
      %324 = vector.load %arg8[%c1_312, %c0_313, %c17_314] : memref<2x24x256xf32, #tpu.memory_space<vmem>>, vector<1x22x1xf32>
      %325 = vector.shape_cast %324 : vector<1x22x1xf32> to vector<22x1xf32>
      %c1_315 = arith.constant 1 : index
      %c0_316 = arith.constant 0 : index
      %c19_317 = arith.constant 19 : index
      %326 = vector.load %arg8[%c1_315, %c0_316, %c19_317] : memref<2x24x256xf32, #tpu.memory_space<vmem>>, vector<1x22x1xf32>
      %327 = vector.shape_cast %326 : vector<1x22x1xf32> to vector<22x1xf32>
      %328 = vector.shape_cast %325 : vector<22x1xf32> to vector<1x22x1xf32>
      tpu.vector_store %arg8[%c1_315, %c0_316, %c19_317], %328 {strides = array<i32>} : memref<2x24x256xf32, #tpu.memory_space<vmem>>, vector<1x22x1xf32>,
      %c1_318 = arith.constant 1 : index
      %c0_319 = arith.constant 0 : index
      %c5_320 = arith.constant 5 : index
      %329 = vector.load %arg8[%c1_318, %c0_319, %c5_320] : memref<2x24x256xf32, #tpu.memory_space<vmem>>, vector<1x22x1xf32>
      %330 = vector.shape_cast %329 : vector<1x22x1xf32> to vector<22x1xf32>
      %c1_321 = arith.constant 1 : index
      %c0_322 = arith.constant 0 : index
      %c1_323 = arith.constant 1 : index
      %331 = vector.load %arg8[%c1_321, %c0_322, %c1_323] : memref<2x24x256xf32, #tpu.memory_space<vmem>>, vector<1x22x1xf32>
      %332 = vector.shape_cast %331 : vector<1x22x1xf32> to vector<22x1xf32>
      %333 = vector.shape_cast %330 : vector<22x1xf32> to vector<1x22x1xf32>
      tpu.vector_store %arg8[%c1_321, %c0_322, %c1_323], %333 {strides = array<i32>} : memref<2x24x256xf32, #tpu.memory_space<vmem>>, vector<1x22x1xf32>,
      %c1_324 = arith.constant 1 : index
      %c0_325 = arith.constant 0 : index
      %c16_326 = arith.constant 16 : index
      %334 = vector.load %arg8[%c1_324, %c0_325, %c16_326] : memref<2x24x256xf32, #tpu.memory_space<vmem>>, vector<1x22x1xf32>
      %335 = vector.shape_cast %334 : vector<1x22x1xf32> to vector<22x1xf32>
      %c1_327 = arith.constant 1 : index
      %c0_328 = arith.constant 0 : index
      %c20_329 = arith.constant 20 : index
      %336 = vector.load %arg8[%c1_327, %c0_328, %c20_329] : memref<2x24x256xf32, #tpu.memory_space<vmem>>, vector<1x22x1xf32>
      %337 = vector.shape_cast %336 : vector<1x22x1xf32> to vector<22x1xf32>
      %338 = vector.shape_cast %335 : vector<22x1xf32> to vector<1x22x1xf32>
      tpu.vector_store %arg8[%c1_327, %c0_328, %c20_329], %338 {strides = array<i32>} : memref<2x24x256xf32, #tpu.memory_space<vmem>>, vector<1x22x1xf32>,
      %c1_330 = arith.constant 1 : index
      %c0_331 = arith.constant 0 : index
      %c4_332 = arith.constant 4 : index
      %339 = vector.load %arg8[%c1_330, %c0_331, %c4_332] : memref<2x24x256xf32, #tpu.memory_space<vmem>>, vector<1x22x1xf32>
      %340 = vector.shape_cast %339 : vector<1x22x1xf32> to vector<22x1xf32>
      %c1_333 = arith.constant 1 : index
      %c0_334 = arith.constant 0 : index
      %c2_335 = arith.constant 2 : index
      %341 = vector.load %arg8[%c1_333, %c0_334, %c2_335] : memref<2x24x256xf32, #tpu.memory_space<vmem>>, vector<1x22x1xf32>
      %342 = vector.shape_cast %341 : vector<1x22x1xf32> to vector<22x1xf32>
      %343 = vector.shape_cast %340 : vector<22x1xf32> to vector<1x22x1xf32>
      tpu.vector_store %arg8[%c1_333, %c0_334, %c2_335], %343 {strides = array<i32>} : memref<2x24x256xf32, #tpu.memory_space<vmem>>, vector<1x22x1xf32>,
      %c1_336 = arith.constant 1 : index
      %c0_337 = arith.constant 0 : index
      %c15_338 = arith.constant 15 : index
      %344 = vector.load %arg8[%c1_336, %c0_337, %c15_338] : memref<2x24x256xf32, #tpu.memory_space<vmem>>, vector<1x22x1xf32>
      %345 = vector.shape_cast %344 : vector<1x22x1xf32> to vector<22x1xf32>
      %c1_339 = arith.constant 1 : index
      %c0_340 = arith.constant 0 : index
      %c21_341 = arith.constant 21 : index
      %346 = vector.load %arg8[%c1_339, %c0_340, %c21_341] : memref<2x24x256xf32, #tpu.memory_space<vmem>>, vector<1x22x1xf32>
      %347 = vector.shape_cast %346 : vector<1x22x1xf32> to vector<22x1xf32>
      %348 = vector.shape_cast %345 : vector<22x1xf32> to vector<1x22x1xf32>
      tpu.vector_store %arg8[%c1_339, %c0_340, %c21_341], %348 {strides = array<i32>} : memref<2x24x256xf32, #tpu.memory_space<vmem>>, vector<1x22x1xf32>,
      %c0_342 = arith.constant 0 : index
      %c0_343 = arith.constant 0 : index
      %c0_344 = arith.constant 0 : index
      %349 = vector.load %arg8[%c0_342, %c0_343, %c0_344] : memref<2x24x256xf32, #tpu.memory_space<vmem>>, vector<1x22x128xf32>
      %350 = vector.shape_cast %349 : vector<1x22x128xf32> to vector<22x128xf32>
      %c0_345 = arith.constant 0 : index
      %351 = memref.load %arg3[%c0_345] : memref<98xf32, #tpu.memory_space<smem>>
      %352 = vector.extract_strided_slice %350 {offsets = [0, 0], sizes = [16, 128], strides = [1, 1]} : vector<22x128xf32> to vector<16x128xf32>
      %353 = vector.broadcast %351 : f32 to vector<16x128xf32>
      %354 = arith.mulf %353, %352 : vector<16x128xf32>
      %c7_346 = arith.constant 7 : index
      %355 = memref.load %arg3[%c7_346] : memref<98xf32, #tpu.memory_space<smem>>
      %356 = vector.extract_strided_slice %350 {offsets = [1, 0], sizes = [16, 128], strides = [1, 1]} : vector<22x128xf32> to vector<16x128xf32>
      %357 = vector.broadcast %355 : f32 to vector<16x128xf32>
      %358 = arith.mulf %357, %356 : vector<16x128xf32>
      %c14_347 = arith.constant 14 : index
      %359 = memref.load %arg3[%c14_347] : memref<98xf32, #tpu.memory_space<smem>>
      %360 = vector.extract_strided_slice %350 {offsets = [2, 0], sizes = [16, 128], strides = [1, 1]} : vector<22x128xf32> to vector<16x128xf32>
      %361 = vector.broadcast %359 : f32 to vector<16x128xf32>
      %362 = arith.mulf %361, %360 : vector<16x128xf32>
      %c21_348 = arith.constant 21 : index
      %363 = memref.load %arg3[%c21_348] : memref<98xf32, #tpu.memory_space<smem>>
      %364 = vector.extract_strided_slice %350 {offsets = [3, 0], sizes = [16, 128], strides = [1, 1]} : vector<22x128xf32> to vector<16x128xf32>
      %365 = vector.broadcast %363 : f32 to vector<16x128xf32>
      %366 = arith.mulf %365, %364 : vector<16x128xf32>
      %c28 = arith.constant 28 : index
      %367 = memref.load %arg3[%c28] : memref<98xf32, #tpu.memory_space<smem>>
      %368 = vector.extract_strided_slice %350 {offsets = [4, 0], sizes = [16, 128], strides = [1, 1]} : vector<22x128xf32> to vector<16x128xf32>
      %369 = vector.broadcast %367 : f32 to vector<16x128xf32>
      %370 = arith.mulf %369, %368 : vector<16x128xf32>
      %371 = arith.addf %354, %370 : vector<16x128xf32>
      %c35 = arith.constant 35 : index
      %372 = memref.load %arg3[%c35] : memref<98xf32, #tpu.memory_space<smem>>
      %373 = vector.extract_strided_slice %350 {offsets = [5, 0], sizes = [16, 128], strides = [1, 1]} : vector<22x128xf32> to vector<16x128xf32>
      %374 = vector.broadcast %372 : f32 to vector<16x128xf32>
      %375 = arith.mulf %374, %373 : vector<16x128xf32>
      %376 = arith.addf %358, %375 : vector<16x128xf32>
      %c42 = arith.constant 42 : index
      %377 = memref.load %arg3[%c42] : memref<98xf32, #tpu.memory_space<smem>>
      %378 = vector.extract_strided_slice %350 {offsets = [6, 0], sizes = [16, 128], strides = [1, 1]} : vector<22x128xf32> to vector<16x128xf32>
      %379 = vector.broadcast %377 : f32 to vector<16x128xf32>
      %380 = arith.mulf %379, %378 : vector<16x128xf32>
      %381 = arith.addf %362, %380 : vector<16x128xf32>
      %c0_349 = arith.constant 0 : index
      %c0_350 = arith.constant 0 : index
      %c1_351 = arith.constant 1 : index
      %382 = vector.load %arg8[%c0_349, %c0_350, %c1_351] : memref<2x24x256xf32, #tpu.memory_space<vmem>>, vector<1x22x128xf32>
      %383 = vector.shape_cast %382 : vector<1x22x128xf32> to vector<22x128xf32>
      %c1_352 = arith.constant 1 : index
      %384 = memref.load %arg3[%c1_352] : memref<98xf32, #tpu.memory_space<smem>>
      %385 = vector.extract_strided_slice %383 {offsets = [0, 0], sizes = [16, 128], strides = [1, 1]} : vector<22x128xf32> to vector<16x128xf32>
      %386 = vector.broadcast %384 : f32 to vector<16x128xf32>
      %387 = arith.mulf %386, %385 : vector<16x128xf32>
      %388 = arith.addf %366, %387 : vector<16x128xf32>
      %c8_353 = arith.constant 8 : index
      %389 = memref.load %arg3[%c8_353] : memref<98xf32, #tpu.memory_space<smem>>
      %390 = vector.extract_strided_slice %383 {offsets = [1, 0], sizes = [16, 128], strides = [1, 1]} : vector<22x128xf32> to vector<16x128xf32>
      %391 = vector.broadcast %389 : f32 to vector<16x128xf32>
      %392 = arith.mulf %391, %390 : vector<16x128xf32>
      %393 = arith.addf %371, %392 : vector<16x128xf32>
      %c15_354 = arith.constant 15 : index
      %394 = memref.load %arg3[%c15_354] : memref<98xf32, #tpu.memory_space<smem>>
      %395 = vector.extract_strided_slice %383 {offsets = [2, 0], sizes = [16, 128], strides = [1, 1]} : vector<22x128xf32> to vector<16x128xf32>
      %396 = vector.broadcast %394 : f32 to vector<16x128xf32>
      %397 = arith.mulf %396, %395 : vector<16x128xf32>
      %398 = arith.addf %376, %397 : vector<16x128xf32>
      %c22 = arith.constant 22 : index
      %399 = memref.load %arg3[%c22] : memref<98xf32, #tpu.memory_space<smem>>
      %400 = vector.extract_strided_slice %383 {offsets = [3, 0], sizes = [16, 128], strides = [1, 1]} : vector<22x128xf32> to vector<16x128xf32>
      %401 = vector.broadcast %399 : f32 to vector<16x128xf32>
      %402 = arith.mulf %401, %400 : vector<16x128xf32>
      %403 = arith.addf %381, %402 : vector<16x128xf32>
      %c29 = arith.constant 29 : index
      %404 = memref.load %arg3[%c29] : memref<98xf32, #tpu.memory_space<smem>>
      %405 = vector.extract_strided_slice %383 {offsets = [4, 0], sizes = [16, 128], strides = [1, 1]} : vector<22x128xf32> to vector<16x128xf32>
      %406 = vector.broadcast %404 : f32 to vector<16x128xf32>
      %407 = arith.mulf %406, %405 : vector<16x128xf32>
      %408 = arith.addf %388, %407 : vector<16x128xf32>
      %c36 = arith.constant 36 : index
      %409 = memref.load %arg3[%c36] : memref<98xf32, #tpu.memory_space<smem>>
      %410 = vector.extract_strided_slice %383 {offsets = [5, 0], sizes = [16, 128], strides = [1, 1]} : vector<22x128xf32> to vector<16x128xf32>
      %411 = vector.broadcast %409 : f32 to vector<16x128xf32>
      %412 = arith.mulf %411, %410 : vector<16x128xf32>
      %413 = arith.addf %393, %412 : vector<16x128xf32>
      %c43 = arith.constant 43 : index
      %414 = memref.load %arg3[%c43] : memref<98xf32, #tpu.memory_space<smem>>
      %415 = vector.extract_strided_slice %383 {offsets = [6, 0], sizes = [16, 128], strides = [1, 1]} : vector<22x128xf32> to vector<16x128xf32>
      %416 = vector.broadcast %414 : f32 to vector<16x128xf32>
      %417 = arith.mulf %416, %415 : vector<16x128xf32>
      %418 = arith.addf %398, %417 : vector<16x128xf32>
      %c0_355 = arith.constant 0 : index
      %c0_356 = arith.constant 0 : index
      %c2_357 = arith.constant 2 : index
      %419 = vector.load %arg8[%c0_355, %c0_356, %c2_357] : memref<2x24x256xf32, #tpu.memory_space<vmem>>, vector<1x22x128xf32>
      %420 = vector.shape_cast %419 : vector<1x22x128xf32> to vector<22x128xf32>
      %c2_358 = arith.constant 2 : index
      %421 = memref.load %arg3[%c2_358] : memref<98xf32, #tpu.memory_space<smem>>
      %422 = vector.extract_strided_slice %420 {offsets = [0, 0], sizes = [16, 128], strides = [1, 1]} : vector<22x128xf32> to vector<16x128xf32>
      %423 = vector.broadcast %421 : f32 to vector<16x128xf32>
      %424 = arith.mulf %423, %422 : vector<16x128xf32>
      %425 = arith.addf %403, %424 : vector<16x128xf32>
      %c9_359 = arith.constant 9 : index
      %426 = memref.load %arg3[%c9_359] : memref<98xf32, #tpu.memory_space<smem>>
      %427 = vector.extract_strided_slice %420 {offsets = [1, 0], sizes = [16, 128], strides = [1, 1]} : vector<22x128xf32> to vector<16x128xf32>
      %428 = vector.broadcast %426 : f32 to vector<16x128xf32>
      %429 = arith.mulf %428, %427 : vector<16x128xf32>
      %430 = arith.addf %408, %429 : vector<16x128xf32>
      %c16_360 = arith.constant 16 : index
      %431 = memref.load %arg3[%c16_360] : memref<98xf32, #tpu.memory_space<smem>>
      %432 = vector.extract_strided_slice %420 {offsets = [2, 0], sizes = [16, 128], strides = [1, 1]} : vector<22x128xf32> to vector<16x128xf32>
      %433 = vector.broadcast %431 : f32 to vector<16x128xf32>
      %434 = arith.mulf %433, %432 : vector<16x128xf32>
      %435 = arith.addf %413, %434 : vector<16x128xf32>
      %c23 = arith.constant 23 : index
      %436 = memref.load %arg3[%c23] : memref<98xf32, #tpu.memory_space<smem>>
      %437 = vector.extract_strided_slice %420 {offsets = [3, 0], sizes = [16, 128], strides = [1, 1]} : vector<22x128xf32> to vector<16x128xf32>
      %438 = vector.broadcast %436 : f32 to vector<16x128xf32>
      %439 = arith.mulf %438, %437 : vector<16x128xf32>
      %440 = arith.addf %418, %439 : vector<16x128xf32>
      %c30 = arith.constant 30 : index
      %441 = memref.load %arg3[%c30] : memref<98xf32, #tpu.memory_space<smem>>
      %442 = vector.extract_strided_slice %420 {offsets = [4, 0], sizes = [16, 128], strides = [1, 1]} : vector<22x128xf32> to vector<16x128xf32>
      %443 = vector.broadcast %441 : f32 to vector<16x128xf32>
      %444 = arith.mulf %443, %442 : vector<16x128xf32>
      %445 = arith.addf %425, %444 : vector<16x128xf32>
      %c37 = arith.constant 37 : index
      %446 = memref.load %arg3[%c37] : memref<98xf32, #tpu.memory_space<smem>>
      %447 = vector.extract_strided_slice %420 {offsets = [5, 0], sizes = [16, 128], strides = [1, 1]} : vector<22x128xf32> to vector<16x128xf32>
      %448 = vector.broadcast %446 : f32 to vector<16x128xf32>
      %449 = arith.mulf %448, %447 : vector<16x128xf32>
      %450 = arith.addf %430, %449 : vector<16x128xf32>
      %c44 = arith.constant 44 : index
      %451 = memref.load %arg3[%c44] : memref<98xf32, #tpu.memory_space<smem>>
      %452 = vector.extract_strided_slice %420 {offsets = [6, 0], sizes = [16, 128], strides = [1, 1]} : vector<22x128xf32> to vector<16x128xf32>
      %453 = vector.broadcast %451 : f32 to vector<16x128xf32>
      %454 = arith.mulf %453, %452 : vector<16x128xf32>
      %455 = arith.addf %435, %454 : vector<16x128xf32>
      %c0_361 = arith.constant 0 : index
      %c0_362 = arith.constant 0 : index
      %c3_363 = arith.constant 3 : index
      %456 = vector.load %arg8[%c0_361, %c0_362, %c3_363] : memref<2x24x256xf32, #tpu.memory_space<vmem>>, vector<1x22x128xf32>
      %457 = vector.shape_cast %456 : vector<1x22x128xf32> to vector<22x128xf32>
      %c3_364 = arith.constant 3 : index
      %458 = memref.load %arg3[%c3_364] : memref<98xf32, #tpu.memory_space<smem>>
      %459 = vector.extract_strided_slice %457 {offsets = [0, 0], sizes = [16, 128], strides = [1, 1]} : vector<22x128xf32> to vector<16x128xf32>
      %460 = vector.broadcast %458 : f32 to vector<16x128xf32>
      %461 = arith.mulf %460, %459 : vector<16x128xf32>
      %462 = arith.addf %440, %461 : vector<16x128xf32>
      %c10_365 = arith.constant 10 : index
      %463 = memref.load %arg3[%c10_365] : memref<98xf32, #tpu.memory_space<smem>>
      %464 = vector.extract_strided_slice %457 {offsets = [1, 0], sizes = [16, 128], strides = [1, 1]} : vector<22x128xf32> to vector<16x128xf32>
      %465 = vector.broadcast %463 : f32 to vector<16x128xf32>
      %466 = arith.mulf %465, %464 : vector<16x128xf32>
      %467 = arith.addf %445, %466 : vector<16x128xf32>
      %c17_366 = arith.constant 17 : index
      %468 = memref.load %arg3[%c17_366] : memref<98xf32, #tpu.memory_space<smem>>
      %469 = vector.extract_strided_slice %457 {offsets = [2, 0], sizes = [16, 128], strides = [1, 1]} : vector<22x128xf32> to vector<16x128xf32>
      %470 = vector.broadcast %468 : f32 to vector<16x128xf32>
      %471 = arith.mulf %470, %469 : vector<16x128xf32>
      %472 = arith.addf %450, %471 : vector<16x128xf32>
      %c24 = arith.constant 24 : index
      %473 = memref.load %arg3[%c24] : memref<98xf32, #tpu.memory_space<smem>>
      %474 = vector.extract_strided_slice %457 {offsets = [3, 0], sizes = [16, 128], strides = [1, 1]} : vector<22x128xf32> to vector<16x128xf32>
      %475 = vector.broadcast %473 : f32 to vector<16x128xf32>
      %476 = arith.mulf %475, %474 : vector<16x128xf32>
      %477 = arith.addf %455, %476 : vector<16x128xf32>
      %c31 = arith.constant 31 : index
      %478 = memref.load %arg3[%c31] : memref<98xf32, #tpu.memory_space<smem>>
      %479 = vector.extract_strided_slice %457 {offsets = [4, 0], sizes = [16, 128], strides = [1, 1]} : vector<22x128xf32> to vector<16x128xf32>
      %480 = vector.broadcast %478 : f32 to vector<16x128xf32>
      %481 = arith.mulf %480, %479 : vector<16x128xf32>
      %482 = arith.addf %462, %481 : vector<16x128xf32>
      %c38 = arith.constant 38 : index
      %483 = memref.load %arg3[%c38] : memref<98xf32, #tpu.memory_space<smem>>
      %484 = vector.extract_strided_slice %457 {offsets = [5, 0], sizes = [16, 128], strides = [1, 1]} : vector<22x128xf32> to vector<16x128xf32>
      %485 = vector.broadcast %483 : f32 to vector<16x128xf32>
      %486 = arith.mulf %485, %484 : vector<16x128xf32>
      %487 = arith.addf %467, %486 : vector<16x128xf32>
      %c45 = arith.constant 45 : index
      %488 = memref.load %arg3[%c45] : memref<98xf32, #tpu.memory_space<smem>>
      %489 = vector.extract_strided_slice %457 {offsets = [6, 0], sizes = [16, 128], strides = [1, 1]} : vector<22x128xf32> to vector<16x128xf32>
      %490 = vector.broadcast %488 : f32 to vector<16x128xf32>
      %491 = arith.mulf %490, %489 : vector<16x128xf32>
      %492 = arith.addf %472, %491 : vector<16x128xf32>
      %c0_367 = arith.constant 0 : index
      %c0_368 = arith.constant 0 : index
      %c4_369 = arith.constant 4 : index
      %493 = vector.load %arg8[%c0_367, %c0_368, %c4_369] : memref<2x24x256xf32, #tpu.memory_space<vmem>>, vector<1x22x128xf32>
      %494 = vector.shape_cast %493 : vector<1x22x128xf32> to vector<22x128xf32>
      %c4_370 = arith.constant 4 : index
      %495 = memref.load %arg3[%c4_370] : memref<98xf32, #tpu.memory_space<smem>>
      %496 = vector.extract_strided_slice %494 {offsets = [0, 0], sizes = [16, 128], strides = [1, 1]} : vector<22x128xf32> to vector<16x128xf32>
      %497 = vector.broadcast %495 : f32 to vector<16x128xf32>
      %498 = arith.mulf %497, %496 : vector<16x128xf32>
      %499 = arith.addf %477, %498 : vector<16x128xf32>
      %c11_371 = arith.constant 11 : index
      %500 = memref.load %arg3[%c11_371] : memref<98xf32, #tpu.memory_space<smem>>
      %501 = vector.extract_strided_slice %494 {offsets = [1, 0], sizes = [16, 128], strides = [1, 1]} : vector<22x128xf32> to vector<16x128xf32>
      %502 = vector.broadcast %500 : f32 to vector<16x128xf32>
      %503 = arith.mulf %502, %501 : vector<16x128xf32>
      %504 = arith.addf %482, %503 : vector<16x128xf32>
      %c18_372 = arith.constant 18 : index
      %505 = memref.load %arg3[%c18_372] : memref<98xf32, #tpu.memory_space<smem>>
      %506 = vector.extract_strided_slice %494 {offsets = [2, 0], sizes = [16, 128], strides = [1, 1]} : vector<22x128xf32> to vector<16x128xf32>
      %507 = vector.broadcast %505 : f32 to vector<16x128xf32>
      %508 = arith.mulf %507, %506 : vector<16x128xf32>
      %509 = arith.addf %487, %508 : vector<16x128xf32>
      %c25 = arith.constant 25 : index
      %510 = memref.load %arg3[%c25] : memref<98xf32, #tpu.memory_space<smem>>
      %511 = vector.extract_strided_slice %494 {offsets = [3, 0], sizes = [16, 128], strides = [1, 1]} : vector<22x128xf32> to vector<16x128xf32>
      %512 = vector.broadcast %510 : f32 to vector<16x128xf32>
      %513 = arith.mulf %512, %511 : vector<16x128xf32>
      %514 = arith.addf %492, %513 : vector<16x128xf32>
      %c32_373 = arith.constant 32 : index
      %515 = memref.load %arg3[%c32_373] : memref<98xf32, #tpu.memory_space<smem>>
      %516 = vector.extract_strided_slice %494 {offsets = [4, 0], sizes = [16, 128], strides = [1, 1]} : vector<22x128xf32> to vector<16x128xf32>
      %517 = vector.broadcast %515 : f32 to vector<16x128xf32>
      %518 = arith.mulf %517, %516 : vector<16x128xf32>
      %519 = arith.addf %499, %518 : vector<16x128xf32>
      %c39 = arith.constant 39 : index
      %520 = memref.load %arg3[%c39] : memref<98xf32, #tpu.memory_space<smem>>
      %521 = vector.extract_strided_slice %494 {offsets = [5, 0], sizes = [16, 128], strides = [1, 1]} : vector<22x128xf32> to vector<16x128xf32>
      %522 = vector.broadcast %520 : f32 to vector<16x128xf32>
      %523 = arith.mulf %522, %521 : vector<16x128xf32>
      %524 = arith.addf %504, %523 : vector<16x128xf32>
      %c46 = arith.constant 46 : index
      %525 = memref.load %arg3[%c46] : memref<98xf32, #tpu.memory_space<smem>>
      %526 = vector.extract_strided_slice %494 {offsets = [6, 0], sizes = [16, 128], strides = [1, 1]} : vector<22x128xf32> to vector<16x128xf32>
      %527 = vector.broadcast %525 : f32 to vector<16x128xf32>
      %528 = arith.mulf %527, %526 : vector<16x128xf32>
      %529 = arith.addf %509, %528 : vector<16x128xf32>
      %c0_374 = arith.constant 0 : index
      %c0_375 = arith.constant 0 : index
      %c5_376 = arith.constant 5 : index
      %530 = vector.load %arg8[%c0_374, %c0_375, %c5_376] : memref<2x24x256xf32, #tpu.memory_space<vmem>>, vector<1x22x128xf32>
      %531 = vector.shape_cast %530 : vector<1x22x128xf32> to vector<22x128xf32>
      %c5_377 = arith.constant 5 : index
      %532 = memref.load %arg3[%c5_377] : memref<98xf32, #tpu.memory_space<smem>>
      %533 = vector.extract_strided_slice %531 {offsets = [0, 0], sizes = [16, 128], strides = [1, 1]} : vector<22x128xf32> to vector<16x128xf32>
      %534 = vector.broadcast %532 : f32 to vector<16x128xf32>
      %535 = arith.mulf %534, %533 : vector<16x128xf32>
      %536 = arith.addf %514, %535 : vector<16x128xf32>
      %c12_378 = arith.constant 12 : index
      %537 = memref.load %arg3[%c12_378] : memref<98xf32, #tpu.memory_space<smem>>
      %538 = vector.extract_strided_slice %531 {offsets = [1, 0], sizes = [16, 128], strides = [1, 1]} : vector<22x128xf32> to vector<16x128xf32>
      %539 = vector.broadcast %537 : f32 to vector<16x128xf32>
      %540 = arith.mulf %539, %538 : vector<16x128xf32>
      %541 = arith.addf %519, %540 : vector<16x128xf32>
      %c19_379 = arith.constant 19 : index
      %542 = memref.load %arg3[%c19_379] : memref<98xf32, #tpu.memory_space<smem>>
      %543 = vector.extract_strided_slice %531 {offsets = [2, 0], sizes = [16, 128], strides = [1, 1]} : vector<22x128xf32> to vector<16x128xf32>
      %544 = vector.broadcast %542 : f32 to vector<16x128xf32>
      %545 = arith.mulf %544, %543 : vector<16x128xf32>
      %546 = arith.addf %524, %545 : vector<16x128xf32>
      %c26 = arith.constant 26 : index
      %547 = memref.load %arg3[%c26] : memref<98xf32, #tpu.memory_space<smem>>
      %548 = vector.extract_strided_slice %531 {offsets = [3, 0], sizes = [16, 128], strides = [1, 1]} : vector<22x128xf32> to vector<16x128xf32>
      %549 = vector.broadcast %547 : f32 to vector<16x128xf32>
      %550 = arith.mulf %549, %548 : vector<16x128xf32>
      %551 = arith.addf %529, %550 : vector<16x128xf32>
      %c33 = arith.constant 33 : index
      %552 = memref.load %arg3[%c33] : memref<98xf32, #tpu.memory_space<smem>>
      %553 = vector.extract_strided_slice %531 {offsets = [4, 0], sizes = [16, 128], strides = [1, 1]} : vector<22x128xf32> to vector<16x128xf32>
      %554 = vector.broadcast %552 : f32 to vector<16x128xf32>
      %555 = arith.mulf %554, %553 : vector<16x128xf32>
      %556 = arith.addf %536, %555 : vector<16x128xf32>
      %c40 = arith.constant 40 : index
      %557 = memref.load %arg3[%c40] : memref<98xf32, #tpu.memory_space<smem>>
      %558 = vector.extract_strided_slice %531 {offsets = [5, 0], sizes = [16, 128], strides = [1, 1]} : vector<22x128xf32> to vector<16x128xf32>
      %559 = vector.broadcast %557 : f32 to vector<16x128xf32>
      %560 = arith.mulf %559, %558 : vector<16x128xf32>
      %561 = arith.addf %541, %560 : vector<16x128xf32>
      %c47 = arith.constant 47 : index
      %562 = memref.load %arg3[%c47] : memref<98xf32, #tpu.memory_space<smem>>
      %563 = vector.extract_strided_slice %531 {offsets = [6, 0], sizes = [16, 128], strides = [1, 1]} : vector<22x128xf32> to vector<16x128xf32>
      %564 = vector.broadcast %562 : f32 to vector<16x128xf32>
      %565 = arith.mulf %564, %563 : vector<16x128xf32>
      %566 = arith.addf %546, %565 : vector<16x128xf32>
      %c0_380 = arith.constant 0 : index
      %c0_381 = arith.constant 0 : index
      %c6_382 = arith.constant 6 : index
      %567 = vector.load %arg8[%c0_380, %c0_381, %c6_382] : memref<2x24x256xf32, #tpu.memory_space<vmem>>, vector<1x22x128xf32>
      %568 = vector.shape_cast %567 : vector<1x22x128xf32> to vector<22x128xf32>
      %c6_383 = arith.constant 6 : index
      %569 = memref.load %arg3[%c6_383] : memref<98xf32, #tpu.memory_space<smem>>
      %570 = vector.extract_strided_slice %568 {offsets = [0, 0], sizes = [16, 128], strides = [1, 1]} : vector<22x128xf32> to vector<16x128xf32>
      %571 = vector.broadcast %569 : f32 to vector<16x128xf32>
      %572 = arith.mulf %571, %570 : vector<16x128xf32>
      %573 = arith.addf %551, %572 : vector<16x128xf32>
      %c13_384 = arith.constant 13 : index
      %574 = memref.load %arg3[%c13_384] : memref<98xf32, #tpu.memory_space<smem>>
      %575 = vector.extract_strided_slice %568 {offsets = [1, 0], sizes = [16, 128], strides = [1, 1]} : vector<22x128xf32> to vector<16x128xf32>
      %576 = vector.broadcast %574 : f32 to vector<16x128xf32>
      %577 = arith.mulf %576, %575 : vector<16x128xf32>
      %578 = arith.addf %556, %577 : vector<16x128xf32>
      %c20_385 = arith.constant 20 : index
      %579 = memref.load %arg3[%c20_385] : memref<98xf32, #tpu.memory_space<smem>>
      %580 = vector.extract_strided_slice %568 {offsets = [2, 0], sizes = [16, 128], strides = [1, 1]} : vector<22x128xf32> to vector<16x128xf32>
      %581 = vector.broadcast %579 : f32 to vector<16x128xf32>
      %582 = arith.mulf %581, %580 : vector<16x128xf32>
      %583 = arith.addf %561, %582 : vector<16x128xf32>
      %c27 = arith.constant 27 : index
      %584 = memref.load %arg3[%c27] : memref<98xf32, #tpu.memory_space<smem>>
      %585 = vector.extract_strided_slice %568 {offsets = [3, 0], sizes = [16, 128], strides = [1, 1]} : vector<22x128xf32> to vector<16x128xf32>
      %586 = vector.broadcast %584 : f32 to vector<16x128xf32>
      %587 = arith.mulf %586, %585 : vector<16x128xf32>
      %588 = arith.addf %566, %587 : vector<16x128xf32>
      %c34 = arith.constant 34 : index
      %589 = memref.load %arg3[%c34] : memref<98xf32, #tpu.memory_space<smem>>
      %590 = vector.extract_strided_slice %568 {offsets = [4, 0], sizes = [16, 128], strides = [1, 1]} : vector<22x128xf32> to vector<16x128xf32>
      %591 = vector.broadcast %589 : f32 to vector<16x128xf32>
      %592 = arith.mulf %591, %590 : vector<16x128xf32>
      %593 = arith.addf %573, %592 : vector<16x128xf32>
      %c41 = arith.constant 41 : index
      %594 = memref.load %arg3[%c41] : memref<98xf32, #tpu.memory_space<smem>>
      %595 = vector.extract_strided_slice %568 {offsets = [5, 0], sizes = [16, 128], strides = [1, 1]} : vector<22x128xf32> to vector<16x128xf32>
      %596 = vector.broadcast %594 : f32 to vector<16x128xf32>
      %597 = arith.mulf %596, %595 : vector<16x128xf32>
      %598 = arith.addf %578, %597 : vector<16x128xf32>
      %c48_386 = arith.constant 48 : index
      %599 = memref.load %arg3[%c48_386] : memref<98xf32, #tpu.memory_space<smem>>
      %600 = vector.extract_strided_slice %568 {offsets = [6, 0], sizes = [16, 128], strides = [1, 1]} : vector<22x128xf32> to vector<16x128xf32>
      %601 = vector.broadcast %599 : f32 to vector<16x128xf32>
      %602 = arith.mulf %601, %600 : vector<16x128xf32>
      %603 = arith.addf %583, %602 : vector<16x128xf32>
      %c1_387 = arith.constant 1 : index
      %c0_388 = arith.constant 0 : index
      %c0_389 = arith.constant 0 : index
      %604 = vector.load %arg8[%c1_387, %c0_388, %c0_389] : memref<2x24x256xf32, #tpu.memory_space<vmem>>, vector<1x22x128xf32>
      %605 = vector.shape_cast %604 : vector<1x22x128xf32> to vector<22x128xf32>
      %c49 = arith.constant 49 : index
      %606 = memref.load %arg3[%c49] : memref<98xf32, #tpu.memory_space<smem>>
      %607 = vector.extract_strided_slice %605 {offsets = [0, 0], sizes = [16, 128], strides = [1, 1]} : vector<22x128xf32> to vector<16x128xf32>
      %608 = vector.broadcast %606 : f32 to vector<16x128xf32>
      %609 = arith.mulf %608, %607 : vector<16x128xf32>
      %610 = arith.addf %588, %609 : vector<16x128xf32>
      %c56 = arith.constant 56 : index
      %611 = memref.load %arg3[%c56] : memref<98xf32, #tpu.memory_space<smem>>
      %612 = vector.extract_strided_slice %605 {offsets = [1, 0], sizes = [16, 128], strides = [1, 1]} : vector<22x128xf32> to vector<16x128xf32>
      %613 = vector.broadcast %611 : f32 to vector<16x128xf32>
      %614 = arith.mulf %613, %612 : vector<16x128xf32>
      %615 = arith.addf %593, %614 : vector<16x128xf32>
      %c63 = arith.constant 63 : index
      %616 = memref.load %arg3[%c63] : memref<98xf32, #tpu.memory_space<smem>>
      %617 = vector.extract_strided_slice %605 {offsets = [2, 0], sizes = [16, 128], strides = [1, 1]} : vector<22x128xf32> to vector<16x128xf32>
      %618 = vector.broadcast %616 : f32 to vector<16x128xf32>
      %619 = arith.mulf %618, %617 : vector<16x128xf32>
      %620 = arith.addf %598, %619 : vector<16x128xf32>
      %c70 = arith.constant 70 : index
      %621 = memref.load %arg3[%c70] : memref<98xf32, #tpu.memory_space<smem>>
      %622 = vector.extract_strided_slice %605 {offsets = [3, 0], sizes = [16, 128], strides = [1, 1]} : vector<22x128xf32> to vector<16x128xf32>
      %623 = vector.broadcast %621 : f32 to vector<16x128xf32>
      %624 = arith.mulf %623, %622 : vector<16x128xf32>
      %625 = arith.addf %603, %624 : vector<16x128xf32>
      %c77 = arith.constant 77 : index
      %626 = memref.load %arg3[%c77] : memref<98xf32, #tpu.memory_space<smem>>
      %627 = vector.extract_strided_slice %605 {offsets = [4, 0], sizes = [16, 128], strides = [1, 1]} : vector<22x128xf32> to vector<16x128xf32>
      %628 = vector.broadcast %626 : f32 to vector<16x128xf32>
      %629 = arith.mulf %628, %627 : vector<16x128xf32>
      %630 = arith.addf %610, %629 : vector<16x128xf32>
      %c84 = arith.constant 84 : index
      %631 = memref.load %arg3[%c84] : memref<98xf32, #tpu.memory_space<smem>>
      %632 = vector.extract_strided_slice %605 {offsets = [5, 0], sizes = [16, 128], strides = [1, 1]} : vector<22x128xf32> to vector<16x128xf32>
      %633 = vector.broadcast %631 : f32 to vector<16x128xf32>
      %634 = arith.mulf %633, %632 : vector<16x128xf32>
      %635 = arith.addf %615, %634 : vector<16x128xf32>
      %c91 = arith.constant 91 : index
      %636 = memref.load %arg3[%c91] : memref<98xf32, #tpu.memory_space<smem>>
      %637 = vector.extract_strided_slice %605 {offsets = [6, 0], sizes = [16, 128], strides = [1, 1]} : vector<22x128xf32> to vector<16x128xf32>
      %638 = vector.broadcast %636 : f32 to vector<16x128xf32>
      %639 = arith.mulf %638, %637 : vector<16x128xf32>
      %640 = arith.addf %620, %639 : vector<16x128xf32>
      %c1_390 = arith.constant 1 : index
      %c0_391 = arith.constant 0 : index
      %c1_392 = arith.constant 1 : index
      %641 = vector.load %arg8[%c1_390, %c0_391, %c1_392] : memref<2x24x256xf32, #tpu.memory_space<vmem>>, vector<1x22x128xf32>
      %642 = vector.shape_cast %641 : vector<1x22x128xf32> to vector<22x128xf32>
      %c50 = arith.constant 50 : index
      %643 = memref.load %arg3[%c50] : memref<98xf32, #tpu.memory_space<smem>>
      %644 = vector.extract_strided_slice %642 {offsets = [0, 0], sizes = [16, 128], strides = [1, 1]} : vector<22x128xf32> to vector<16x128xf32>
      %645 = vector.broadcast %643 : f32 to vector<16x128xf32>
      %646 = arith.mulf %645, %644 : vector<16x128xf32>
      %647 = arith.addf %625, %646 : vector<16x128xf32>
      %c57 = arith.constant 57 : index
      %648 = memref.load %arg3[%c57] : memref<98xf32, #tpu.memory_space<smem>>
      %649 = vector.extract_strided_slice %642 {offsets = [1, 0], sizes = [16, 128], strides = [1, 1]} : vector<22x128xf32> to vector<16x128xf32>
      %650 = vector.broadcast %648 : f32 to vector<16x128xf32>
      %651 = arith.mulf %650, %649 : vector<16x128xf32>
      %652 = arith.addf %630, %651 : vector<16x128xf32>
      %c64_393 = arith.constant 64 : index
      %653 = memref.load %arg3[%c64_393] : memref<98xf32, #tpu.memory_space<smem>>
      %654 = vector.extract_strided_slice %642 {offsets = [2, 0], sizes = [16, 128], strides = [1, 1]} : vector<22x128xf32> to vector<16x128xf32>
      %655 = vector.broadcast %653 : f32 to vector<16x128xf32>
      %656 = arith.mulf %655, %654 : vector<16x128xf32>
      %657 = arith.addf %635, %656 : vector<16x128xf32>
      %c71 = arith.constant 71 : index
      %658 = memref.load %arg3[%c71] : memref<98xf32, #tpu.memory_space<smem>>
      %659 = vector.extract_strided_slice %642 {offsets = [3, 0], sizes = [16, 128], strides = [1, 1]} : vector<22x128xf32> to vector<16x128xf32>
      %660 = vector.broadcast %658 : f32 to vector<16x128xf32>
      %661 = arith.mulf %660, %659 : vector<16x128xf32>
      %662 = arith.addf %640, %661 : vector<16x128xf32>
      %c78 = arith.constant 78 : index
      %663 = memref.load %arg3[%c78] : memref<98xf32, #tpu.memory_space<smem>>
      %664 = vector.extract_strided_slice %642 {offsets = [4, 0], sizes = [16, 128], strides = [1, 1]} : vector<22x128xf32> to vector<16x128xf32>
      %665 = vector.broadcast %663 : f32 to vector<16x128xf32>
      %666 = arith.mulf %665, %664 : vector<16x128xf32>
      %667 = arith.addf %647, %666 : vector<16x128xf32>
      %c85 = arith.constant 85 : index
      %668 = memref.load %arg3[%c85] : memref<98xf32, #tpu.memory_space<smem>>
      %669 = vector.extract_strided_slice %642 {offsets = [5, 0], sizes = [16, 128], strides = [1, 1]} : vector<22x128xf32> to vector<16x128xf32>
      %670 = vector.broadcast %668 : f32 to vector<16x128xf32>
      %671 = arith.mulf %670, %669 : vector<16x128xf32>
      %672 = arith.addf %652, %671 : vector<16x128xf32>
      %c92 = arith.constant 92 : index
      %673 = memref.load %arg3[%c92] : memref<98xf32, #tpu.memory_space<smem>>
      %674 = vector.extract_strided_slice %642 {offsets = [6, 0], sizes = [16, 128], strides = [1, 1]} : vector<22x128xf32> to vector<16x128xf32>
      %675 = vector.broadcast %673 : f32 to vector<16x128xf32>
      %676 = arith.mulf %675, %674 : vector<16x128xf32>
      %677 = arith.addf %657, %676 : vector<16x128xf32>
      %c1_394 = arith.constant 1 : index
      %c0_395 = arith.constant 0 : index
      %c2_396 = arith.constant 2 : index
      %678 = vector.load %arg8[%c1_394, %c0_395, %c2_396] : memref<2x24x256xf32, #tpu.memory_space<vmem>>, vector<1x22x128xf32>
      %679 = vector.shape_cast %678 : vector<1x22x128xf32> to vector<22x128xf32>
      %c51 = arith.constant 51 : index
      %680 = memref.load %arg3[%c51] : memref<98xf32, #tpu.memory_space<smem>>
      %681 = vector.extract_strided_slice %679 {offsets = [0, 0], sizes = [16, 128], strides = [1, 1]} : vector<22x128xf32> to vector<16x128xf32>
      %682 = vector.broadcast %680 : f32 to vector<16x128xf32>
      %683 = arith.mulf %682, %681 : vector<16x128xf32>
      %684 = arith.addf %662, %683 : vector<16x128xf32>
      %c58 = arith.constant 58 : index
      %685 = memref.load %arg3[%c58] : memref<98xf32, #tpu.memory_space<smem>>
      %686 = vector.extract_strided_slice %679 {offsets = [1, 0], sizes = [16, 128], strides = [1, 1]} : vector<22x128xf32> to vector<16x128xf32>
      %687 = vector.broadcast %685 : f32 to vector<16x128xf32>
      %688 = arith.mulf %687, %686 : vector<16x128xf32>
      %689 = arith.addf %667, %688 : vector<16x128xf32>
      %c65 = arith.constant 65 : index
      %690 = memref.load %arg3[%c65] : memref<98xf32, #tpu.memory_space<smem>>
      %691 = vector.extract_strided_slice %679 {offsets = [2, 0], sizes = [16, 128], strides = [1, 1]} : vector<22x128xf32> to vector<16x128xf32>
      %692 = vector.broadcast %690 : f32 to vector<16x128xf32>
      %693 = arith.mulf %692, %691 : vector<16x128xf32>
      %694 = arith.addf %672, %693 : vector<16x128xf32>
      %c72 = arith.constant 72 : index
      %695 = memref.load %arg3[%c72] : memref<98xf32, #tpu.memory_space<smem>>
      %696 = vector.extract_strided_slice %679 {offsets = [3, 0], sizes = [16, 128], strides = [1, 1]} : vector<22x128xf32> to vector<16x128xf32>
      %697 = vector.broadcast %695 : f32 to vector<16x128xf32>
      %698 = arith.mulf %697, %696 : vector<16x128xf32>
      %699 = arith.addf %677, %698 : vector<16x128xf32>
      %c79 = arith.constant 79 : index
      %700 = memref.load %arg3[%c79] : memref<98xf32, #tpu.memory_space<smem>>
      %701 = vector.extract_strided_slice %679 {offsets = [4, 0], sizes = [16, 128], strides = [1, 1]} : vector<22x128xf32> to vector<16x128xf32>
      %702 = vector.broadcast %700 : f32 to vector<16x128xf32>
      %703 = arith.mulf %702, %701 : vector<16x128xf32>
      %704 = arith.addf %684, %703 : vector<16x128xf32>
      %c86 = arith.constant 86 : index
      %705 = memref.load %arg3[%c86] : memref<98xf32, #tpu.memory_space<smem>>
      %706 = vector.extract_strided_slice %679 {offsets = [5, 0], sizes = [16, 128], strides = [1, 1]} : vector<22x128xf32> to vector<16x128xf32>
      %707 = vector.broadcast %705 : f32 to vector<16x128xf32>
      %708 = arith.mulf %707, %706 : vector<16x128xf32>
      %709 = arith.addf %689, %708 : vector<16x128xf32>
      %c93 = arith.constant 93 : index
      %710 = memref.load %arg3[%c93] : memref<98xf32, #tpu.memory_space<smem>>
      %711 = vector.extract_strided_slice %679 {offsets = [6, 0], sizes = [16, 128], strides = [1, 1]} : vector<22x128xf32> to vector<16x128xf32>
      %712 = vector.broadcast %710 : f32 to vector<16x128xf32>
      %713 = arith.mulf %712, %711 : vector<16x128xf32>
      %714 = arith.addf %694, %713 : vector<16x128xf32>
      %c1_397 = arith.constant 1 : index
      %c0_398 = arith.constant 0 : index
      %c3_399 = arith.constant 3 : index
      %715 = vector.load %arg8[%c1_397, %c0_398, %c3_399] : memref<2x24x256xf32, #tpu.memory_space<vmem>>, vector<1x22x128xf32>
      %716 = vector.shape_cast %715 : vector<1x22x128xf32> to vector<22x128xf32>
      %c52 = arith.constant 52 : index
      %717 = memref.load %arg3[%c52] : memref<98xf32, #tpu.memory_space<smem>>
      %718 = vector.extract_strided_slice %716 {offsets = [0, 0], sizes = [16, 128], strides = [1, 1]} : vector<22x128xf32> to vector<16x128xf32>
      %719 = vector.broadcast %717 : f32 to vector<16x128xf32>
      %720 = arith.mulf %719, %718 : vector<16x128xf32>
      %721 = arith.addf %699, %720 : vector<16x128xf32>
      %c59 = arith.constant 59 : index
      %722 = memref.load %arg3[%c59] : memref<98xf32, #tpu.memory_space<smem>>
      %723 = vector.extract_strided_slice %716 {offsets = [1, 0], sizes = [16, 128], strides = [1, 1]} : vector<22x128xf32> to vector<16x128xf32>
      %724 = vector.broadcast %722 : f32 to vector<16x128xf32>
      %725 = arith.mulf %724, %723 : vector<16x128xf32>
      %726 = arith.addf %704, %725 : vector<16x128xf32>
      %c66 = arith.constant 66 : index
      %727 = memref.load %arg3[%c66] : memref<98xf32, #tpu.memory_space<smem>>
      %728 = vector.extract_strided_slice %716 {offsets = [2, 0], sizes = [16, 128], strides = [1, 1]} : vector<22x128xf32> to vector<16x128xf32>
      %729 = vector.broadcast %727 : f32 to vector<16x128xf32>
      %730 = arith.mulf %729, %728 : vector<16x128xf32>
      %731 = arith.addf %709, %730 : vector<16x128xf32>
      %c73 = arith.constant 73 : index
      %732 = memref.load %arg3[%c73] : memref<98xf32, #tpu.memory_space<smem>>
      %733 = vector.extract_strided_slice %716 {offsets = [3, 0], sizes = [16, 128], strides = [1, 1]} : vector<22x128xf32> to vector<16x128xf32>
      %734 = vector.broadcast %732 : f32 to vector<16x128xf32>
      %735 = arith.mulf %734, %733 : vector<16x128xf32>
      %736 = arith.addf %714, %735 : vector<16x128xf32>
      %c80_400 = arith.constant 80 : index
      %737 = memref.load %arg3[%c80_400] : memref<98xf32, #tpu.memory_space<smem>>
      %738 = vector.extract_strided_slice %716 {offsets = [4, 0], sizes = [16, 128], strides = [1, 1]} : vector<22x128xf32> to vector<16x128xf32>
      %739 = vector.broadcast %737 : f32 to vector<16x128xf32>
      %740 = arith.mulf %739, %738 : vector<16x128xf32>
      %741 = arith.addf %721, %740 : vector<16x128xf32>
      %c87 = arith.constant 87 : index
      %742 = memref.load %arg3[%c87] : memref<98xf32, #tpu.memory_space<smem>>
      %743 = vector.extract_strided_slice %716 {offsets = [5, 0], sizes = [16, 128], strides = [1, 1]} : vector<22x128xf32> to vector<16x128xf32>
      %744 = vector.broadcast %742 : f32 to vector<16x128xf32>
      %745 = arith.mulf %744, %743 : vector<16x128xf32>
      %746 = arith.addf %726, %745 : vector<16x128xf32>
      %c94 = arith.constant 94 : index
      %747 = memref.load %arg3[%c94] : memref<98xf32, #tpu.memory_space<smem>>
      %748 = vector.extract_strided_slice %716 {offsets = [6, 0], sizes = [16, 128], strides = [1, 1]} : vector<22x128xf32> to vector<16x128xf32>
      %749 = vector.broadcast %747 : f32 to vector<16x128xf32>
      %750 = arith.mulf %749, %748 : vector<16x128xf32>
      %751 = arith.addf %731, %750 : vector<16x128xf32>
      %c1_401 = arith.constant 1 : index
      %c0_402 = arith.constant 0 : index
      %c4_403 = arith.constant 4 : index
      %752 = vector.load %arg8[%c1_401, %c0_402, %c4_403] : memref<2x24x256xf32, #tpu.memory_space<vmem>>, vector<1x22x128xf32>
      %753 = vector.shape_cast %752 : vector<1x22x128xf32> to vector<22x128xf32>
      %c53 = arith.constant 53 : index
      %754 = memref.load %arg3[%c53] : memref<98xf32, #tpu.memory_space<smem>>
      %755 = vector.extract_strided_slice %753 {offsets = [0, 0], sizes = [16, 128], strides = [1, 1]} : vector<22x128xf32> to vector<16x128xf32>
      %756 = vector.broadcast %754 : f32 to vector<16x128xf32>
      %757 = arith.mulf %756, %755 : vector<16x128xf32>
      %758 = arith.addf %736, %757 : vector<16x128xf32>
      %c60 = arith.constant 60 : index
      %759 = memref.load %arg3[%c60] : memref<98xf32, #tpu.memory_space<smem>>
      %760 = vector.extract_strided_slice %753 {offsets = [1, 0], sizes = [16, 128], strides = [1, 1]} : vector<22x128xf32> to vector<16x128xf32>
      %761 = vector.broadcast %759 : f32 to vector<16x128xf32>
      %762 = arith.mulf %761, %760 : vector<16x128xf32>
      %763 = arith.addf %741, %762 : vector<16x128xf32>
      %c67 = arith.constant 67 : index
      %764 = memref.load %arg3[%c67] : memref<98xf32, #tpu.memory_space<smem>>
      %765 = vector.extract_strided_slice %753 {offsets = [2, 0], sizes = [16, 128], strides = [1, 1]} : vector<22x128xf32> to vector<16x128xf32>
      %766 = vector.broadcast %764 : f32 to vector<16x128xf32>
      %767 = arith.mulf %766, %765 : vector<16x128xf32>
      %768 = arith.addf %746, %767 : vector<16x128xf32>
      %c74 = arith.constant 74 : index
      %769 = memref.load %arg3[%c74] : memref<98xf32, #tpu.memory_space<smem>>
      %770 = vector.extract_strided_slice %753 {offsets = [3, 0], sizes = [16, 128], strides = [1, 1]} : vector<22x128xf32> to vector<16x128xf32>
      %771 = vector.broadcast %769 : f32 to vector<16x128xf32>
      %772 = arith.mulf %771, %770 : vector<16x128xf32>
      %773 = arith.addf %751, %772 : vector<16x128xf32>
      %c81 = arith.constant 81 : index
      %774 = memref.load %arg3[%c81] : memref<98xf32, #tpu.memory_space<smem>>
      %775 = vector.extract_strided_slice %753 {offsets = [4, 0], sizes = [16, 128], strides = [1, 1]} : vector<22x128xf32> to vector<16x128xf32>
      %776 = vector.broadcast %774 : f32 to vector<16x128xf32>
      %777 = arith.mulf %776, %775 : vector<16x128xf32>
      %778 = arith.addf %758, %777 : vector<16x128xf32>
      %c88 = arith.constant 88 : index
      %779 = memref.load %arg3[%c88] : memref<98xf32, #tpu.memory_space<smem>>
      %780 = vector.extract_strided_slice %753 {offsets = [5, 0], sizes = [16, 128], strides = [1, 1]} : vector<22x128xf32> to vector<16x128xf32>
      %781 = vector.broadcast %779 : f32 to vector<16x128xf32>
      %782 = arith.mulf %781, %780 : vector<16x128xf32>
      %783 = arith.addf %763, %782 : vector<16x128xf32>
      %c95 = arith.constant 95 : index
      %784 = memref.load %arg3[%c95] : memref<98xf32, #tpu.memory_space<smem>>
      %785 = vector.extract_strided_slice %753 {offsets = [6, 0], sizes = [16, 128], strides = [1, 1]} : vector<22x128xf32> to vector<16x128xf32>
      %786 = vector.broadcast %784 : f32 to vector<16x128xf32>
      %787 = arith.mulf %786, %785 : vector<16x128xf32>
      %788 = arith.addf %768, %787 : vector<16x128xf32>
      %c1_404 = arith.constant 1 : index
      %c0_405 = arith.constant 0 : index
      %c5_406 = arith.constant 5 : index
      %789 = vector.load %arg8[%c1_404, %c0_405, %c5_406] : memref<2x24x256xf32, #tpu.memory_space<vmem>>, vector<1x22x128xf32>
      %790 = vector.shape_cast %789 : vector<1x22x128xf32> to vector<22x128xf32>
      %c54 = arith.constant 54 : index
      %791 = memref.load %arg3[%c54] : memref<98xf32, #tpu.memory_space<smem>>
      %792 = vector.extract_strided_slice %790 {offsets = [0, 0], sizes = [16, 128], strides = [1, 1]} : vector<22x128xf32> to vector<16x128xf32>
      %793 = vector.broadcast %791 : f32 to vector<16x128xf32>
      %794 = arith.mulf %793, %792 : vector<16x128xf32>
      %795 = arith.addf %773, %794 : vector<16x128xf32>
      %c61 = arith.constant 61 : index
      %796 = memref.load %arg3[%c61] : memref<98xf32, #tpu.memory_space<smem>>
      %797 = vector.extract_strided_slice %790 {offsets = [1, 0], sizes = [16, 128], strides = [1, 1]} : vector<22x128xf32> to vector<16x128xf32>
      %798 = vector.broadcast %796 : f32 to vector<16x128xf32>
      %799 = arith.mulf %798, %797 : vector<16x128xf32>
      %800 = arith.addf %778, %799 : vector<16x128xf32>
      %c68 = arith.constant 68 : index
      %801 = memref.load %arg3[%c68] : memref<98xf32, #tpu.memory_space<smem>>
      %802 = vector.extract_strided_slice %790 {offsets = [2, 0], sizes = [16, 128], strides = [1, 1]} : vector<22x128xf32> to vector<16x128xf32>
      %803 = vector.broadcast %801 : f32 to vector<16x128xf32>
      %804 = arith.mulf %803, %802 : vector<16x128xf32>
      %805 = arith.addf %783, %804 : vector<16x128xf32>
      %c75 = arith.constant 75 : index
      %806 = memref.load %arg3[%c75] : memref<98xf32, #tpu.memory_space<smem>>
      %807 = vector.extract_strided_slice %790 {offsets = [3, 0], sizes = [16, 128], strides = [1, 1]} : vector<22x128xf32> to vector<16x128xf32>
      %808 = vector.broadcast %806 : f32 to vector<16x128xf32>
      %809 = arith.mulf %808, %807 : vector<16x128xf32>
      %810 = arith.addf %788, %809 : vector<16x128xf32>
      %c82 = arith.constant 82 : index
      %811 = memref.load %arg3[%c82] : memref<98xf32, #tpu.memory_space<smem>>
      %812 = vector.extract_strided_slice %790 {offsets = [4, 0], sizes = [16, 128], strides = [1, 1]} : vector<22x128xf32> to vector<16x128xf32>
      %813 = vector.broadcast %811 : f32 to vector<16x128xf32>
      %814 = arith.mulf %813, %812 : vector<16x128xf32>
      %815 = arith.addf %795, %814 : vector<16x128xf32>
      %c89 = arith.constant 89 : index
      %816 = memref.load %arg3[%c89] : memref<98xf32, #tpu.memory_space<smem>>
      %817 = vector.extract_strided_slice %790 {offsets = [5, 0], sizes = [16, 128], strides = [1, 1]} : vector<22x128xf32> to vector<16x128xf32>
      %818 = vector.broadcast %816 : f32 to vector<16x128xf32>
      %819 = arith.mulf %818, %817 : vector<16x128xf32>
      %820 = arith.addf %800, %819 : vector<16x128xf32>
      %c96_407 = arith.constant 96 : index
      %821 = memref.load %arg3[%c96_407] : memref<98xf32, #tpu.memory_space<smem>>
      %822 = vector.extract_strided_slice %790 {offsets = [6, 0], sizes = [16, 128], strides = [1, 1]} : vector<22x128xf32> to vector<16x128xf32>
      %823 = vector.broadcast %821 : f32 to vector<16x128xf32>
      %824 = arith.mulf %823, %822 : vector<16x128xf32>
      %825 = arith.addf %805, %824 : vector<16x128xf32>
      %c1_408 = arith.constant 1 : index
      %c0_409 = arith.constant 0 : index
      %c6_410 = arith.constant 6 : index
      %826 = vector.load %arg8[%c1_408, %c0_409, %c6_410] : memref<2x24x256xf32, #tpu.memory_space<vmem>>, vector<1x22x128xf32>
      %827 = vector.shape_cast %826 : vector<1x22x128xf32> to vector<22x128xf32>
      %c55 = arith.constant 55 : index
      %828 = memref.load %arg3[%c55] : memref<98xf32, #tpu.memory_space<smem>>
      %829 = vector.extract_strided_slice %827 {offsets = [0, 0], sizes = [16, 128], strides = [1, 1]} : vector<22x128xf32> to vector<16x128xf32>
      %830 = vector.broadcast %828 : f32 to vector<16x128xf32>
      %831 = arith.mulf %830, %829 : vector<16x128xf32>
      %832 = arith.addf %810, %831 : vector<16x128xf32>
      %c62 = arith.constant 62 : index
      %833 = memref.load %arg3[%c62] : memref<98xf32, #tpu.memory_space<smem>>
      %834 = vector.extract_strided_slice %827 {offsets = [1, 0], sizes = [16, 128], strides = [1, 1]} : vector<22x128xf32> to vector<16x128xf32>
      %835 = vector.broadcast %833 : f32 to vector<16x128xf32>
      %836 = arith.mulf %835, %834 : vector<16x128xf32>
      %837 = arith.addf %815, %836 : vector<16x128xf32>
      %c69 = arith.constant 69 : index
      %838 = memref.load %arg3[%c69] : memref<98xf32, #tpu.memory_space<smem>>
      %839 = vector.extract_strided_slice %827 {offsets = [2, 0], sizes = [16, 128], strides = [1, 1]} : vector<22x128xf32> to vector<16x128xf32>
      %840 = vector.broadcast %838 : f32 to vector<16x128xf32>
      %841 = arith.mulf %840, %839 : vector<16x128xf32>
      %842 = arith.addf %820, %841 : vector<16x128xf32>
      %c76 = arith.constant 76 : index
      %843 = memref.load %arg3[%c76] : memref<98xf32, #tpu.memory_space<smem>>
      %844 = vector.extract_strided_slice %827 {offsets = [3, 0], sizes = [16, 128], strides = [1, 1]} : vector<22x128xf32> to vector<16x128xf32>
      %845 = vector.broadcast %843 : f32 to vector<16x128xf32>
      %846 = arith.mulf %845, %844 : vector<16x128xf32>
      %847 = arith.addf %825, %846 : vector<16x128xf32>
      %c83 = arith.constant 83 : index
      %848 = memref.load %arg3[%c83] : memref<98xf32, #tpu.memory_space<smem>>
      %849 = vector.extract_strided_slice %827 {offsets = [4, 0], sizes = [16, 128], strides = [1, 1]} : vector<22x128xf32> to vector<16x128xf32>
      %850 = vector.broadcast %848 : f32 to vector<16x128xf32>
      %851 = arith.mulf %850, %849 : vector<16x128xf32>
      %852 = arith.addf %832, %851 : vector<16x128xf32>
      %c90 = arith.constant 90 : index
      %853 = memref.load %arg3[%c90] : memref<98xf32, #tpu.memory_space<smem>>
      %854 = vector.extract_strided_slice %827 {offsets = [5, 0], sizes = [16, 128], strides = [1, 1]} : vector<22x128xf32> to vector<16x128xf32>
      %855 = vector.broadcast %853 : f32 to vector<16x128xf32>
      %856 = arith.mulf %855, %854 : vector<16x128xf32>
      %857 = arith.addf %837, %856 : vector<16x128xf32>
      %c97 = arith.constant 97 : index
      %858 = memref.load %arg3[%c97] : memref<98xf32, #tpu.memory_space<smem>>
      %859 = vector.extract_strided_slice %827 {offsets = [6, 0], sizes = [16, 128], strides = [1, 1]} : vector<22x128xf32> to vector<16x128xf32>
      %860 = vector.broadcast %858 : f32 to vector<16x128xf32>
      %861 = arith.mulf %860, %859 : vector<16x128xf32>
      %862 = arith.addf %842, %861 : vector<16x128xf32>
      %863 = arith.addf %857, %862 : vector<16x128xf32>
      %864 = arith.addf %847, %852 : vector<16x128xf32>
      %865 = arith.addf %863, %864 : vector<16x128xf32>
      %866 = vector.extract_strided_slice %865 {offsets = [0, 0], sizes = [16, 16], strides = [1, 1]} : vector<16x128xf32> to vector<16x16xf32>
      %867 = vector.broadcast %24 : f32 to vector<16x16xf32>
      %868 = arith.addf %866, %867 : vector<16x16xf32>
      %c0_411 = arith.constant 0 : index
      %c0_412 = arith.constant 0 : index
      %c0_413 = arith.constant 0 : index
      %c0_414 = arith.constant 0 : index
      %869 = vector.load %arg5[%c0_411, %c0_412, %c0_413, %c0_414] : memref<1x1x16x16xf32, #tpu.memory_space<vmem>>, vector<1x1x16x16xf32>
      %870 = vector.shape_cast %869 : vector<1x1x16x16xf32> to vector<16x16xf32>
      %871 = vector.shape_cast %868 : vector<16x16xf32> to vector<1x1x16x16xf32>
      tpu.vector_store %arg5[%c0_411, %c0_412, %c0_413, %c0_414], %871 {strides = array<i32>} : memref<1x1x16x16xf32, #tpu.memory_space<vmem>>, vector<1x1x16x16xf32>,
    } else {
    }
    return
  }
  func.func @transform_0(%arg0: i32, %arg1: i32) -> (i32, i32, i32) {
    %c0_i32 = arith.constant 0 : i32
    %c0_i32_0 = arith.constant 0 : i32
    return %arg0, %arg1, %c0_i32 : i32, i32, i32
  }
  func.func @transform_1(%arg0: i32, %arg1: i32) -> i32 {
    %c0_i32 = arith.constant 0 : i32
    %c0_i32_0 = arith.constant 0 : i32
    return %c0_i32 : i32
  }
  func.func @transform_2(%arg0: i32, %arg1: i32) -> i32 {
    %c0_i32 = arith.constant 0 : i32
    %c0_i32_0 = arith.constant 0 : i32
    return %c0_i32 : i32
  }
  func.func @transform_3(%arg0: i32, %arg1: i32) -> (i32, i32, i32, i32) {
    %c0_i32 = arith.constant 0 : i32
    %c0_i32_0 = arith.constant 0 : i32
    %c0_i32_1 = arith.constant 0 : i32
    %c0_i32_2 = arith.constant 0 : i32
    return %arg0, %c0_i32, %c0_i32_0, %c0_i32_1 : i32, i32, i32, i32
  }
}

</mosaic_0001>

<bundles_post_ra>
// kernel: tpu_custom_call.1
= control target key start
LH: loop header
LB: loop body
LE: loop exit
PB: predicated region body
PF: predicated region fallthrough
CT: control target
= control target key end

     0   :  { %s9835_s0 = inlined_call_operand.hbm [shape: f32[2,4,256], index: 0, kind: input, shape index: {}]   ;;  %s9836_s1 = inlined_call_operand.vmem [shape: f32[98], index: 1, kind: input, shape index: {}]   ;;  %s9837_s2 = inlined_call_operand.<no memory space> [shape: f32[1], index: 2, kind: input, shape index: {}]   ;;  %s9838_s3 = inlined_call_operand.hbm [shape: f32[2,1,16,16], index: 3, kind: output, shape index: {}]  }
   0x1   :  { %8 = sst [smem:[#allocation5]] %s9837_s2 }
   0x2   :  { %9 = vsyncpa [#allocation7], 0 }
   0x3   :  { %11 = vsyncpa [#allocation7 + $0x1], 0 }
   0x4   :  { %12 = vsyncpa [#allocation9], 0 }
   0x5   :  { %13 = vsyncpa [#allocation8], 0 }
   0x6   :  { %15 = vsyncpa [#allocation8 + $0x1], 0  ;;  %s5240_s14 = smov 0   ;;  %s5242_s15 = smov 0  }
   0x7   :  { %s5244_s16 = smov 0   ;;  %s5246_s17 = smov 0  }
   0x8   :  { %s5248_s18 = smov 0   ;;  %s5250_s19 = smov 0  }
   0x9 LB: > { %s4810_s2 = sadd.s32 4294967295, %s5190_s19   ;;  %s4811_s20 = sadd.s32 4294967294, %s5190_s19   ;;  %s5190_s19 = sphi %s5250_s19, %s21_s19   ;;  %s5186_s18 = sphi %s5248_s18, %s10954_s18   ;;  %s5182_s17 = sphi %s5246_s17, %s10953_s17   ;;  %s5178_s16 = sphi %s5244_s16, %s10952_s16   ;;  %s5174_s15 = sphi %s5242_s15, %s10951_s15   ;;  %s5170_s14 = sphi %s5240_s14, %s10950_s14  }
   0xa   : > { %p55_p0 = scmp.ne.s32.totalorder %s5174_s15, %s5170_s14  ;;  %p5274_p1 = scmp.eq.s32.totalorder %s4810_s2, 0 }
   0xb   : > { %p5278_p2 = scmp.eq.s32.totalorder %s4810_s2, 1  ;;  %p127_p3 = scmp.eq.s32.totalorder %s4811_s20, 1 }
   0xc   : > { %s9977_s21 = scalar_select %p5274_p1, 1, 0 }
   0xd   : > { %p5284_p4 = por %p5274_p1, %p55_p0  ;;  %p4812_p5 = scmp.ge.s32.totalorder %s5190_s19, 1 }
   0xe   : > { %p5289_p6 = por %p127_p3, %p55_p0  ;;  %p134_p7 = scmp.lt.s32.totalorder %s5190_s19, 3 }
   0xf   : > { %s9979_s23 = scalar_select %p5284_p4, 1, 0 }
  0x10   : > { %s9980_s24 = scalar_select %p5289_p6, 1, 0 }
  0x11   : > { %s147_s27 = sshll.u32 %s9836_s1, 4  ;;  %p5297_p8 = pnand %p4812_p5, %p134_p7  ;;  %s148_s27 = int_to_ptr.vmem [resolvable:$true] %s147_s27 }
  0x12   : > { %s33_s30 = sadd.s32 1, %s5186_s18  ;;  %s42_s4 = sadd.s32 1, %s5178_s16 }
  0x13   : > { %p4956_p10 = pneg %p5297_p8  ;;  %p35_p12 = scmp.ge.s32.totalorder %s33_s30, 2 }
  0x14   : > { %s5059_s5 = scalar_lea.vmem %s148_s27, 16  ;;  %p5067_p7 = scmp.lt.s32.totalorder %s148_s27, %s148_s27 }
  0x15   : > { %p5306_p11 = pnand %p4956_p10, %p5274_p1  ;;  %p5060_p13 = scmp.ne.s32.totalorder %s148_s27, %s5059_s5 }
  0x16   : > { %p5068_p6 = scmp.lt.s32.totalorder %s5059_s5, %s5059_s5 }
  0x17   : > { %p5061_p0 = pneg %p5306_p11 }
  0x18   : > { %p5069_p9 = por %p5068_p6, %p5067_p7 }
  0x19   : > { %p5062_p3 = pnand %p5061_p0, %p5060_p13 }
  0x1b   : > { %p5063_p5 = pneg %p5062_p3 }
  0x1d   : > { %p5070_p4 = pnand %p5069_p9, %p5063_p5 }
  0x1f   : > { %5073 = shalt.err (!%p5070_p4)
}
  0x20   : > { %s5192_s6 = smov [#allocation10]   ;;  %s10956_s30 = smov (%p35_p12, %s33_s30), 0 }
  0x21   : > { %4959 = dma.vmem_to_smem (!%p5306_p11), %s148_s27, 16, %s5192_s6, [#allocation9]  }
  0x22   : > { %p49_p10 = scmp.ne.s32.totalorder %s5178_s16, %s5174_s15  ;;  %p50_p6 = scmp.eq.s32.totalorder %s5190_s19, 0 }
  0x23   : > { %s37_s7 = ssub.s32 %s5186_s18, %s10956_s30  ;;  %p4969_p4 = scmp.lt.s32.totalorder %s5190_s19, 2 }
  0x24   : > { %p40_p9 = scmp.eq.s32.totalorder %s37_s7, 0  ;;  %p51_p13 = por %p50_p6, %p49_p10 }
  0x25   : > { %p5326_p0 = por %p5278_p2, %p49_p10  ;;  %s161_s9 = sand.u32 1, %s5178_s16  }
  0x26   : > { %s5332_s10 = scalar_select %p40_p9, %s5178_s16, %s42_s4  }
  0x27   : > { %s9983_s8 = scalar_select %p5326_p0, 1, 0 }
  0x28   : > { %s4815_s11 = sshll.u32 %s161_s9, 3  ;;  %s4946_s12 = sshll.u32 %s5186_s18, 7 }
  0x29   : > { %s5338_s20 = scalar_lea.hbm %s9835_s0, %s4946_s12  ;;  %s165_s25 = scalar_lea.vmem [#allocation6], %s4815_s11 }
  0x2a   : > { %s175_s22 = sshll.u32 %s165_s25, 4  ;;  %p5342_p2 = pnand %p4969_p4, %p51_p13  ;;  %s5340_s22 = int_to_ptr.vmem [resolvable:$true] %s175_s22 }
  0x2b   : > { %s162_s27 = scalar_lea.sflag [#allocation7], %s161_s9  ;;  %s5074_s29 = scalar_lea.hbm %s5338_s20, 128 }
  0x2c   : > { %p5075_p11 = scmp.ne.s32.totalorder %s5338_s20, %s5074_s29  ;;  %p5076_p12 = pneg %p5342_p2 }
  0x2d   : > { %s5079_s6 = scalar_lea.hbm %s9835_s0, 256  ;;  %p5080_p7 = scmp.lt.u32.totalorder %s5338_s20, %s9835_s0 }
  0x2e   : > { %p5077_p3 = pnand %p5076_p12, %p5075_p11  ;;  %p5081_p10 = scmp.lt.u32.totalorder %s5079_s6, %s5074_s29 }
  0x2f   : > { %p5083_p4 = scmp.lt.u32.totalorder %s5074_s29, %s5338_s20 }
  0x30   : > { %p5078_p5 = pneg %p5077_p3  ;;  %p5082_p6 = por %p5081_p10, %p5080_p7 }
  0x32   : > { %p5084_p9 = por %p5083_p4, %p5082_p6 }
  0x34   : > { %p5085_p13 = pnand %p5084_p9, %p5078_p5 }
  0x36   : > { %5088 = shalt.err (!%p5085_p13)
}
  0x37   : > { %s5089_s9 = scalar_lea.vmem %s5340_s22, 128  ;;  %s5193_s12 = smov [#allocation6]  }
  0x38   : > { %p5090_p11 = scmp.ne.s32.totalorder %s5340_s22, %s5089_s9  ;;  %s5094_s13 = sshll.u32 %s5193_s12, 4  ;;  %s5095_s13 = int_to_ptr.vmem [resolvable:$false] %s5094_s13 }
  0x39   : > { %s5096_s2 = scalar_lea.vmem %s5095_s13, 256  ;;  %p5097_p1 = scmp.lt.s32.totalorder %s5340_s22, %s5095_s13 }
  0x3a   : > { %p5092_p3 = pnand %p5090_p11, %p5076_p12  ;;  %p5098_p7 = scmp.lt.s32.totalorder %s5096_s2, %s5089_s9 }
  0x3c   : > { %p5093_p0 = pneg %p5092_p3  ;;  %p5099_p10 = por %p5098_p7, %p5097_p1 }
  0x3e   : > { %p5100_p6 = pnand %p5099_p10, %p5093_p0 }
  0x40   : > { %5103 = shalt.err (!%p5100_p6)
}
  0x41   : > { %4963 = dma.hbm_to_vmem [thread:$0]  (!%p5342_p2), %s5338_s20, 128, %s5340_s22, %s162_s27  }
  0x42   : > { %184 = sbr.rel (%p5297_p8) target bundleno = 2142 (0x85e), region = 32 }
  0x49   : > { %s5374_s25 = sand.u32 1, %s5174_s15   ;;  %p9985_p1 = scmp.ne.s32.totalorder %s9979_s23, 0 }
  0x4a   : > { %s4819_s29 = sshll.u32 %s5374_s25, 3  ;;  %s187_s4 = scalar_lea.sflag [#allocation7], %s5374_s25 }
  0x4b   : > { %s190_s5 = scalar_lea.vmem [#allocation6], %s4819_s29 }
  0x4c   : > { %5157 = dma.done.wait (%p9985_p1), %s187_s4, 128  }
  0x4d   : > { %5159 = vsyncadd (%p9985_p1), %s187_s4, 4294967168  ;;  %p9986_p0 = scmp.ne.s32.totalorder %s9977_s21, 0 }
  0x4f   : > { %5161 = dma.done.wait (%p9986_p0), [#allocation9], 16  }
  0x50   : > { %5163 = vsyncadd (%p9986_p0), [#allocation9], 4294967280 }
  0x51   : > { %199 = sfence }
  0x52   : > { %v222_v0 = vlaneseq  ;;  %v228_v1 = vld [vmem:[%s190_s5] sm:$0xff]  ;;  %vm232_vm0 = vcmask 1043456   ;;  %v5194_v7 = vmov 0.0   ;;  %v5195_v9 = vmov -inf   ;;  %s5197_s21 = smov 115   ;;  %s5198_s23 = smov 83  }
  0x53   : > { %v230_v2 = vcombine.high %v228_v1, %v228_v1  ;;  %v233_v3 = vsel %vm232_vm0, %v228_v1, 0.0  ;;  %v247_v6 = vsel %vm232_vm0, %v228_v1, -inf  ;;  %v5196_v18 = vmov 1966171168   ;;  %s5199_s28 = smov 3   ;;  %s5200_s20 = smov 99  }
  0x54   : > { %vm5387_vm1 = vcmp.lt.s32.totalorder %v222_v0, 256  ;;  %v234_v5 = vrot.slane %v233_v3, 4  ;;  %v248_v10 = vrot.slane %v247_v6, 4  ;;  %v266_v19 = vunpack.c.l.s4 %v5196_v18  ;;  %s5201_s22 = smov 67   ;;  %s5202_s26 = smov 35  }
  0x55   : > { %226 = vst.msk [vmem:[#allocation2] sm:$0x3] %vm5387_vm1, %v5194_v7  ;;  %v240_v8 = vsel %vm232_vm0, %v230_v2, 0.0  ;;  %227 = vst.msk [vmem:[#allocation3] sm:$0x3] %vm5387_vm1, %v5195_v9  ;;  %v254_v11 = vsel %vm232_vm0, %v230_v2, -inf }
  0x56   : > { %v235_v12 = vadd.f32 %v234_v5, %v233_v3  ;;  %v241_v13 = vrot.slane %v240_v8, 4  ;;  %v255_v14 = vrot.slane %v254_v11, 4  ;;  %v249_v15 = vmax.f32 %v247_v6, %v248_v10  ;;  %s5203_s27 = smov 51   ;;  %s5204_s6 = smov 19  }
  0x57   : > { %v269_v25 = vshrl.u32 %v222_v0, 7  ;;  %v267_v29 = vunpack.c.0.s8 %v266_v19  ;;  %s4850_s7 = sld [smem:[#allocation10 + $0x1]]  ;;  %s4851_s11 = sld [smem:[#allocation10 + $0x8]]  ;;  %vm1096_vm2 = vcmask 1042432   ;;  %vm1139_vm3 = vcmask 1046528  }
  0x58   : > { %v236_v16 = vrot.slane %v235_v12, 2  ;;  %v242_v17 = vadd.f32 %v241_v13, %v240_v8  ;;  %v256_v20 = vmax.f32 %v254_v11, %v255_v14  ;;  %v250_v21 = vrot.slane %v249_v15, 2  ;;  %s4852_s9 = sld [smem:[#allocation10 + $0xf]]  ;;  %s5205_s12 = smov 127  }
  0x59   : > { %v270_v37 = vsub.s32 %v267_v29, %v269_v25  ;;  %v5402_v49 = vsub.s32 0, %v269_v25  ;;  %s4853_s13 = sld [smem:[#allocation10 + $0x16]]  ;;  %s4854_s2 = sld [smem:[#allocation10 + $0x1d]]  ;;  %vm321_vm4 = vcmask 147480   ;;  %vm1392_vm5 = vcmask 1041408  }
  0x5a   : > { %v237_v22 = vadd.f32 %v236_v16, %v235_v12  ;;  %v243_v23 = vrot.slane %v242_v17, 2  ;;  %v257_v24 = vrot.slane %v256_v20, 2  ;;  %v251_v26 = vmax.f32 %v249_v15, %v250_v21  ;;  %s4855_s29 = sld [smem:[#allocation10 + $0x24]]  ;;  %s5206_s4 = smov 122  }
  0x5b   : > { %s4856_s5 = sld [smem:[#allocation10 + $0x2b]]  ;;  %vm1480_vm6 = vcmask 1045504   ;;  %vm1688_vm7 = vcmask 1040384   ;;  %vm569_vm8 = vcmask 7168   ;;  %vm572_vm9 = vcmask 5120   ;;  %p10947_p2 = scmp.ne.s32.totalorder %s9983_s8, 0 }
  0x5c   : > { %v238_v27 = vrot.slane %v237_v22, 1  ;;  %v244_v28 = vadd.f32 %v243_v23, %v242_v17  ;;  %v258_v30 = vmax.f32 %v256_v20, %v257_v24  ;;  %v252_v31 = vrot.slane %v251_v26, 1  ;;  %v261_v43 = vld [vmem:[#allocation2] sm:$0x3]  ;;  %v286_v44 = vld [vmem:[#allocation3] sm:$0x3] }
  0x5d   : > { %vm1821_vm10 = vcmask 1044480   ;;  %vm589_vm11 = vcmask 162968   ;;  %vm592_vm12 = vcmask 160920   ;;  %vm609_vm13 = vcmask 15368  }
  0x5e   : > { %v239_v32 = vadd.f32 %v238_v27, %v237_v22  ;;  %v245_v33 = vrot.slane %v244_v28, 1  ;;  %v259_v34 = vrot.slane %v258_v30, 1  ;;  %v253_v35 = vmax.f32 %v251_v26, %v252_v31 }
  0x5f   : > { %vm612_vm14 = vcmask 13320   ;;  %vm629_vm15 = vcmask 171168  }
  0x60   : > { %v246_v36 = vadd.f32 %v245_v33, %v244_v28  ;;  %v260_v38 = vmax.f32 %v258_v30, %v259_v34 }
  0x62   : > { %v264_v39 = vcombine.low %v239_v32, %v246_v36  ;;  %v289_v40 = vcombine.low %v253_v35, %v260_v38 }
  0x64   : > { %v271_v41 = vrot.slane %v264_v39, %v270_v37  ;;  %v296_v42 = vrot.slane %v289_v40, %v270_v37 }
  0x66   : > { %v278_v45 = vrot.slane %v271_v41, %v270_v37  ;;  %v303_v46 = vrot.slane %v296_v42, %v270_v37 }
  0x68   : > { %v280_v47 = vadd.f32 %v278_v45, %v261_v43  ;;  %v305_v48 = vmax.f32 %v286_v44, %v303_v46 }
  0x6a   : > { %285 = vst.msk [vmem:[#allocation2] sm:$0x3] %vm5387_vm1, %v280_v47  ;;  %306 = vst.msk [vmem:[#allocation3] sm:$0x3] %vm5387_vm1, %v305_v48  ;;  %vm632_vm1 = vcmask 169120  }
  0x71   : > { %v334_v50 = vld [vmem:[#allocation2] sm:$0x1]  ;;  %v433_v14 = vld [vmem:[#allocation2 + $0x1] sm:$0x1] }
  0x72   : > { %v311_v51 = vld [vmem:[#allocation2] sm:$0x1]  ;;  %v335_v53 = vmul.f32 0.25, %v334_v50  ;;  %v434_v18 = vmul.f32 0.25, %v433_v14  ;;  %v455_v20 = vld [vmem:[#allocation2 + $0x1] sm:$0x1] }
  0x73   : > { %v345_v52 = vld [vmem:[#allocation2] sm:$0x1]  ;;  %v312_v54 = vmul.f32 0.25, %v311_v51  ;;  %v444_v21 = vld [vmem:[#allocation2 + $0x1] sm:$0x1]  ;;  %v456_v24 = vmul.f32 0.25, %v455_v20 }
  0x74   : > { %v346_v55 = vmul.f32 0.25, %v345_v52  ;;  %v323_v56 = vld [vmem:[#allocation2] sm:$0x1]  ;;  %v340_v60 = vrot.slane %v335_v53, %v5402_v49  ;;  %v439_v22 = vrot.slane %v434_v18, %v5402_v49  ;;  %v445_v25 = vmul.f32 0.25, %v444_v21  ;;  %v477_v26 = vld [vmem:[#allocation2 + $0x1] sm:$0x1] }
  0x75   : > { %v324_v57 = vmul.f32 0.25, %v323_v56  ;;  %v367_v58 = vld [vmem:[#allocation2] sm:$0x1]  ;;  %v317_v61 = vrot.slane %v312_v54, %v5402_v49  ;;  %v466_v27 = vld [vmem:[#allocation2 + $0x1] sm:$0x1]  ;;  %v461_v28 = vrot.slane %v456_v24, %v5402_v49  ;;  %v478_v30 = vmul.f32 0.25, %v477_v26 }
  0x76   : > { %v356_v59 = vld [vmem:[#allocation2] sm:$0x1]  ;;  %341 = vrot.lane.b32.xlu1 %v340_v60, %s5197_s21  ;;  %v351_v62 = vrot.slane %v346_v55, %v5402_v49  ;;  %v368_v0 = vmul.f32 0.25, %v367_v58  ;;  %v450_v29 = vrot.slane %v445_v25, %v5402_v49  ;;  %v467_v31 = vmul.f32 0.25, %v466_v27  ;;  %v499_v32 = vld [vmem:[#allocation2 + $0x1] sm:$0x1] }
  0x77   : > { %318 = vrot.lane.b32.xlu0 %v317_v61, %s5198_s23  ;;  %v329_v63 = vrot.slane %v324_v57, %v5402_v49  ;;  %v357_v1 = vmul.f32 0.25, %v356_v59  ;;  %v389_v2 = vld [vmem:[#allocation2] sm:$0x1]  ;;  %v488_v33 = vld [vmem:[#allocation2 + $0x1] sm:$0x1]  ;;  %v483_v34 = vrot.slane %v478_v30, %v5402_v49  ;;  %v500_v36 = vmul.f32 0.25, %v499_v32 }
  0x78   : > { %v378_v3 = vld [vmem:[#allocation2] sm:$0x1]  ;;  %v373_v4 = vrot.slane %v368_v0, %v5402_v49  ;;  %v390_v6 = vmul.f32 0.25, %v389_v2  ;;  %v472_v35 = vrot.slane %v467_v31, %v5402_v49  ;;  %v489_v37 = vmul.f32 0.25, %v488_v33  ;;  %v521_v38 = vld [vmem:[#allocation2 + $0x1] sm:$0x1] }
  0x79   : > { %v362_v5 = vrot.slane %v357_v1, %v5402_v49  ;;  %v379_v7 = vmul.f32 0.25, %v378_v3  ;;  %v411_v8 = vld [vmem:[#allocation2] sm:$0x1]  ;;  %v510_v39 = vld [vmem:[#allocation2 + $0x1] sm:$0x1]  ;;  %v505_v40 = vrot.slane %v500_v36, %v5402_v49  ;;  %v522_v42 = vmul.f32 0.25, %v521_v38 }
  0x7a   : > { %352 = vrot.lane.b32.xlu1 %v351_v62, %s5199_s28  ;;  %v400_v9 = vld [vmem:[#allocation2] sm:$0x1]  ;;  %v395_v10 = vrot.slane %v390_v6, %v5402_v49  ;;  %v412_v12 = vmul.f32 0.25, %v411_v8  ;;  %v494_v41 = vrot.slane %v489_v37, %v5402_v49  ;;  %v511_v43 = vmul.f32 0.25, %v510_v39  ;;  %v543_v44 = vld [vmem:[#allocation2 + $0x1] sm:$0x1] }
  0x7b   : > { %330 = vrot.lane.b32.xlu0 %v329_v63, %s5200_s20  ;;  %v384_v11 = vrot.slane %v379_v7, %v5402_v49  ;;  %v401_v13 = vmul.f32 0.25, %v400_v9  ;;  %v422_v15 = vld [vmem:[#allocation2] sm:$0x1]  ;;  %v532_v45 = vld [vmem:[#allocation2 + $0x1] sm:$0x1]  ;;  %v527_v46 = vrot.slane %v522_v42, %v5402_v49  ;;  %v544_v48 = vmul.f32 0.25, %v543_v44 }
  0x7c   : > { %v417_v16 = vrot.slane %v412_v12, %v5402_v49  ;;  %v423_v19 = vmul.f32 0.25, %v422_v15  ;;  %v516_v47 = vrot.slane %v511_v43, %v5402_v49  ;;  %v533_v50 = vmul.f32 0.25, %v532_v45  ;;  %v4823_v53 = vld [vmem:[#allocation3] ss:$0 sm:$0xff]  ;;  %v5466_v54 = vld [vmem:[#allocation4 + $0x8] sm:$0xff] }
  0x7d   : > { %v406_v17 = vrot.slane %v401_v13, %v5402_v49  ;;  %v549_v51 = vrot.slane %v544_v48, %v5402_v49  ;;  %v5468_v55 = vstv %s4850_s7  ;;  %v5470_v56 = vld [vmem:[#allocation4 + $0x18] sm:$0xff]  ;;  %v5480_v61 = vstv %s4851_s11  ;;  %v5488_v1 = vld [vmem:[#allocation4 + $0x28] sm:$0x3f]  ;;  %s4864_s7 = sld [smem:[#allocation10 + $0x3]]  ;;  %s4865_s11 = sld [smem:[#allocation10 + $0xa]] }
  0x7e   : > { %374 = vrot.lane.b32.xlu1 %v373_v4, %s5200_s20  ;;  %v428_v23 = vrot.slane %v423_v19, %v5402_v49  ;;  %v538_v52 = vrot.slane %v533_v50, %v5402_v49  ;;  %v4833_v49 = vld [vmem:[#allocation3 + $0x1] ss:$0 sm:$0xff]  ;;  %v1089_v57 = vmul.f32 %v5468_v55, %v5466_v54  ;;  %v1091_v58 = vmul.f32 %v5468_v55, %v5470_v56 }
  0x7f   : > { %363 = vrot.lane.b32.xlu0 %v362_v5, %s5197_s21  ;;  %9989 = vst [vmem:[#allocation15_spill] sm:$0xff] %v5480_v61  ;;  %v1128_v63 = vmul.f32 %v5480_v61, %v5466_v54  ;;  %v1130_v0 = vmul.f32 %v5480_v61, %v5470_v56  ;;  %v1132_v4 = vmul.f32 %v5480_v61, %v5488_v1  ;;  %v5493_v5 = vstv %s4852_s9  ;;  %s5208_s9 = smov 125  }
  0x80   : > { %v1098_v59 = vrot.slane %v1089_v57, 5  ;;  %v1101_v60 = vrot.slane %v1091_v58, 5  ;;  %v1167_v8 = vmul.f32 %v5493_v5, %v5466_v54  ;;  %v1169_v9 = vmul.f32 %v5493_v5, %v5470_v56 }
  0x81   : > { %v1143_v2 = vrot.slane %v1128_v63, 1  ;;  %v1144_v3 = vrot.slane %v1130_v0, 1  ;;  %v1148_v7 = vrot.slane %v1132_v4, 1  ;;  %v1171_v13 = vmul.f32 %v5493_v5, %v5488_v1 }
  0x82   : > { %396 = vrot.lane.b32.xlu1 %v395_v10, %s5201_s22  ;;  %v1102_v62 = vsel %vm1096_vm2, %v1098_v59, %v1101_v60  ;;  %v1182_v12 = vrot.slane %v1169_v9, 1  ;;  %v5541_v44 = vstv %s4855_s29  ;;  %s4867_s29 = sld [smem:[#allocation10 + $0x18]] }
  0x83   : > { %385 = vrot.lane.b32.xlu0 %v384_v11, %s5198_s23  ;;  %v1145_v6 = vsel %vm1139_vm3, %v1143_v2, %v1144_v3  ;;  %v1149_v10 = vsel %vm1139_vm3, %v1144_v3, %v1148_v7  ;;  %v1181_v11 = vrot.slane %v1167_v8, 1  ;;  %v1186_v15 = vrot.slane %v1171_v13, 1  ;;  %9990 = vst [vmem:[#allocation16_spill] sm:$0xff] %v5541_v44 }
  0x85   : > { %v1183_v14 = vsel %vm1139_vm3, %v1181_v11, %v1182_v12 }
  0x86   : > { %418 = vrot.lane.b32.xlu1 %v417_v16, %s5202_s26  ;;  %v5507_v16 = vstv %s4853_s13  ;;  %s5209_s13 = smov 2  }
  0x87   : > { %407 = vrot.lane.b32.xlu0 %v406_v17, %s5203_s27  ;;  %v1187_v17 = vsel %vm1139_vm3, %v1182_v12, %v1186_v15  ;;  %v1212_v18 = vmul.f32 %v5507_v16, %v5466_v54  ;;  %v1214_v19 = vmul.f32 %v5507_v16, %v5470_v56 }
  0x89   : > { %v1226_v20 = vrot.slane %v1212_v18, 1  ;;  %v1227_v21 = vrot.slane %v1214_v19, 1 }
  0x8a   : > { %440 = vrot.lane.b32.xlu1 %v439_v22, %s5199_s28  ;;  %v1216_v22 = vmul.f32 %v5507_v16, %v5488_v1 }
  0x8b   : > { %429 = vrot.lane.b32.xlu0 %v428_v23, %s5204_s6  ;;  %v1228_v25 = vsel %vm1139_vm3, %v1226_v20, %v1227_v21 }
  0x8c   : > { %v1231_v26 = vrot.slane %v1216_v22, 1 }
  0x8e   : > { %462 = vrot.lane.b32.xlu1 %v461_v28, %s5200_s20  ;;  %v1232_v30 = vsel %vm1139_vm3, %v1227_v21, %v1231_v26 }
  0x8f   : > { %451 = vrot.lane.b32.xlu0 %v450_v29, %s5197_s21  ;;  %v5522_v29 = vstv %s4854_s2  ;;  %s4866_s2 = sld [smem:[#allocation10 + $0x11]] }
  0x90   : > { %v1257_v31 = vmul.f32 %v5522_v29, %v5466_v54  ;;  %v1259_v32 = vmul.f32 %v5522_v29, %v5470_v56  ;;  %v1261_v37 = vmul.f32 %v5522_v29, %v5488_v1 }
  0x92   : > { %484 = vrot.lane.b32.xlu1 %v483_v34, %s5201_s22  ;;  %v1272_v36 = vrot.slane %v1259_v32, 1 }
  0x93   : > { %473 = vrot.lane.b32.xlu0 %v472_v35, %s5198_s23  ;;  %v1271_v35 = vrot.slane %v1257_v31, 1 }
  0x96   : > { %506 = vrot.lane.b32.xlu1 %v505_v40, %s5202_s26  ;;  %v1273_v40 = vsel %vm1139_vm3, %v1271_v35, %v1272_v36 }
  0x97   : > { %495 = vrot.lane.b32.xlu0 %v494_v41, %s5203_s27  ;;  %v1276_v41 = vrot.slane %v1261_v37, 1 }
  0x99   : > { %v1277_v45 = vsel %vm1139_vm3, %v1272_v36, %v1276_v41 }
  0x9a   : > { %528 = vrot.lane.b32.xlu1 %v527_v46, %s5202_s26  ;;  %v1302_v46 = vmul.f32 %v5541_v44, %v5466_v54 }
  0x9b   : > { %517 = vrot.lane.b32.xlu0 %v516_v47, %s5204_s6  ;;  %v1304_v47 = vmul.f32 %v5541_v44, %v5470_v56 }
  0x9e   : > { %550 = vrot.lane.b32.xlu1 %v549_v51, %s5201_s22  ;;  %v1316_v51 = vrot.slane %v1302_v46, 5 }
  0x9f   : > { %539 = vrot.lane.b32.xlu0 %v538_v52, %s5203_s27  ;;  %v1317_v52 = vrot.slane %v1304_v47, 5 }
  0xa1   : > { %v1318_v58 = vsel %vm1096_vm2, %v1316_v51, %v1317_v52 }
  0xa2   : > { %691 = vrot.lane.b32.xlu1 %v4823_v53, %s5200_s20 }
  0xa3   : > { %680 = vrot.lane.b32.xlu0 %v4823_v53, %s5198_s23 }
  0xa6   : > { %711 = vrot.lane.b32.xlu1 %v4823_v53, %s5199_s28 }
  0xa7   : > { %701 = vrot.lane.b32.xlu0 %v4823_v53, %s5197_s21 }
  0xaa   : > { %731 = vrot.lane.b32.xlu1 %v4823_v53, %s5200_s20 }
  0xab   : > { %721 = vrot.lane.b32.xlu0 %v4823_v53, %s5197_s21 }
  0xae   : > { %751 = vrot.lane.b32.xlu1 %v4823_v53, %s5201_s22 }
  0xaf   : > { %741 = vrot.lane.b32.xlu0 %v4823_v53, %s5198_s23 }
  0xb2   : > { %771 = vrot.lane.b32.xlu1 %v4823_v53, %s5202_s26 }
  0xb3   : > { %761 = vrot.lane.b32.xlu0 %v4823_v53, %s5203_s27 }
  0xb6   : > { %791 = vrot.lane.b32.xlu1 %v4833_v49, %s5199_s28  ;;  %s5207_s28 = smov 126  }
  0xb7   : > { %781 = vrot.lane.b32.xlu0 %v4823_v53, %s5204_s6  ;;  %v1306_v53 = vmul.f32 %v5541_v44, %v5488_v1 }
  0xba   : > { %811 = vrot.lane.b32.xlu1 %v4833_v49, %s5200_s20  ;;  %s4859_s20 = sld [smem:[#allocation10 + $0x10]] }
  0xbb   : > { %801 = vrot.lane.b32.xlu0 %v4833_v49, %s5197_s21  ;;  %s4857_s21 = sld [smem:[#allocation10 + $0x2]] }
  0xbe   : > { %831 = vrot.lane.b32.xlu1 %v4833_v49, %s5201_s22 }
  0xbf   : > { %821 = vrot.lane.b32.xlu0 %v4833_v49, %s5198_s23  ;;  %s4858_s23 = sld [smem:[#allocation10 + $0x9]] }
  0xc2   : > { %851 = vrot.lane.b32.xlu1 %v4833_v49, %s5202_s26 }
  0xc3   : > { %841 = vrot.lane.b32.xlu0 %v4833_v49, %s5203_s27 }
  0xc6   : > { %871 = vrot.lane.b32.xlu1 %v4833_v49, %s5202_s26  ;;  %s4861_s26 = sld [smem:[#allocation10 + $0x1e]] }
  0xc7   : > { %861 = vrot.lane.b32.xlu0 %v4833_v49, %s5204_s6  ;;  %s4863_s6 = sld [smem:[#allocation10 + $0x2c]] }
  0xca   : > { %891 = vrot.lane.b32.xlu1 %v4833_v49, %s5201_s22  ;;  %s4860_s22 = sld [smem:[#allocation10 + $0x17]] }
  0xcb   : > { %881 = vrot.lane.b32.xlu0 %v4833_v49, %s5203_s27  ;;  %s4862_s27 = sld [smem:[#allocation10 + $0x25]] }
  0xce   : > { %1105 = vrot.lane.b32.xlu1 %v1098_v59, %s5205_s12  ;;  %v1321_v59 = vrot.slane %v1306_v53, 5 }
  0xd0   : > { %v1322_v63 = vsel %vm1096_vm2, %v1317_v52, %v1321_v59 }
  0xd2   : > { %1109 = vrot.lane.b32.xlu1 %v1102_v62, %s5205_s12 }
  0xd6   : > { %1113 = vrot.lane.b32.xlu1 %v1101_v60, %s5205_s12 }
  0xda   : > { %1152 = vrot.lane.b32.xlu1 %v1145_v6, %s5205_s12 }
  0xde   : > { %1156 = vrot.lane.b32.xlu1 %v1149_v10, %s5205_s12 }
  0xe2   : > { %1190 = vrot.lane.b32.xlu1 %v1183_v14, %s5205_s12 }
  0xe6   : > { %1194 = vrot.lane.b32.xlu1 %v1187_v17, %s5205_s12 }
  0xe8   : > { %v342_v23 = vpop.permute.xlu1 %341 }
  0xe9   : > { %v319_v24 = vpop.permute.xlu0 %318  ;;  %344 = vst.msk [vmem:[#allocation4 + $0x2] sm:$0x1] %vm321_vm4, %v342_v23 }
  0xea   : > { %322 = vst.msk [vmem:[#allocation4] sm:$0x1] %vm321_vm4, %v319_v24  ;;  %1198 = vrot.lane.b32.xlu1 %v1186_v15, %s5205_s12 }
  0xec   : > { %v353_v27 = vpop.permute.xlu1 %352 }
  0xed   : > { %v331_v28 = vpop.permute.xlu0 %330  ;;  %355 = vst.msk [vmem:[#allocation4 + $0x3] sm:$0x1] %vm321_vm4, %v353_v27 }
  0xee   : > { %333 = vst.msk [vmem:[#allocation4 + $0x1] sm:$0x1] %vm321_vm4, %v331_v28  ;;  %1235 = vrot.lane.b32.xlu1 %v1228_v25, %s5205_s12 }
  0xf0   : > { %v375_v33 = vpop.permute.xlu1 %374 }
  0xf1   : > { %v364_v34 = vpop.permute.xlu0 %363  ;;  %377 = vst.msk [vmem:[#allocation4 + $0x5] sm:$0x1] %vm321_vm4, %v375_v33 }
  0xf2   : > { %366 = vst.msk [vmem:[#allocation4 + $0x4] sm:$0x1] %vm321_vm4, %v364_v34  ;;  %1239 = vrot.lane.b32.xlu1 %v1232_v30, %s5205_s12 }
  0xf4   : > { %v397_v38 = vpop.permute.xlu1 %396 }
  0xf5   : > { %v386_v39 = vpop.permute.xlu0 %385  ;;  %399 = vst.msk [vmem:[#allocation4 + $0x7] sm:$0x1] %vm321_vm4, %v397_v38 }
  0xf6   : > { %388 = vst.msk [vmem:[#allocation4 + $0x6] sm:$0x1] %vm321_vm4, %v386_v39  ;;  %1243 = vrot.lane.b32.xlu1 %v1231_v26, %s5205_s12  ;;  %v5588_v26 = vstv %s4856_s5  ;;  %s4868_s5 = sld [smem:[#allocation10 + $0x1f]] }
  0xf7   : > { %v1340_v30 = vmul.f32 %v5588_v26, %v5466_v54  ;;  %v1342_v31 = vmul.f32 %v5588_v26, %v5470_v56  ;;  %v1344_v37 = vmul.f32 %v5588_v26, %v5488_v1 }
  0xf8   : > { %v419_v42 = vpop.permute.xlu1 %418 }
  0xf9   : > { %v408_v43 = vpop.permute.xlu0 %407  ;;  %421 = vst.msk [vmem:[#allocation4 + $0x11] sm:$0x1] %vm321_vm4, %v419_v42  ;;  %v1354_v35 = vrot.slane %v1340_v30, 5  ;;  %v1355_v36 = vrot.slane %v1342_v31, 5  ;;  %v1359_v42 = vrot.slane %v1344_v37, 5  ;;  %v5668_v31 = vstv %s4861_s26  ;;  %s5210_s26 = smov 124  }
  0xfa   : > { %410 = vst.msk [vmem:[#allocation4 + $0x10] sm:$0x1] %vm321_vm4, %v408_v43  ;;  %1280 = vrot.lane.b32.xlu1 %v1273_v40, %s5205_s12 }
  0xfb   : > { %v1360_v43 = vsel %vm1096_vm2, %v1355_v36, %v1359_v42 }
  0xfc   : > { %v441_v48 = vpop.permute.xlu1 %440 }
  0xfd   : > { %v430_v50 = vpop.permute.xlu0 %429  ;;  %443 = vst.msk [vmem:[#allocation4 + $0x13] sm:$0x1] %vm321_vm4, %v441_v48 }
  0xfe   : > { %432 = vst.msk [vmem:[#allocation4 + $0x12] sm:$0x1] %vm321_vm4, %v430_v50  ;;  %1284 = vrot.lane.b32.xlu1 %v1277_v45, %s5205_s12  ;;  %v5607_v45 = vstv %s4857_s21  ;;  %v554_v50 = vld [vmem:[#allocation4] sm:$0xff]  ;;  %s4869_s21 = sld [smem:[#allocation10 + $0x26]] }
  0xff   : > { %v1385_v47 = vmul.f32 %v5607_v45, %v5466_v54  ;;  %v1387_v48 = vmul.f32 %v5607_v45, %v5470_v56 }
 0x100   : > { %v463_v49 = vpop.permute.xlu1 %462 }
 0x101   : > { %v452_v57 = vpop.permute.xlu0 %451  ;;  %465 = vst.msk [vmem:[#allocation4 + $0x15] sm:$0x1] %vm321_vm4, %v463_v49  ;;  %v1394_v51 = vrot.slane %v1385_v47, 6  ;;  %v1397_v52 = vrot.slane %v1387_v48, 6 }
 0x102   : > { %454 = vst.msk [vmem:[#allocation4 + $0x14] sm:$0x1] %vm321_vm4, %v452_v57  ;;  %1288 = vrot.lane.b32.xlu1 %v1276_v41, %s5205_s12  ;;  %v1356_v41 = vsel %vm1096_vm2, %v1354_v35, %v1355_v36 }
 0x103   : > { %v1398_v57 = vsel %vm1392_vm5, %v1394_v51, %v1397_v52 }
 0x104   : > { %v485_v60 = vpop.permute.xlu1 %484 }
 0x105   : > { %v474_v62 = vpop.permute.xlu0 %473  ;;  %487 = vst.msk [vmem:[#allocation4 + $0x17] sm:$0x1] %vm321_vm4, %v485_v60 }
 0x106   : > { %476 = vst.msk [vmem:[#allocation4 + $0x16] sm:$0x1] %vm321_vm4, %v474_v62  ;;  %1325 = vrot.lane.b32.xlu1 %v1318_v58, %s5205_s12  ;;  %v5622_v58 = vstv %s4858_s23  ;;  %s4870_s23 = sld [smem:[#allocation10 + $0x2d]] }
 0x107   : > { %v1424_v59 = vmul.f32 %v5622_v58, %v5466_v54  ;;  %v1426_v62 = vmul.f32 %v5622_v58, %v5470_v56 }
 0x108   : > { %v507_v0 = vpop.permute.xlu1 %506 }
 0x109   : > { %v496_v2 = vpop.permute.xlu0 %495  ;;  %509 = vst.msk [vmem:[#allocation4 + $0x21] sm:$0x1] %vm321_vm4, %v507_v0  ;;  %v1439_v0 = vrot.slane %v1426_v62, 6  ;;  %v5702_v62 = vstv %s4863_s6  ;;  %s4874_s6 = sld [smem:[#allocation10 + $0x19]] }
 0x10a   : > { %498 = vst.msk [vmem:[#allocation4 + $0x20] sm:$0x1] %vm321_vm4, %v496_v2  ;;  %1329 = vrot.lane.b32.xlu1 %v1322_v63, %s5205_s12  ;;  %v1436_v63 = vrot.slane %v1424_v59, 6  ;;  %v1428_v2 = vmul.f32 %v5622_v58, %v5488_v1  ;;  %10003 = vst [vmem:[#allocation29_spill] sm:$0xff] %v5702_v62 }
 0x10c   : > { %v529_v3 = vpop.permute.xlu1 %528 }
 0x10d   : > { %v518_v4 = vpop.permute.xlu0 %517  ;;  %531 = vst.msk [vmem:[#allocation4 + $0x23] sm:$0x1] %vm321_vm4, %v529_v3  ;;  %v555_v40 = vld [vmem:[#allocation4 + $0x10] sm:$0xff]  ;;  %v5634_v3 = vstv %s4859_s20  ;;  %s4871_s20 = sld [smem:[#allocation10 + $0x4]] }
 0x10e   : > { %520 = vst.msk [vmem:[#allocation4 + $0x22] sm:$0x1] %vm321_vm4, %v518_v4  ;;  %9993 = vst [vmem:[#allocation19_spill] sm:$0xff] %v5634_v3 }
 0x110   : > { %v551_v6 = vpop.permute.xlu1 %550 }
 0x111   : > { %v540_v7 = vpop.permute.xlu0 %539  ;;  %553 = vst.msk [vmem:[#allocation4 + $0x25] sm:$0x1] %vm321_vm4, %v551_v6  ;;  %v1440_v6 = vsel %vm1392_vm5, %v1436_v63, %v1439_v0 }
 0x112   : > { %542 = vst.msk [vmem:[#allocation4 + $0x24] sm:$0x1] %vm321_vm4, %v540_v7  ;;  %v1443_v7 = vrot.slane %v1428_v2, 6  ;;  %v1645_v2 = vmul.f32 %v5702_v62, %v5470_v56 }
 0x114   : > { %v692_v8 = vpop.permute.xlu1 %691 }
 0x115   : > { %v681_v9 = vpop.permute.xlu0 %680  ;;  %694 = vst.msk [vmem:[#allocation4 + $0x31] sm:$0x1] %vm321_vm4, %v692_v8  ;;  %v1469_v8 = vmul.f32 %v5634_v3, %v5466_v54 }
 0x116   : > { %684 = vst.msk [vmem:[#allocation4 + $0x30] sm:$0x1] %vm321_vm4, %v681_v9  ;;  %v1471_v9 = vmul.f32 %v5634_v3, %v5470_v56 }
 0x118   : > { %v712_v10 = vpop.permute.xlu1 %711 }
 0x119   : > { %v702_v11 = vpop.permute.xlu0 %701  ;;  %714 = vst.msk [vmem:[#allocation4 + $0x33] sm:$0x1] %vm321_vm4, %v712_v10  ;;  %v556_v49 = vld [vmem:[#allocation4 + $0x20] sm:$0x3f] }
 0x11a   : > { %704 = vst.msk [vmem:[#allocation4 + $0x32] sm:$0x1] %vm321_vm4, %v702_v11  ;;  %v1444_v11 = vsel %vm1392_vm5, %v1439_v0, %v1443_v7  ;;  %v1643_v0 = vmul.f32 %v5702_v62, %v5466_v54 }
 0x11c   : > { %v732_v12 = vpop.permute.xlu1 %731  ;;  %v1657_v7 = vrot.slane %v1643_v0, 6 }
 0x11d   : > { %v722_v13 = vpop.permute.xlu0 %721  ;;  %734 = vst.msk [vmem:[#allocation4 + $0x35] sm:$0x1] %vm321_vm4, %v732_v12  ;;  %v1484_v12 = vrot.slane %v1469_v8, 2  ;;  %v1658_v8 = vrot.slane %v1645_v2, 6 }
 0x11e   : > { %724 = vst.msk [vmem:[#allocation4 + $0x34] sm:$0x1] %vm321_vm4, %v722_v13  ;;  %v1485_v13 = vrot.slane %v1471_v9, 2  ;;  %v1647_v9 = vmul.f32 %v5702_v62, %v5488_v1 }
 0x120   : > { %v752_v14 = vpop.permute.xlu1 %751 }
 0x121   : > { %v742_v15 = vpop.permute.xlu0 %741  ;;  %754 = vst.msk [vmem:[#allocation4 + $0x37] sm:$0x1] %vm321_vm4, %v752_v14  ;;  %v1473_v14 = vmul.f32 %v5634_v3, %v5488_v1 }
 0x122   : > { %744 = vst.msk [vmem:[#allocation4 + $0x36] sm:$0x1] %vm321_vm4, %v742_v15  ;;  %v5650_v15 = vstv %s4860_s22  ;;  %s4872_s22 = sld [smem:[#allocation10 + $0xb]] }
 0x124   : > { %v772_v17 = vpop.permute.xlu1 %771 }
 0x125   : > { %v762_v18 = vpop.permute.xlu0 %761  ;;  %774 = vst.msk [vmem:[#allocation4 + $0x41] sm:$0x1] %vm321_vm4, %v772_v17  ;;  %v1486_v17 = vsel %vm1480_vm6, %v1484_v12, %v1485_v13  ;;  %v1659_v12 = vsel %vm1392_vm5, %v1657_v7, %v1658_v8 }
 0x126   : > { %764 = vst.msk [vmem:[#allocation4 + $0x40] sm:$0x1] %vm321_vm4, %v762_v18  ;;  %v1489_v18 = vrot.slane %v1473_v14, 2  ;;  %v5719_v14 = vstv %s4864_s7  ;;  %s4875_s7 = sld [smem:[#allocation10 + $0x20]] }
 0x127   : > { %10006 = vst [vmem:[#allocation32_spill] sm:$0xff] %v5719_v14 }
 0x128   : > { %v792_v19 = vpop.permute.xlu1 %791 }
 0x129   : > { %v782_v20 = vpop.permute.xlu0 %781  ;;  %v895_v21 = vld [vmem:[#allocation4 + $0x30] sm:$0xff]  ;;  %794 = vst.msk [vmem:[#allocation4 + $0x43] sm:$0x1] %vm321_vm4, %v792_v19  ;;  %v1508_v19 = vmul.f32 %v5650_v15, %v5466_v54 }
 0x12a   : > { %784 = vst.msk [vmem:[#allocation4 + $0x42] sm:$0x1] %vm321_vm4, %v782_v20  ;;  %901 = vrot.lane.b32.xlu0 %v895_v21, %s5206_s4  ;;  %v1510_v20 = vmul.f32 %v5650_v15, %v5470_v56 }
 0x12c   : > { %v812_v22 = vpop.permute.xlu1 %811 }
 0x12d   : > { %v802_v23 = vpop.permute.xlu0 %801  ;;  %814 = vst.msk [vmem:[#allocation4 + $0x45] sm:$0x1] %vm321_vm4, %v812_v22  ;;  %v1490_v22 = vsel %vm1480_vm6, %v1485_v13, %v1489_v18  ;;  %v1662_v13 = vrot.slane %v1647_v9, 6 }
 0x12e   : > { %804 = vst.msk [vmem:[#allocation4 + $0x44] sm:$0x1] %vm321_vm4, %v802_v23  ;;  %v1522_v23 = vrot.slane %v1508_v19, 2  ;;  %v1683_v19 = vmul.f32 %v5719_v14, %v5470_v56 }
 0x12f   : > { %v1663_v18 = vsel %vm1392_vm5, %v1658_v8, %v1662_v13 }
 0x130   : > { %v832_v24 = vpop.permute.xlu1 %831 }
 0x131   : > { %v822_v25 = vpop.permute.xlu0 %821  ;;  %834 = vst.msk [vmem:[#allocation4 + $0x47] sm:$0x1] %vm321_vm4, %v832_v24  ;;  %v1523_v24 = vrot.slane %v1510_v20, 2 }
 0x132   : > { %824 = vst.msk [vmem:[#allocation4 + $0x46] sm:$0x1] %vm321_vm4, %v822_v25  ;;  %v1512_v25 = vmul.f32 %v5650_v15, %v5488_v1 }
 0x134   : > { %v852_v27 = vpop.permute.xlu1 %851  ;;  %v1527_v30 = vrot.slane %v1512_v25, 2 }
 0x135   : > { %v842_v28 = vpop.permute.xlu0 %841  ;;  %854 = vst.msk [vmem:[#allocation4 + $0x51] sm:$0x1] %vm321_vm4, %v852_v27 }
 0x136   : > { %844 = vst.msk [vmem:[#allocation4 + $0x50] sm:$0x1] %vm321_vm4, %v842_v28  ;;  %v1524_v28 = vsel %vm1480_vm6, %v1522_v23, %v1523_v24  ;;  %v1693_v23 = vrot.slane %v1683_v19, 7 }
 0x138   : > { %v872_v32 = vpop.permute.xlu1 %871 }
 0x139   : > { %v862_v33 = vpop.permute.xlu0 %861  ;;  %v896_v34 = vld [vmem:[#allocation4 + $0x40] sm:$0xff]  ;;  %874 = vst.msk [vmem:[#allocation4 + $0x53] sm:$0x1] %vm321_vm4, %v872_v32  ;;  %v1528_v32 = vsel %vm1480_vm6, %v1523_v24, %v1527_v30 }
 0x13a   : > { %864 = vst.msk [vmem:[#allocation4 + $0x52] sm:$0x1] %vm321_vm4, %v862_v33  ;;  %903 = vrot.lane.b32.xlu1 %v896_v34, %s5206_s4  ;;  %v1553_v33 = vmul.f32 %v5668_v31, %v5466_v54  ;;  %v1555_v34 = vmul.f32 %v5668_v31, %v5470_v56 }
 0x13c   : > { %v892_v38 = vpop.permute.xlu1 %891  ;;  %v1567_v36 = vrot.slane %v1553_v33, 2  ;;  %v1568_v37 = vrot.slane %v1555_v34, 2 }
 0x13d   : > { %v882_v39 = vpop.permute.xlu0 %881  ;;  %894 = vst.msk [vmem:[#allocation4 + $0x55] sm:$0x1] %vm321_vm4, %v892_v38  ;;  %v1557_v38 = vmul.f32 %v5668_v31, %v5488_v1 }
 0x13e   : > { %884 = vst.msk [vmem:[#allocation4 + $0x54] sm:$0x1] %vm321_vm4, %v882_v39  ;;  %562 = vrot.lane.b32.xlu1 %v555_v40, %s5206_s4  ;;  %v1569_v40 = vsel %vm1480_vm6, %v1567_v36, %v1568_v37  ;;  %vm649_vm4 = vcmask 23568  }
 0x140   : > { %v5617_v53 = vpop.permute.xlu1 %1105 }
 0x141   : > { %9991 = vst [vmem:[#allocation17_spill] sm:$0xff] %v5617_v53 }
 0x142   : > { %1363 = vrot.lane.b32.xlu1 %v1356_v41, %s5205_s12  ;;  %v1572_v41 = vrot.slane %v1557_v38, 2 }
 0x144   : > { %v5627_v60 = vpop.permute.xlu1 %1109 }
 0x145   : > { %v897_v46 = vld [vmem:[#allocation4 + $0x50] sm:$0x3f]  ;;  %9992 = vst [vmem:[#allocation18_spill] sm:$0xff] %v5627_v60 }
 0x146   : > { %1367 = vrot.lane.b32.xlu1 %v1360_v43, %s5205_s12  ;;  %905 = vrot.lane.b32.xlu0 %v897_v46, %s5206_s4  ;;  %v1573_v43 = vsel %vm1480_vm6, %v1568_v37, %v1572_v41 }
 0x148   : > { %v5636_v4 = vpop.permute.xlu1 %1113 }
 0x149   : > { %9994 = vst [vmem:[#allocation20_spill] sm:$0xff] %v5636_v4 }
 0x14a   : > { %1371 = vrot.lane.b32.xlu1 %v1359_v42, %s5205_s12  ;;  %560 = vrot.lane.b32.xlu0 %v554_v50, %s5206_s4  ;;  %v5685_v42 = vstv %s4862_s27  ;;  %s4873_s27 = sld [smem:[#allocation10 + $0x12]] }
 0x14b   : > { %10000 = vst [vmem:[#allocation26_spill] sm:$0xff] %v5685_v42  ;;  %v1598_v46 = vmul.f32 %v5685_v42, %v5466_v54  ;;  %v1600_v47 = vmul.f32 %v5685_v42, %v5470_v56 }
 0x14c   : > { %v5645_v10 = vpop.permute.xlu1 %1152 }
 0x14d   : > { %9995 = vst [vmem:[#allocation21_spill] sm:$0xff] %v5645_v10  ;;  %v1612_v50 = vrot.slane %v1598_v46, 2 }
 0x14e   : > { %1401 = vrot.lane.b32.xlu1 %v1394_v51, %s5207_s28  ;;  %564 = vrot.lane.b32.xlu0 %v556_v49, %s5206_s4  ;;  %v1613_v51 = vrot.slane %v1600_v47, 2 }
 0x150   : > { %v5658_v21 = vpop.permute.xlu1 %1156 }
 0x151   : > { %9996 = vst [vmem:[#allocation22_spill] sm:$0xff] %v5658_v21 }
 0x152   : > { %1405 = vrot.lane.b32.xlu1 %v1398_v57, %s5207_s28  ;;  %v1614_v57 = vsel %vm1480_vm6, %v1612_v50, %v1613_v51 }
 0x154   : > { %v5665_v27 = vpop.permute.xlu1 %1190 }
 0x155   : > { %9997 = vst [vmem:[#allocation23_spill] sm:$0xff] %v5665_v27 }
 0x156   : > { %1409 = vrot.lane.b32.xlu1 %v1397_v52, %s5207_s28  ;;  %v1602_v52 = vmul.f32 %v5685_v42, %v5488_v1 }
 0x158   : > { %v5676_v35 = vpop.permute.xlu1 %1194  ;;  %v1617_v59 = vrot.slane %v1602_v52, 2 }
 0x159   : > { %9998 = vst [vmem:[#allocation24_spill] sm:$0xff] %v5676_v35 }
 0x15a   : > { %1447 = vrot.lane.b32.xlu1 %v1436_v63, %s5207_s28  ;;  %v1618_v63 = vsel %vm1480_vm6, %v1613_v51, %v1617_v59 }
 0x15c   : > { %v5682_v39 = vpop.permute.xlu1 %1198 }
 0x15d   : > { %9999 = vst [vmem:[#allocation25_spill] sm:$0xff] %v5682_v39  ;;  %v5895_v39 = vstv %s4873_s27  ;;  %s4884_s27 = sld [smem:[#allocation10 + $0x2f]] }
 0x15e   : > { %1451 = vrot.lane.b32.xlu1 %v1440_v6, %s5207_s28 }
 0x160   : > { %v5693_v48 = vpop.permute.xlu1 %1235 }
 0x161   : > { %10001 = vst [vmem:[#allocation27_spill] sm:$0xff] %v5693_v48 }
 0x162   : > { %1455 = vrot.lane.b32.xlu1 %v1444_v11, %s5207_s28 }
 0x164   : > { %v5699_v49 = vpop.permute.xlu1 %1239 }
 0x165   : > { %10002 = vst [vmem:[#allocation28_spill] sm:$0xff] %v5699_v49 }
 0x166   : > { %1493 = vrot.lane.b32.xlu1 %v1486_v17, %s5207_s28  ;;  %v1681_v17 = vmul.f32 %v5719_v14, %v5466_v54 }
 0x168   : > { %v5710_v6 = vpop.permute.xlu1 %1243 }
 0x169   : > { %10004 = vst [vmem:[#allocation30_spill] sm:$0xff] %v5710_v6 }
 0x16a   : > { %1497 = vrot.lane.b32.xlu1 %v1490_v22, %s5207_s28  ;;  %v1690_v22 = vrot.slane %v1681_v17, 7  ;;  %v5770_v17 = vstv %s4866_s2  ;;  %s4878_s2 = sld [smem:[#allocation10 + $0x5]] }
 0x16b   : > { %10017 = vst [vmem:[#allocation43_spill] sm:$0xff] %v5770_v17 }
 0x16c   : > { %v5716_v11 = vpop.permute.xlu1 %1280  ;;  %v1694_v25 = vsel %vm1688_vm7, %v1690_v22, %v1693_v23 }
 0x16d   : > { %10005 = vst [vmem:[#allocation31_spill] sm:$0xff] %v5716_v11 }
 0x16e   : > { %1531 = vrot.lane.b32.xlu1 %v1524_v28, %s5207_s28  ;;  %v5734_v28 = vstv %s4865_s11  ;;  %s4876_s11 = sld [smem:[#allocation10 + $0x27]] }
 0x16f   : > { %10009 = vst [vmem:[#allocation35_spill] sm:$0xff] %v5734_v28  ;;  %v1722_v33 = vmul.f32 %v5734_v28, %v5470_v56  ;;  %v1724_v8 = vmul.f32 %v5734_v28, %v5488_v1 }
 0x170   : > { %v5727_v20 = vpop.permute.xlu1 %1284 }
 0x171   : > { %10007 = vst [vmem:[#allocation33_spill] sm:$0xff] %v5727_v20  ;;  %v1735_v37 = vrot.slane %v1722_v33, 7  ;;  %v1739_v13 = vrot.slane %v1724_v8, 7  ;;  %v5801_v8 = vstv %s4868_s5  ;;  %s4880_s5 = sld [smem:[#allocation10 + $0x13]] }
 0x172   : > { %1535 = vrot.lane.b32.xlu1 %v1528_v32, %s5207_s28  ;;  %v1720_v32 = vmul.f32 %v5734_v28, %v5466_v54  ;;  %10023 = vst [vmem:[#allocation49_spill] sm:$0xff] %v5801_v8 }
 0x174   : > { %v5731_v24 = vpop.permute.xlu1 %1288  ;;  %v1732_v36 = vrot.slane %v1720_v32, 7 }
 0x175   : > { %10008 = vst [vmem:[#allocation34_spill] sm:$0xff] %v5731_v24 }
 0x176   : > { %1539 = vrot.lane.b32.xlu1 %v1527_v30, %s5207_s28 }
 0x178   : > { %v5742_v34 = vpop.permute.xlu1 %1325 }
 0x179   : > { %10010 = vst [vmem:[#allocation36_spill] sm:$0xff] %v5742_v34 }
 0x17a   : > { %1576 = vrot.lane.b32.xlu1 %v1569_v40, %s5207_s28  ;;  %v1736_v40 = vsel %vm1688_vm7, %v1732_v36, %v1735_v37 }
 0x17c   : > { %v5746_v38 = vpop.permute.xlu1 %1329 }
 0x17d   : > { %10011 = vst [vmem:[#allocation37_spill] sm:$0xff] %v5746_v38  ;;  %v6015_v38 = vstv %s4880_s5  ;;  %s4890_s5 = sld [smem:[#allocation10 + $0x29]] }
 0x17e   : > { %1580 = vrot.lane.b32.xlu1 %v1573_v43, %s5207_s28  ;;  %10059 = vst [vmem:[#allocation85_spill] sm:$0xff] %v6015_v38 }
 0x182   : > { %1584 = vrot.lane.b32.xlu1 %v1572_v41, %s5207_s28 }
 0x186   : > { %1621 = vrot.lane.b32.xlu1 %v1614_v57, %s5207_s28 }
 0x18a   : > { %1625 = vrot.lane.b32.xlu1 %v1618_v63, %s5207_s28 }
 0x18e   : > { %1629 = vrot.lane.b32.xlu1 %v1617_v59, %s5207_s28 }
 0x192   : > { %1666 = vrot.lane.b32.xlu1 %v1659_v12, %s5207_s28 }
 0x196   : > { %1670 = vrot.lane.b32.xlu1 %v1663_v18, %s5207_s28 }
 0x19a   : > { %1697 = vrot.lane.b32.xlu1 %v1690_v22, %s5208_s9  ;;  %v1765_v22 = vmul.f32 %v5770_v17, %v5466_v54 }
 0x19c   : > { %v902_v30 = vpop.permute.xlu0 %901  ;;  %v1777_v32 = vrot.slane %v1765_v22, 7  ;;  %v1849_v22 = vmul.f32 %v5801_v8, %v5466_v54 }
 0x19d   : > { %910 = vst.msk [vmem:[#allocation4 + $0x30] sm:$0xff] %vm569_vm8, %v902_v30 }
 0x19e   : > { %1701 = vrot.lane.b32.xlu1 %v1694_v25, %s5208_s9  ;;  %v1767_v25 = vmul.f32 %v5770_v17, %v5470_v56 }
 0x1a0   : > { %v1780_v33 = vrot.slane %v1767_v25, 7 }
 0x1a2   : > { %1705 = vrot.lane.b32.xlu1 %v1693_v23, %s5208_s9  ;;  %v1740_v23 = vsel %vm1688_vm7, %v1735_v37, %v1739_v13  ;;  %v1781_v37 = vsel %vm1688_vm7, %v1777_v32, %v1780_v33 }
 0x1a4   : > { %v913_v43 = vld [vmem:[#allocation4 + $0x30] sm:$0xff] }
 0x1a6   : > { %1743 = vrot.lane.b32.xlu1 %v1732_v36, %s5208_s9  ;;  %v1769_v36 = vmul.f32 %v5770_v17, %v5488_v1 }
 0x1aa   : > { %1747 = vrot.lane.b32.xlu1 %v1736_v40, %s5208_s9  ;;  %v5785_v40 = vstv %s4867_s29  ;;  %s4879_s29 = sld [smem:[#allocation10 + $0xc]] }
 0x1ab   : > { %10020 = vst [vmem:[#allocation46_spill] sm:$0xff] %v5785_v40 }
 0x1ac   : > { %v904_v41 = vpop.permute.xlu1 %903 }
 0x1ad   : > { %911 = vst.msk [vmem:[#allocation4 + $0x40] sm:$0xff] %vm569_vm8, %v904_v41 }
 0x1ae   : > { %919 = vrot.lane.b32.xlu1 %v913_v43, %s5209_s13  ;;  %v1784_v43 = vrot.slane %v1769_v36, 7 }
 0x1b0   : > { %v563_v46 = vpop.permute.xlu1 %562 }
 0x1b1   : > { %571 = vst.msk [vmem:[#allocation4 + $0x10] sm:$0xff] %vm569_vm8, %v563_v46  ;;  %v1810_v46 = vmul.f32 %v5785_v40, %v5466_v54 }
 0x1b4   : > { %v5753_v47 = vpop.permute.xlu1 %1363  ;;  %v914_v50 = vld [vmem:[#allocation4 + $0x40] sm:$0xff] }
 0x1b5   : > { %10012 = vst [vmem:[#allocation38_spill] sm:$0xff] %v5753_v47  ;;  %921 = vrot.lane.b32.xlu0 %v914_v50, %s5209_s13  ;;  %v1812_v50 = vmul.f32 %v5785_v40, %v5470_v56  ;;  %v5911_v47 = vstv %s4874_s6  ;;  %s4885_s6 = sld [smem:[#allocation10 + $0x6]] }
 0x1b8   : > { %v5756_v51 = vpop.permute.xlu1 %1367  ;;  %v906_v52 = vpop.permute.xlu0 %905  ;;  %v575_v57 = vld [vmem:[#allocation4 + $0x10] sm:$0xff] }
 0x1b9   : > { %10013 = vst [vmem:[#allocation39_spill] sm:$0xff] %v5756_v51  ;;  %912 = vst.msk [vmem:[#allocation4 + $0x50] sm:$0x3f] %vm572_vm9, %v906_v52  ;;  %582 = vrot.lane.b32.xlu0 %v575_v57, %s5209_s13  ;;  %v1785_v57 = vsel %vm1688_vm7, %v1780_v33, %v1784_v43  ;;  %v1863_v33 = vrot.slane %v1849_v22, 3 }
 0x1bc   : > { %v5759_v59 = vpop.permute.xlu1 %1371  ;;  %v561_v63 = vpop.permute.xlu0 %560 }
 0x1bd   : > { %10014 = vst [vmem:[#allocation40_spill] sm:$0xff] %v5759_v59  ;;  %570 = vst.msk [vmem:[#allocation4] sm:$0xff] %vm569_vm8, %v561_v63  ;;  %v1825_v63 = vrot.slane %v1810_v46, 3  ;;  %vm652_vm8 = vcmask 21520  }
 0x1c0   : > { %v5762_v0 = vpop.permute.xlu1 %1401  ;;  %v565_v2 = vpop.permute.xlu0 %564  ;;  %v915_v7 = vld [vmem:[#allocation4 + $0x50] sm:$0x3f] }
 0x1c1   : > { %10015 = vst [vmem:[#allocation41_spill] sm:$0xff] %v5762_v0  ;;  %573 = vst.msk [vmem:[#allocation4 + $0x20] sm:$0x3f] %vm572_vm9, %v565_v2  ;;  %923 = vrot.lane.b32.xlu1 %v915_v7, %s5209_s13  ;;  %v1826_v2 = vrot.slane %v1812_v50, 3  ;;  %v1814_v7 = vmul.f32 %v5785_v40, %v5488_v1  ;;  %vm669_vm9 = vcmask 179368  }
 0x1c3   : > { %v1827_v13 = vsel %vm1821_vm10, %v1825_v63, %v1826_v2 }
 0x1c4   : > { %v5767_v9 = vpop.permute.xlu1 %1405  ;;  %v574_v12 = vld [vmem:[#allocation4] sm:$0xff] }
 0x1c5   : > { %10016 = vst [vmem:[#allocation42_spill] sm:$0xff] %v5767_v9  ;;  %580 = vrot.lane.b32.xlu1 %v574_v12, %s5209_s13 }
 0x1c8   : > { %v5772_v18 = vpop.permute.xlu1 %1409  ;;  %v576_v19 = vld [vmem:[#allocation4 + $0x20] sm:$0x3f] }
 0x1c9   : > { %10018 = vst [vmem:[#allocation44_spill] sm:$0xff] %v5772_v18  ;;  %584 = vrot.lane.b32.xlu1 %v576_v19, %s5209_s13  ;;  %v1830_v19 = vrot.slane %v1814_v7, 3  ;;  %s4877_s13 = sld [smem:[#allocation10 + $0x2e]] }
 0x1cc   : > { %v5780_v30 = vpop.permute.xlu1 %1447 }
 0x1cd   : > { %10019 = vst [vmem:[#allocation45_spill] sm:$0xff] %v5780_v30  ;;  %1751 = vrot.lane.b32.xlu1 %v1740_v23, %s5208_s9  ;;  %v1851_v23 = vmul.f32 %v5801_v8, %v5470_v56 }
 0x1cf   : > { %v1864_v36 = vrot.slane %v1851_v23, 3 }
 0x1d0   : > { %v5787_v41 = vpop.permute.xlu1 %1451 }
 0x1d1   : > { %10021 = vst [vmem:[#allocation47_spill] sm:$0xff] %v5787_v41  ;;  %1788 = vrot.lane.b32.xlu1 %v1777_v32, %s5208_s9  ;;  %v1831_v32 = vsel %vm1821_vm10, %v1826_v2, %v1830_v19  ;;  %v1865_v46 = vsel %vm1821_vm10, %v1863_v33, %v1864_v36 }
 0x1d4   : > { %v5795_v52 = vpop.permute.xlu1 %1455 }
 0x1d5   : > { %10022 = vst [vmem:[#allocation48_spill] sm:$0xff] %v5795_v52  ;;  %1792 = vrot.lane.b32.xlu1 %v1781_v37, %s5208_s9  ;;  %v1853_v37 = vmul.f32 %v5801_v8, %v5488_v1 }
 0x1d7   : > { %v1868_v50 = vrot.slane %v1853_v37, 3 }
 0x1d8   : > { %v5803_v12 = vpop.permute.xlu1 %1493 }
 0x1d9   : > { %10024 = vst [vmem:[#allocation50_spill] sm:$0xff] %v5803_v12  ;;  %1796 = vrot.lane.b32.xlu1 %v1785_v57, %s5208_s9  ;;  %v5821_v57 = vstv %s4869_s21  ;;  %v1869_v2 = vsel %vm1821_vm10, %v1864_v36, %v1868_v50  ;;  %s5211_s21 = smov 123  }
 0x1da   : > { %10027 = vst [vmem:[#allocation53_spill] sm:$0xff] %v5821_v57  ;;  %v1894_v7 = vmul.f32 %v5821_v57, %v5466_v54 }
 0x1dc   : > { %v5811_v25 = vpop.permute.xlu1 %1497  ;;  %v1908_v22 = vrot.slane %v1894_v7, 3 }
 0x1dd   : > { %10025 = vst [vmem:[#allocation51_spill] sm:$0xff] %v5811_v25  ;;  %1834 = vrot.lane.b32.xlu1 %v1827_v13, %s5208_s9  ;;  %v1896_v13 = vmul.f32 %v5821_v57, %v5470_v56 }
 0x1df   : > { %v1909_v23 = vrot.slane %v1896_v13, 3 }
 0x1e0   : > { %v5817_v43 = vpop.permute.xlu1 %1531 }
 0x1e1   : > { %10026 = vst [vmem:[#allocation52_spill] sm:$0xff] %v5817_v43  ;;  %1838 = vrot.lane.b32.xlu1 %v1831_v32, %s5208_s9  ;;  %v1898_v32 = vmul.f32 %v5821_v57, %v5488_v1  ;;  %v1910_v36 = vsel %vm1821_vm10, %v1908_v22, %v1909_v23 }
 0x1e3   : > { %v1913_v37 = vrot.slane %v1898_v32, 3 }
 0x1e4   : > { %v5823_v63 = vpop.permute.xlu1 %1535 }
 0x1e5   : > { %10028 = vst [vmem:[#allocation54_spill] sm:$0xff] %v5823_v63  ;;  %1872 = vrot.lane.b32.xlu1 %v1865_v46, %s5208_s9  ;;  %v5840_v46 = vstv %s4870_s23  ;;  %s4881_s23 = sld [smem:[#allocation10 + $0x1a]] }
 0x1e6   : > { %10031 = vst [vmem:[#allocation57_spill] sm:$0xff] %v5840_v46  ;;  %v1939_v7 = vmul.f32 %v5840_v46, %v5466_v54  ;;  %v1941_v13 = vmul.f32 %v5840_v46, %v5470_v56  ;;  %v1943_v32 = vmul.f32 %v5840_v46, %v5488_v1 }
 0x1e8   : > { %v5831_v19 = vpop.permute.xlu1 %1539  ;;  %v1954_v22 = vrot.slane %v1941_v13, 3 }
 0x1e9   : > { %10029 = vst [vmem:[#allocation55_spill] sm:$0xff] %v5831_v19  ;;  %1876 = vrot.lane.b32.xlu1 %v1869_v2, %s5208_s9  ;;  %v1914_v2 = vsel %vm1821_vm10, %v1909_v23, %v1913_v37 }
 0x1eb   : > { %v6035_v41 = vstv %s4881_s23  ;;  %s4891_s23 = sld [smem:[#allocation10 + $0x30]] }
 0x1ec   : > { %v5836_v33 = vpop.permute.xlu1 %1576  ;;  %10063 = vst [vmem:[#allocation89_spill] sm:$0xff] %v6035_v41 }
 0x1ed   : > { %10030 = vst [vmem:[#allocation56_spill] sm:$0xff] %v5836_v33  ;;  %1880 = vrot.lane.b32.xlu1 %v1868_v50, %s5208_s9  ;;  %v1953_v50 = vrot.slane %v1939_v7, 3  ;;  %v5866_v7 = vstv %s4871_s20  ;;  %s4882_s20 = sld [smem:[#allocation10 + $0x21]] }
 0x1ef   : > { %v1955_v23 = vsel %vm1821_vm10, %v1953_v50, %v1954_v22 }
 0x1f0   : > { %v5842_v63 = vpop.permute.xlu1 %1580 }
 0x1f1   : > { %10032 = vst [vmem:[#allocation58_spill] sm:$0xff] %v5842_v63  ;;  %1917 = vrot.lane.b32.xlu1 %v1910_v36, %s5208_s9  ;;  %v1958_v36 = vrot.slane %v1943_v32, 3  ;;  %v5878_v32 = vstv %s4872_s22  ;;  %s4883_s22 = sld [smem:[#allocation10 + $0x28]] }
 0x1f3   : > { %v1959_v59 = vsel %vm1821_vm10, %v1954_v22, %v1958_v36  ;;  %v1986_v22 = vmul.f32 %v5866_v7, %v5470_v56  ;;  %v6054_v21 = vstv %s4882_s20  ;;  %s4899_s20 = sld [smem:[#allocation10 + $0x32]] }
 0x1f4   : > { %v5850_v51 = vpop.permute.xlu1 %1584  ;;  %10067 = vst [vmem:[#allocation93_spill] sm:$0xff] %v6054_v21 }
 0x1f5   : > { %10033 = vst [vmem:[#allocation59_spill] sm:$0xff] %v5850_v51  ;;  %1921 = vrot.lane.b32.xlu1 %v1914_v2, %s5208_s9 }
 0x1f8   : > { %v5855_v19 = vpop.permute.xlu1 %1621 }
 0x1f9   : > { %10034 = vst [vmem:[#allocation60_spill] sm:$0xff] %v5855_v19  ;;  %1925 = vrot.lane.b32.xlu1 %v1913_v37, %s5208_s9  ;;  %v1984_v37 = vmul.f32 %v5866_v7, %v5466_v54 }
 0x1fc   : > { %v5859_v35 = vpop.permute.xlu1 %1625 }
 0x1fd   : > { %10035 = vst [vmem:[#allocation61_spill] sm:$0xff] %v5859_v35  ;;  %1962 = vrot.lane.b32.xlu1 %v1955_v23, %s5208_s9  ;;  %v2009_v23 = vmul.f32 %v5878_v32, %v5466_v54 }
 0x200   : > { %v5863_v2 = vpop.permute.xlu1 %1629 }
 0x201   : > { %10036 = vst [vmem:[#allocation62_spill] sm:$0xff] %v5863_v2  ;;  %1966 = vrot.lane.b32.xlu1 %v1959_v59, %s5208_s9  ;;  %v5916_v2 = vstv %s4875_s7  ;;  %s4886_s7 = sld [smem:[#allocation10 + $0xd]] }
 0x202   : > { %10044 = vst [vmem:[#allocation70_spill] sm:$0xff] %v5916_v2 }
 0x204   : > { %v5868_v13 = vpop.permute.xlu1 %1666 }
 0x205   : > { %10037 = vst [vmem:[#allocation63_spill] sm:$0xff] %v5868_v13  ;;  %1970 = vrot.lane.b32.xlu1 %v1958_v36, %s5208_s9 }
 0x208   : > { %v5873_v50 = vpop.permute.xlu1 %1670 }
 0x209   : > { %10038 = vst [vmem:[#allocation64_spill] sm:$0xff] %v5873_v50  ;;  %1993 = vrot.lane.b32.xlu1 %v1984_v37, %s5210_s26  ;;  %v2011_v37 = vmul.f32 %v5878_v32, %v5470_v56 }
 0x20c   : > { %v5880_v59 = vpop.permute.xlu1 %1697 }
 0x20d   : > { %10039 = vst [vmem:[#allocation65_spill] sm:$0xff] %v5880_v59  ;;  %1997 = vrot.lane.b32.xlu1 %v1986_v22, %s5210_s26  ;;  %v2013_v59 = vmul.f32 %v5878_v32, %v5488_v1 }
 0x210   : > { %v5885_v36 = vpop.permute.xlu1 %1701 }
 0x211   : > { %10040 = vst [vmem:[#allocation66_spill] sm:$0xff] %v5885_v36  ;;  %2022 = vrot.lane.b32.xlu1 %v2009_v23, %s5210_s26  ;;  %v2044_v36 = vmul.f32 %v5895_v39, %v5466_v54 }
 0x214   : > { %v5890_v43 = vpop.permute.xlu1 %1705 }
 0x215   : > { %10041 = vst [vmem:[#allocation67_spill] sm:$0xff] %v5890_v43  ;;  %2026 = vrot.lane.b32.xlu1 %v2011_v37, %s5210_s26  ;;  %v2046_v37 = vmul.f32 %v5895_v39, %v5470_v56 }
 0x218   : > { %v5897_v22 = vpop.permute.xlu1 %1743 }
 0x219   : > { %10042 = vst [vmem:[#allocation68_spill] sm:$0xff] %v5897_v22  ;;  %2030 = vrot.lane.b32.xlu1 %v2013_v59, %s5210_s26  ;;  %v2048_v59 = vmul.f32 %v5895_v39, %v5488_v1  ;;  %v5933_v22 = vstv %s4876_s11  ;;  %s5212_s11 = smov 4  }
 0x21a   : > { %10045 = vst [vmem:[#allocation71_spill] sm:$0xff] %v5933_v22 }
 0x21c   : > { %v5902_v23 = vpop.permute.xlu1 %1747 }
 0x21d   : > { %10043 = vst [vmem:[#allocation69_spill] sm:$0xff] %v5902_v23  ;;  %2057 = vrot.lane.b32.xlu1 %v2044_v36, %s5210_s26  ;;  %v2079_v36 = vmul.f32 %v5911_v47, %v5466_v54 }
 0x220   : > { %v920_v43 = vpop.permute.xlu1 %919 }
 0x221   : > { %928 = vst.msk [vmem:[#allocation4 + $0x30] sm:$0xff] %vm589_vm11, %v920_v43  ;;  %2061 = vrot.lane.b32.xlu1 %v2046_v37, %s5210_s26  ;;  %v2081_v43 = vmul.f32 %v5911_v47, %v5470_v56  ;;  %v2114_v37 = vmul.f32 %v5916_v2, %v5466_v54 }
 0x225   : > { %2065 = vrot.lane.b32.xlu1 %v2048_v59, %s5210_s26  ;;  %v2116_v59 = vmul.f32 %v5916_v2, %v5470_v56 }
 0x227   : > { %v922_v27 = vpop.permute.xlu0 %921  ;;  %v2129_v4 = vrot.slane %v2116_v59, 4 }
 0x228   : > { %929 = vst.msk [vmem:[#allocation4 + $0x40] sm:$0xff] %vm589_vm11, %v922_v27  ;;  %v931_v52 = vld [vmem:[#allocation4 + $0x30] sm:$0xff]  ;;  %v2083_v27 = vmul.f32 %v5911_v47, %v5488_v1 }
 0x229   : > { %937 = vrot.lane.b32.xlu0 %v931_v52, %s5210_s26  ;;  %2092 = vrot.lane.b32.xlu1 %v2079_v36, %s5210_s26  ;;  %v2128_v52 = vrot.slane %v2114_v37, 4  ;;  %v2118_v36 = vmul.f32 %v5916_v2, %v5488_v1 }
 0x22b   : > { %v583_v24 = vpop.permute.xlu0 %582  ;;  %v2130_v33 = vsel %vm232_vm0, %v2128_v52, %v2129_v4  ;;  %v2133_v0 = vrot.slane %v2118_v36, 4 }
 0x22c   : > { %591 = vst.msk [vmem:[#allocation4 + $0x10] sm:$0xff] %vm589_vm11, %v583_v24  ;;  %v2152_v24 = vmul.f32 %v5933_v22, %v5466_v54 }
 0x22d   : > { %2096 = vrot.lane.b32.xlu1 %v2081_v43, %s5210_s26  ;;  %v2154_v43 = vmul.f32 %v5933_v22, %v5470_v56  ;;  %v2134_v37 = vsel %vm232_vm0, %v2129_v4, %v2133_v0  ;;  %v2156_v56 = vmul.f32 %v5933_v22, %v5488_v1 }
 0x22e   : > { %v2166_v59 = vrot.slane %v2152_v24, 4 }
 0x22f   : > { %v2167_v25 = vrot.slane %v2154_v43, 4 }
 0x231   : > { %2100 = vrot.lane.b32.xlu1 %v2083_v27, %s5210_s26  ;;  %v2168_v52 = vsel %vm232_vm0, %v2166_v59, %v2167_v25 }
 0x233   : > { %v924_v50 = vpop.permute.xlu1 %923  ;;  %v595_v59 = vld [vmem:[#allocation4 + $0x10] sm:$0xff] }
 0x234   : > { %930 = vst.msk [vmem:[#allocation4 + $0x50] sm:$0x3f] %vm592_vm12, %v924_v50  ;;  %v2171_v50 = vrot.slane %v2156_v56, 4 }
 0x235   : > { %2137 = vrot.lane.b32.xlu1 %v2130_v33, %s5210_s26  ;;  %v932_v33 = vld [vmem:[#allocation4 + $0x40] sm:$0xff] }
 0x236   : > { %v2172_v1 = vsel %vm232_vm0, %v2167_v25, %v2171_v50 }
 0x237   : > { %v581_v27 = vpop.permute.xlu1 %580 }
 0x238   : > { %590 = vst.msk [vmem:[#allocation4] sm:$0xff] %vm589_vm11, %v581_v27  ;;  %v5963_v27 = vld [vmem:[#allocation4 + $0x8] sm:$0xff]  ;;  %vm672_vm11 = vcmask 177320  }
 0x239   : > { %2141 = vrot.lane.b32.xlu1 %v2134_v37, %s5210_s26  ;;  %v5958_v37 = vstv %s4877_s13  ;;  %v2318_v35 = vmul.f32 %v5963_v27, %v6015_v38  ;;  %s4887_s13 = sld [smem:[#allocation10 + $0x14]] }
 0x23a   : > { %10048 = vst [vmem:[#allocation74_spill] sm:$0xff] %v5958_v37 }
 0x23b   : > { %v585_v54 = vpop.permute.xlu1 %584  ;;  %v933_v36 = vld [vmem:[#allocation4 + $0x50] sm:$0x3f] }
 0x23c   : > { %593 = vst.msk [vmem:[#allocation4 + $0x20] sm:$0x3f] %vm592_vm12, %v585_v54  ;;  %941 = vrot.lane.b32.xlu0 %v933_v36, %s5210_s26  ;;  %v5967_v54 = vld [vmem:[#allocation4 + $0x18] sm:$0xff]  ;;  %vm1411_vm12 = vcmask 1031168  }
 0x23d   : > { %2175 = vrot.lane.b32.xlu1 %v2168_v52, %s5210_s26  ;;  %v2197_v52 = vmul.f32 %v5963_v27, %v5958_v37  ;;  %v2199_v36 = vmul.f32 %v5967_v54, %v5958_v37 }
 0x23f   : > { %v5952_v4 = vpop.permute.xlu1 %1751  ;;  %v594_v0 = vld [vmem:[#allocation4] sm:$0xff] }
 0x240   : > { %10046 = vst [vmem:[#allocation72_spill] sm:$0xff] %v5952_v4  ;;  %600 = vrot.lane.b32.xlu0 %v594_v0, %s5210_s26  ;;  %v2211_v0 = vrot.slane %v2197_v52, 4  ;;  %v5986_v52 = vstv %s4878_s2  ;;  %s4888_s2 = sld [smem:[#allocation10 + $0x1b]] }
 0x241   : > { %939 = vrot.lane.b32.xlu1 %v932_v33, %s5210_s26  ;;  %v2212_v33 = vrot.slane %v2199_v36, 4  ;;  %10052 = vst [vmem:[#allocation78_spill] sm:$0xff] %v5986_v52 }
 0x243   : > { %v5956_v24 = vpop.permute.xlu1 %1788  ;;  %v596_v43 = vld [vmem:[#allocation4 + $0x20] sm:$0x3f]  ;;  %v2213_v4 = vsel %vm232_vm0, %v2211_v0, %v2212_v33 }
 0x244   : > { %10047 = vst [vmem:[#allocation73_spill] sm:$0xff] %v5956_v24  ;;  %604 = vrot.lane.b32.xlu0 %v596_v43, %s5210_s26  ;;  %v5974_v43 = vld [vmem:[#allocation4 + $0x28] sm:$0x3f] }
 0x245   : > { %602 = vrot.lane.b32.xlu1 %v595_v59, %s5210_s26  ;;  %v2201_v25 = vmul.f32 %v5974_v43, %v5958_v37 }
 0x247   : > { %v5971_v56 = vpop.permute.xlu1 %1792  ;;  %v2216_v48 = vrot.slane %v2201_v25, 4 }
 0x248   : > { %10049 = vst [vmem:[#allocation75_spill] sm:$0xff] %v5971_v56 }
 0x249   : > { %2179 = vrot.lane.b32.xlu1 %v2172_v1, %s5210_s26  ;;  %v2217_v1 = vsel %vm232_vm0, %v2212_v33, %v2216_v48 }
 0x24b   : > { %v5978_v59 = vpop.permute.xlu1 %1796 }
 0x24c   : > { %10050 = vst [vmem:[#allocation76_spill] sm:$0xff] %v5978_v59  ;;  %v2242_v59 = vmul.f32 %v5963_v27, %v5986_v52 }
 0x24d   : > { %2183 = vrot.lane.b32.xlu1 %v2171_v50, %s5210_s26  ;;  %v2244_v50 = vmul.f32 %v5967_v54, %v5986_v52 }
 0x24f   : > { %v5982_v13 = vpop.permute.xlu1 %1834  ;;  %v2253_v25 = vrot.slane %v2244_v50, 5 }
 0x250   : > { %10051 = vst [vmem:[#allocation77_spill] sm:$0xff] %v5982_v13  ;;  %v6000_v13 = vstv %s4879_s29  ;;  %s4889_s29 = sld [smem:[#allocation10 + $0x22]] }
 0x251   : > { %2220 = vrot.lane.b32.xlu1 %v2213_v4, %s5210_s26  ;;  %v2250_v4 = vrot.slane %v2242_v59, 5  ;;  %10056 = vst [vmem:[#allocation82_spill] sm:$0xff] %v6000_v13  ;;  %v2284_v50 = vmul.f32 %v5974_v43, %v6000_v13 }
 0x253   : > { %v5988_v36 = vpop.permute.xlu1 %1838  ;;  %v2299_v12 = vrot.slane %v2284_v50, 1 }
 0x254   : > { %10053 = vst [vmem:[#allocation79_spill] sm:$0xff] %v5988_v36  ;;  %v2280_v36 = vmul.f32 %v5963_v27, %v6000_v13 }
 0x255   : > { %2224 = vrot.lane.b32.xlu1 %v2217_v1, %s5210_s26  ;;  %v2254_v1 = vsel %vm1096_vm2, %v2250_v4, %v2253_v25 }
 0x257   : > { %v5995_v0 = vpop.permute.xlu1 %1872 }
 0x258   : > { %10054 = vst [vmem:[#allocation80_spill] sm:$0xff] %v5995_v0  ;;  %v2282_v0 = vmul.f32 %v5967_v54, %v6000_v13 }
 0x259   : > { %2228 = vrot.lane.b32.xlu1 %v2216_v48, %s5210_s26  ;;  %v2294_v48 = vrot.slane %v2280_v36, 1 }
 0x25a   : > { %v2295_v59 = vrot.slane %v2282_v0, 1 }
 0x25b   : > { %v5998_v33 = vpop.permute.xlu1 %1876 }
 0x25c   : > { %10055 = vst [vmem:[#allocation81_spill] sm:$0xff] %v5998_v33  ;;  %v2300_v0 = vsel %vm1139_vm3, %v2295_v59, %v2299_v12 }
 0x25d   : > { %2257 = vrot.lane.b32.xlu1 %v2250_v4, %s5211_s21  ;;  %v2296_v4 = vsel %vm1139_vm3, %v2294_v48, %v2295_v59  ;;  %v2365_v59 = vmul.f32 %v5967_v54, %v6035_v41 }
 0x25f   : > { %v6008_v56 = vpop.permute.xlu1 %1880 }
 0x260   : > { %10057 = vst [vmem:[#allocation83_spill] sm:$0xff] %v6008_v56  ;;  %v2332_v56 = vrot.slane %v2318_v35, 1  ;;  %v2363_v35 = vmul.f32 %v5963_v27, %v6035_v41 }
 0x261   : > { %2261 = vrot.lane.b32.xlu1 %v2254_v1, %s5211_s21  ;;  %v2320_v1 = vmul.f32 %v5967_v54, %v6015_v38 }
 0x263   : > { %v6013_v33 = vpop.permute.xlu1 %1917 }
 0x264   : > { %10058 = vst [vmem:[#allocation84_spill] sm:$0xff] %v6013_v33  ;;  %v2333_v33 = vrot.slane %v2320_v1, 1  ;;  %v2378_v1 = vrot.slane %v2365_v59, 1  ;;  %v2410_v59 = vmul.f32 %v5967_v54, %v6054_v21 }
 0x265   : > { %2265 = vrot.lane.b32.xlu1 %v2253_v25, %s5211_s21  ;;  %v2322_v25 = vmul.f32 %v5974_v43, %v6015_v38 }
 0x266   : > { %v2334_v50 = vsel %vm1139_vm3, %v2332_v56, %v2333_v33  ;;  %v2377_v56 = vrot.slane %v2363_v35, 1  ;;  %v2408_v35 = vmul.f32 %v5963_v27, %v6054_v21 }
 0x267   : > { %v6023_v36 = vpop.permute.xlu1 %1921  ;;  %v2337_v51 = vrot.slane %v2322_v25, 1 }
 0x268   : > { %10060 = vst [vmem:[#allocation86_spill] sm:$0xff] %v6023_v36 }
 0x269   : > { %2303 = vrot.lane.b32.xlu1 %v2296_v4, %s5211_s21  ;;  %v2338_v12 = vsel %vm1139_vm3, %v2333_v33, %v2337_v51  ;;  %v2379_v33 = vsel %vm1139_vm3, %v2377_v56, %v2378_v1  ;;  %v2423_v56 = vrot.slane %v2410_v59, 1 }
 0x26b   : > { %v6029_v48 = vpop.permute.xlu1 %1925 }
 0x26c   : > { %10061 = vst [vmem:[#allocation87_spill] sm:$0xff] %v6029_v48 }
 0x26d   : > { %2307 = vrot.lane.b32.xlu1 %v2300_v0, %s5211_s21  ;;  %v2367_v0 = vmul.f32 %v5974_v43, %v6035_v41 }
 0x26f   : > { %v6033_v34 = vpop.permute.xlu1 %1962 }
 0x270   : > { %10062 = vst [vmem:[#allocation88_spill] sm:$0xff] %v6033_v34  ;;  %v6073_v34 = vstv %s4883_s22  ;;  %s4900_s22 = sld [smem:[#allocation10 + $0x39]] }
 0x271   : > { %2341 = vrot.lane.b32.xlu1 %v2334_v50, %s5211_s21  ;;  %v2382_v50 = vrot.slane %v2367_v0, 1  ;;  %v2412_v0 = vmul.f32 %v5974_v43, %v6054_v21  ;;  %10071 = vst [vmem:[#allocation97_spill] sm:$0xff] %v6073_v34  ;;  %v2455_v59 = vmul.f32 %v5967_v54, %v6073_v34 }
 0x273   : > { %v6043_v4 = vpop.permute.xlu1 %1966 }
 0x274   : > { %10064 = vst [vmem:[#allocation90_spill] sm:$0xff] %v6043_v4 }
 0x275   : > { %2345 = vrot.lane.b32.xlu1 %v2338_v12, %s5211_s21  ;;  %v2383_v12 = vsel %vm1139_vm3, %v2378_v1, %v2382_v50 }
 0x277   : > { %v6048_v25 = vpop.permute.xlu1 %1970 }
 0x278   : > { %10065 = vst [vmem:[#allocation91_spill] sm:$0xff] %v6048_v25 }
 0x279   : > { %2349 = vrot.lane.b32.xlu1 %v2337_v51, %s5211_s21  ;;  %v2422_v51 = vrot.slane %v2408_v35, 1  ;;  %v2453_v35 = vmul.f32 %v5963_v27, %v6073_v34 }
 0x27b   : > { %v6052_v48 = vpop.permute.xlu1 %1993  ;;  %v2424_v1 = vsel %vm1139_vm3, %v2422_v51, %v2423_v56  ;;  %v2468_v51 = vrot.slane %v2455_v59, 5 }
 0x27c   : > { %10066 = vst [vmem:[#allocation92_spill] sm:$0xff] %v6052_v48  ;;  %v6224_v48 = vstv %s4891_s23  ;;  %s4909_s23 = sld [smem:[#allocation10 + $0x48]] }
 0x27d   : > { %2386 = vrot.lane.b32.xlu1 %v2379_v33, %s5211_s21  ;;  %v2427_v33 = vrot.slane %v2412_v0, 1  ;;  %v2457_v0 = vmul.f32 %v5974_v43, %v6073_v34  ;;  %10103 = vst [vmem:[#allocation129_spill] sm:$0xff] %v6224_v48 }
 0x27f   : > { %v6062_v25 = vpop.permute.xlu1 %1997  ;;  %v2472_v36 = vrot.slane %v2457_v0, 5 }
 0x280   : > { %10068 = vst [vmem:[#allocation94_spill] sm:$0xff] %v6062_v25 }
 0x281   : > { %2390 = vrot.lane.b32.xlu1 %v2383_v12, %s5211_s21  ;;  %v2428_v12 = vsel %vm1139_vm3, %v2423_v56, %v2427_v33  ;;  %v2473_v59 = vsel %vm1096_vm2, %v2468_v51, %v2472_v36  ;;  %v6111_v36 = vstv %s4885_s6  ;;  %s4902_s6 = sld [smem:[#allocation10 + $0x47]] }
 0x282   : > { %10078 = vst [vmem:[#allocation104_spill] sm:$0xff] %v6111_v36  ;;  %v6422_v2 = vstv %s4909_s23  ;;  %s4919_s23 = sld [smem:[#allocation10 + $0x5e]] }
 0x283   : > { %v6067_v4 = vpop.permute.xlu1 %2022 }
 0x284   : > { %10069 = vst [vmem:[#allocation95_spill] sm:$0xff] %v6067_v4 }
 0x285   : > { %2394 = vrot.lane.b32.xlu1 %v2382_v50, %s5211_s21  ;;  %v2467_v50 = vrot.slane %v2453_v35, 5 }
 0x287   : > { %v6071_v10 = vpop.permute.xlu1 %2026  ;;  %v2469_v56 = vsel %vm1096_vm2, %v2467_v50, %v2468_v51 }
 0x288   : > { %10070 = vst [vmem:[#allocation96_spill] sm:$0xff] %v6071_v10 }
 0x289   : > { %2431 = vrot.lane.b32.xlu1 %v2424_v1, %s5211_s21  ;;  %v6088_v1 = vstv %s4884_s27  ;;  %s4901_s27 = sld [smem:[#allocation10 + $0x40]] }
 0x28a   : > { %10074 = vst [vmem:[#allocation100_spill] sm:$0xff] %v6088_v1  ;;  %v2491_v20 = vmul.f32 %v5963_v27, %v6088_v1 }
 0x28b   : > { %v6081_v4 = vpop.permute.xlu1 %2030 }
 0x28c   : > { %10072 = vst [vmem:[#allocation98_spill] sm:$0xff] %v6081_v4  ;;  %v2505_v4 = vrot.slane %v2491_v20, 5 }
 0x28d   : > { %2435 = vrot.lane.b32.xlu1 %v2428_v12, %s5211_s21  ;;  %v2493_v12 = vmul.f32 %v5967_v54, %v6088_v1 }
 0x28f   : > { %v6086_v10 = vpop.permute.xlu1 %2057 }
 0x290   : > { %10073 = vst [vmem:[#allocation99_spill] sm:$0xff] %v6086_v10  ;;  %v2506_v10 = vrot.slane %v2493_v12, 5 }
 0x291   : > { %2439 = vrot.lane.b32.xlu1 %v2427_v33, %s5211_s21  ;;  %v2495_v33 = vmul.f32 %v5974_v43, %v6088_v1 }
 0x292   : > { %v2507_v0 = vsel %vm1096_vm2, %v2505_v4, %v2506_v10  ;;  %v2538_v4 = vmul.f32 %v5967_v54, %v6111_v36 }
 0x293   : > { %v6096_v35 = vpop.permute.xlu1 %2061  ;;  %v2510_v24 = vrot.slane %v2495_v33, 5 }
 0x294   : > { %10075 = vst [vmem:[#allocation101_spill] sm:$0xff] %v6096_v35 }
 0x295   : > { %2476 = vrot.lane.b32.xlu1 %v2469_v56, %s5211_s21  ;;  %v2511_v20 = vsel %vm1096_vm2, %v2506_v10, %v2510_v24  ;;  %v2536_v56 = vmul.f32 %v5963_v27, %v6111_v36 }
 0x297   : > { %v6102_v50 = vpop.permute.xlu1 %2065 }
 0x298   : > { %10076 = vst [vmem:[#allocation102_spill] sm:$0xff] %v6102_v50 }
 0x299   : > { %2480 = vrot.lane.b32.xlu1 %v2473_v59, %s5211_s21  ;;  %v2547_v59 = vrot.slane %v2538_v4, 6 }
 0x29b   : > { %v6106_v18 = vpop.permute.xlu1 %2092  ;;  %v938_v6 = vpop.permute.xlu0 %937 }
 0x29c   : > { %10077 = vst [vmem:[#allocation103_spill] sm:$0xff] %v6106_v18  ;;  %946 = vst.msk [vmem:[#allocation4 + $0x30] sm:$0xff] %vm609_vm13, %v938_v6  ;;  %v2544_v6 = vrot.slane %v2536_v56, 6 }
 0x29d   : > { %2514 = vrot.lane.b32.xlu1 %v2507_v0, %s5211_s21 }
 0x29e   : > { %v2548_v10 = vsel %vm1392_vm5, %v2544_v6, %v2547_v59 }
 0x29f   : > { %v6113_v51 = vpop.permute.xlu1 %2096 }
 0x2a0   : > { %10079 = vst [vmem:[#allocation105_spill] sm:$0xff] %v6113_v51 }
 0x2a1   : > { %2518 = vrot.lane.b32.xlu1 %v2511_v20, %s5211_s21 }
 0x2a3   : > { %v6120_v12 = vpop.permute.xlu1 %2100  ;;  %v949_v4 = vld [vmem:[#allocation4 + $0x30] sm:$0xff] }
 0x2a4   : > { %10080 = vst [vmem:[#allocation106_spill] sm:$0xff] %v6120_v12 }
 0x2a5   : > { %2522 = vrot.lane.b32.xlu1 %v2510_v24, %s5211_s21 }
 0x2a7   : > { %v6123_v33 = vpop.permute.xlu1 %2137 }
 0x2a8   : > { %10081 = vst [vmem:[#allocation107_spill] sm:$0xff] %v6123_v33 }
 0x2a9   : > { %2551 = vrot.lane.b32.xlu1 %v2544_v6, %s5206_s4 }
 0x2ab   : > { %v6127_v0 = vpop.permute.xlu1 %2141 }
 0x2ac   : > { %10082 = vst [vmem:[#allocation108_spill] sm:$0xff] %v6127_v0 }
 0x2ad   : > { %2555 = vrot.lane.b32.xlu1 %v2548_v10, %s5206_s4 }
 0x2ae   : > { %v942_v20 = vpop.permute.xlu0 %941 }
 0x2af   : > { %948 = vst.msk [vmem:[#allocation4 + $0x50] sm:$0x3f] %vm612_vm14, %v942_v20  ;;  %v6130_v50 = vpop.permute.xlu1 %2175  ;;  %v6136_v20 = vstv %s4886_s7  ;;  %s4903_s7 = sld [smem:[#allocation10 + $0x4e]] }
 0x2b0   : > { %10083 = vst [vmem:[#allocation109_spill] sm:$0xff] %v6130_v50  ;;  %10084 = vst [vmem:[#allocation110_spill] sm:$0xff] %v6136_v20 }
 0x2b1   : > { %2559 = vrot.lane.b32.xlu1 %v2547_v59, %s5206_s4 }
 0x2b2   : > { %v601_v24 = vpop.permute.xlu0 %600 }
 0x2b3   : > { %610 = vst.msk [vmem:[#allocation4] sm:$0xff] %vm609_vm13, %v601_v24  ;;  %v940_v56 = vpop.permute.xlu1 %939 }
 0x2b4   : > { %947 = vst.msk [vmem:[#allocation4 + $0x40] sm:$0xff] %vm609_vm13, %v940_v56  ;;  %v2574_v56 = vmul.f32 %v5963_v27, %v6136_v20 }
 0x2b5   : > { %955 = vrot.lane.b32.xlu1 %v949_v4, %s5212_s11  ;;  %v2576_v4 = vmul.f32 %v5967_v54, %v6136_v20 }
 0x2b6   : > { %v605_v6 = vpop.permute.xlu0 %604  ;;  %v951_v10 = vld [vmem:[#allocation4 + $0x50] sm:$0x3f]  ;;  %v2586_v0 = vrot.slane %v2574_v56, 6 }
 0x2b7   : > { %613 = vst.msk [vmem:[#allocation4 + $0x20] sm:$0x3f] %vm612_vm14, %v605_v6  ;;  %v603_v12 = vpop.permute.xlu1 %602  ;;  %v2589_v33 = vrot.slane %v2576_v4, 6  ;;  %vm2561_vm14 = vcmask 998400  }
 0x2b8   : > { %611 = vst.msk [vmem:[#allocation4 + $0x10] sm:$0xff] %vm609_vm13, %v603_v12  ;;  %vm2267_vm13 = vcmask 1006592  }
 0x2b9   : > { %959 = vrot.lane.b32.xlu1 %v951_v10, %s5212_s11  ;;  %v2590_v51 = vsel %vm1392_vm5, %v2586_v0, %v2589_v33 }
 0x2ba   : > { %v614_v24 = vld [vmem:[#allocation4] sm:$0xff] }
 0x2bb   : > { %v6138_v59 = vpop.permute.xlu1 %2179  ;;  %v950_v50 = vld [vmem:[#allocation4 + $0x40] sm:$0xff] }
 0x2bc   : > { %10085 = vst [vmem:[#allocation111_spill] sm:$0xff] %v6138_v59  ;;  %957 = vrot.lane.b32.xlu0 %v950_v50, %s5212_s11  ;;  %v2578_v59 = vmul.f32 %v5974_v43, %v6136_v20 }
 0x2bd   : > { %620 = vrot.lane.b32.xlu1 %v614_v24, %s5212_s11  ;;  %v6150_v24 = vstv %s4887_s13  ;;  %s4905_s13 = sld [smem:[#allocation10 + $0x5c]] }
 0x2be   : > { %v616_v10 = vld [vmem:[#allocation4 + $0x20] sm:$0x3f]  ;;  %10088 = vst [vmem:[#allocation114_spill] sm:$0xff] %v6150_v24  ;;  %v2593_v18 = vrot.slane %v2578_v59, 6  ;;  %v2621_v56 = vmul.f32 %v5967_v54, %v6150_v24  ;;  %v2623_v35 = vmul.f32 %v5974_v43, %v6150_v24 }
 0x2bf   : > { %v6144_v6 = vpop.permute.xlu1 %2183  ;;  %v615_v12 = vld [vmem:[#allocation4 + $0x10] sm:$0xff] }
 0x2c0   : > { %10086 = vst [vmem:[#allocation112_spill] sm:$0xff] %v6144_v6  ;;  %622 = vrot.lane.b32.xlu0 %v615_v12, %s5212_s11  ;;  %v2619_v12 = vmul.f32 %v5963_v27, %v6150_v24  ;;  %v2638_v60 = vrot.slane %v2623_v35, 2 }
 0x2c1   : > { %624 = vrot.lane.b32.xlu1 %v616_v10, %s5212_s11  ;;  %v2594_v10 = vsel %vm1392_vm5, %v2589_v33, %v2593_v18  ;;  %s4904_s11 = sld [smem:[#allocation10 + $0x55]] }
 0x2c2   : > { %v2633_v6 = vrot.slane %v2619_v12, 2 }
 0x2c3   : > { %v6148_v50 = vpop.permute.xlu1 %2220 }
 0x2c4   : > { %10087 = vst [vmem:[#allocation113_spill] sm:$0xff] %v6148_v50  ;;  %v2634_v50 = vrot.slane %v2621_v56, 2 }
 0x2c5   : > { %2597 = vrot.lane.b32.xlu1 %v2586_v0, %s5206_s4  ;;  %v6166_v0 = vstv %s4888_s2  ;;  %s4906_s2 = sld [smem:[#allocation10 + $0x33]] }
 0x2c6   : > { %10091 = vst [vmem:[#allocation117_spill] sm:$0xff] %v6166_v0  ;;  %v2635_v59 = vsel %vm1480_vm6, %v2633_v6, %v2634_v50  ;;  %v2659_v18 = vmul.f32 %v5967_v54, %v6166_v0  ;;  %v2639_v33 = vsel %vm1480_vm6, %v2634_v50, %v2638_v60 }
 0x2c7   : > { %v6158_v4 = vpop.permute.xlu1 %2224 }
 0x2c8   : > { %10089 = vst [vmem:[#allocation115_spill] sm:$0xff] %v6158_v4  ;;  %v2657_v4 = vmul.f32 %v5963_v27, %v6166_v0  ;;  %v2672_v56 = vrot.slane %v2659_v18, 2 }
 0x2c9   : > { %2601 = vrot.lane.b32.xlu1 %v2590_v51, %s5206_s4 }
 0x2ca   : > { %v2671_v12 = vrot.slane %v2657_v4, 2 }
 0x2cb   : > { %v6164_v23 = vpop.permute.xlu1 %2228 }
 0x2cc   : > { %10090 = vst [vmem:[#allocation116_spill] sm:$0xff] %v6164_v23  ;;  %v2673_v35 = vsel %vm1480_vm6, %v2671_v12, %v2672_v56 }
 0x2cd   : > { %2605 = vrot.lane.b32.xlu1 %v2594_v10, %s5206_s4  ;;  %v2661_v10 = vmul.f32 %v5974_v43, %v6166_v0 }
 0x2cf   : > { %v6174_v51 = vpop.permute.xlu1 %2257  ;;  %v2676_v23 = vrot.slane %v2661_v10, 2 }
 0x2d0   : > { %10092 = vst [vmem:[#allocation118_spill] sm:$0xff] %v6174_v51  ;;  %v6186_v51 = vstv %s4889_s29  ;;  %s4907_s29 = sld [smem:[#allocation10 + $0x3a]] }
 0x2d1   : > { %2642 = vrot.lane.b32.xlu1 %v2635_v59, %s5206_s4  ;;  %10095 = vst [vmem:[#allocation121_spill] sm:$0xff] %v6186_v51  ;;  %v2677_v60 = vsel %vm1480_vm6, %v2672_v56, %v2676_v23  ;;  %v2702_v50 = vmul.f32 %v5963_v27, %v6186_v51  ;;  %v2704_v4 = vmul.f32 %v5967_v54, %v6186_v51 }
 0x2d2   : > { %v2706_v12 = vmul.f32 %v5974_v43, %v6186_v51 }
 0x2d3   : > { %v6180_v6 = vpop.permute.xlu1 %2261  ;;  %v2716_v18 = vrot.slane %v2702_v50, 2 }
 0x2d4   : > { %10093 = vst [vmem:[#allocation119_spill] sm:$0xff] %v6180_v6  ;;  %v6205_v6 = vstv %s4890_s5  ;;  %s4908_s5 = sld [smem:[#allocation10 + $0x41]] }
 0x2d5   : > { %2646 = vrot.lane.b32.xlu1 %v2639_v33, %s5206_s4  ;;  %v2717_v33 = vrot.slane %v2704_v4, 2  ;;  %10099 = vst [vmem:[#allocation125_spill] sm:$0xff] %v6205_v6  ;;  %v2747_v50 = vmul.f32 %v5963_v27, %v6205_v6  ;;  %v2749_v4 = vmul.f32 %v5967_v54, %v6205_v6 }
 0x2d7   : > { %v6184_v25 = vpop.permute.xlu1 %2265  ;;  %v2718_v56 = vsel %vm1480_vm6, %v2716_v18, %v2717_v33  ;;  %v2762_v18 = vrot.slane %v2749_v4, 2  ;;  %v2794_v4 = vmul.f32 %v5967_v54, %v6224_v48 }
 0x2d8   : > { %10094 = vst [vmem:[#allocation120_spill] sm:$0xff] %v6184_v25 }
 0x2d9   : > { %2680 = vrot.lane.b32.xlu1 %v2673_v35, %s5206_s4  ;;  %v2721_v35 = vrot.slane %v2706_v12, 2  ;;  %v2751_v12 = vmul.f32 %v5974_v43, %v6205_v6 }
 0x2db   : > { %v6194_v59 = vpop.permute.xlu1 %2303 }
 0x2dc   : > { %10096 = vst [vmem:[#allocation122_spill] sm:$0xff] %v6194_v59 }
 0x2dd   : > { %2684 = vrot.lane.b32.xlu1 %v2677_v60, %s5206_s4  ;;  %v2722_v60 = vsel %vm1480_vm6, %v2717_v33, %v2721_v35 }
 0x2df   : > { %v6199_v10 = vpop.permute.xlu1 %2307 }
 0x2e0   : > { %10097 = vst [vmem:[#allocation123_spill] sm:$0xff] %v6199_v10 }
 0x2e1   : > { %2688 = vrot.lane.b32.xlu1 %v2676_v23, %s5206_s4  ;;  %v2761_v23 = vrot.slane %v2747_v50, 2  ;;  %v2792_v50 = vmul.f32 %v5963_v27, %v6224_v48 }
 0x2e3   : > { %v6203_v25 = vpop.permute.xlu1 %2341  ;;  %v2763_v33 = vsel %vm1480_vm6, %v2761_v23, %v2762_v18  ;;  %v2807_v23 = vrot.slane %v2794_v4, 6  ;;  %v6254_v4 = vld [vmem:[#allocation4 + $0x48] sm:$0xff] }
 0x2e4   : > { %10098 = vst [vmem:[#allocation124_spill] sm:$0xff] %v6203_v25 }
 0x2e5   : > { %2725 = vrot.lane.b32.xlu1 %v2718_v56, %s5206_s4  ;;  %v2766_v56 = vrot.slane %v2751_v12, 2  ;;  %v2796_v12 = vmul.f32 %v5974_v43, %v6224_v48 }
 0x2e7   : > { %v6213_v10 = vpop.permute.xlu1 %2345  ;;  %v2811_v27 = vrot.slane %v2796_v12, 6  ;;  %v6261_v12 = vstv %s4900_s22  ;;  %s4911_s22 = sld [smem:[#allocation10 + $0x56]] }
 0x2e8   : > { %10100 = vst [vmem:[#allocation126_spill] sm:$0xff] %v6213_v10 }
 0x2e9   : > { %2729 = vrot.lane.b32.xlu1 %v2722_v60, %s5206_s4  ;;  %v2767_v60 = vsel %vm1480_vm6, %v2762_v18, %v2766_v56  ;;  %v2812_v54 = vsel %vm1392_vm5, %v2807_v23, %v2811_v27 }
 0x2eb   : > { %v6218_v25 = vpop.permute.xlu1 %2349 }
 0x2ec   : > { %10101 = vst [vmem:[#allocation127_spill] sm:$0xff] %v6218_v25 }
 0x2ed   : > { %2733 = vrot.lane.b32.xlu1 %v2721_v35, %s5206_s4  ;;  %v2806_v35 = vrot.slane %v2792_v50, 6  ;;  %v6247_v50 = vstv %s4899_s20  ;;  %s4910_s20 = sld [smem:[#allocation10 + $0x4f]] }
 0x2ef   : > { %v6222_v59 = vpop.permute.xlu1 %2386  ;;  %v2808_v18 = vsel %vm1392_vm5, %v2806_v35, %v2807_v23  ;;  %v2968_v23 = vmul.f32 %v6247_v50, %v6254_v4 }
 0x2f0   : > { %10102 = vst [vmem:[#allocation128_spill] sm:$0xff] %v6222_v59  ;;  %v6280_v59 = vstv %s4901_s27  ;;  %s4912_s27 = sld [smem:[#allocation10 + $0x5d]] }
 0x2f1   : > { %2770 = vrot.lane.b32.xlu1 %v2763_v33, %s5206_s4 }
 0x2f3   : > { %v6232_v25 = vpop.permute.xlu1 %2390 }
 0x2f4   : > { %10104 = vst [vmem:[#allocation130_spill] sm:$0xff] %v6232_v25 }
 0x2f5   : > { %2774 = vrot.lane.b32.xlu1 %v2767_v60, %s5206_s4  ;;  %v6245_v60 = vld [vmem:[#allocation4 + $0x38] sm:$0xff] }
 0x2f6   : > { %v2990_v27 = vmul.f32 %v6261_v12, %v6245_v60 }
 0x2f7   : > { %v6237_v10 = vpop.permute.xlu1 %2394 }
 0x2f8   : > { %10105 = vst [vmem:[#allocation131_spill] sm:$0xff] %v6237_v10 }
 0x2f9   : > { %2778 = vrot.lane.b32.xlu1 %v2766_v56, %s5206_s4  ;;  %v2966_v56 = vmul.f32 %v6247_v50, %v6245_v60 }
 0x2fb   : > { %v6241_v33 = vpop.permute.xlu1 %2431 }
 0x2fc   : > { %10106 = vst [vmem:[#allocation132_spill] sm:$0xff] %v6241_v33  ;;  %v6306_v33 = vstv %s4903_s7  ;;  %s5213_s7 = smov 6  }
 0x2fd   : > { %2815 = vrot.lane.b32.xlu1 %v2808_v18, %s5206_s4 }
 0x2ff   : > { %v6249_v43 = vpop.permute.xlu1 %2435 }
 0x300   : > { %10107 = vst [vmem:[#allocation133_spill] sm:$0xff] %v6249_v43 }
 0x301   : > { %2819 = vrot.lane.b32.xlu1 %v2812_v54, %s5206_s4 }
 0x303   : > { %v6256_v35 = vpop.permute.xlu1 %2439 }
 0x304   : > { %10108 = vst [vmem:[#allocation134_spill] sm:$0xff] %v6256_v35  ;;  %v6273_v35 = vld [vmem:[#allocation4 + $0x58] sm:$0x3f] }
 0x305   : > { %2975 = vrot.lane.b32.xlu1 %v2966_v56, %s5205_s12  ;;  %v2992_v56 = vmul.f32 %v6261_v12, %v6254_v4 }
 0x307   : > { %v6263_v18 = vpop.permute.xlu1 %2476 }
 0x308   : > { %10109 = vst [vmem:[#allocation135_spill] sm:$0xff] %v6263_v18 }
 0x309   : > { %2979 = vrot.lane.b32.xlu1 %v2968_v23, %s5205_s12  ;;  %v2994_v23 = vmul.f32 %v6261_v12, %v6273_v35 }
 0x30b   : > { %v6268_v54 = vpop.permute.xlu1 %2480 }
 0x30c   : > { %10110 = vst [vmem:[#allocation136_spill] sm:$0xff] %v6268_v54 }
 0x30d   : > { %3003 = vrot.lane.b32.xlu1 %v2990_v27, %s5205_s12  ;;  %v3025_v27 = vmul.f32 %v6280_v59, %v6245_v60 }
 0x30f   : > { %v6275_v10 = vpop.permute.xlu1 %2514 }
 0x310   : > { %10111 = vst [vmem:[#allocation137_spill] sm:$0xff] %v6275_v10 }
 0x311   : > { %3007 = vrot.lane.b32.xlu1 %v2992_v56, %s5205_s12  ;;  %v3027_v56 = vmul.f32 %v6280_v59, %v6254_v4 }
 0x313   : > { %v6282_v18 = vpop.permute.xlu1 %2518 }
 0x314   : > { %10112 = vst [vmem:[#allocation138_spill] sm:$0xff] %v6282_v18  ;;  %v3029_v18 = vmul.f32 %v6280_v59, %v6273_v35 }
 0x315   : > { %3011 = vrot.lane.b32.xlu1 %v2994_v23, %s5205_s12  ;;  %v6297_v23 = vstv %s4902_s6  ;;  %s4913_s6 = sld [smem:[#allocation10 + $0x34]] }
 0x317   : > { %v6287_v54 = vpop.permute.xlu1 %2522 }
 0x318   : > { %10113 = vst [vmem:[#allocation139_spill] sm:$0xff] %v6287_v54 }
 0x319   : > { %3038 = vrot.lane.b32.xlu1 %v3025_v27, %s5205_s12  ;;  %v3060_v27 = vmul.f32 %v6297_v23, %v6245_v60 }
 0x31b   : > { %v6292_v10 = vpop.permute.xlu1 %2551 }
 0x31c   : > { %10114 = vst [vmem:[#allocation140_spill] sm:$0xff] %v6292_v10  ;;  %v3095_v10 = vmul.f32 %v6306_v33, %v6245_v60 }
 0x31d   : > { %3042 = vrot.lane.b32.xlu1 %v3027_v56, %s5205_s12  ;;  %v3062_v56 = vmul.f32 %v6297_v23, %v6254_v4 }
 0x31e   : > { %v3109_v25 = vrot.slane %v3095_v10, 4 }
 0x31f   : > { %v6299_v43 = vpop.permute.xlu1 %2555 }
 0x320   : > { %10115 = vst [vmem:[#allocation141_spill] sm:$0xff] %v6299_v43  ;;  %v3097_v43 = vmul.f32 %v6306_v33, %v6254_v4 }
 0x321   : > { %3046 = vrot.lane.b32.xlu1 %v3029_v18, %s5205_s12 }
 0x323   : > { %v6304_v54 = vpop.permute.xlu1 %2559 }
 0x324   : > { %10116 = vst [vmem:[#allocation142_spill] sm:$0xff] %v6304_v54  ;;  %v3064_v54 = vmul.f32 %v6297_v23, %v6273_v35 }
 0x325   : > { %3073 = vrot.lane.b32.xlu1 %v3060_v27, %s5205_s12  ;;  %v3110_v27 = vrot.slane %v3097_v43, 4 }
 0x327   : > { %v956_v18 = vpop.permute.xlu1 %955  ;;  %v3111_v9 = vsel %vm232_vm0, %v3109_v25, %v3110_v27  ;;  %v6331_v25 = vstv %s4904_s11  ;;  %s4914_s11 = sld [smem:[#allocation10 + $0x3b]] }
 0x328   : > { %964 = vst.msk [vmem:[#allocation4 + $0x30] sm:$0xff] %vm629_vm15, %v956_v18 }
 0x329   : > { %3077 = vrot.lane.b32.xlu1 %v3062_v56, %s5205_s12 }
 0x32b   : > { %v960_v63 = vpop.permute.xlu1 %959 }
 0x32c   : > { %966 = vst.msk [vmem:[#allocation4 + $0x50] sm:$0x3f] %vm632_vm1, %v960_v63 }
 0x32d   : > { %3081 = vrot.lane.b32.xlu1 %v3064_v54, %s5205_s12 }
 0x32e   : > { %v958_v19 = vpop.permute.xlu0 %957 }
 0x32f   : > { %965 = vst.msk [vmem:[#allocation4 + $0x40] sm:$0xff] %vm629_vm15, %v958_v19  ;;  %v621_v18 = vpop.permute.xlu1 %620  ;;  %v967_v30 = vld [vmem:[#allocation4 + $0x30] sm:$0xff]  ;;  %v3099_v19 = vmul.f32 %v6306_v33, %v6273_v35 }
 0x330   : > { %630 = vst.msk [vmem:[#allocation4] sm:$0xff] %vm629_vm15, %v621_v18  ;;  %973 = vrot.lane.b32.xlu0 %v967_v30, %s5207_s28  ;;  %v3133_v18 = vmul.f32 %v6331_v25, %v6245_v60 }
 0x331   : > { %3118 = vrot.lane.b32.xlu1 %v3111_v9, %s5205_s12  ;;  %v3114_v9 = vrot.slane %v3099_v19, 4  ;;  %v3137_v19 = vmul.f32 %v6331_v25, %v6273_v35 }
 0x332   : > { %v623_v10 = vpop.permute.xlu0 %622 }
 0x333   : > { %631 = vst.msk [vmem:[#allocation4 + $0x10] sm:$0xff] %vm629_vm15, %v623_v10  ;;  %v625_v63 = vpop.permute.xlu1 %624  ;;  %v969_v43 = vld [vmem:[#allocation4 + $0x50] sm:$0x3f]  ;;  %v3135_v10 = vmul.f32 %v6331_v25, %v6254_v4  ;;  %v3152_v48 = vrot.slane %v3137_v19, 4 }
 0x334   : > { %633 = vst.msk [vmem:[#allocation4 + $0x20] sm:$0x3f] %vm632_vm1, %v625_v63  ;;  %977 = vrot.lane.b32.xlu0 %v969_v43, %s5207_s28 }
 0x336   : > { %v968_v54 = vld [vmem:[#allocation4 + $0x40] sm:$0xff] }
 0x337   : > { %975 = vrot.lane.b32.xlu1 %v968_v54, %s5207_s28  ;;  %v634_v30 = vld [vmem:[#allocation4] sm:$0xff]  ;;  %v6334_v56 = vpop.permute.xlu1 %2597  ;;  %v3115_v54 = vsel %vm232_vm0, %v3110_v27, %v3114_v9 }
 0x338   : > { %10117 = vst [vmem:[#allocation143_spill] sm:$0xff] %v6334_v56  ;;  %640 = vrot.lane.b32.xlu0 %v634_v30, %s5207_s28  ;;  %v3147_v56 = vrot.slane %v3133_v18, 4  ;;  %v3148_v30 = vrot.slane %v3135_v10, 4 }
 0x33a   : > { %v635_v63 = vld [vmem:[#allocation4 + $0x10] sm:$0xff]  ;;  %v3149_v53 = vsel %vm232_vm0, %v3147_v56, %v3148_v30  ;;  %v3153_v27 = vsel %vm232_vm0, %v3148_v30, %v3152_v48 }
 0x33b   : > { %642 = vrot.lane.b32.xlu1 %v635_v63, %s5207_s28  ;;  %v636_v43 = vld [vmem:[#allocation4 + $0x20] sm:$0x3f]  ;;  %v6342_v49 = vpop.permute.xlu1 %2601  ;;  %v6352_v63 = vstv %s4905_s13  ;;  %s4915_s13 = sld [smem:[#allocation10 + $0x42]] }
 0x33c   : > { %10118 = vst [vmem:[#allocation144_spill] sm:$0xff] %v6342_v49  ;;  %644 = vrot.lane.b32.xlu0 %v636_v43, %s5207_s28  ;;  %v3178_v9 = vmul.f32 %v6352_v63, %v6245_v60  ;;  %v3180_v18 = vmul.f32 %v6352_v63, %v6254_v4 }
 0x33e   : > { %v3192_v56 = vrot.slane %v3178_v9, 4  ;;  %v3193_v43 = vrot.slane %v3180_v18, 4 }
 0x33f   : > { %3122 = vrot.lane.b32.xlu1 %v3115_v54, %s5205_s12  ;;  %v6349_v11 = vpop.permute.xlu1 %2605  ;;  %v3182_v54 = vmul.f32 %v6352_v63, %v6273_v35 }
 0x340   : > { %10119 = vst [vmem:[#allocation145_spill] sm:$0xff] %v6349_v11  ;;  %v3194_v30 = vsel %vm232_vm0, %v3192_v56, %v3193_v43 }
 0x341   : > { %v3197_v19 = vrot.slane %v3182_v54, 4 }
 0x343   : > { %3156 = vrot.lane.b32.xlu1 %v3149_v53, %s5205_s12  ;;  %v6355_v49 = vpop.permute.xlu1 %2642 }
 0x344   : > { %10120 = vst [vmem:[#allocation146_spill] sm:$0xff] %v6355_v49  ;;  %v6402_v49 = vstv %s4908_s5  ;;  %s4918_s5 = sld [smem:[#allocation10 + $0x57]] }
 0x345   : > { %v3298_v34 = vmul.f32 %v6402_v49, %v6245_v60 }
 0x347   : > { %3160 = vrot.lane.b32.xlu1 %v3153_v27, %s5205_s12  ;;  %v6363_v10 = vpop.permute.xlu1 %2646  ;;  %v3198_v27 = vsel %vm232_vm0, %v3193_v43, %v3197_v19  ;;  %v6387_v43 = vstv %s4907_s29  ;;  %s4917_s29 = sld [smem:[#allocation10 + $0x50]] }
 0x348   : > { %10121 = vst [vmem:[#allocation147_spill] sm:$0xff] %v6363_v10  ;;  %v6375_v10 = vstv %s4906_s2  ;;  %s4916_s2 = sld [smem:[#allocation10 + $0x49]] }
 0x349   : > { %v3225_v18 = vmul.f32 %v6375_v10, %v6254_v4 }
 0x34b   : > { %3164 = vrot.lane.b32.xlu1 %v3152_v48, %s5205_s12  ;;  %v6368_v53 = vpop.permute.xlu1 %2680  ;;  %v3223_v48 = vmul.f32 %v6375_v10, %v6245_v60 }
 0x34c   : > { %10122 = vst [vmem:[#allocation148_spill] sm:$0xff] %v6368_v53  ;;  %v3262_v53 = vmul.f32 %v6387_v43, %v6254_v4 }
 0x34d   : > { %v3231_v54 = vrot.slane %v3223_v48, 5 }
 0x34f   : > { %3201 = vrot.lane.b32.xlu1 %v3194_v30, %s5205_s12  ;;  %v6372_v11 = vpop.permute.xlu1 %2684  ;;  %v3234_v30 = vrot.slane %v3225_v18, 5  ;;  %v3275_v18 = vrot.slane %v3262_v53, 1 }
 0x350   : > { %10123 = vst [vmem:[#allocation149_spill] sm:$0xff] %v6372_v11  ;;  %v3260_v11 = vmul.f32 %v6387_v43, %v6245_v60 }
 0x352   : > { %v3274_v48 = vrot.slane %v3260_v11, 1 }
 0x353   : > { %3205 = vrot.lane.b32.xlu1 %v3198_v27, %s5205_s12  ;;  %v6378_v9 = vpop.permute.xlu1 %2688 }
 0x354   : > { %10124 = vst [vmem:[#allocation150_spill] sm:$0xff] %v6378_v9  ;;  %v3235_v9 = vsel %vm1096_vm2, %v3231_v54, %v3234_v30 }
 0x357   : > { %3209 = vrot.lane.b32.xlu1 %v3197_v19, %s5205_s12  ;;  %v6385_v56 = vpop.permute.xlu1 %2725 }
 0x358   : > { %10125 = vst [vmem:[#allocation151_spill] sm:$0xff] %v6385_v56  ;;  %v3264_v56 = vmul.f32 %v6387_v43, %v6273_v35 }
 0x35a   : > { %v3279_v24 = vrot.slane %v3264_v56, 1 }
 0x35b   : > { %3238 = vrot.lane.b32.xlu1 %v3231_v54, %s5207_s28  ;;  %v6390_v27 = vpop.permute.xlu1 %2729 }
 0x35c   : > { %10126 = vst [vmem:[#allocation152_spill] sm:$0xff] %v6390_v27  ;;  %v3276_v27 = vsel %vm1139_vm3, %v3274_v48, %v3275_v18  ;;  %v3280_v53 = vsel %vm1139_vm3, %v3275_v18, %v3279_v24  ;;  %v3345_v18 = vmul.f32 %v6422_v2, %v6254_v4 }
 0x35f   : > { %3242 = vrot.lane.b32.xlu1 %v3235_v9, %s5207_s28  ;;  %v6398_v19 = vpop.permute.xlu1 %2733  ;;  %v3300_v9 = vmul.f32 %v6402_v49, %v6254_v4 }
 0x360   : > { %10127 = vst [vmem:[#allocation153_spill] sm:$0xff] %v6398_v19  ;;  %v3312_v19 = vrot.slane %v3298_v34, 1  ;;  %v3343_v34 = vmul.f32 %v6422_v2, %v6245_v60 }
 0x363   : > { %3246 = vrot.lane.b32.xlu1 %v3234_v30, %s5207_s28  ;;  %v6405_v54 = vpop.permute.xlu1 %2770  ;;  %v3313_v30 = vrot.slane %v3300_v9, 1 }
 0x364   : > { %10128 = vst [vmem:[#allocation154_spill] sm:$0xff] %v6405_v54  ;;  %v3302_v54 = vmul.f32 %v6402_v49, %v6273_v35 }
 0x365   : > { %v3314_v48 = vsel %vm1139_vm3, %v3312_v19, %v3313_v30  ;;  %v3357_v19 = vrot.slane %v3343_v34, 1 }
 0x366   : > { %v3317_v13 = vrot.slane %v3302_v54, 1  ;;  %v3358_v54 = vrot.slane %v3345_v18, 1 }
 0x367   : > { %3283 = vrot.lane.b32.xlu1 %v3276_v27, %s5207_s28  ;;  %v6413_v11 = vpop.permute.xlu1 %2774 }
 0x368   : > { %10129 = vst [vmem:[#allocation155_spill] sm:$0xff] %v6413_v11  ;;  %v3318_v24 = vsel %vm1139_vm3, %v3313_v30, %v3317_v13  ;;  %v3359_v30 = vsel %vm1139_vm3, %v3357_v19, %v3358_v54 }
 0x36b   : > { %3287 = vrot.lane.b32.xlu1 %v3280_v53, %s5207_s28  ;;  %v6419_v56 = vpop.permute.xlu1 %2778  ;;  %v3347_v53 = vmul.f32 %v6422_v2, %v6273_v35 }
 0x36c   : > { %10130 = vst [vmem:[#allocation156_spill] sm:$0xff] %v6419_v56 }
 0x36d   : > { %v3362_v56 = vrot.slane %v3347_v53, 1 }
 0x36f   : > { %3321 = vrot.lane.b32.xlu1 %v3314_v48, %s5207_s28  ;;  %v6425_v27 = vpop.permute.xlu1 %2815 }
 0x370   : > { %10131 = vst [vmem:[#allocation157_spill] sm:$0xff] %v6425_v27  ;;  %v6441_v27 = vstv %s4910_s20  ;;  %s4920_s20 = sld [smem:[#allocation10 + $0x35]] }
 0x371   : > { %v3388_v34 = vmul.f32 %v6441_v27, %v6245_v60  ;;  %v3390_v18 = vmul.f32 %v6441_v27, %v6254_v4 }
 0x373   : > { %3325 = vrot.lane.b32.xlu1 %v3318_v24, %s5207_s28  ;;  %v6433_v9 = vpop.permute.xlu1 %2819  ;;  %v3363_v24 = vsel %vm1139_vm3, %v3358_v54, %v3362_v56  ;;  %v3402_v19 = vrot.slane %v3388_v34, 1  ;;  %v3403_v53 = vrot.slane %v3390_v18, 1 }
 0x374   : > { %10132 = vst [vmem:[#allocation158_spill] sm:$0xff] %v6433_v9 }
 0x375   : > { %v3404_v54 = vsel %vm1139_vm3, %v3402_v19, %v3403_v53 }
 0x376   : > { %v6630_v36 = vstv %s4920_s20  ;;  %s4934_s20 = sld [smem:[#allocation10 + $0x37]] }
 0x377   : > { %3329 = vrot.lane.b32.xlu1 %v3317_v13, %s5207_s28  ;;  %v6438_v48 = vpop.permute.xlu1 %2975 }
 0x378   : > { %10133 = vst [vmem:[#allocation159_spill] sm:$0xff] %v6438_v48  ;;  %v6460_v48 = vstv %s4911_s22  ;;  %s4921_s22 = sld [smem:[#allocation10 + $0x3c]] }
 0x379   : > { %v3433_v18 = vmul.f32 %v6460_v48, %v6245_v60 }
 0x37b   : > { %3366 = vrot.lane.b32.xlu1 %v3359_v30, %s5207_s28  ;;  %v6444_v11 = vpop.permute.xlu1 %2979  ;;  %v3392_v30 = vmul.f32 %v6441_v27, %v6273_v35  ;;  %v3447_v19 = vrot.slane %v3433_v18, 5 }
 0x37c   : > { %10134 = vst [vmem:[#allocation160_spill] sm:$0xff] %v6444_v11 }
 0x37d   : > { %v3407_v11 = vrot.slane %v3392_v30, 1 }
 0x37f   : > { %3370 = vrot.lane.b32.xlu1 %v3363_v24, %s5207_s28  ;;  %v6452_v13 = vpop.permute.xlu1 %3003  ;;  %v3408_v34 = vsel %vm1139_vm3, %v3403_v53, %v3407_v11 }
 0x380   : > { %10135 = vst [vmem:[#allocation161_spill] sm:$0xff] %v6452_v13  ;;  %v3437_v13 = vmul.f32 %v6460_v48, %v6273_v35 }
 0x382   : > { %v3452_v40 = vrot.slane %v3437_v13, 5 }
 0x383   : > { %3374 = vrot.lane.b32.xlu1 %v3362_v56, %s5207_s28  ;;  %v6457_v9 = vpop.permute.xlu1 %3007  ;;  %v3435_v56 = vmul.f32 %v6460_v48, %v6254_v4 }
 0x384   : > { %10136 = vst [vmem:[#allocation162_spill] sm:$0xff] %v6457_v9 }
 0x385   : > { %v3448_v30 = vrot.slane %v3435_v56, 5 }
 0x387   : > { %3411 = vrot.lane.b32.xlu1 %v3404_v54, %s5207_s28  ;;  %v6463_v24 = vpop.permute.xlu1 %3011  ;;  %v6475_v54 = vstv %s4912_s27  ;;  %v3453_v56 = vsel %vm1096_vm2, %v3448_v30, %v3452_v40  ;;  %v6499_v40 = vstv %s4913_s6  ;;  %s4922_s27 = sld [smem:[#allocation10 + $0x43]]  ;;  %s4923_s6 = sld [smem:[#allocation10 + $0x4a]] }
 0x388   : > { %10137 = vst [vmem:[#allocation163_spill] sm:$0xff] %v6463_v24  ;;  %v3449_v24 = vsel %vm1096_vm2, %v3447_v19, %v3448_v30  ;;  %v3471_v62 = vmul.f32 %v6475_v54, %v6245_v60  ;;  %v3516_v30 = vmul.f32 %v6499_v40, %v6245_v60 }
 0x38b   : > { %3415 = vrot.lane.b32.xlu1 %v3408_v34, %s5207_s28  ;;  %v6471_v9 = vpop.permute.xlu1 %3038  ;;  %v3473_v34 = vmul.f32 %v6475_v54, %v6254_v4 }
 0x38c   : > { %10138 = vst [vmem:[#allocation164_spill] sm:$0xff] %v6471_v9  ;;  %v3485_v9 = vrot.slane %v3471_v62, 5 }
 0x38d   : > { %v3486_v3 = vrot.slane %v3473_v34, 5  ;;  %v6665_v1 = vstv %s4922_s27  ;;  %s4936_s27 = sld [smem:[#allocation10 + $0x45]] }
 0x38f   : > { %3419 = vrot.lane.b32.xlu1 %v3407_v11, %s5207_s28  ;;  %v6478_v53 = vpop.permute.xlu1 %3042  ;;  %v3475_v11 = vmul.f32 %v6475_v54, %v6273_v35  ;;  %v3487_v19 = vsel %vm1096_vm2, %v3485_v9, %v3486_v3 }
 0x390   : > { %10139 = vst [vmem:[#allocation165_spill] sm:$0xff] %v6478_v53 }
 0x391   : > { %v3490_v53 = vrot.slane %v3475_v11, 5 }
 0x393   : > { %3456 = vrot.lane.b32.xlu1 %v3449_v24, %s5207_s28  ;;  %v6486_v18 = vpop.permute.xlu1 %3046 }
 0x394   : > { %10140 = vst [vmem:[#allocation166_spill] sm:$0xff] %v6486_v18  ;;  %v3491_v18 = vsel %vm1096_vm2, %v3486_v3, %v3490_v53 }
 0x397   : > { %3460 = vrot.lane.b32.xlu1 %v3453_v56, %s5207_s28  ;;  %v6492_v13 = vpop.permute.xlu1 %3073  ;;  %v3524_v56 = vrot.slane %v3516_v30, 6  ;;  %v3518_v30 = vmul.f32 %v6499_v40, %v6254_v4 }
 0x398   : > { %10141 = vst [vmem:[#allocation167_spill] sm:$0xff] %v6492_v13 }
 0x39b   : > { %3494 = vrot.lane.b32.xlu1 %v3487_v19, %s5207_s28  ;;  %v6496_v24 = vpop.permute.xlu1 %3077 }
 0x39c   : > { %10142 = vst [vmem:[#allocation168_spill] sm:$0xff] %v6496_v24 }
 0x39f   : > { %3498 = vrot.lane.b32.xlu1 %v3491_v18, %s5207_s28  ;;  %v6502_v62 = vpop.permute.xlu1 %3081 }
 0x3a0   : > { %10143 = vst [vmem:[#allocation169_spill] sm:$0xff] %v6502_v62 }
 0x3a2   : > { %v974_v34 = vpop.permute.xlu0 %973 }
 0x3a3   : > { %982 = vst.msk [vmem:[#allocation4 + $0x30] sm:$0xff] %vm649_vm4, %v974_v34  ;;  %3502 = vrot.lane.b32.xlu1 %v3490_v53, %s5207_s28  ;;  %v6508_v9 = vpop.permute.xlu1 %3118 }
 0x3a4   : > { %10144 = vst [vmem:[#allocation170_spill] sm:$0xff] %v6508_v9 }
 0x3a6   : > { %v978_v3 = vpop.permute.xlu0 %977 }
 0x3a7   : > { %984 = vst.msk [vmem:[#allocation4 + $0x50] sm:$0x3f] %vm652_vm8, %v978_v3  ;;  %3531 = vrot.lane.b32.xlu1 %v3524_v56, %s5208_s9 }
 0x3a9   : > { %v976_v18 = vpop.permute.xlu1 %975 }
 0x3aa   : > { %983 = vst.msk [vmem:[#allocation4 + $0x40] sm:$0xff] %vm649_vm4, %v976_v18  ;;  %v641_v11 = vpop.permute.xlu0 %640  ;;  %v985_v19 = vld [vmem:[#allocation4 + $0x30] sm:$0xff] }
 0x3ab   : > { %650 = vst.msk [vmem:[#allocation4] sm:$0xff] %vm649_vm4, %v641_v11  ;;  %991 = vrot.lane.b32.xlu1 %v985_v19, %s5213_s7  ;;  %v3527_v11 = vrot.slane %v3518_v30, 6 }
 0x3ad   : > { %v643_v34 = vpop.permute.xlu1 %642 }
 0x3ae   : > { %651 = vst.msk [vmem:[#allocation4 + $0x10] sm:$0xff] %vm649_vm4, %v643_v34  ;;  %v645_v53 = vpop.permute.xlu0 %644  ;;  %v987_v9 = vld [vmem:[#allocation4 + $0x50] sm:$0x3f] }
 0x3af   : > { %653 = vst.msk [vmem:[#allocation4 + $0x20] sm:$0x3f] %vm652_vm8, %v645_v53  ;;  %995 = vrot.lane.b32.xlu1 %v987_v9, %s5213_s7  ;;  %v3528_v53 = vsel %vm1392_vm5, %v3524_v56, %v3527_v11  ;;  %v6521_v9 = vstv %s4914_s11  ;;  %s4928_s11 = sld [smem:[#allocation10 + $0x3d]] }
 0x3b0   : > { %v3557_v56 = vmul.f32 %v6521_v9, %v6273_v35 }
 0x3b1   : > { %v6516_v3 = vpop.permute.xlu1 %3122  ;;  %v986_v18 = vld [vmem:[#allocation4 + $0x40] sm:$0xff] }
 0x3b2   : > { %10145 = vst [vmem:[#allocation171_spill] sm:$0xff] %v6516_v3  ;;  %993 = vrot.lane.b32.xlu0 %v986_v18, %s5213_s7  ;;  %v654_v62 = vld [vmem:[#allocation4] sm:$0xff]  ;;  %v3553_v18 = vmul.f32 %v6521_v9, %v6245_v60  ;;  %v3572_v3 = vrot.slane %v3557_v56, 6 }
 0x3b3   : > { %660 = vrot.lane.b32.xlu1 %v654_v62, %s5213_s7  ;;  %v3555_v62 = vmul.f32 %v6521_v9, %v6254_v4 }
 0x3b5   : > { %v6518_v24 = vpop.permute.xlu1 %3156  ;;  %v655_v19 = vld [vmem:[#allocation4 + $0x10] sm:$0xff] }
 0x3b6   : > { %10146 = vst [vmem:[#allocation172_spill] sm:$0xff] %v6518_v24  ;;  %662 = vrot.lane.b32.xlu0 %v655_v19, %s5213_s7  ;;  %v656_v34 = vld [vmem:[#allocation4 + $0x20] sm:$0x3f]  ;;  %v3565_v19 = vrot.slane %v3553_v18, 6 }
 0x3b7   : > { %664 = vrot.lane.b32.xlu1 %v656_v34, %s5213_s7  ;;  %v3568_v34 = vrot.slane %v3555_v62, 6  ;;  %s4924_s7 = sld [smem:[#allocation10 + $0x51]] }
 0x3b9   : > { %v6523_v13 = vpop.permute.xlu1 %3160  ;;  %v3573_v62 = vsel %vm1392_vm5, %v3568_v34, %v3572_v3 }
 0x3ba   : > { %10147 = vst [vmem:[#allocation173_spill] sm:$0xff] %v6523_v13  ;;  %v3569_v13 = vsel %vm1392_vm5, %v3565_v19, %v3568_v34 }
 0x3bb   : > { %3535 = vrot.lane.b32.xlu1 %v3528_v53, %s5208_s9  ;;  %v6538_v53 = vstv %s4915_s13  ;;  %s4929_s13 = sld [smem:[#allocation10 + $0x44]] }
 0x3bc   : > { %v3602_v61 = vmul.f32 %v6538_v53, %v6273_v35 }
 0x3bd   : > { %v6530_v30 = vpop.permute.xlu1 %3164  ;;  %v6695_v41 = vstv %s4924_s7  ;;  %s8303_s7 = sld [smem:[#allocation10 + $0x23]] }
 0x3be   : > { %10148 = vst [vmem:[#allocation174_spill] sm:$0xff] %v6530_v30  ;;  %v3598_v30 = vmul.f32 %v6538_v53, %v6245_v60  ;;  %v3617_v51 = vrot.slane %v3602_v61, 2 }
 0x3bf   : > { %3539 = vrot.lane.b32.xlu1 %v3527_v11, %s5208_s9  ;;  %v3600_v11 = vmul.f32 %v6538_v53, %v6254_v4 }
 0x3c1   : > { %v6535_v24 = vpop.permute.xlu1 %3201  ;;  %v3613_v44 = vrot.slane %v3600_v11, 2 }
 0x3c2   : > { %10149 = vst [vmem:[#allocation175_spill] sm:$0xff] %v6535_v24  ;;  %v3612_v24 = vrot.slane %v3598_v30, 2 }
 0x3c3   : > { %3576 = vrot.lane.b32.xlu1 %v3565_v19, %s5208_s9  ;;  %v6554_v19 = vstv %s4916_s2  ;;  %v3618_v30 = vsel %vm1480_vm6, %v3613_v44, %v3617_v51  ;;  %s4930_s2 = sld [smem:[#allocation10 + $0x4b]] }
 0x3c4   : > { %v3614_v56 = vsel %vm1480_vm6, %v3612_v24, %v3613_v44 }
 0x3c5   : > { %v6545_v18 = vpop.permute.xlu1 %3205 }
 0x3c6   : > { %10150 = vst [vmem:[#allocation176_spill] sm:$0xff] %v6545_v18  ;;  %v3636_v18 = vmul.f32 %v6554_v19, %v6245_v60 }
 0x3c7   : > { %3580 = vrot.lane.b32.xlu1 %v3569_v13, %s5208_s9  ;;  %v3638_v13 = vmul.f32 %v6554_v19, %v6254_v4 }
 0x3c8   : > { %v3650_v34 = vrot.slane %v3636_v18, 2 }
 0x3c9   : > { %v6551_v6 = vpop.permute.xlu1 %3209  ;;  %v3651_v11 = vrot.slane %v3638_v13, 2 }
 0x3ca   : > { %10151 = vst [vmem:[#allocation177_spill] sm:$0xff] %v6551_v6 }
 0x3cb   : > { %3584 = vrot.lane.b32.xlu1 %v3573_v62, %s5208_s9  ;;  %v3640_v62 = vmul.f32 %v6554_v19, %v6273_v35  ;;  %v3652_v61 = vsel %vm1480_vm6, %v3650_v34, %v3651_v11 }
 0x3cd   : > { %v6561_v3 = vpop.permute.xlu1 %3238  ;;  %v3655_v6 = vrot.slane %v3640_v62, 2 }
 0x3ce   : > { %10152 = vst [vmem:[#allocation178_spill] sm:$0xff] %v6561_v3 }
 0x3cf   : > { %3621 = vrot.lane.b32.xlu1 %v3614_v56, %s5208_s9  ;;  %v6574_v56 = vstv %s4917_s29  ;;  %v3656_v44 = vsel %vm1480_vm6, %v3651_v11, %v3655_v6  ;;  %s4931_s29 = sld [smem:[#allocation10 + $0x52]] }
 0x3d0   : > { %v3681_v51 = vmul.f32 %v6574_v56, %v6245_v60  ;;  %v3683_v18 = vmul.f32 %v6574_v56, %v6254_v4  ;;  %v3685_v62 = vmul.f32 %v6574_v56, %v6273_v35 }
 0x3d1   : > { %v6567_v24 = vpop.permute.xlu1 %3242 }
 0x3d2   : > { %10153 = vst [vmem:[#allocation179_spill] sm:$0xff] %v6567_v24  ;;  %v3696_v34 = vrot.slane %v3683_v18, 2 }
 0x3d3   : > { %3625 = vrot.lane.b32.xlu1 %v3618_v30, %s5208_s9  ;;  %v3695_v30 = vrot.slane %v3681_v51, 2 }
 0x3d5   : > { %v6571_v0 = vpop.permute.xlu1 %3246  ;;  %v3697_v11 = vsel %vm1480_vm6, %v3695_v30, %v3696_v34 }
 0x3d6   : > { %10154 = vst [vmem:[#allocation180_spill] sm:$0xff] %v6571_v0  ;;  %v3700_v0 = vrot.slane %v3685_v62, 2 }
 0x3d7   : > { %3659 = vrot.lane.b32.xlu1 %v3652_v61, %s5208_s9 }
 0x3d9   : > { %v6581_v13 = vpop.permute.xlu1 %3283 }
 0x3da   : > { %10155 = vst [vmem:[#allocation181_spill] sm:$0xff] %v6581_v13  ;;  %v6593_v13 = vstv %s4918_s5  ;;  %s4932_s5 = sld [smem:[#allocation10 + $0x59]] }
 0x3db   : > { %3663 = vrot.lane.b32.xlu1 %v3656_v44, %s5208_s9  ;;  %v3701_v44 = vsel %vm1480_vm6, %v3696_v34, %v3700_v0  ;;  %v3726_v51 = vmul.f32 %v6593_v13, %v6245_v60  ;;  %v3728_v18 = vmul.f32 %v6593_v13, %v6254_v4  ;;  %v3730_v62 = vmul.f32 %v6593_v13, %v6273_v35 }
 0x3dd   : > { %v6586_v61 = vpop.permute.xlu1 %3287  ;;  %v3741_v30 = vrot.slane %v3728_v18, 2 }
 0x3de   : > { %10156 = vst [vmem:[#allocation182_spill] sm:$0xff] %v6586_v61 }
 0x3df   : > { %3667 = vrot.lane.b32.xlu1 %v3655_v6, %s5208_s9  ;;  %v3740_v6 = vrot.slane %v3726_v51, 2 }
 0x3e1   : > { %v6590_v24 = vpop.permute.xlu1 %3321  ;;  %v3742_v34 = vsel %vm1480_vm6, %v3740_v6, %v3741_v30 }
 0x3e2   : > { %10157 = vst [vmem:[#allocation183_spill] sm:$0xff] %v6590_v24  ;;  %v3745_v24 = vrot.slane %v3730_v62, 2 }
 0x3e3   : > { %3704 = vrot.lane.b32.xlu1 %v3697_v11, %s5208_s9 }
 0x3e5   : > { %v6600_v61 = vpop.permute.xlu1 %3325 }
 0x3e6   : > { %10158 = vst [vmem:[#allocation184_spill] sm:$0xff] %v6600_v61  ;;  %v6612_v61 = vstv %s4919_s23  ;;  %s4933_s23 = sld [smem:[#allocation10 + $0x60]] }
 0x3e7   : > { %3708 = vrot.lane.b32.xlu1 %v3701_v44, %s5208_s9  ;;  %v3746_v44 = vsel %vm1480_vm6, %v3741_v30, %v3745_v24  ;;  %v3771_v51 = vmul.f32 %v6612_v61, %v6245_v60  ;;  %v3773_v18 = vmul.f32 %v6612_v61, %v6254_v4  ;;  %v3775_v62 = vmul.f32 %v6612_v61, %v6273_v35 }
 0x3e9   : > { %v6605_v11 = vpop.permute.xlu1 %3329  ;;  %v3786_v6 = vrot.slane %v3773_v18, 6  ;;  %v3811_v18 = vmul.f32 %v6630_v36, %v6254_v4 }
 0x3ea   : > { %10159 = vst [vmem:[#allocation185_spill] sm:$0xff] %v6605_v11 }
 0x3eb   : > { %3712 = vrot.lane.b32.xlu1 %v3700_v0, %s5208_s9  ;;  %v3785_v0 = vrot.slane %v3771_v51, 6 }
 0x3ed   : > { %v6609_v3 = vpop.permute.xlu1 %3366  ;;  %v3787_v30 = vsel %vm1392_vm5, %v3785_v0, %v3786_v6  ;;  %v3820_v0 = vrot.slane %v3811_v18, 7 }
 0x3ee   : > { %10160 = vst [vmem:[#allocation186_spill] sm:$0xff] %v6609_v3  ;;  %v3790_v3 = vrot.slane %v3775_v62, 6 }
 0x3ef   : > { %3749 = vrot.lane.b32.xlu1 %v3742_v34, %s5208_s9 }
 0x3f0   : > { %v3791_v51 = vsel %vm1392_vm5, %v3786_v6, %v3790_v3 }
 0x3f1   : > { %v6619_v11 = vpop.permute.xlu1 %3370 }
 0x3f2   : > { %10161 = vst [vmem:[#allocation187_spill] sm:$0xff] %v6619_v11  ;;  %v6647_v11 = vstv %s4921_s22  ;;  %s4938_s22 = sld [smem:[#allocation10 + $0x53]] }
 0x3f3   : > { %3753 = vrot.lane.b32.xlu1 %v3746_v44, %s5208_s9  ;;  %v3809_v44 = vmul.f32 %v6630_v36, %v6245_v60  ;;  %v3846_v3 = vmul.f32 %v6647_v11, %v6245_v60  ;;  %v3848_v6 = vmul.f32 %v6647_v11, %v6254_v4 }
 0x3f5   : > { %v6624_v34 = vpop.permute.xlu1 %3374  ;;  %v3861_v18 = vrot.slane %v3848_v6, 7  ;;  %v3893_v6 = vmul.f32 %v6665_v1, %v6254_v4 }
 0x3f6   : > { %10162 = vst [vmem:[#allocation188_spill] sm:$0xff] %v6624_v34 }
 0x3f7   : > { %3757 = vrot.lane.b32.xlu1 %v3745_v24, %s5208_s9  ;;  %v3817_v24 = vrot.slane %v3809_v44, 7 }
 0x3f9   : > { %v6628_v20 = vpop.permute.xlu1 %3411 }
 0x3fa   : > { %10163 = vst [vmem:[#allocation189_spill] sm:$0xff] %v6628_v20 }
 0x3fb   : > { %3794 = vrot.lane.b32.xlu1 %v3787_v30, %s5208_s9  ;;  %v3821_v30 = vsel %vm1688_vm7, %v3817_v24, %v3820_v0 }
 0x3fd   : > { %v6638_v34 = vpop.permute.xlu1 %3415 }
 0x3fe   : > { %10164 = vst [vmem:[#allocation190_spill] sm:$0xff] %v6638_v34 }
 0x3ff   : > { %3798 = vrot.lane.b32.xlu1 %v3791_v51, %s5208_s9  ;;  %v3858_v51 = vrot.slane %v3846_v3, 7 }
 0x401   : > { %v6641_v62 = vpop.permute.xlu1 %3419 }
 0x402   : > { %10165 = vst [vmem:[#allocation191_spill] sm:$0xff] %v6641_v62 }
 0x403   : > { %3824 = vrot.lane.b32.xlu1 %v3817_v24, %s5210_s26  ;;  %v3850_v24 = vmul.f32 %v6647_v11, %v6273_v35 }
 0x405   : > { %v6645_v20 = vpop.permute.xlu1 %3456 }
 0x406   : > { %10166 = vst [vmem:[#allocation192_spill] sm:$0xff] %v6645_v20  ;;  %v3865_v20 = vrot.slane %v3850_v24, 7  ;;  %v3906_v24 = vrot.slane %v3893_v6, 7 }
 0x407   : > { %3828 = vrot.lane.b32.xlu1 %v3821_v30, %s5210_s26  ;;  %v3862_v30 = vsel %vm1688_vm7, %v3858_v51, %v3861_v18 }
 0x408   : > { %v3866_v3 = vsel %vm1688_vm7, %v3861_v18, %v3865_v20 }
 0x409   : > { %v6654_v44 = vpop.permute.xlu1 %3460 }
 0x40a   : > { %10167 = vst [vmem:[#allocation193_spill] sm:$0xff] %v6654_v44 }
 0x40b   : > { %3832 = vrot.lane.b32.xlu1 %v3820_v0, %s5210_s26  ;;  %v3891_v0 = vmul.f32 %v6665_v1, %v6245_v60 }
 0x40d   : > { %v6659_v62 = vpop.permute.xlu1 %3494 }
 0x40e   : > { %10168 = vst [vmem:[#allocation194_spill] sm:$0xff] %v6659_v62 }
 0x40f   : > { %3869 = vrot.lane.b32.xlu1 %v3858_v51, %s5210_s26  ;;  %v3903_v51 = vrot.slane %v3891_v0, 7 }
 0x411   : > { %v6663_v34 = vpop.permute.xlu1 %3498  ;;  %v3907_v20 = vsel %vm1688_vm7, %v3903_v51, %v3906_v24 }
 0x412   : > { %10169 = vst [vmem:[#allocation195_spill] sm:$0xff] %v6663_v34  ;;  %v3895_v34 = vmul.f32 %v6665_v1, %v6273_v35 }
 0x413   : > { %3873 = vrot.lane.b32.xlu1 %v3862_v30, %s5210_s26  ;;  %v6681_v30 = vstv %s4923_s6  ;;  %s4937_s6 = sld [smem:[#allocation10 + $0x4c]] }
 0x414   : > { %v3910_v18 = vrot.slane %v3895_v34, 7  ;;  %v3938_v0 = vmul.f32 %v6681_v30, %v6254_v4 }
 0x415   : > { %v6673_v62 = vpop.permute.xlu1 %3502 }
 0x416   : > { %10170 = vst [vmem:[#allocation196_spill] sm:$0xff] %v6673_v62  ;;  %v3936_v62 = vmul.f32 %v6681_v30, %v6245_v60  ;;  %v3911_v6 = vsel %vm1688_vm7, %v3906_v24, %v3910_v18  ;;  %v3951_v21 = vrot.slane %v3938_v0, 3 }
 0x417   : > { %3877 = vrot.lane.b32.xlu1 %v3866_v3, %s5210_s26 }
 0x419   : > { %v6678_v44 = vpop.permute.xlu1 %3531 }
 0x41a   : > { %10171 = vst [vmem:[#allocation197_spill] sm:$0xff] %v6678_v44  ;;  %v3950_v44 = vrot.slane %v3936_v62, 3  ;;  %v3976_v62 = vmul.f32 %v6695_v41, %v6254_v4  ;;  %v3978_v4 = vmul.f32 %v6695_v41, %v6273_v35 }
 0x41b   : > { %3914 = vrot.lane.b32.xlu1 %v3903_v51, %s5210_s26  ;;  %v3940_v51 = vmul.f32 %v6681_v30, %v6273_v35 }
 0x41d   : > { %v992_v3 = vpop.permute.xlu1 %991  ;;  %v3955_v52 = vrot.slane %v3940_v51, 3  ;;  %v3989_v51 = vrot.slane %v3976_v62, 3 }
 0x41e   : > { %1000 = vst.msk [vmem:[#allocation4 + $0x30] sm:$0xff] %vm669_vm9, %v992_v3  ;;  %v3952_v3 = vsel %vm1821_vm10, %v3950_v44, %v3951_v21 }
 0x41f   : > { %3918 = vrot.lane.b32.xlu1 %v3907_v20, %s5210_s26  ;;  %v3974_v20 = vmul.f32 %v6695_v41, %v6245_v60  ;;  %v3956_v60 = vsel %vm1821_vm10, %v3951_v21, %v3955_v52 }
 0x421   : > { %v996_v34 = vpop.permute.xlu1 %995 }
 0x422   : > { %1002 = vst.msk [vmem:[#allocation4 + $0x50] sm:$0x3f] %vm672_vm11, %v996_v34 }
 0x423   : > { %3922 = vrot.lane.b32.xlu1 %v3911_v6, %s5210_s26  ;;  %v3988_v6 = vrot.slane %v3974_v20, 3 }
 0x424   : > { %v994_v38 = vpop.permute.xlu0 %993 }
 0x425   : > { %v6702_v24 = vld [vmem:[#allocation4 + $0x30] sm:$0xff]  ;;  %1001 = vst.msk [vmem:[#allocation4 + $0x40] sm:$0xff] %vm669_vm9, %v994_v38  ;;  %v661_v18 = vpop.permute.xlu1 %660 }
 0x426   : > { %670 = vst.msk [vmem:[#allocation4] sm:$0xff] %vm669_vm9, %v661_v18  ;;  %v2965_v0 = vmul.f32 %v6247_v50, %v6702_v24  ;;  %v3993_v18 = vrot.slane %v3978_v4, 3  ;;  %v3222_v52 = vmul.f32 %v6375_v10, %v6702_v24  ;;  %v3515_v4 = vmul.f32 %v6499_v40, %v6702_v24 }
 0x427   : > { %3959 = vrot.lane.b32.xlu1 %v3952_v3, %s5210_s26  ;;  %v3990_v3 = vsel %vm1821_vm10, %v3988_v6, %v3989_v51 }
 0x428   : > { %2973 = vrot.lane.b32.xlu0 %v2965_v0, %s5205_s12  ;;  %v663_v44 = vpop.permute.xlu0 %662  ;;  %v3994_v62 = vsel %vm1821_vm10, %v3989_v51, %v3993_v18  ;;  %v2989_v0 = vmul.f32 %v6261_v12, %v6702_v24 }
 0x429   : > { %671 = vst.msk [vmem:[#allocation4 + $0x10] sm:$0xff] %vm669_vm9, %v663_v44  ;;  %v665_v38 = vpop.permute.xlu1 %664  ;;  %v3230_v44 = vrot.slane %v3222_v52, 5 }
 0x42a   : > { %673 = vst.msk [vmem:[#allocation4 + $0x20] sm:$0x3f] %vm672_vm11, %v665_v38 }
 0x42b   : > { %3963 = vrot.lane.b32.xlu1 %v3956_v60, %s5210_s26  ;;  %v6737_v60 = vld [vmem:[#allocation4 + $0x50] sm:$0x3f] }
 0x42c   : > { %v6716_v34 = vld [vmem:[#allocation4 + $0x40] sm:$0xff]  ;;  %v2993_v51 = vmul.f32 %v6261_v12, %v6737_v60  ;;  %v3098_v8 = vmul.f32 %v6306_v33, %v6737_v60 }
 0x42d   : > { %v2967_v21 = vmul.f32 %v6247_v50, %v6716_v34  ;;  %v3224_v35 = vmul.f32 %v6375_v10, %v6716_v34  ;;  %v2991_v10 = vmul.f32 %v6261_v12, %v6716_v34  ;;  %v3517_v6 = vmul.f32 %v6499_v40, %v6716_v34 }
 0x42e   : > { %v3028_v12 = vmul.f32 %v6280_v59, %v6737_v60  ;;  %v3059_v40 = vmul.f32 %v6297_v23, %v6702_v24  ;;  %v3096_v37 = vmul.f32 %v6306_v33, %v6716_v34  ;;  %v3134_v28 = vmul.f32 %v6331_v25, %v6716_v34 }
 0x42f   : > { %2977 = vrot.lane.b32.xlu0 %v2967_v21, %s5205_s12  ;;  %3997 = vrot.lane.b32.xlu1 %v3990_v3, %s5210_s26  ;;  %v3232_v20 = vrot.slane %v3224_v35, 5  ;;  %v3525_v38 = vrot.slane %v3517_v6, 6  ;;  %v3024_v3 = vmul.f32 %v6280_v59, %v6702_v24  ;;  %v3523_v21 = vrot.slane %v3515_v4, 6 }
 0x430   : > { %v3061_v35 = vmul.f32 %v6297_v23, %v6716_v34  ;;  %v6794_v4 = vmul.f32 %v6422_v2, %v6737_v60  ;;  %v3107_v46 = vrot.slane %v3096_v37, 4  ;;  %v3132_v37 = vmul.f32 %v6331_v25, %v6702_v24 }
 0x431   : > { %v6733_v50 = vsel %vm1096_vm2, %v3230_v44, %v3232_v20  ;;  %v6752_v52 = vsel %vm1392_vm5, %v3523_v21, %v3525_v38  ;;  %v3179_v42 = vmul.f32 %v6352_v63, %v6716_v34 }
 0x433   : > { %3001 = vrot.lane.b32.xlu0 %v2989_v0, %s5205_s12  ;;  %4001 = vrot.lane.b32.xlu1 %v3994_v62, %s5210_s26  ;;  %v3063_v62 = vmul.f32 %v6297_v23, %v6737_v60  ;;  %v6770_v0 = vmul.f32 %v6331_v25, %v6737_v60  ;;  %v6788_v23 = vmul.f32 %v6402_v49, %v6737_v60 }
 0x437   : > { %3005 = vrot.lane.b32.xlu0 %v2991_v10, %s5205_s12  ;;  %4005 = vrot.lane.b32.xlu1 %v3993_v18, %s5210_s26  ;;  %v3026_v18 = vmul.f32 %v6280_v59, %v6716_v34  ;;  %v9893_v59 = vrot.slane %v6770_v0, 4  ;;  %v6776_v10 = vmul.f32 %v6352_v63, %v6737_v60 }
 0x439   : > { %v9890_v6 = vrot.slane %v6776_v10, 4 }
 0x43b   : > { %3009 = vrot.lane.b32.xlu0 %v2993_v51, %s5205_s12  ;;  %v9888_v51 = vrot.slane %v6788_v23, 1 }
 0x43f   : > { %3036 = vrot.lane.b32.xlu0 %v3024_v3, %s5205_s12  ;;  %v9886_v3 = vrot.slane %v6794_v4, 1 }
 0x443   : > { %3040 = vrot.lane.b32.xlu0 %v3026_v18, %s5205_s12  ;;  %v6810_v18 = vmul.f32 %v6475_v54, %v6737_v60 }
 0x447   : > { %3044 = vrot.lane.b32.xlu0 %v3028_v12, %s5205_s12  ;;  %v9883_v12 = vrot.slane %v6810_v18, 5 }
 0x44b   : > { %3071 = vrot.lane.b32.xlu0 %v3059_v40, %s5205_s12  ;;  %v6822_v40 = vmul.f32 %v6521_v9, %v6702_v24 }
 0x44f   : > { %3075 = vrot.lane.b32.xlu0 %v3061_v35, %s5205_s12  ;;  %v9885_v35 = vrot.slane %v6822_v40, 6 }
 0x453   : > { %3079 = vrot.lane.b32.xlu0 %v3063_v62, %s5205_s12  ;;  %v6828_v62 = vmul.f32 %v6554_v19, %v6737_v60 }
 0x457   : > { %3162 = vrot.lane.b32.xlu0 %v9893_v59, %s5205_s12  ;;  %v6884_v59 = vmul.f32 %v6695_v41, %v6737_v60 }
 0x45b   : > { %3207 = vrot.lane.b32.xlu0 %v9890_v6, %s5205_s12  ;;  %v6868_v6 = vmul.f32 %v6647_v11, %v6702_v24 }
 0x45f   : > { %3236 = vrot.lane.b32.xlu0 %v3230_v44, %s5207_s28  ;;  %v6802_v44 = vmul.f32 %v6441_v27, %v6737_v60 }
 0x463   : > { %3244 = vrot.lane.b32.xlu0 %v3232_v20, %s5207_s28  ;;  %v9884_v20 = vrot.slane %v6802_v44, 1 }
 0x467   : > { %3327 = vrot.lane.b32.xlu0 %v9888_v51, %s5207_s28  ;;  %v6860_v51 = vmul.f32 %v6630_v36, %v6716_v34 }
 0x46b   : > { %3372 = vrot.lane.b32.xlu0 %v9886_v3, %s5207_s28  ;;  %v6852_v3 = vmul.f32 %v6630_v36, %v6702_v24  ;;  %v6876_v36 = vmul.f32 %v6665_v1, %v6702_v24 }
 0x46f   : > { %3417 = vrot.lane.b32.xlu0 %v9884_v20, %s5207_s28  ;;  %v6844_v20 = vmul.f32 %v6593_v13, %v6737_v60 }
 0x473   : > { %3500 = vrot.lane.b32.xlu0 %v9883_v12, %s5207_s28  ;;  %v9887_v12 = vrot.slane %v6828_v62, 2 }
 0x477   : > { %3529 = vrot.lane.b32.xlu0 %v3523_v21, %s5208_s9  ;;  %v6836_v21 = vmul.f32 %v6574_v56, %v6737_v60 }
 0x47b   : > { %3537 = vrot.lane.b32.xlu0 %v3525_v38, %s5208_s9  ;;  %v9889_v38 = vrot.slane %v6836_v21, 2 }
 0x47f   : > { %3574 = vrot.lane.b32.xlu0 %v9885_v35, %s5208_s9  ;;  %v9891_v35 = vrot.slane %v6844_v20, 2 }
 0x483   : > { %3665 = vrot.lane.b32.xlu0 %v9887_v12, %s5208_s9  ;;  %v9892_v12 = vrot.slane %v6852_v3, 7 }
 0x487   : > { %3710 = vrot.lane.b32.xlu0 %v9889_v38, %s5208_s9  ;;  %v9896_v38 = vrot.slane %v6860_v51, 7 }
 0x48b   : > { %3755 = vrot.lane.b32.xlu0 %v9891_v35, %s5208_s9  ;;  %v9899_v35 = vrot.slane %v6868_v6, 7 }
 0x48f   : > { %3822 = vrot.lane.b32.xlu0 %v9892_v12, %s5210_s26  ;;  %v9908_v12 = vrot.slane %v6876_v36, 7 }
 0x493   : > { %3830 = vrot.lane.b32.xlu0 %v9896_v38, %s5210_s26  ;;  %v3094_v38 = vmul.f32 %v6306_v33, %v6702_v24  ;;  %v3144_v33 = vrot.slane %v3132_v37, 4 }
 0x495   : > { %v3106_v57 = vrot.slane %v3094_v38, 4 }
 0x497   : > { %3867 = vrot.lane.b32.xlu0 %v9899_v35, %s5210_s26  ;;  %v9913_v35 = vrot.slane %v6884_v59, 3 }
 0x49a   : > { %v6893_v22 = vpop.permute.xlu0 %2973 }
 0x49b   : > { %3912 = vrot.lane.b32.xlu0 %v9908_v12, %s5210_s26  ;;  %10172 = vst [vmem:[#allocation198_spill] sm:$0xff] %v6893_v22  ;;  %v3108_v12 = vsel %vm232_vm0, %v3106_v57, %v3107_v46  ;;  %v3112_v22 = vrot.slane %v3098_v8, 4  ;;  %v3177_v8 = vmul.f32 %v6352_v63, %v6702_v24  ;;  %v10180_v63 = vrot.slane %v6776_v10, 4 }
 0x49c   : > { %v3263_v10 = vmul.f32 %v6387_v43, %v6737_v60 }
 0x49d   : > { %v3113_v38 = vsel %vm232_vm0, %v3107_v46, %v3112_v22  ;;  %v10177_v46 = vrot.slane %v6770_v0, 4  ;;  %v3190_v22 = vrot.slane %v3179_v42, 4  ;;  %v3261_v0 = vmul.f32 %v6387_v43, %v6716_v34 }
 0x49e   : > { %v3259_v42 = vmul.f32 %v6387_v43, %v6702_v24 }
 0x49f   : > { %4003 = vrot.lane.b32.xlu0 %v9913_v35, %s5210_s26  ;;  %v3145_v35 = vrot.slane %v3134_v28, 4 }
 0x4a1   : > { %v6901_v17 = vpop.permute.xlu0 %2977  ;;  %v3146_v57 = vsel %vm232_vm0, %v3144_v33, %v3145_v35  ;;  %v3151_v28 = vsel %vm232_vm0, %v3145_v35, %v10177_v46  ;;  %v3271_v46 = vrot.slane %v3259_v42, 1 }
 0x4a2   : > { %10173 = vst [vmem:[#allocation199_spill] sm:$0xff] %v6901_v17 }
 0x4a3   : > { %3116 = vrot.lane.b32.xlu0 %v3108_v12, %s5205_s12  ;;  %v3189_v12 = vrot.slane %v3177_v8, 4  ;;  %v3272_v8 = vrot.slane %v3261_v0, 1 }
 0x4a5   : > { %v6909_v14 = vpop.permute.xlu0 %3001 }
 0x4a6   : > { %10174 = vst [vmem:[#allocation200_spill] sm:$0xff] %v6909_v14 }
 0x4a7   : > { %3120 = vrot.lane.b32.xlu0 %v3113_v38, %s5205_s12  ;;  %v3191_v38 = vsel %vm232_vm0, %v3189_v12, %v3190_v22  ;;  %v3299_v12 = vmul.f32 %v6402_v49, %v6716_v34 }
 0x4a9   : > { %v6913_v17 = vpop.permute.xlu0 %3005  ;;  %v3310_v0 = vrot.slane %v3299_v12, 1 }
 0x4aa   : > { %10175 = vst [vmem:[#allocation201_spill] sm:$0xff] %v6913_v17 }
 0x4ab   : > { %3154 = vrot.lane.b32.xlu0 %v3146_v57, %s5205_s12  ;;  %v3196_v57 = vsel %vm232_vm0, %v3190_v22, %v10180_v63  ;;  %v3273_v22 = vsel %vm1139_vm3, %v3271_v46, %v3272_v8  ;;  %v3297_v63 = vmul.f32 %v6402_v49, %v6702_v24  ;;  %v3342_v49 = vmul.f32 %v6422_v2, %v6702_v24 }
 0x4ad   : > { %v6921_v25 = vpop.permute.xlu0 %3009  ;;  %v3309_v43 = vrot.slane %v3297_v63, 1 }
 0x4ae   : > { %10176 = vst [vmem:[#allocation202_spill] sm:$0xff] %v6921_v25  ;;  %v3344_v25 = vmul.f32 %v6422_v2, %v6716_v34  ;;  %v3387_v2 = vmul.f32 %v6441_v27, %v6702_v24 }
 0x4af   : > { %3158 = vrot.lane.b32.xlu0 %v3151_v28, %s5205_s12  ;;  %v3311_v46 = vsel %vm1139_vm3, %v3309_v43, %v3310_v0  ;;  %v3389_v43 = vmul.f32 %v6441_v27, %v6716_v34  ;;  %v3432_v27 = vmul.f32 %v6460_v48, %v6702_v24 }
 0x4b0   : > { %v3355_v12 = vrot.slane %v3344_v25, 1 }
 0x4b1   : > { %v6927_v37 = vpop.permute.xlu0 %3036 }
 0x4b2   : > { %10178 = vst [vmem:[#allocation203_spill] sm:$0xff] %v6927_v37 }
 0x4b3   : > { %3199 = vrot.lane.b32.xlu0 %v3191_v38, %s5205_s12  ;;  %v3277_v38 = vrot.slane %v3263_v10, 1 }
 0x4b5   : > { %v6931_v33 = vpop.permute.xlu0 %3040 }
 0x4b6   : > { %10179 = vst [vmem:[#allocation204_spill] sm:$0xff] %v6931_v33  ;;  %v10294_v33 = vld [vmem:[#allocation125_spill] sm:$0xff] }
 0x4b7   : > { %3203 = vrot.lane.b32.xlu0 %v3196_v57, %s5205_s12 }
 0x4b9   : > { %v6941_v35 = vpop.permute.xlu0 %3044 }
 0x4ba   : > { %10181 = vst [vmem:[#allocation205_spill] sm:$0xff] %v6941_v35 }
 0x4bb   : > { %3240 = vrot.lane.b32.xlu0 %v6733_v50, %s5207_s28  ;;  %v3278_v50 = vsel %vm1139_vm3, %v3272_v8, %v3277_v38  ;;  %v10186_v8 = vrot.slane %v6788_v23, 1  ;;  %v3354_v38 = vrot.slane %v3342_v49, 1  ;;  %v10189_v23 = vrot.slane %v6794_v4, 1 }
 0x4bc   : > { %v3399_v49 = vrot.slane %v3387_v2, 1  ;;  %v10192_v4 = vrot.slane %v6802_v44, 1  ;;  %v3444_v2 = vrot.slane %v3432_v27, 5  ;;  %v3470_v44 = vmul.f32 %v6475_v54, %v6702_v24 }
 0x4bd   : > { %v6947_v28 = vpop.permute.xlu0 %3071  ;;  %v3361_v25 = vsel %vm1139_vm3, %v3355_v12, %v10189_v23  ;;  %v3436_v23 = vmul.f32 %v6460_v48, %v6737_v60 }
 0x4be   : > { %10182 = vst [vmem:[#allocation206_spill] sm:$0xff] %v6947_v28  ;;  %v10291_v28 = vld [vmem:[#allocation121_spill] sm:$0xff] }
 0x4bf   : > { %3281 = vrot.lane.b32.xlu0 %v3273_v22, %s5207_s28  ;;  %v3316_v22 = vsel %vm1139_vm3, %v3310_v0, %v10186_v8  ;;  %v3400_v0 = vrot.slane %v3389_v43, 1 }
 0x4c1   : > { %v6955_v57 = vpop.permute.xlu0 %3075 }
 0x4c2   : > { %10183 = vst [vmem:[#allocation207_spill] sm:$0xff] %v6955_v57 }
 0x4c3   : > { %3285 = vrot.lane.b32.xlu0 %v3278_v50, %s5207_s28  ;;  %v3356_v50 = vsel %vm1139_vm3, %v3354_v38, %v3355_v12  ;;  %v3434_v38 = vmul.f32 %v6460_v48, %v6716_v34  ;;  %v3406_v12 = vsel %vm1139_vm3, %v3400_v0, %v10192_v4  ;;  %v3482_v48 = vrot.slane %v3470_v44, 5 }
 0x4c5   : > { %v6959_v42 = vpop.permute.xlu0 %3079  ;;  %v3445_v43 = vrot.slane %v3434_v38, 5 }
 0x4c6   : > { %10184 = vst [vmem:[#allocation208_spill] sm:$0xff] %v6959_v42 }
 0x4c7   : > { %3319 = vrot.lane.b32.xlu0 %v3311_v46, %s5207_s28 }
 0x4c9   : > { %v6967_v10 = vpop.permute.xlu0 %3162 }
 0x4ca   : > { %10185 = vst [vmem:[#allocation209_spill] sm:$0xff] %v6967_v10 }
 0x4cb   : > { %3323 = vrot.lane.b32.xlu0 %v3316_v22, %s5207_s28  ;;  %v3401_v22 = vsel %vm1139_vm3, %v3399_v49, %v3400_v0  ;;  %v3446_v49 = vsel %vm1096_vm2, %v3444_v2, %v3445_v43 }
 0x4cd   : > { %v6973_v63 = vpop.permute.xlu0 %3207 }
 0x4ce   : > { %10187 = vst [vmem:[#allocation210_spill] sm:$0xff] %v6973_v63  ;;  %v10285_v63 = vld [vmem:[#allocation110_spill] sm:$0xff] }
 0x4cf   : > { %3364 = vrot.lane.b32.xlu0 %v3356_v50, %s5207_s28 }
 0x4d1   : > { %v6981_v46 = vpop.permute.xlu0 %3236 }
 0x4d2   : > { %10188 = vst [vmem:[#allocation211_spill] sm:$0xff] %v6981_v46 }
 0x4d3   : > { %3368 = vrot.lane.b32.xlu0 %v3361_v25, %s5207_s28 }
 0x4d5   : > { %v6987_v8 = vpop.permute.xlu0 %3244 }
 0x4d6   : > { %10190 = vst [vmem:[#allocation212_spill] sm:$0xff] %v6987_v8  ;;  %v10251_v8 = vld [vmem:[#allocation26_spill] sm:$0xff] }
 0x4d7   : > { %3409 = vrot.lane.b32.xlu0 %v3401_v22, %s5207_s28  ;;  %v3472_v22 = vmul.f32 %v6475_v54, %v6716_v34 }
 0x4d9   : > { %v6995_v50 = vpop.permute.xlu0 %3327  ;;  %v3483_v27 = vrot.slane %v3472_v22, 5  ;;  %v3556_v22 = vmul.f32 %v6521_v9, %v6737_v60 }
 0x4da   : > { %10191 = vst [vmem:[#allocation213_spill] sm:$0xff] %v6995_v50  ;;  %v3450_v50 = vrot.slane %v3436_v23, 5  ;;  %v10197_v23 = vrot.slane %v6810_v18, 5  ;;  %v10200_v18 = vrot.slane %v6822_v40, 6  ;;  %v3601_v40 = vmul.f32 %v6538_v53, %v6737_v60 }
 0x4db   : > { %3413 = vrot.lane.b32.xlu0 %v3406_v12, %s5207_s28  ;;  %v3484_v12 = vsel %vm1096_vm2, %v3482_v48, %v3483_v27  ;;  %v3570_v48 = vrot.slane %v3556_v22, 6  ;;  %v3637_v22 = vmul.f32 %v6554_v19, %v6716_v34 }
 0x4dc   : > { %v3451_v38 = vsel %vm1096_vm2, %v3445_v43, %v3450_v50  ;;  %v3489_v54 = vsel %vm1096_vm2, %v3483_v27, %v10197_v23  ;;  %v3599_v27 = vmul.f32 %v6538_v53, %v6716_v34 }
 0x4dd   : > { %v7003_v25 = vpop.permute.xlu0 %3372 }
 0x4de   : > { %10193 = vst [vmem:[#allocation214_spill] sm:$0xff] %v7003_v25 }
 0x4df   : > { %3454 = vrot.lane.b32.xlu0 %v3446_v49, %s5207_s28  ;;  %v3554_v49 = vmul.f32 %v6521_v9, %v6716_v34  ;;  %v3610_v9 = vrot.slane %v3599_v27, 2 }
 0x4e1   : > { %v7011_v0 = vpop.permute.xlu0 %3417  ;;  %v3566_v43 = vrot.slane %v3554_v49, 6 }
 0x4e2   : > { %10194 = vst [vmem:[#allocation215_spill] sm:$0xff] %v7011_v0 }
 0x4e3   : > { %3458 = vrot.lane.b32.xlu0 %v3451_v38, %s5207_s28  ;;  %v3567_v38 = vsel %vm1392_vm5, %v10200_v18, %v3566_v43 }
 0x4e5   : > { %v7015_v4 = vpop.permute.xlu0 %3500 }
 0x4e6   : > { %10195 = vst [vmem:[#allocation216_spill] sm:$0xff] %v7015_v4 }
 0x4e7   : > { %3492 = vrot.lane.b32.xlu0 %v3484_v12, %s5207_s28  ;;  %v3597_v12 = vmul.f32 %v6538_v53, %v6702_v24 }
 0x4e9   : > { %v7019_v2 = vpop.permute.xlu0 %3529 }
 0x4ea   : > { %10196 = vst [vmem:[#allocation217_spill] sm:$0xff] %v7019_v2 }
 0x4eb   : > { %3496 = vrot.lane.b32.xlu0 %v3489_v54, %s5207_s28  ;;  %v3609_v54 = vrot.slane %v3597_v12, 2  ;;  %v3648_v12 = vrot.slane %v3637_v22, 2 }
 0x4ed   : > { %v7027_v50 = vpop.permute.xlu0 %3537  ;;  %v3611_v18 = vsel %vm1480_vm6, %v3609_v54, %v3610_v9 }
 0x4ee   : > { %10198 = vst [vmem:[#allocation218_spill] sm:$0xff] %v7027_v50  ;;  %v10253_v50 = vld [vmem:[#allocation32_spill] sm:$0xff] }
 0x4ef   : > { %3533 = vrot.lane.b32.xlu0 %v6752_v52, %s5208_s9  ;;  %v3571_v52 = vsel %vm1392_vm5, %v3566_v43, %v3570_v48  ;;  %v3635_v43 = vmul.f32 %v6554_v19, %v6702_v24  ;;  %v3680_v19 = vmul.f32 %v6574_v56, %v6702_v24 }
 0x4f1   : > { %v7033_v44 = vpop.permute.xlu0 %3574  ;;  %v3647_v53 = vrot.slane %v3635_v43, 2 }
 0x4f2   : > { %10199 = vst [vmem:[#allocation219_spill] sm:$0xff] %v7033_v44 }
 0x4f3   : > { %3578 = vrot.lane.b32.xlu0 %v3567_v38, %s5208_s9  ;;  %v3615_v38 = vrot.slane %v3601_v40, 2  ;;  %v3649_v54 = vsel %vm1480_vm6, %v3647_v53, %v3648_v12  ;;  %v3727_v53 = vmul.f32 %v6593_v13, %v6716_v34 }
 0x4f5   : > { %v7043_v23 = vpop.permute.xlu0 %3665  ;;  %v3616_v48 = vsel %vm1480_vm6, %v3610_v9, %v3615_v38  ;;  %v10206_v9 = vrot.slane %v6828_v62, 2  ;;  %v3692_v38 = vrot.slane %v3680_v19, 2  ;;  %v10209_v62 = vrot.slane %v6836_v21, 2 }
 0x4f6   : > { %10201 = vst [vmem:[#allocation220_spill] sm:$0xff] %v7043_v23  ;;  %v3682_v23 = vmul.f32 %v6574_v56, %v6716_v34  ;;  %v3725_v56 = vmul.f32 %v6593_v13, %v6702_v24  ;;  %v3770_v13 = vmul.f32 %v6612_v61, %v6702_v24  ;;  %v10212_v21 = vrot.slane %v6844_v20, 2 }
 0x4f7   : > { %3582 = vrot.lane.b32.xlu0 %v3571_v52, %s5208_s9 }
 0x4f8   : > { %v3693_v22 = vrot.slane %v3682_v23, 2  ;;  %v3737_v19 = vrot.slane %v3725_v56, 2  ;;  %v3782_v56 = vrot.slane %v3770_v13, 6  ;;  %v10217_v13 = vrot.slane %v6852_v3, 7 }
 0x4f9   : > { %v7049_v49 = vpop.permute.xlu0 %3710 }
 0x4fa   : > { %10202 = vst [vmem:[#allocation221_spill] sm:$0xff] %v7049_v49  ;;  %v3699_v23 = vsel %vm1480_vm6, %v3693_v22, %v10209_v62  ;;  %v3774_v62 = vmul.f32 %v6612_v61, %v6737_v60 }
 0x4fb   : > { %3619 = vrot.lane.b32.xlu0 %v3611_v18, %s5208_s9  ;;  %v3654_v18 = vsel %vm1480_vm6, %v3648_v12, %v10206_v9  ;;  %v3738_v12 = vrot.slane %v3727_v53, 2 }
 0x4fd   : > { %v7057_v27 = vpop.permute.xlu0 %3755 }
 0x4fe   : > { %10203 = vst [vmem:[#allocation222_spill] sm:$0xff] %v7057_v27 }
 0x4ff   : > { %3623 = vrot.lane.b32.xlu0 %v3616_v48, %s5208_s9  ;;  %v3694_v48 = vsel %vm1480_vm6, %v3692_v38, %v3693_v22  ;;  %v3772_v38 = vmul.f32 %v6612_v61, %v6716_v34  ;;  %v3744_v22 = vsel %vm1480_vm6, %v3738_v12, %v10212_v21  ;;  %v10216_v61 = vrot.slane %v6860_v51, 7 }
 0x501   : > { %v7061_v52 = vpop.permute.xlu0 %3822  ;;  %v3783_v53 = vrot.slane %v3772_v38, 6  ;;  %v3819_v21 = vsel %vm1688_vm7, %v10217_v13, %v10216_v61 }
 0x502   : > { %10204 = vst [vmem:[#allocation223_spill] sm:$0xff] %v7061_v52 }
 0x503   : > { %3657 = vrot.lane.b32.xlu0 %v3649_v54, %s5208_s9 }
 0x505   : > { %v7069_v40 = vpop.permute.xlu0 %3830 }
 0x506   : > { %10205 = vst [vmem:[#allocation224_spill] sm:$0xff] %v7069_v40 }
 0x507   : > { %3661 = vrot.lane.b32.xlu0 %v3654_v18, %s5208_s9  ;;  %v3739_v18 = vsel %vm1480_vm6, %v3737_v19, %v3738_v12  ;;  %v3784_v19 = vsel %vm1392_vm5, %v3782_v56, %v3783_v53  ;;  %v3847_v12 = vmul.f32 %v6647_v11, %v6716_v34  ;;  %v3849_v56 = vmul.f32 %v6647_v11, %v6737_v60 }
 0x508   : > { %v3894_v11 = vmul.f32 %v6665_v1, %v6737_v60 }
 0x509   : > { %v7075_v43 = vpop.permute.xlu0 %3867  ;;  %v3863_v51 = vrot.slane %v3849_v56, 7 }
 0x50a   : > { %10207 = vst [vmem:[#allocation225_spill] sm:$0xff] %v7075_v43  ;;  %v3908_v56 = vrot.slane %v3894_v11, 7  ;;  %v3975_v11 = vmul.f32 %v6695_v41, %v6716_v34 }
 0x50b   : > { %3702 = vrot.lane.b32.xlu0 %v3694_v48, %s5208_s9 }
 0x50d   : > { %v7083_v54 = vpop.permute.xlu0 %3912 }
 0x50e   : > { %10208 = vst [vmem:[#allocation226_spill] sm:$0xff] %v7083_v54  ;;  %v10281_v54 = vld [vmem:[#allocation104_spill] sm:$0xff] }
 0x50f   : > { %3706 = vrot.lane.b32.xlu0 %v3699_v23, %s5208_s9 }
 0x511   : > { %v7089_v9 = vpop.permute.xlu0 %4003 }
 0x512   : > { %10210 = vst [vmem:[#allocation227_spill] sm:$0xff] %v7089_v9 }
 0x513   : > { %3747 = vrot.lane.b32.xlu0 %v3739_v18, %s5208_s9  ;;  %v3788_v18 = vrot.slane %v3774_v62, 6  ;;  %v10219_v62 = vrot.slane %v6868_v6, 7  ;;  %v10222_v6 = vrot.slane %v6876_v36, 7  ;;  %v3939_v36 = vmul.f32 %v6681_v30, %v6737_v60 }
 0x515   : > { %v7097_v48 = vpop.permute.xlu0 %3116  ;;  %v3789_v20 = vsel %vm1392_vm5, %v3783_v53, %v3788_v18  ;;  %v3892_v18 = vmul.f32 %v6665_v1, %v6716_v34 }
 0x516   : > { %10211 = vst [vmem:[#allocation228_spill] sm:$0xff] %v7097_v48 }
 0x517   : > { %3751 = vrot.lane.b32.xlu0 %v3744_v22, %s5208_s9  ;;  %v3859_v22 = vrot.slane %v3847_v12, 7  ;;  %v3904_v12 = vrot.slane %v3892_v18, 7 }
 0x519   : > { %v7105_v23 = vpop.permute.xlu0 %3120  ;;  %v3905_v13 = vsel %vm1688_vm7, %v10222_v6, %v3904_v12  ;;  %v3953_v6 = vrot.slane %v3939_v36, 3  ;;  %v7183_v36 = vld [vmem:[#allocation4 + $0x10] sm:$0xff] }
 0x51a   : > { %10213 = vst [vmem:[#allocation229_spill] sm:$0xff] %v7105_v23  ;;  %v7247_v52 = vmul.f32 %v5468_v55, %v7183_v36  ;;  %v7307_v27 = vmul.f32 %v5607_v45, %v7183_v36  ;;  %v7367_v2 = vmul.f32 %v10253_v50, %v7183_v36  ;;  %v10279_v23 = vld [vmem:[#allocation100_spill] sm:$0xff]  ;;  %v7517_v46 = vmul.f32 %v10281_v54, %v7183_v36 }
 0x51b   : > { %3792 = vrot.lane.b32.xlu0 %v3784_v19, %s5208_s9  ;;  %v3860_v19 = vsel %vm1688_vm7, %v10219_v62, %v3859_v22 }
 0x51d   : > { %v7109_v9 = vpop.permute.xlu0 %3154 }
 0x51e   : > { %10214 = vst [vmem:[#allocation230_spill] sm:$0xff] %v7109_v9 }
 0x51f   : > { %3796 = vrot.lane.b32.xlu0 %v3789_v20, %s5208_s9  ;;  %v3864_v20 = vsel %vm1688_vm7, %v3859_v22, %v3863_v51  ;;  %v3935_v22 = vmul.f32 %v6681_v30, %v6702_v24 }
 0x521   : > { %v7115_v38 = vpop.permute.xlu0 %3158  ;;  %v3947_v18 = vrot.slane %v3935_v22, 3 }
 0x522   : > { %10215 = vst [vmem:[#allocation231_spill] sm:$0xff] %v7115_v38 }
 0x523   : > { %3826 = vrot.lane.b32.xlu0 %v3819_v21, %s5210_s26  ;;  %v3937_v21 = vmul.f32 %v6681_v30, %v6716_v34 }
 0x525   : > { %v7125_v53 = vpop.permute.xlu0 %3199  ;;  %v3948_v1 = vrot.slane %v3937_v21, 3 }
 0x526   : > { %10218 = vst [vmem:[#allocation232_spill] sm:$0xff] %v7125_v53  ;;  %v10270_v53 = vld [vmem:[#allocation78_spill] sm:$0xff] }
 0x527   : > { %3871 = vrot.lane.b32.xlu0 %v3860_v19, %s5210_s26  ;;  %v3909_v19 = vsel %vm1688_vm7, %v3904_v12, %v3908_v56  ;;  %v3973_v12 = vmul.f32 %v6695_v41, %v6702_v24  ;;  %v3954_v21 = vsel %vm1821_vm10, %v3948_v1, %v3953_v6  ;;  %v3986_v56 = vrot.slane %v3975_v11, 3 }
 0x528   : > { %v10228_v41 = vrot.slane %v6884_v59, 3  ;;  %v1985_v11 = vmul.f32 %v5866_v7, %v7183_v36 }
 0x529   : > { %v7133_v3 = vpop.permute.xlu0 %3203  ;;  %v3985_v30 = vrot.slane %v3973_v12, 3 }
 0x52a   : > { %10220 = vst [vmem:[#allocation233_spill] sm:$0xff] %v7133_v3  ;;  %v3992_v24 = vsel %vm1821_vm10, %v3986_v56, %v10228_v41 }
 0x52b   : > { %3875 = vrot.lane.b32.xlu0 %v3864_v20, %s5210_s26  ;;  %v3949_v20 = vsel %vm1821_vm10, %v3947_v18, %v3948_v1  ;;  %v3987_v22 = vsel %vm1821_vm10, %v3985_v30, %v3986_v56  ;;  %v7200_v56 = vld [vmem:[#allocation4 + $0x20] sm:$0x3f] }
 0x52c   : > { %v7257_v4 = vmul.f32 %v5493_v5, %v7200_v56  ;;  %v7327_v17 = vmul.f32 %v5650_v15, %v7200_v56  ;;  %v7337_v14 = vmul.f32 %v5668_v31, %v7200_v56  ;;  %v7347_v43 = vmul.f32 %v10251_v8, %v7200_v56 }
 0x52d   : > { %v7139_v61 = vpop.permute.xlu0 %3240  ;;  %v7497_v48 = vmul.f32 %v10279_v23, %v7200_v56  ;;  %v7547_v35 = vmul.f32 %v10291_v28, %v7200_v56  ;;  %v7557_v37 = vmul.f32 %v10294_v33, %v7200_v56  ;;  %v10297_v28 = vld [vmem:[#allocation15_spill] sm:$0xff]  ;;  %v10299_v33 = vrot.slane %v7247_v52, 5 }
 0x52e   : > { %10221 = vst [vmem:[#allocation234_spill] sm:$0xff] %v7139_v61  ;;  %v9925_v0 = vrot.slane %v7327_v17, 2  ;;  %v9926_v49 = vrot.slane %v7337_v14, 2  ;;  %v10277_v61 = vld [vmem:[#allocation93_spill] sm:$0xff] }
 0x52f   : > { %3916 = vrot.lane.b32.xlu0 %v3905_v13, %s5210_s26  ;;  %v7487_v3 = vmul.f32 %v10277_v61, %v7200_v56  ;;  %10292 = vst [vmem:[#allocation269_spill] sm:$0xff] %v7547_v35  ;;  %10295 = vst [vmem:[#allocation271_spill] sm:$0xff] %v7557_v37 }
 0x531   : > { %v7149_v62 = vpop.permute.xlu0 %3281 }
 0x532   : > { %10223 = vst [vmem:[#allocation235_spill] sm:$0xff] %v7149_v62 }
 0x533   : > { %3920 = vrot.lane.b32.xlu0 %v3909_v19, %s5210_s26  ;;  %v7173_v19 = vld [vmem:[#allocation4] sm:$0xff] }
 0x534   : > { %v1983_v18 = vmul.f32 %v5866_v7, %v7173_v19  ;;  %v2008_v6 = vmul.f32 %v5878_v32, %v7173_v19  ;;  %v2012_v7 = vmul.f32 %v5878_v32, %v7200_v56  ;;  %v2043_v41 = vmul.f32 %v5895_v39, %v7173_v19 }
 0x535   : > { %v7155_v51 = vpop.permute.xlu0 %3285  ;;  %v7317_v9 = vmul.f32 %v5622_v58, %v7173_v19  ;;  %v7507_v44 = vmul.f32 %v10281_v54, %v7173_v19  ;;  %v7527_v42 = vmul.f32 %v10285_v63, %v7173_v19 }
 0x536   : > { %10224 = vst [vmem:[#allocation236_spill] sm:$0xff] %v7155_v51 }
 0x537   : > { %3957 = vrot.lane.b32.xlu0 %v3949_v20, %s5210_s26  ;;  %10282 = vst [vmem:[#allocation104_spill] sm:$0xff] %v7507_v44  ;;  %10286 = vst [vmem:[#allocation110_spill] sm:$0xff] %v7527_v42  ;;  %v9945_v54 = vrot.slane %v7527_v42, 6 }
 0x539   : > { %v7163_v13 = vpop.permute.xlu0 %3319 }
 0x53a   : > { %10225 = vst [vmem:[#allocation237_spill] sm:$0xff] %v7163_v13  ;;  %v7297_v13 = vmul.f32 %v5607_v45, %v7173_v19  ;;  %v9924_v45 = vrot.slane %v7317_v9, 6 }
 0x53b   : > { %3961 = vrot.lane.b32.xlu0 %v3954_v21, %s5210_s26  ;;  %v2010_v21 = vmul.f32 %v5878_v32, %v7183_v36  ;;  %v2047_v32 = vmul.f32 %v5895_v39, %v7200_v56 }
 0x53c   : > { %v9922_v38 = vrot.slane %v7297_v13, 6 }
 0x53d   : > { %v7167_v60 = vpop.permute.xlu0 %3323 }
 0x53e   : > { %10226 = vst [vmem:[#allocation238_spill] sm:$0xff] %v7167_v60  ;;  %v7287_v60 = vmul.f32 %v5588_v26, %v7200_v56 }
 0x53f   : > { %3995 = vrot.lane.b32.xlu0 %v3987_v22, %s5210_s26 }
 0x540   : > { %v9921_v10 = vrot.slane %v7287_v60, 5 }
 0x541   : > { %v7171_v34 = vpop.permute.xlu0 %3364 }
 0x542   : > { %10227 = vst [vmem:[#allocation239_spill] sm:$0xff] %v7171_v34  ;;  %v10264_v34 = vld [vmem:[#allocation57_spill] sm:$0xff] }
 0x543   : > { %3999 = vrot.lane.b32.xlu0 %v3992_v24, %s5210_s26 }
 0x545   : > { %v7179_v1 = vpop.permute.xlu0 %3368 }
 0x546   : > { %10229 = vst [vmem:[#allocation240_spill] sm:$0xff] %v7179_v1 }
 0x547   : > { %1991 = vrot.lane.b32.xlu0 %v1983_v18, %s5210_s26  ;;  %v2045_v18 = vmul.f32 %v5895_v39, %v7183_v36  ;;  %v2082_v39 = vmul.f32 %v5911_v47, %v7200_v56 }
 0x549   : > { %v7186_v20 = vpop.permute.xlu0 %3409 }
 0x54a   : > { %10230 = vst [vmem:[#allocation241_spill] sm:$0xff] %v7186_v20 }
 0x54b   : > { %1995 = vrot.lane.b32.xlu0 %v1985_v11, %s5210_s26 }
 0x54d   : > { %v7191_v59 = vpop.permute.xlu0 %3413 }
 0x54e   : > { %10231 = vst [vmem:[#allocation242_spill] sm:$0xff] %v7191_v59 }
 0x54f   : > { %2020 = vrot.lane.b32.xlu0 %v2008_v6, %s5210_s26 }
 0x551   : > { %v7196_v12 = vpop.permute.xlu0 %3454 }
 0x552   : > { %10232 = vst [vmem:[#allocation243_spill] sm:$0xff] %v7196_v12 }
 0x553   : > { %2024 = vrot.lane.b32.xlu0 %v2010_v21, %s5210_s26  ;;  %v2078_v21 = vmul.f32 %v5911_v47, %v7173_v19 }
 0x555   : > { %v7203_v30 = vpop.permute.xlu0 %3458 }
 0x556   : > { %10233 = vst [vmem:[#allocation244_spill] sm:$0xff] %v7203_v30  ;;  %v10262_v30 = vld [vmem:[#allocation53_spill] sm:$0xff] }
 0x557   : > { %2028 = vrot.lane.b32.xlu0 %v2012_v7, %s5210_s26  ;;  %v7407_v12 = vmul.f32 %v10262_v30, %v7200_v56 }
 0x559   : > { %v7208_v22 = vpop.permute.xlu0 %3492 }
 0x55a   : > { %10234 = vst [vmem:[#allocation245_spill] sm:$0xff] %v7208_v22  ;;  %v7277_v22 = vmul.f32 %v5522_v29, %v7200_v56 }
 0x55b   : > { %2055 = vrot.lane.b32.xlu0 %v2043_v41, %s5210_s26  ;;  %v2080_v41 = vmul.f32 %v5911_v47, %v7183_v36  ;;  %v9917_v47 = vrot.slane %v7247_v52, 5 }
 0x55d   : > { %v7213_v24 = vpop.permute.xlu0 %3496 }
 0x55e   : > { %10235 = vst [vmem:[#allocation246_spill] sm:$0xff] %v7213_v24  ;;  %v7267_v24 = vmul.f32 %v5507_v16, %v7200_v56 }
 0x55f   : > { %2059 = vrot.lane.b32.xlu0 %v2045_v18, %s5210_s26 }
 0x561   : > { %v7218_v11 = vpop.permute.xlu0 %3533 }
 0x562   : > { %10236 = vst [vmem:[#allocation247_spill] sm:$0xff] %v7218_v11  ;;  %v10273_v11 = vld [vmem:[#allocation85_spill] sm:$0xff] }
 0x563   : > { %2063 = vrot.lane.b32.xlu0 %v2047_v32, %s5210_s26  ;;  %v7239_v32 = vmul.f32 %v5468_v55, %v7173_v19  ;;  %v9918_v55 = vrot.slane %v7257_v4, 1  ;;  %v7467_v20 = vmul.f32 %v10273_v11, %v7200_v56 }
 0x565   : > { %v7223_v6 = vpop.permute.xlu0 %3578 }
 0x566   : > { %10237 = vst [vmem:[#allocation248_spill] sm:$0xff] %v7223_v6  ;;  %v10266_v6 = vld [vmem:[#allocation71_spill] sm:$0xff] }
 0x567   : > { %2090 = vrot.lane.b32.xlu0 %v2078_v21, %s5210_s26  ;;  %v9916_v21 = vrot.slane %v7239_v32, 5  ;;  %v7427_v51 = vmul.f32 %v10266_v6, %v7200_v56 }
 0x569   : > { %v7228_v7 = vpop.permute.xlu0 %3582 }
 0x56a   : > { %10238 = vst [vmem:[#allocation249_spill] sm:$0xff] %v7228_v7  ;;  %v9923_v7 = vrot.slane %v7307_v27, 6 }
 0x56b   : > { %2094 = vrot.lane.b32.xlu0 %v2080_v41, %s5210_s26 }
 0x56d   : > { %v7233_v18 = vpop.permute.xlu0 %3619 }
 0x56e   : > { %10239 = vst [vmem:[#allocation250_spill] sm:$0xff] %v7233_v18 }
 0x56f   : > { %2098 = vrot.lane.b32.xlu0 %v2082_v39, %s5210_s26 }
 0x571   : > { %v7242_v40 = vpop.permute.xlu0 %3623 }
 0x572   : > { %10240 = vst [vmem:[#allocation251_spill] sm:$0xff] %v7242_v40  ;;  %v10260_v40 = vld [vmem:[#allocation49_spill] sm:$0xff] }
 0x573   : > { %1103 = vrot.lane.b32.xlu0 %v9916_v21, %s5205_s12  ;;  %v7397_v18 = vmul.f32 %v10260_v40, %v7200_v56 }
 0x575   : > { %v7252_v41 = vpop.permute.xlu0 %3657 }
 0x576   : > { %10241 = vst [vmem:[#allocation252_spill] sm:$0xff] %v7252_v41  ;;  %v9919_v41 = vrot.slane %v7267_v24, 1 }
 0x577   : > { %1111 = vrot.lane.b32.xlu0 %v9917_v47, %s5205_s12 }
 0x579   : > { %v7262_v39 = vpop.permute.xlu0 %3661 }
 0x57a   : > { %10242 = vst [vmem:[#allocation253_spill] sm:$0xff] %v7262_v39  ;;  %v9920_v39 = vrot.slane %v7277_v22, 1 }
 0x57b   : > { %1196 = vrot.lane.b32.xlu0 %v9918_v55, %s5205_s12 }
 0x57d   : > { %v7272_v21 = vpop.permute.xlu0 %3702 }
 0x57e   : > { %10243 = vst [vmem:[#allocation254_spill] sm:$0xff] %v7272_v21  ;;  %v7357_v21 = vmul.f32 %v10253_v50, %v7173_v19 }
 0x57f   : > { %1241 = vrot.lane.b32.xlu0 %v9919_v41, %s5205_s12 }
 0x580   : > { %v9928_v25 = vrot.slane %v7357_v21, 7 }
 0x581   : > { %v7282_v47 = vpop.permute.xlu0 %3706 }
 0x582   : > { %10244 = vst [vmem:[#allocation255_spill] sm:$0xff] %v7282_v47  ;;  %v7457_v47 = vmul.f32 %v10270_v53, %v7183_v36 }
 0x583   : > { %1286 = vrot.lane.b32.xlu0 %v9920_v39, %s5205_s12 }
 0x585   : > { %v7292_v55 = vpop.permute.xlu0 %3747 }
 0x586   : > { %10245 = vst [vmem:[#allocation256_spill] sm:$0xff] %v7292_v55  ;;  %v7417_v55 = vmul.f32 %v10264_v34, %v7200_v56 }
 0x587   : > { %1369 = vrot.lane.b32.xlu0 %v9921_v10, %s5205_s12 }
 0x589   : > { %v7302_v41 = vpop.permute.xlu0 %3751 }
 0x58a   : > { %10246 = vst [vmem:[#allocation257_spill] sm:$0xff] %v7302_v41 }
 0x58b   : > { %1399 = vrot.lane.b32.xlu0 %v9922_v38, %s5207_s28 }
 0x58d   : > { %v7312_v39 = vpop.permute.xlu0 %3792 }
 0x58e   : > { %10247 = vst [vmem:[#allocation258_spill] sm:$0xff] %v7312_v39 }
 0x58f   : > { %1407 = vrot.lane.b32.xlu0 %v9923_v7, %s5207_s28 }
 0x591   : > { %v7322_v10 = vpop.permute.xlu0 %3796 }
 0x592   : > { %10248 = vst [vmem:[#allocation259_spill] sm:$0xff] %v7322_v10  ;;  %v10256_v10 = vld [vmem:[#allocation35_spill] sm:$0xff] }
 0x593   : > { %1445 = vrot.lane.b32.xlu0 %v9924_v45, %s5207_s28  ;;  %v7377_v39 = vmul.f32 %v10256_v10, %v7173_v19 }
 0x595   : > { %v7332_v38 = vpop.permute.xlu0 %3826  ;;  %v9930_v50 = vrot.slane %v7377_v39, 7 }
 0x596   : > { %10249 = vst [vmem:[#allocation260_spill] sm:$0xff] %v7332_v38  ;;  %v9927_v38 = vrot.slane %v7347_v43, 2 }
 0x597   : > { %1537 = vrot.lane.b32.xlu0 %v9925_v0, %s5207_s28 }
 0x599   : > { %v7342_v7 = vpop.permute.xlu0 %3871 }
 0x59a   : > { %10250 = vst [vmem:[#allocation261_spill] sm:$0xff] %v7342_v7  ;;  %v10268_v7 = vld [vmem:[#allocation74_spill] sm:$0xff] }
 0x59b   : > { %1582 = vrot.lane.b32.xlu0 %v9926_v49, %s5207_s28  ;;  %v7437_v59 = vmul.f32 %v10268_v7, %v7200_v56 }
 0x59d   : > { %v7352_v45 = vpop.permute.xlu0 %3875  ;;  %v9936_v62 = vrot.slane %v7437_v59, 4 }
 0x59e   : > { %10252 = vst [vmem:[#allocation26_spill] sm:$0xff] %v7352_v45  ;;  %v9929_v45 = vrot.slane %v7367_v2, 7 }
 0x59f   : > { %1627 = vrot.lane.b32.xlu0 %v9927_v38, %s5207_s28 }
 0x5a1   : > { %v7362_v0 = vpop.permute.xlu0 %3916 }
 0x5a2   : > { %10254 = vst [vmem:[#allocation32_spill] sm:$0xff] %v7362_v0  ;;  %v10258_v0 = vld [vmem:[#allocation43_spill] sm:$0xff] }
 0x5a3   : > { %1695 = vrot.lane.b32.xlu0 %v9928_v25, %s5208_s9  ;;  %v7387_v41 = vmul.f32 %v10258_v0, %v7173_v19 }
 0x5a5   : > { %v7372_v49 = vpop.permute.xlu0 %3920 }
 0x5a6   : > { %10255 = vst [vmem:[#allocation262_spill] sm:$0xff] %v7372_v49  ;;  %v9931_v49 = vrot.slane %v7387_v41, 7 }
 0x5a7   : > { %1703 = vrot.lane.b32.xlu0 %v9929_v45, %s5208_s9 }
 0x5a9   : > { %v7382_v38 = vpop.permute.xlu0 %3957 }
 0x5aa   : > { %10257 = vst [vmem:[#allocation35_spill] sm:$0xff] %v7382_v38  ;;  %v9932_v38 = vrot.slane %v7397_v18, 3 }
 0x5ab   : > { %1741 = vrot.lane.b32.xlu0 %v9930_v50, %s5208_s9 }
 0x5ad   : > { %v7392_v25 = vpop.permute.xlu0 %3961 }
 0x5ae   : > { %10259 = vst [vmem:[#allocation43_spill] sm:$0xff] %v7392_v25  ;;  %v9933_v25 = vrot.slane %v7407_v12, 3 }
 0x5af   : > { %1786 = vrot.lane.b32.xlu0 %v9931_v49, %s5208_s9 }
 0x5b1   : > { %v7402_v45 = vpop.permute.xlu0 %3995 }
 0x5b2   : > { %10261 = vst [vmem:[#allocation49_spill] sm:$0xff] %v7402_v45  ;;  %v9934_v45 = vrot.slane %v7417_v55, 3 }
 0x5b3   : > { %1878 = vrot.lane.b32.xlu0 %v9932_v38, %s5208_s9 }
 0x5b5   : > { %v7412_v50 = vpop.permute.xlu0 %3999 }
 0x5b6   : > { %10263 = vst [vmem:[#allocation53_spill] sm:$0xff] %v7412_v50  ;;  %v9935_v50 = vrot.slane %v7427_v51, 4 }
 0x5b7   : > { %1923 = vrot.lane.b32.xlu0 %v9933_v25, %s5208_s9 }
 0x5b9   : > { %v7422_v49 = vpop.permute.xlu0 %1991 }
 0x5ba   : > { %10265 = vst [vmem:[#allocation57_spill] sm:$0xff] %v7422_v49  ;;  %v7447_v49 = vmul.f32 %v10270_v53, %v7173_v19  ;;  %v9939_v53 = vrot.slane %v7467_v20, 1 }
 0x5bb   : > { %1968 = vrot.lane.b32.xlu0 %v9934_v45, %s5208_s9 }
 0x5bd   : > { %v7432_v38 = vpop.permute.xlu0 %1995 }
 0x5be   : > { %10267 = vst [vmem:[#allocation71_spill] sm:$0xff] %v7432_v38  ;;  %v9937_v38 = vrot.slane %v7447_v49, 5 }
 0x5bf   : > { %2181 = vrot.lane.b32.xlu0 %v9935_v50, %s5210_s26 }
 0x5c1   : > { %v7442_v25 = vpop.permute.xlu0 %2020 }
 0x5c2   : > { %10269 = vst [vmem:[#allocation74_spill] sm:$0xff] %v7442_v25  ;;  %v9938_v25 = vrot.slane %v7457_v47, 5 }
 0x5c3   : > { %2226 = vrot.lane.b32.xlu0 %v9936_v62, %s5210_s26 }
 0x5c5   : > { %v7452_v45 = vpop.permute.xlu0 %2024 }
 0x5c6   : > { %10271 = vst [vmem:[#allocation78_spill] sm:$0xff] %v7452_v45  ;;  %v10275_v45 = vld [vmem:[#allocation89_spill] sm:$0xff] }
 0x5c7   : > { %2255 = vrot.lane.b32.xlu0 %v9937_v38, %s5211_s21  ;;  %v7477_v1 = vmul.f32 %v10275_v45, %v7200_v56 }
 0x5c9   : > { %v7462_v50 = vpop.permute.xlu0 %2028 }
 0x5ca   : > { %10272 = vst [vmem:[#allocation263_spill] sm:$0xff] %v7462_v50  ;;  %v9940_v50 = vrot.slane %v7477_v1, 1 }
 0x5cb   : > { %2263 = vrot.lane.b32.xlu0 %v9938_v25, %s5211_s21 }
 0x5cd   : > { %v7472_v62 = vpop.permute.xlu0 %2055 }
 0x5ce   : > { %10274 = vst [vmem:[#allocation85_spill] sm:$0xff] %v7472_v62  ;;  %v9941_v62 = vrot.slane %v7487_v3, 1 }
 0x5cf   : > { %2347 = vrot.lane.b32.xlu0 %v9939_v53, %s5211_s21 }
 0x5d1   : > { %v7482_v38 = vpop.permute.xlu0 %2059 }
 0x5d2   : > { %10276 = vst [vmem:[#allocation89_spill] sm:$0xff] %v7482_v38  ;;  %v9942_v38 = vrot.slane %v7497_v48, 5 }
 0x5d3   : > { %2392 = vrot.lane.b32.xlu0 %v9940_v50, %s5211_s21 }
 0x5d5   : > { %v7492_v25 = vpop.permute.xlu0 %2063 }
 0x5d6   : > { %10278 = vst [vmem:[#allocation93_spill] sm:$0xff] %v7492_v25  ;;  %v9943_v25 = vrot.slane %v7507_v44, 6 }
 0x5d7   : > { %2437 = vrot.lane.b32.xlu0 %v9941_v62, %s5211_s21 }
 0x5d9   : > { %v7502_v53 = vpop.permute.xlu0 %2090 }
 0x5da   : > { %10280 = vst [vmem:[#allocation100_spill] sm:$0xff] %v7502_v53  ;;  %v9944_v53 = vrot.slane %v7517_v46, 6 }
 0x5db   : > { %2520 = vrot.lane.b32.xlu0 %v9942_v38, %s5211_s21 }
 0x5dd   : > { %v7512_v50 = vpop.permute.xlu0 %2094 }
 0x5de   : > { %10283 = vst [vmem:[#allocation264_spill] sm:$0xff] %v7512_v50  ;;  %v10288_v50 = vld [vmem:[#allocation117_spill] sm:$0xff] }
 0x5df   : > { %2549 = vrot.lane.b32.xlu0 %v9943_v25, %s5206_s4  ;;  %v7537_v57 = vmul.f32 %v10288_v50, %v7200_v56  ;;  %v1131_v50 = vmul.f32 %v10297_v28, %v7200_v56 }
 0x5e1   : > { %v7522_v62 = vpop.permute.xlu0 %2098  ;;  %10289 = vst [vmem:[#allocation267_spill] sm:$0xff] %v7537_v57  ;;  %v1146_v44 = vrot.slane %v1131_v50, 1 }
 0x5e2   : > { %10284 = vst [vmem:[#allocation265_spill] sm:$0xff] %v7522_v62  ;;  %v9947_v62 = vrot.slane %v7537_v57, 2  ;;  %v1129_v57 = vmul.f32 %v10297_v28, %v7183_v36 }
 0x5e3   : > { %2557 = vrot.lane.b32.xlu0 %v9944_v53, %s5206_s4 }
 0x5e5   : > { %v7532_v38 = vpop.permute.xlu0 %1103 }
 0x5e6   : > { %10287 = vst [vmem:[#allocation266_spill] sm:$0xff] %v7532_v38  ;;  %v9948_v38 = vrot.slane %v7547_v35, 2  ;;  %v1141_v35 = vrot.slane %v1129_v57, 1 }
 0x5e7   : > { %2595 = vrot.lane.b32.xlu0 %v9945_v54, %s5206_s4 }
 0x5e9   : > { %v7542_v25 = vpop.permute.xlu0 %1111 }
 0x5ea   : > { %10290 = vst [vmem:[#allocation268_spill] sm:$0xff] %v7542_v25  ;;  %v9952_v25 = vrot.slane %v7557_v37, 2 }
 0x5eb   : > { %2686 = vrot.lane.b32.xlu0 %v9947_v62, %s5206_s4  ;;  %v1127_v62 = vmul.f32 %v10297_v28, %v7173_v19  ;;  %v1147_v28 = vsel %vm1139_vm3, %v1141_v35, %v1146_v44 }
 0x5ed   : > { %v7552_v53 = vpop.permute.xlu0 %1196  ;;  %v1140_v42 = vrot.slane %v1127_v62, 1 }
 0x5ee   : > { %10293 = vst [vmem:[#allocation270_spill] sm:$0xff] %v7552_v53 }
 0x5ef   : > { %2731 = vrot.lane.b32.xlu0 %v9948_v38, %s5206_s4  ;;  %v10300_v38 = vrot.slane %v7239_v32, 5  ;;  %v1213_v32 = vmul.f32 %v5507_v16, %v7183_v36 }
 0x5f1   : > { %v7562_v54 = vpop.permute.xlu0 %1241  ;;  %v1224_v50 = vrot.slane %v1213_v32, 1 }
 0x5f2   : > { %10296 = vst [vmem:[#allocation272_spill] sm:$0xff] %v7562_v54  ;;  %v1100_v54 = vsel %vm1096_vm2, %v10300_v38, %v10299_v33  ;;  %v1166_v33 = vmul.f32 %v5493_v5, %v7173_v19 }
 0x5f3   : > { %2776 = vrot.lane.b32.xlu0 %v9952_v25, %s5206_s4  ;;  %v1142_v25 = vsel %vm1139_vm3, %v1140_v42, %v1141_v35  ;;  %v10304_v35 = vrot.slane %v7257_v4, 1  ;;  %v10307_v4 = vrot.slane %v7267_v24, 1  ;;  %v10311_v24 = vrot.slane %v7277_v22, 1 }
 0x5f4   : > { %v1178_v38 = vrot.slane %v1166_v33, 1  ;;  %v1339_v22 = vmul.f32 %v5588_v26, %v7173_v19 }
 0x5f5   : > { %v7572_v53 = vpop.permute.xlu0 %1286 }
 0x5f6   : > { %10298 = vst [vmem:[#allocation15_spill] sm:$0xff] %v7572_v53  ;;  %v1168_v53 = vmul.f32 %v5493_v5, %v7183_v36  ;;  %v1211_v5 = vmul.f32 %v5507_v16, %v7173_v19  ;;  %v1256_v16 = vmul.f32 %v5522_v29, %v7173_v19 }
 0x5f7   : > { %1107 = vrot.lane.b32.xlu0 %v1100_v54, %s5205_s12 }
 0x5f8   : > { %v1179_v52 = vrot.slane %v1168_v53, 1  ;;  %v1223_v53 = vrot.slane %v1211_v5, 1  ;;  %v1268_v32 = vrot.slane %v1256_v16, 1 }
 0x5f9   : > { %v7582_v37 = vpop.permute.xlu0 %1369 }
 0x5fa   : > { %10301 = vst [vmem:[#allocation273_spill] sm:$0xff] %v7582_v37  ;;  %v1180_v42 = vsel %vm1139_vm3, %v1178_v38, %v1179_v52  ;;  %v1185_v44 = vsel %vm1139_vm3, %v1179_v52, %v10304_v35  ;;  %v1225_v33 = vsel %vm1139_vm3, %v1223_v53, %v1224_v50  ;;  %v1230_v52 = vsel %vm1139_vm3, %v1224_v50, %v10307_v4 }
 0x5fb   : > { %1150 = vrot.lane.b32.xlu0 %v1142_v25, %s5205_s12 }
 0x5fd   : > { %v7590_v57 = vpop.permute.xlu0 %1399 }
 0x5fe   : > { %10302 = vst [vmem:[#allocation274_spill] sm:$0xff] %v7590_v57 }
 0x5ff   : > { %1154 = vrot.lane.b32.xlu0 %v1147_v28, %s5205_s12  ;;  %v1258_v28 = vmul.f32 %v5522_v29, %v7183_v36 }
 0x601   : > { %v7594_v62 = vpop.permute.xlu0 %1407 }
 0x602   : > { %10303 = vst [vmem:[#allocation275_spill] sm:$0xff] %v7594_v62 }
 0x603   : > { %1188 = vrot.lane.b32.xlu0 %v1180_v42, %s5205_s12  ;;  %v1269_v42 = vrot.slane %v1258_v28, 1 }
 0x605   : > { %v7602_v25 = vpop.permute.xlu0 %1445  ;;  %v1270_v35 = vsel %vm1139_vm3, %v1268_v32, %v1269_v42  ;;  %v1275_v50 = vsel %vm1139_vm3, %v1269_v42, %v10311_v24 }
 0x607   : > { %1192 = vrot.lane.b32.xlu0 %v1185_v44, %s5205_s12  ;;  %v10309_v44 = vld [vmem:[#allocation16_spill] sm:$0xff] }
 0x608   : > { %v1303_v53 = vmul.f32 %v10309_v44, %v7183_v36  ;;  %v1301_v29 = vmul.f32 %v10309_v44, %v7173_v19  ;;  %v1305_v16 = vmul.f32 %v10309_v44, %v7200_v56 }
 0x609   : > { %v7608_v54 = vpop.permute.xlu0 %1537 }
 0x60a   : > { %10305 = vst [vmem:[#allocation276_spill] sm:$0xff] %v7608_v54  ;;  %v1314_v28 = vrot.slane %v1303_v53, 5  ;;  %v1313_v4 = vrot.slane %v1301_v29, 5  ;;  %v1341_v54 = vmul.f32 %v5588_v26, %v7183_v36  ;;  %v1351_v29 = vrot.slane %v1339_v22, 5 }
 0x60b   : > { %1233 = vrot.lane.b32.xlu0 %v1225_v33, %s5205_s12 }
 0x60c   : > { %v1315_v32 = vsel %vm1096_vm2, %v1313_v4, %v1314_v28  ;;  %v1352_v53 = vrot.slane %v1341_v54, 5  ;;  %v10316_v4 = vrot.slane %v7287_v60, 5 }
 0x60d   : > { %v7616_v38 = vpop.permute.xlu0 %1582 }
 0x60e   : > { %10306 = vst [vmem:[#allocation277_spill] sm:$0xff] %v7616_v38  ;;  %v1358_v26 = vsel %vm1096_vm2, %v1352_v53, %v10316_v4 }
 0x60f   : > { %1237 = vrot.lane.b32.xlu0 %v1230_v52, %s5205_s12 }
 0x611   : > { %v7622_v5 = vpop.permute.xlu0 %1627 }
 0x612   : > { %10308 = vst [vmem:[#allocation278_spill] sm:$0xff] %v7622_v5 }
 0x613   : > { %1278 = vrot.lane.b32.xlu0 %v1270_v35, %s5205_s12  ;;  %v1319_v35 = vrot.slane %v1305_v16, 5 }
 0x615   : > { %v7630_v33 = vpop.permute.xlu0 %1695  ;;  %v1320_v44 = vsel %vm1096_vm2, %v1314_v28, %v1319_v35  ;;  %v10318_v28 = vrot.slane %v7307_v27, 6  ;;  %v10319_v35 = vrot.slane %v7297_v13, 6 }
 0x616   : > { %10310 = vst [vmem:[#allocation16_spill] sm:$0xff] %v7630_v33 }
 0x617   : > { %1282 = vrot.lane.b32.xlu0 %v1275_v50, %s5205_s12  ;;  %v1353_v50 = vsel %vm1096_vm2, %v1351_v29, %v1352_v53  ;;  %v1396_v22 = vsel %vm1392_vm5, %v10319_v35, %v10318_v28  ;;  %v1427_v29 = vmul.f32 %v5622_v58, %v7200_v56  ;;  %v10321_v53 = vrot.slane %v7317_v9, 6 }
 0x619   : > { %v7638_v52 = vpop.permute.xlu0 %1703  ;;  %v1441_v4 = vrot.slane %v1427_v29, 6 }
 0x61a   : > { %10312 = vst [vmem:[#allocation279_spill] sm:$0xff] %v7638_v52 }
 0x61b   : > { %1323 = vrot.lane.b32.xlu0 %v1315_v32, %s5205_s12  ;;  %v1425_v32 = vmul.f32 %v5622_v58, %v7183_v36 }
 0x61d   : > { %v7646_v42 = vpop.permute.xlu0 %1741 }
 0x61e   : > { %10313 = vst [vmem:[#allocation280_spill] sm:$0xff] %v7646_v42 }
 0x61f   : > { %1327 = vrot.lane.b32.xlu0 %v1320_v44, %s5205_s12  ;;  %v1437_v44 = vrot.slane %v1425_v32, 6 }
 0x621   : > { %v7650_v24 = vpop.permute.xlu0 %1786  ;;  %v1442_v58 = vsel %vm1392_vm5, %v1437_v44, %v1441_v4 }
 0x622   : > { %10314 = vst [vmem:[#allocation281_spill] sm:$0xff] %v7650_v24 }
 0x623   : > { %1361 = vrot.lane.b32.xlu0 %v1353_v50, %s5205_s12  ;;  %v1438_v50 = vsel %vm1392_vm5, %v10321_v53, %v1437_v44  ;;  %v1507_v44 = vmul.f32 %v5650_v15, %v7173_v19 }
 0x625   : > { %v7654_v16 = vpop.permute.xlu0 %1878 }
 0x626   : > { %10315 = vst [vmem:[#allocation282_spill] sm:$0xff] %v7654_v16 }
 0x627   : > { %1365 = vrot.lane.b32.xlu0 %v1358_v26, %s5205_s12  ;;  %v10322_v26 = vld [vmem:[#allocation19_spill] sm:$0xff]  ;;  %s4925_s12 = sld [smem:[#allocation10 + $0x58]] }
 0x628   : > { %v1470_v27 = vmul.f32 %v10322_v26, %v7183_v36  ;;  %v1468_v13 = vmul.f32 %v10322_v26, %v7173_v19  ;;  %v1472_v35 = vmul.f32 %v10322_v26, %v7200_v56 }
 0x629   : > { %v7662_v54 = vpop.permute.xlu0 %1923 }
 0x62a   : > { %10317 = vst [vmem:[#allocation283_spill] sm:$0xff] %v7662_v54  ;;  %v1482_v28 = vrot.slane %v1470_v27, 2  ;;  %v1481_v9 = vrot.slane %v1468_v13, 2  ;;  %v1487_v53 = vrot.slane %v1472_v35, 2  ;;  %v1519_v13 = vrot.slane %v1507_v44, 2 }
 0x62b   : > { %1403 = vrot.lane.b32.xlu0 %v1396_v22, %s5207_s28 }
 0x62c   : > { %v1483_v29 = vsel %vm1480_vm6, %v1481_v9, %v1482_v28  ;;  %v1488_v26 = vsel %vm1480_vm6, %v1482_v28, %v1487_v53  ;;  %v1554_v9 = vmul.f32 %v5668_v31, %v7183_v36  ;;  %v10328_v28 = vrot.slane %v7327_v17, 2 }
 0x62d   : > { %v7672_v60 = vpop.permute.xlu0 %1968  ;;  %v10331_v17 = vrot.slane %v7337_v14, 2  ;;  %v10335_v14 = vrot.slane %v7347_v43, 2 }
 0x62e   : > { %10320 = vst [vmem:[#allocation284_spill] sm:$0xff] %v7672_v60 }
 0x62f   : > { %1449 = vrot.lane.b32.xlu0 %v1438_v50, %s5207_s28  ;;  %v1509_v50 = vmul.f32 %v5650_v15, %v7183_v36  ;;  %v1552_v15 = vmul.f32 %v5668_v31, %v7173_v19  ;;  %v1597_v31 = vmul.f32 %v10251_v8, %v7173_v19 }
 0x631   : > { %v7682_v32 = vpop.permute.xlu0 %2181  ;;  %v1520_v27 = vrot.slane %v1509_v50, 2  ;;  %v1565_v50 = vrot.slane %v1554_v9, 2  ;;  %v1564_v44 = vrot.slane %v1552_v15, 2  ;;  %v1609_v15 = vrot.slane %v1597_v31, 2 }
 0x632   : > { %10323 = vst [vmem:[#allocation19_spill] sm:$0xff] %v7682_v32 }
 0x633   : > { %1453 = vrot.lane.b32.xlu0 %v1442_v58, %s5207_s28  ;;  %v1521_v35 = vsel %vm1480_vm6, %v1519_v13, %v1520_v27  ;;  %v1526_v53 = vsel %vm1480_vm6, %v1520_v27, %v10328_v28  ;;  %v1566_v13 = vsel %vm1480_vm6, %v1564_v44, %v1565_v50  ;;  %v1571_v27 = vsel %vm1480_vm6, %v1565_v50, %v10331_v17  ;;  %v10333_v44 = vld [vmem:[#allocation29_spill] sm:$0xff] }
 0x634   : > { %v1646_v31 = vmul.f32 %v10333_v44, %v7200_v56 }
 0x635   : > { %v7688_v22 = vpop.permute.xlu0 %2226 }
 0x636   : > { %10324 = vst [vmem:[#allocation285_spill] sm:$0xff] %v7688_v22 }
 0x637   : > { %1491 = vrot.lane.b32.xlu0 %v1483_v29, %s5207_s28 }
 0x639   : > { %v7696_v4 = vpop.permute.xlu0 %2255 }
 0x63a   : > { %10325 = vst [vmem:[#allocation286_spill] sm:$0xff] %v7696_v4 }
 0x63b   : > { %1495 = vrot.lane.b32.xlu0 %v1488_v26, %s5207_s28 }
 0x63d   : > { %v7700_v58 = vpop.permute.xlu0 %2263 }
 0x63e   : > { %10326 = vst [vmem:[#allocation287_spill] sm:$0xff] %v7700_v58  ;;  %v7867_v58 = vstv %s4925_s12  ;;  %s8306_s12 = sld [smem:[#allocation10 + $0x15]] }
 0x63f   : > { %1529 = vrot.lane.b32.xlu0 %v1521_v35, %s5207_s28  ;;  %v1599_v35 = vmul.f32 %v10251_v8, %v7183_v36  ;;  %v1642_v8 = vmul.f32 %v10333_v44, %v7173_v19 }
 0x641   : > { %v7708_v29 = vpop.permute.xlu0 %2347  ;;  %v1610_v9 = vrot.slane %v1599_v35, 2  ;;  %v1654_v17 = vrot.slane %v1642_v8, 6  ;;  %v10340_v8 = vrot.slane %v7357_v21, 7 }
 0x642   : > { %10327 = vst [vmem:[#allocation288_spill] sm:$0xff] %v7708_v29 }
 0x643   : > { %1533 = vrot.lane.b32.xlu0 %v1526_v53, %s5207_s28  ;;  %v1611_v53 = vsel %vm1480_vm6, %v1609_v15, %v1610_v9  ;;  %v1616_v50 = vsel %vm1480_vm6, %v1610_v9, %v10335_v14  ;;  %v1721_v9 = vmul.f32 %v10256_v10, %v7183_v36 }
 0x645   : > { %v7714_v26 = vpop.permute.xlu0 %2392 }
 0x646   : > { %10329 = vst [vmem:[#allocation289_spill] sm:$0xff] %v7714_v26 }
 0x647   : > { %1574 = vrot.lane.b32.xlu0 %v1566_v13, %s5207_s28  ;;  %v1644_v13 = vmul.f32 %v10333_v44, %v7183_v36 }
 0x649   : > { %v7722_v29 = vpop.permute.xlu0 %2437  ;;  %v1655_v35 = vrot.slane %v1644_v13, 6  ;;  %v10339_v13 = vrot.slane %v7367_v2, 7  ;;  %v1766_v2 = vmul.f32 %v10258_v0, %v7183_v36 }
 0x64a   : > { %10330 = vst [vmem:[#allocation290_spill] sm:$0xff] %v7722_v29 }
 0x64b   : > { %1578 = vrot.lane.b32.xlu0 %v1571_v27, %s5207_s28  ;;  %v1656_v15 = vsel %vm1392_vm5, %v1654_v17, %v1655_v35  ;;  %v1692_v14 = vsel %vm1688_vm7, %v10340_v8, %v10339_v13  ;;  %v10342_v17 = vrot.slane %v7377_v39, 7  ;;  %v10344_v39 = vrot.slane %v7387_v41, 7  ;;  %v7793_v41 = vpop.permute.xlu1 %3535 }
 0x64d   : > { %v7728_v28 = vpop.permute.xlu0 %2520 }
 0x64e   : > { %10332 = vst [vmem:[#allocation291_spill] sm:$0xff] %v7728_v28 }
 0x64f   : > { %1619 = vrot.lane.b32.xlu0 %v1611_v53, %s5207_s28  ;;  %v1660_v53 = vrot.slane %v1646_v31, 6  ;;  %v1723_v31 = vmul.f32 %v10256_v10, %v7200_v56  ;;  %v1768_v10 = vmul.f32 %v10258_v0, %v7200_v56 }
 0x651   : > { %v7736_v32 = vpop.permute.xlu0 %2549  ;;  %v1661_v43 = vsel %vm1392_vm5, %v1655_v35, %v1660_v53  ;;  %v1737_v53 = vrot.slane %v1723_v31, 7  ;;  %v10345_v31 = vld [vmem:[#allocation46_spill] sm:$0xff] }
 0x652   : > { %10334 = vst [vmem:[#allocation29_spill] sm:$0xff] %v7736_v32  ;;  %v8083_v32 = vstv %s4931_s29  ;;  %s8327_s29 = sld [smem:[#allocation10]] }
 0x653   : > { %1623 = vrot.lane.b32.xlu0 %v1616_v50, %s5207_s28  ;;  %v1733_v50 = vrot.slane %v1721_v9, 7  ;;  %v1778_v9 = vrot.slane %v1766_v2, 7  ;;  %v1813_v2 = vmul.f32 %v10345_v31, %v7200_v56 }
 0x655   : > { %v7744_v27 = vpop.permute.xlu0 %2557  ;;  %v1779_v8 = vsel %vm1688_vm7, %v10344_v39, %v1778_v9 }
 0x656   : > { %10336 = vst [vmem:[#allocation292_spill] sm:$0xff] %v7744_v27 }
 0x657   : > { %1664 = vrot.lane.b32.xlu0 %v1656_v15, %s5207_s28  ;;  %v1734_v15 = vsel %vm1688_vm7, %v10342_v17, %v1733_v50  ;;  %v1811_v17 = vmul.f32 %v10345_v31, %v7183_v36 }
 0x659   : > { %v7748_v28 = vpop.permute.xlu0 %2595 }
 0x65a   : > { %10337 = vst [vmem:[#allocation293_spill] sm:$0xff] %v7748_v28 }
 0x65b   : > { %1668 = vrot.lane.b32.xlu0 %v1661_v43, %s5207_s28  ;;  %v1738_v43 = vsel %vm1688_vm7, %v1733_v50, %v1737_v53  ;;  %v1809_v50 = vmul.f32 %v10345_v31, %v7173_v19  ;;  %v1823_v53 = vrot.slane %v1811_v17, 3  ;;  %s4926_s28 = sld [smem:[#allocation10 + $0x5f]] }
 0x65d   : > { %v7754_v44 = vpop.permute.xlu0 %2686 }
 0x65e   : > { %10338 = vst [vmem:[#allocation294_spill] sm:$0xff] %v7754_v44  ;;  %v1850_v44 = vmul.f32 %v10260_v40, %v7183_v36 }
 0x65f   : > { %1699 = vrot.lane.b32.xlu0 %v1692_v14, %s5208_s9  ;;  %v1782_v14 = vrot.slane %v1768_v10, 7 }
 0x661   : > { %v7764_v35 = vpop.permute.xlu0 %2731  ;;  %v1783_v0 = vsel %vm1688_vm7, %v1778_v9, %v1782_v14  ;;  %v1848_v9 = vmul.f32 %v10260_v40, %v7173_v19  ;;  %v7804_v14 = vpop.permute.xlu1 %3539  ;;  %v1893_v40 = vmul.f32 %v10262_v30, %v7173_v19 }
 0x662   : > { %10341 = vst [vmem:[#allocation295_spill] sm:$0xff] %v7764_v35  ;;  %10348 = vst [vmem:[#allocation298_spill] sm:$0xff] %v7804_v14 }
 0x663   : > { %1745 = vrot.lane.b32.xlu0 %v1734_v15, %s5208_s9 }
 0x665   : > { %v7772_v21 = vpop.permute.xlu0 %2776 }
 0x666   : > { %10343 = vst [vmem:[#allocation296_spill] sm:$0xff] %v7772_v21  ;;  %v7815_v21 = vpop.permute.xlu1 %3576 }
 0x667   : > { %1749 = vrot.lane.b32.xlu0 %v1738_v43, %s5208_s9  ;;  %v1822_v43 = vrot.slane %v1809_v50, 3  ;;  %v1861_v50 = vrot.slane %v1850_v44, 3  ;;  %v10352_v44 = vrot.slane %v7397_v18, 3 }
 0x669   : > { %v7778_v13 = vpop.permute.xlu0 %1107  ;;  %v1824_v39 = vsel %vm1821_vm10, %v1822_v43, %v1823_v53 }
 0x66b   : > { %1790 = vrot.lane.b32.xlu0 %v1779_v8, %s5208_s9  ;;  %v1828_v8 = vrot.slane %v1813_v2, 3 }
 0x66d   : > { %v7788_v15 = vpop.permute.xlu0 %1150  ;;  %v1829_v17 = vsel %vm1821_vm10, %v1823_v53, %v1828_v8  ;;  %v1867_v53 = vsel %vm1821_vm10, %v1861_v50, %v10352_v44 }
 0x66e   : > { %10346 = vst [vmem:[#allocation46_spill] sm:$0xff] %v7788_v15 }
 0x66f   : > { %1794 = vrot.lane.b32.xlu0 %v1783_v0, %s5208_s9  ;;  %v1860_v0 = vrot.slane %v1848_v9, 3  ;;  %v1905_v9 = vrot.slane %v1893_v40, 3 }
 0x671   : > { %v7796_v10 = vpop.permute.xlu0 %1154  ;;  %v1862_v2 = vsel %vm1821_vm10, %v1860_v0, %v1861_v50  ;;  %v10354_v50 = vrot.slane %v7407_v12, 3 }
 0x672   : > { %10347 = vst [vmem:[#allocation297_spill] sm:$0xff] %v7796_v10 }
 0x673   : > { %1832 = vrot.lane.b32.xlu0 %v1824_v39, %s5208_s9  ;;  %v1895_v39 = vmul.f32 %v10262_v30, %v7183_v36  ;;  %v1938_v30 = vmul.f32 %v10264_v34, %v7173_v19 }
 0x675   : > { %v7806_v31 = vpop.permute.xlu0 %1188  ;;  %v1906_v8 = vrot.slane %v1895_v39, 3 }
 0x676   : > { %10349 = vst [vmem:[#allocation299_spill] sm:$0xff] %v7806_v31  ;;  %v7887_v31 = vld [vmem:[#allocation4 + $0x58] sm:$0x3f] }
 0x677   : > { %1836 = vrot.lane.b32.xlu0 %v1829_v17, %s5208_s9  ;;  %v7826_v17 = vpop.permute.xlu1 %3580  ;;  %v1907_v16 = vsel %vm1821_vm10, %v1905_v9, %v1906_v8  ;;  %v1912_v39 = vsel %vm1821_vm10, %v1906_v8, %v10354_v50  ;;  %v4023_v27 = vmul.f32 %v7887_v31, %v7867_v58 }
 0x678   : > { %10353 = vst [vmem:[#allocation302_spill] sm:$0xff] %v7826_v17 }
 0x679   : > { %v7810_v43 = vpop.permute.xlu0 %1192 }
 0x67a   : > { %10350 = vst [vmem:[#allocation300_spill] sm:$0xff] %v7810_v43  ;;  %v2153_v43 = vmul.f32 %v10266_v6, %v7183_v36 }
 0x67b   : > { %1870 = vrot.lane.b32.xlu0 %v1862_v2, %s5208_s9  ;;  %v1940_v2 = vmul.f32 %v10264_v34, %v7183_v36  ;;  %v7841_v44 = vpop.permute.xlu1 %3584 }
 0x67c   : > { %10355 = vst [vmem:[#allocation303_spill] sm:$0xff] %v7841_v44 }
 0x67d   : > { %v7820_v14 = vpop.permute.xlu0 %1233  ;;  %v1951_v40 = vrot.slane %v1940_v2, 3  ;;  %v10360_v2 = vrot.slane %v7417_v55, 3 }
 0x67e   : > { %10351 = vst [vmem:[#allocation301_spill] sm:$0xff] %v7820_v14 }
 0x67f   : > { %1874 = vrot.lane.b32.xlu0 %v1867_v53, %s5208_s9  ;;  %v1950_v53 = vrot.slane %v1938_v30, 3  ;;  %v7852_v12 = vpop.permute.xlu1 %3621  ;;  %v1957_v30 = vsel %vm1821_vm10, %v1951_v40, %v10360_v2  ;;  %v2151_v2 = vmul.f32 %v10266_v6, %v7173_v19 }
 0x681   : > { %v7828_v0 = vpop.permute.xlu0 %1237  ;;  %v1952_v52 = vsel %vm1821_vm10, %v1950_v53, %v1951_v40  ;;  %v2163_v60 = vrot.slane %v2151_v2, 4  ;;  %v10366_v2 = vrot.slane %v7427_v51, 4 }
 0x683   : > { %1915 = vrot.lane.b32.xlu0 %v1907_v16, %s5208_s9  ;;  %v10357_v16 = vld [vmem:[#allocation70_spill] sm:$0xff]  ;;  %v7869_v55 = vpop.permute.xlu1 %3625 }
 0x684   : > { %v2115_v29 = vmul.f32 %v10357_v16, %v7183_v36  ;;  %v2113_v34 = vmul.f32 %v10357_v16, %v7173_v19  ;;  %10358 = vst [vmem:[#allocation70_spill] sm:$0xff] %v7852_v12  ;;  %10362 = vst [vmem:[#allocation307_spill] sm:$0xff] %v7869_v55 }
 0x685   : > { %v7836_v18 = vpop.permute.xlu0 %1278 }
 0x686   : > { %v2126_v50 = vrot.slane %v2115_v29, 4  ;;  %v2125_v53 = vrot.slane %v2113_v34, 4  ;;  %v7872_v29 = vld [vmem:[#allocation4 + $0x38] sm:$0xff] }
 0x687   : > { %1919 = vrot.lane.b32.xlu0 %v1912_v39, %s5208_s9  ;;  %v2117_v39 = vmul.f32 %v10357_v16, %v7200_v56  ;;  %v4019_v40 = vmul.f32 %v7872_v29, %v7867_v58  ;;  %v7876_v16 = vld [vmem:[#allocation4 + $0x48] sm:$0xff]  ;;  %v7892_v6 = vpop.permute.xlu1 %3659 }
 0x688   : > { %v4021_v34 = vmul.f32 %v7876_v16, %v7867_v58  ;;  %10364 = vst [vmem:[#allocation309_spill] sm:$0xff] %v7892_v6 }
 0x689   : > { %v7844_v9 = vpop.permute.xlu0 %1282  ;;  %v2131_v33 = vrot.slane %v2117_v39, 4  ;;  %v4033_v39 = vrot.slane %v4019_v40, 3 }
 0x68a   : > { %10356 = vst [vmem:[#allocation304_spill] sm:$0xff] %v7844_v9 }
 0x68b   : > { %1960 = vrot.lane.b32.xlu0 %v1952_v52, %s5208_s9  ;;  %v2127_v52 = vsel %vm232_vm0, %v2125_v53, %v2126_v50  ;;  %v4034_v53 = vrot.slane %v4021_v34, 3  ;;  %v2132_v37 = vsel %vm232_vm0, %v2126_v50, %v2131_v33  ;;  %v4038_v34 = vrot.slane %v4023_v27, 3  ;;  %v7911_v6 = vpop.permute.xlu1 %3663 }
 0x68c   : > { %v2196_v50 = vmul.f32 %v10268_v7, %v7173_v19  ;;  %10367 = vst [vmem:[#allocation311_spill] sm:$0xff] %v7911_v6 }
 0x68d   : > { %v7854_v8 = vpop.permute.xlu0 %1323  ;;  %v4035_v35 = vsel %vm1821_vm10, %v4033_v39, %v4034_v53 }
 0x68e   : > { %10359 = vst [vmem:[#allocation305_spill] sm:$0xff] %v7854_v8  ;;  %4042 = vrot.lane.b32.xlu1 %v4035_v35, %s5210_s26 }
 0x68f   : > { %1964 = vrot.lane.b32.xlu0 %v1957_v30, %s5208_s9  ;;  %s4927_s9 = sld [smem:[#allocation10 + $0x36]]  ;;  %v7927_v6 = vpop.permute.xlu1 %3667 }
 0x690   : > { %10369 = vst [vmem:[#allocation313_spill] sm:$0xff] %v7927_v6 }
 0x691   : > { %v7862_v44 = vpop.permute.xlu0 %1327 }
 0x692   : > { %10361 = vst [vmem:[#allocation306_spill] sm:$0xff] %v7862_v44 }
 0x693   : > { %2135 = vrot.lane.b32.xlu0 %v2127_v52, %s5210_s26  ;;  %v2164_v52 = vrot.slane %v2153_v43, 4  ;;  %v4039_v43 = vsel %vm1821_vm10, %v4034_v53, %v4038_v34 }
 0x694   : > { %4046 = vrot.lane.b32.xlu1 %v4039_v43, %s5210_s26 }
 0x695   : > { %v7882_v30 = vpop.permute.xlu0 %1361  ;;  %v2165_v33 = vsel %vm232_vm0, %v2163_v60, %v2164_v52  ;;  %v2170_v27 = vsel %vm232_vm0, %v2164_v52, %v10366_v2  ;;  %v7909_v60 = vstv %s4926_s28  ;;  %s8315_s28 = sld [smem:[#allocation10 + $0x7]] }
 0x696   : > { %10363 = vst [vmem:[#allocation308_spill] sm:$0xff] %v7882_v30  ;;  %v4064_v53 = vmul.f32 %v7872_v29, %v7909_v60 }
 0x697   : > { %2139 = vrot.lane.b32.xlu0 %v2132_v37, %s5210_s26  ;;  %v2198_v37 = vmul.f32 %v10268_v7, %v7183_v36  ;;  %v4066_v7 = vmul.f32 %v7876_v16, %v7909_v60 }
 0x698   : > { %4050 = vrot.lane.b32.xlu1 %v4038_v34, %s5210_s26  ;;  %v4078_v51 = vrot.slane %v4064_v53, 3  ;;  %v10371_v53 = vrot.slane %v7437_v59, 4  ;;  %v10375_v59 = vrot.slane %v7447_v49, 5 }
 0x699   : > { %v7894_v40 = vpop.permute.xlu0 %1365  ;;  %v2209_v39 = vrot.slane %v2198_v37, 4  ;;  %v4079_v52 = vrot.slane %v4066_v7, 3 }
 0x69a   : > { %10365 = vst [vmem:[#allocation310_spill] sm:$0xff] %v7894_v40 }
 0x69b   : > { %2173 = vrot.lane.b32.xlu0 %v2165_v33, %s5210_s26  ;;  %v2208_v33 = vrot.slane %v2196_v50, 4  ;;  %v4080_v2 = vsel %vm1821_vm10, %v4078_v51, %v4079_v52  ;;  %v2215_v7 = vsel %vm232_vm0, %v2209_v39, %v10371_v53 }
 0x69c   : > { %4087 = vrot.lane.b32.xlu1 %v4080_v2, %s5210_s26 }
 0x69d   : > { %v7904_v35 = vpop.permute.xlu0 %1403  ;;  %v2210_v37 = vsel %vm232_vm0, %v2208_v33, %v2209_v39  ;;  %v10372_v33 = vld [vmem:[#allocation82_spill] sm:$0xff] }
 0x69e   : > { %v2279_v40 = vmul.f32 %v10372_v33, %v7173_v19  ;;  %v2283_v6 = vmul.f32 %v10372_v33, %v7200_v56 }
 0x69f   : > { %2177 = vrot.lane.b32.xlu0 %v2170_v27, %s5210_s26  ;;  %v4068_v27 = vmul.f32 %v7887_v31, %v7909_v60 }
 0x6a1   : > { %v7919_v43 = vpop.permute.xlu0 %1449  ;;  %v4083_v34 = vrot.slane %v4068_v27, 3  ;;  %v10374_v27 = vrot.slane %v7457_v47, 5 }
 0x6a2   : > { %10368 = vst [vmem:[#allocation312_spill] sm:$0xff] %v7919_v43 }
 0x6a3   : > { %2218 = vrot.lane.b32.xlu0 %v2210_v37, %s5210_s26  ;;  %v2281_v37 = vmul.f32 %v10372_v33, %v7183_v36  ;;  %v4084_v51 = vsel %vm1821_vm10, %v4079_v52, %v4083_v34  ;;  %v2252_v39 = vsel %vm1096_vm2, %v10375_v59, %v10374_v27  ;;  %v7953_v52 = vstv %s4927_s9  ;;  %s4849_s9 = sld [smem:[#allocation10 + $0x2a]] }
 0x6a4   : > { %4091 = vrot.lane.b32.xlu1 %v4084_v51, %s5210_s26  ;;  %v2291_v51 = vrot.slane %v2279_v40, 1  ;;  %v4109_v47 = vmul.f32 %v7872_v29, %v7953_v52  ;;  %v2297_v27 = vrot.slane %v2283_v6, 1  ;;  %v2319_v33 = vmul.f32 %v10273_v11, %v7183_v36 }
 0x6a5   : > { %v7929_v50 = vpop.permute.xlu0 %1453  ;;  %v2292_v53 = vrot.slane %v2281_v37, 1  ;;  %v2317_v59 = vmul.f32 %v10273_v11, %v7173_v19  ;;  %v4111_v40 = vmul.f32 %v7876_v16, %v7953_v52 }
 0x6a6   : > { %10370 = vst [vmem:[#allocation314_spill] sm:$0xff] %v7929_v50  ;;  %v2330_v6 = vrot.slane %v2319_v33, 1 }
 0x6a7   : > { %2222 = vrot.lane.b32.xlu0 %v2215_v7, %s5210_s26  ;;  %v7950_v7 = vpop.permute.xlu1 %3704  ;;  %v2293_v37 = vsel %vm1139_vm3, %v2291_v51, %v2292_v53  ;;  %v2298_v51 = vsel %vm1139_vm3, %v2292_v53, %v2297_v27  ;;  %v2362_v53 = vmul.f32 %v10275_v45, %v7173_v19 }
 0x6a8   : > { %10376 = vst [vmem:[#allocation315_spill] sm:$0xff] %v7950_v7  ;;  %4095 = vrot.lane.b32.xlu1 %v4083_v34, %s5210_s26  ;;  %v7975_v7 = vstv %s4928_s11  ;;  %s4845_s11 = sld [smem:[#allocation10 + $0xe]] }
 0x6a9   : > { %v7941_v2 = vpop.permute.xlu0 %1491  ;;  %v4133_v11 = vmul.f32 %v7872_v29, %v7975_v7  ;;  %v4135_v27 = vmul.f32 %v7876_v16, %v7975_v7 }
 0x6aa   : > { %10373 = vst [vmem:[#allocation82_spill] sm:$0xff] %v7941_v2 }
 0x6ab   : > { %2259 = vrot.lane.b32.xlu0 %v2252_v39, %s5211_s21  ;;  %v7969_v34 = vpop.permute.xlu1 %3708 }
 0x6ac   : > { %4118 = vrot.lane.b32.xlu1 %v4109_v47, %s5211_s21 }
 0x6ad   : > { %v7958_v49 = vpop.permute.xlu0 %1495 }
 0x6ae   : > { %10377 = vst [vmem:[#allocation316_spill] sm:$0xff] %v7958_v49 }
 0x6af   : > { %2301 = vrot.lane.b32.xlu0 %v2293_v37, %s5211_s21  ;;  %v2329_v37 = vrot.slane %v2317_v59, 1  ;;  %v7985_v55 = vpop.permute.xlu1 %3712  ;;  %v10382_v59 = vrot.slane %v7467_v20, 1  ;;  %v2409_v20 = vmul.f32 %v10277_v61, %v7183_v36 }
 0x6b0   : > { %4122 = vrot.lane.b32.xlu1 %v4111_v40, %s5211_s21  ;;  %10380 = vst [vmem:[#allocation319_spill] sm:$0xff] %v7985_v55 }
 0x6b1   : > { %v7971_v39 = vpop.permute.xlu0 %1529  ;;  %v2331_v30 = vsel %vm1139_vm3, %v2329_v37, %v2330_v6  ;;  %v2336_v40 = vsel %vm1139_vm3, %v2330_v6, %v10382_v59  ;;  %v2374_v37 = vrot.slane %v2362_v53, 1  ;;  %v2407_v6 = vmul.f32 %v10277_v61, %v7173_v19 }
 0x6b2   : > { %10378 = vst [vmem:[#allocation317_spill] sm:$0xff] %v7971_v39  ;;  %v2364_v39 = vmul.f32 %v10275_v45, %v7183_v36  ;;  %v4137_v45 = vmul.f32 %v7887_v31, %v7975_v7  ;;  %v10384_v59 = vrot.slane %v7477_v1, 1  ;;  %v10387_v1 = vld [vmem:[#allocation97_spill] sm:$0xff] }
 0x6b3   : > { %2305 = vrot.lane.b32.xlu0 %v2298_v51, %s5211_s21  ;;  %v2454_v26 = vmul.f32 %v10387_v1, %v7183_v36  ;;  %v2456_v36 = vmul.f32 %v10387_v1, %v7200_v56 }
 0x6b4   : > { %4146 = vrot.lane.b32.xlu1 %v4133_v11, %s5211_s21  ;;  %v2375_v51 = vrot.slane %v2364_v39, 1  ;;  %v8010_v39 = vstv %s4929_s13  ;;  %s8324_s13 = sld [smem:[#allocation10 + $0x31]] }
 0x6b5   : > { %v7980_v47 = vpop.permute.xlu0 %1533  ;;  %v4168_v53 = vmul.f32 %v7872_v29, %v8010_v39  ;;  %v4170_v61 = vmul.f32 %v7876_v16, %v8010_v39 }
 0x6b6   : > { %10379 = vst [vmem:[#allocation318_spill] sm:$0xff] %v7980_v47  ;;  %v2376_v55 = vsel %vm1139_vm3, %v2374_v37, %v2375_v51  ;;  %v2420_v37 = vrot.slane %v2409_v20, 1  ;;  %v4172_v20 = vmul.f32 %v7887_v31, %v8010_v39 }
 0x6b7   : > { %2339 = vrot.lane.b32.xlu0 %v2331_v30, %s5211_s21  ;;  %v8002_v30 = vpop.permute.xlu1 %3749 }
 0x6b8   : > { %4150 = vrot.lane.b32.xlu1 %v4135_v27, %s5211_s21  ;;  %10383 = vst [vmem:[#allocation321_spill] sm:$0xff] %v8002_v30  ;;  %v8110_v30 = vld [vmem:[#allocation4 + $0x20] sm:$0x3f] }
 0x6b9   : > { %v7993_v33 = vpop.permute.xlu0 %1574 }
 0x6ba   : > { %10381 = vst [vmem:[#allocation320_spill] sm:$0xff] %v7993_v33 }
 0x6bb   : > { %2343 = vrot.lane.b32.xlu0 %v2336_v40, %s5211_s21  ;;  %v2381_v40 = vsel %vm1139_vm3, %v2375_v51, %v10384_v59  ;;  %v8022_v47 = vpop.permute.xlu1 %3753  ;;  %v2452_v51 = vmul.f32 %v10387_v1, %v7173_v19  ;;  %v10390_v59 = vrot.slane %v7487_v3, 1  ;;  %v8049_v19 = vstv %s4930_s2  ;;  %v8064_v1 = vld [vmem:[#allocation4] sm:$0xff]  ;;  %s4896_s2 = sld [smem:[#allocation10 + $0x4d]] }
 0x6bc   : > { %4154 = vrot.lane.b32.xlu1 %v4137_v45, %s5211_s21  ;;  %10385 = vst [vmem:[#allocation322_spill] sm:$0xff] %v8022_v47  ;;  %v2470_v47 = vrot.slane %v2456_v36, 5 }
 0x6bd   : > { %v8004_v11 = vpop.permute.xlu0 %1578 }
 0x6bf   : > { %2384 = vrot.lane.b32.xlu0 %v2376_v55, %s5211_s21  ;;  %v2419_v55 = vrot.slane %v2407_v6, 1  ;;  %v8039_v6 = vpop.permute.xlu1 %3757 }
 0x6c0   : > { %4181 = vrot.lane.b32.xlu1 %v4168_v53, %s5211_s21  ;;  %10388 = vst [vmem:[#allocation97_spill] sm:$0xff] %v8039_v6 }
 0x6c1   : > { %v8017_v27 = vpop.permute.xlu0 %1619  ;;  %v2421_v12 = vsel %vm1139_vm3, %v2419_v55, %v2420_v37  ;;  %v2465_v55 = vrot.slane %v2454_v26, 5 }
 0x6c3   : > { %2388 = vrot.lane.b32.xlu0 %v2381_v40, %s5211_s21  ;;  %v2426_v40 = vsel %vm1139_vm3, %v2420_v37, %v10390_v59  ;;  %v8057_v37 = vld [vmem:[#allocation4 + $0x10] sm:$0xff]  ;;  %v8061_v26 = vpop.permute.xlu1 %3794 }
 0x6c4   : > { %4185 = vrot.lane.b32.xlu1 %v4170_v61, %s5211_s21  ;;  %v4203_v61 = vmul.f32 %v7872_v29, %v8049_v19  ;;  %v2492_v56 = vmul.f32 %v8057_v37, %v10279_v23  ;;  %10392 = vst [vmem:[#allocation326_spill] sm:$0xff] %v8061_v26 }
 0x6c5   : > { %v8028_v45 = vpop.permute.xlu0 %1623 }
 0x6c6   : > { %10386 = vst [vmem:[#allocation323_spill] sm:$0xff] %v8028_v45  ;;  %v2503_v36 = vrot.slane %v2492_v56, 5 }
 0x6c7   : > { %2429 = vrot.lane.b32.xlu0 %v2421_v12, %s5211_s21  ;;  %v2464_v12 = vrot.slane %v2452_v51, 5  ;;  %v2490_v51 = vmul.f32 %v8064_v1, %v10279_v23  ;;  %v8078_v26 = vpop.permute.xlu1 %3798 }
 0x6c8   : > { %4189 = vrot.lane.b32.xlu1 %v4172_v20, %s5211_s21  ;;  %v4205_v20 = vmul.f32 %v7876_v16, %v8049_v19  ;;  %10394 = vst [vmem:[#allocation328_spill] sm:$0xff] %v8078_v26 }
 0x6c9   : > { %v8041_v53 = vpop.permute.xlu0 %1664  ;;  %v2466_v3 = vsel %vm1096_vm2, %v2464_v12, %v2465_v55  ;;  %v2502_v12 = vrot.slane %v2490_v51, 5 }
 0x6ca   : > { %10389 = vst [vmem:[#allocation324_spill] sm:$0xff] %v8041_v53  ;;  %v8366_v53 = vld [vmem:[#allocation4 + $0x10] sm:$0xff] }
 0x6cb   : > { %2433 = vrot.lane.b32.xlu0 %v2426_v40, %s5211_s21  ;;  %v2471_v40 = vsel %vm1096_vm2, %v2465_v55, %v2470_v47  ;;  %v4238_v47 = vmul.f32 %v7872_v29, %v8083_v32  ;;  %v4240_v55 = vmul.f32 %v7876_v16, %v8083_v32 }
 0x6cc   : > { %4216 = vrot.lane.b32.xlu1 %v4203_v61, %s5211_s21  ;;  %v2504_v61 = vsel %vm1096_vm2, %v2502_v12, %v2503_v36 }
 0x6cd   : > { %v8054_v6 = vpop.permute.xlu0 %1668  ;;  %v4252_v51 = vrot.slane %v4238_v47, 4  ;;  %v10399_v47 = vrot.slane %v7517_v46, 6 }
 0x6ce   : > { %10391 = vst [vmem:[#allocation325_spill] sm:$0xff] %v8054_v6 }
 0x6cf   : > { %2474 = vrot.lane.b32.xlu0 %v2466_v3, %s5211_s21  ;;  %v4207_v3 = vmul.f32 %v7887_v31, %v8049_v19 }
 0x6d0   : > { %4220 = vrot.lane.b32.xlu1 %v4205_v20, %s5211_s21  ;;  %v4253_v20 = vrot.slane %v4240_v55, 4  ;;  %v10400_v55 = vld [vmem:[#allocation104_spill] sm:$0xff] }
 0x6d1   : > { %v8071_v59 = vpop.permute.xlu0 %1699 }
 0x6d2   : > { %10393 = vst [vmem:[#allocation327_spill] sm:$0xff] %v8071_v59  ;;  %v2575_v59 = vmul.f32 %v8057_v37, %v10285_v63  ;;  %v4254_v26 = vsel %vm232_vm0, %v4252_v51, %v4253_v20 }
 0x6d3   : > { %2478 = vrot.lane.b32.xlu0 %v2471_v40, %s5211_s21  ;;  %v10396_v40 = vrot.slane %v7497_v48, 5  ;;  %v10401_v48 = vrot.slane %v10400_v55, 6  ;;  %v10406_v55 = vld [vmem:[#allocation114_spill] sm:$0xff] }
 0x6d4   : > { %4224 = vrot.lane.b32.xlu1 %v4207_v3, %s5211_s21  ;;  %v2622_v50 = vmul.f32 %v8110_v30, %v10406_v55 }
 0x6d5   : > { %v8080_v23 = vpop.permute.xlu0 %1745  ;;  %v2509_v12 = vsel %vm1096_vm2, %v2503_v36, %v10396_v40  ;;  %v2546_v36 = vsel %vm1392_vm5, %v10401_v48, %v10399_v47  ;;  %v2587_v40 = vrot.slane %v2575_v59, 6  ;;  %v2620_v47 = vmul.f32 %v8057_v37, %v10406_v55 }
 0x6d6   : > { %v8124_v59 = vstv %s4932_s5  ;;  %s8330_s5 = sld [smem:[#allocation10 + $0x1c]] }
 0x6d7   : > { %2512 = vrot.lane.b32.xlu0 %v2504_v61, %s5211_s21  ;;  %v8098_v61 = vpop.permute.xlu1 %3824  ;;  %v4276_v48 = vmul.f32 %v7872_v29, %v8124_v59  ;;  %v2631_v5 = vrot.slane %v2620_v47, 2  ;;  %v10410_v47 = vld [vmem:[#allocation117_spill] sm:$0xff] }
 0x6d8   : > { %10397 = vst [vmem:[#allocation330_spill] sm:$0xff] %v8098_v61  ;;  %4261 = vrot.lane.b32.xlu1 %v4254_v26, %s5211_s21  ;;  %v2577_v61 = vmul.f32 %v8110_v30, %v10285_v63  ;;  %v10404_v26 = vld [vmem:[#allocation110_spill] sm:$0xff]  ;;  %v4242_v63 = vmul.f32 %v7887_v31, %v8083_v32 }
 0x6d9   : > { %v8091_v56 = vpop.permute.xlu0 %1749  ;;  %v10405_v17 = vrot.slane %v10404_v26, 6 }
 0x6da   : > { %10395 = vst [vmem:[#allocation329_spill] sm:$0xff] %v8091_v56  ;;  %v2591_v22 = vrot.slane %v2577_v61, 6  ;;  %v4257_v26 = vrot.slane %v4242_v63, 4 }
 0x6db   : > { %2516 = vrot.lane.b32.xlu0 %v2509_v12, %s5211_s21  ;;  %v8115_v12 = vpop.permute.xlu1 %3828  ;;  %v2588_v46 = vsel %vm1392_vm5, %v10405_v17, %v2587_v40  ;;  %v4278_v17 = vmul.f32 %v7876_v16, %v8124_v59 }
 0x6dc   : > { %10402 = vst [vmem:[#allocation104_spill] sm:$0xff] %v8115_v12  ;;  %v4290_v12 = vrot.slane %v4276_v48, 4  ;;  %v4258_v56 = vsel %vm232_vm0, %v4253_v20, %v4257_v26  ;;  %v2656_v20 = vmul.f32 %v8064_v1, %v10410_v47 }
 0x6dd   : > { %v8103_v3 = vpop.permute.xlu0 %1790  ;;  %v4291_v54 = vrot.slane %v4278_v17, 4  ;;  %4265 = vrot.lane.b32.xlu1 %v4258_v56, %s5211_s21 }
 0x6de   : > { %10398 = vst [vmem:[#allocation331_spill] sm:$0xff] %v8103_v3  ;;  %v1026_v3 = vstv %s8330_s5  ;;  %s4701_s5 = scalar_lea.sflag [#allocation8], %s5374_s25 }
 0x6df   : > { %2553 = vrot.lane.b32.xlu0 %v2546_v36, %s5206_s4  ;;  %v2618_v36 = vmul.f32 %v8064_v1, %v10406_v55  ;;  %v8142_v42 = vpop.permute.xlu1 %3832  ;;  %v4292_v48 = vsel %vm232_vm0, %v4290_v12, %v4291_v54  ;;  %v2658_v55 = vmul.f32 %v8057_v37, %v10410_v47 }
 0x6e0   : > { %10408 = vst [vmem:[#allocation114_spill] sm:$0xff] %v8142_v42 }
 0x6e1   : > { %v8117_v51 = vpop.permute.xlu0 %1794  ;;  %v2630_v33 = vrot.slane %v2618_v36, 2  ;;  %4299 = vrot.lane.b32.xlu1 %v4292_v48, %s5211_s21 }
 0x6e2   : > { %10403 = vst [vmem:[#allocation332_spill] sm:$0xff] %v8117_v51  ;;  %v4280_v51 = vmul.f32 %v7887_v31, %v8124_v59 }
 0x6e3   : > { %2599 = vrot.lane.b32.xlu0 %v2588_v46, %s5206_s4  ;;  %v2592_v46 = vsel %vm1392_vm5, %v2587_v40, %v2591_v22  ;;  %v2632_v22 = vsel %vm1480_vm6, %v2630_v33, %v2631_v5  ;;  %v2636_v40 = vrot.slane %v2622_v50, 2  ;;  %v8157_v56 = vpop.permute.xlu1 %3869  ;;  %v2669_v50 = vrot.slane %v2658_v55, 2 }
 0x6e4   : > { %v4295_v28 = vrot.slane %v4280_v51, 4  ;;  %10411 = vst [vmem:[#allocation117_spill] sm:$0xff] %v8157_v56  ;;  %v2668_v51 = vrot.slane %v2656_v20, 2 }
 0x6e5   : > { %v8135_v61 = vpop.permute.xlu0 %1832  ;;  %v2637_v33 = vsel %vm1480_vm6, %v2631_v5, %v2636_v40 }
 0x6e6   : > { %10407 = vst [vmem:[#allocation110_spill] sm:$0xff] %v8135_v61  ;;  %v4296_v12 = vsel %vm232_vm0, %v4291_v54, %v4295_v28  ;;  %v2670_v26 = vsel %vm1480_vm6, %v2668_v51, %v2669_v50  ;;  %v8268_v61 = vld [vmem:[#allocation4 + $0x50] sm:$0x3f] }
 0x6e7   : > { %2603 = vrot.lane.b32.xlu0 %v2592_v46, %s5206_s4  ;;  %4303 = vrot.lane.b32.xlu1 %v4296_v12, %s5211_s21  ;;  %v10414_v46 = vld [vmem:[#allocation121_spill] sm:$0xff]  ;;  %v8172_v47 = vpop.permute.xlu1 %3873  ;;  %v4022_v49 = vmul.f32 %v8268_v61, %v7867_v58 }
 0x6e8   : > { %v2703_v48 = vmul.f32 %v8057_v37, %v10414_v46  ;;  %10415 = vst [vmem:[#allocation121_spill] sm:$0xff] %v8172_v47  ;;  %v2701_v40 = vmul.f32 %v8064_v1, %v10414_v46  ;;  %v10426_v47 = vld [vmem:[#allocation129_spill] sm:$0xff] }
 0x6e9   : > { %v8147_v63 = vpop.permute.xlu0 %1836 }
 0x6ea   : > { %10409 = vst [vmem:[#allocation333_spill] sm:$0xff] %v8147_v63  ;;  %v2713_v46 = vrot.slane %v2701_v40, 2  ;;  %v10423_v40 = vld [vmem:[#allocation269_spill] sm:$0xff] }
 0x6eb   : > { %2640 = vrot.lane.b32.xlu0 %v2632_v22, %s5206_s4  ;;  %v8170_v22 = vstv %s4933_s23  ;;  %4307 = vrot.lane.b32.xlu1 %v4295_v28, %s5211_s21  ;;  %v8192_v28 = vpop.permute.xlu1 %3877  ;;  %s8333_s23 = sld [smem:[#allocation10 + $0x61]] }
 0x6ec   : > { %v4321_v5 = vmul.f32 %v7872_v29, %v8170_v22  ;;  %v4323_v54 = vmul.f32 %v7876_v16, %v8170_v22 }
 0x6ed   : > { %v8159_v36 = vpop.permute.xlu0 %1870 }
 0x6ee   : > { %10412 = vst [vmem:[#allocation334_spill] sm:$0xff] %v8159_v36  ;;  %v4335_v20 = vrot.slane %v4321_v5, 4  ;;  %v4336_v12 = vrot.slane %v4323_v54, 4 }
 0x6ef   : > { %2644 = vrot.lane.b32.xlu0 %v2637_v33, %s5206_s4  ;;  %v10417_v33 = vld [vmem:[#allocation267_spill] sm:$0xff]  ;;  %v8211_v36 = vpop.permute.xlu1 %3914 }
 0x6f0   : > { %v10418_v51 = vrot.slane %v10417_v33, 2  ;;  %v4337_v56 = vsel %vm232_vm0, %v4335_v20, %v4336_v12  ;;  %10419 = vst [vmem:[#allocation267_spill] sm:$0xff] %v8192_v28 }
 0x6f1   : > { %v8165_v17 = vpop.permute.xlu0 %1874  ;;  %4344 = vrot.lane.b32.xlu1 %v4337_v56, %s5211_s21  ;;  %v8379_v44 = vstv %s8333_s23 }
 0x6f2   : > { %10413 = vst [vmem:[#allocation335_spill] sm:$0xff] %v8165_v17  ;;  %v2675_v42 = vsel %vm1480_vm6, %v2669_v50, %v10418_v51  ;;  %v4325_v17 = vmul.f32 %v7887_v31, %v8170_v22  ;;  %v10421_v50 = vld [vmem:[#allocation125_spill] sm:$0xff]  ;;  %v10424_v51 = vrot.slane %v10423_v40, 2  ;;  %v8392_v45 = vmul.f32 %v7876_v16, %v8379_v44 }
 0x6f3   : > { %2678 = vrot.lane.b32.xlu0 %v2670_v26, %s5206_s4  ;;  %v2714_v26 = vrot.slane %v2703_v48, 2  ;;  %v2748_v48 = vmul.f32 %v8057_v37, %v10421_v50  ;;  %v2746_v20 = vmul.f32 %v8064_v1, %v10421_v50 }
 0x6f4   : > { %v4340_v54 = vrot.slane %v4325_v17, 4 }
 0x6f5   : > { %v8182_v55 = vpop.permute.xlu0 %1915  ;;  %v2715_v33 = vsel %vm1480_vm6, %v2713_v46, %v2714_v26  ;;  %v2720_v17 = vsel %vm1480_vm6, %v2714_v26, %v10424_v51  ;;  %v2759_v28 = vrot.slane %v2748_v48, 2  ;;  %v8209_v46 = vstv %s4934_s20  ;;  %s8455_s20 = sld [smem:[#allocation10 + $0x3f]] }
 0x6f6   : > { %10416 = vst [vmem:[#allocation336_spill] sm:$0xff] %v8182_v55  ;;  %v2793_v26 = vmul.f32 %v8057_v37, %v10426_v47  ;;  %v4368_v48 = vmul.f32 %v7876_v16, %v8209_v46  ;;  %v2791_v51 = vmul.f32 %v8064_v1, %v10426_v47 }
 0x6f7   : > { %2682 = vrot.lane.b32.xlu0 %v2675_v42, %s5206_s4  ;;  %v4341_v42 = vsel %vm232_vm0, %v4336_v12, %v4340_v54  ;;  %v4366_v12 = vmul.f32 %v7872_v29, %v8209_v46 }
 0x6f8   : > { %4348 = vrot.lane.b32.xlu1 %v4341_v42, %s5211_s21  ;;  %v2804_v55 = vrot.slane %v2793_v26, 6  ;;  %v2803_v1 = vrot.slane %v2791_v51, 6  ;;  %v8247_v26 = vstv %s4938_s22  ;;  %v8258_v51 = vld [vmem:[#allocation4 + $0x30] sm:$0xff]  ;;  %s8472_s22 = sld [smem:[#allocation10 + $0x5b]] }
 0x6f9   : > { %v8194_v5 = vpop.permute.xlu0 %1919  ;;  %v4374_v42 = vrot.slane %v4366_v12, 5  ;;  %v10429_v12 = vld [vmem:[#allocation271_spill] sm:$0xff] }
 0x6fa   : > { %10420 = vst [vmem:[#allocation337_spill] sm:$0xff] %v8194_v5 }
 0x6fb   : > { %2723 = vrot.lane.b32.xlu0 %v2715_v33, %s5206_s4  ;;  %v2758_v33 = vrot.slane %v2746_v20, 2 }
 0x6fc   : > { %4352 = vrot.lane.b32.xlu1 %v4340_v54, %s5211_s21  ;;  %v8228_v54 = vpop.permute.xlu1 %3918 }
 0x6fd   : > { %v8204_v56 = vpop.permute.xlu0 %1960  ;;  %v2760_v40 = vsel %vm1480_vm6, %v2758_v33, %v2759_v28  ;;  %10427 = vst [vmem:[#allocation129_spill] sm:$0xff] %v8228_v54  ;;  %v10430_v33 = vrot.slane %v10429_v12, 2  ;;  %v8243_v12 = vld [vmem:[#allocation4 + $0x40] sm:$0xff] }
 0x6fe   : > { %10422 = vst [vmem:[#allocation125_spill] sm:$0xff] %v8204_v56 }
 0x6ff   : > { %2727 = vrot.lane.b32.xlu0 %v2720_v17, %s5206_s4  ;;  %v4377_v17 = vrot.slane %v4368_v48, 5  ;;  %v2765_v37 = vsel %vm1480_vm6, %v2759_v28, %v10430_v33  ;;  %v2805_v48 = vsel %vm1392_vm5, %v2803_v1, %v2804_v55  ;;  %v4020_v28 = vmul.f32 %v8243_v12, %v7867_v58 }
 0x700   : > { %4381 = vrot.lane.b32.xlu1 %v4374_v42, %s5206_s4  ;;  %v4018_v33 = vmul.f32 %v8258_v51, %v7867_v58  ;;  %v4036_v58 = vrot.slane %v4022_v49, 3  ;;  %v4063_v49 = vmul.f32 %v8258_v51, %v7909_v60 }
 0x701   : > { %v8217_v50 = vpop.permute.xlu0 %1964  ;;  %v4378_v63 = vsel %vm1096_vm2, %v4374_v42, %v4377_v17  ;;  %v4535_v42 = vmul.f32 %v7887_v31, %v8247_v26 }
 0x702   : > { %10425 = vst [vmem:[#allocation269_spill] sm:$0xff] %v8217_v50  ;;  %v4030_v6 = vrot.slane %v4018_v33, 3  ;;  %v8359_v50 = vstv %s4845_s11 }
 0x703   : > { %2768 = vrot.lane.b32.xlu0 %v2760_v40, %s5206_s4  ;;  %v2795_v40 = vmul.f32 %v8110_v30, %v10426_v47  ;;  %v8249_v30 = vpop.permute.xlu1 %3922  ;;  %v4533_v47 = vmul.f32 %v7876_v16, %v8247_v26 }
 0x704   : > { %4385 = vrot.lane.b32.xlu1 %v4378_v63, %s5206_s4  ;;  %10432 = vst [vmem:[#allocation339_spill] sm:$0xff] %v8249_v30  ;;  %v4531_v63 = vmul.f32 %v7872_v29, %v8247_v26 }
 0x705   : > { %v8230_v20 = vpop.permute.xlu0 %2135  ;;  %v4546_v1 = vrot.slane %v4533_v47, 1 }
 0x706   : > { %10428 = vst [vmem:[#allocation338_spill] sm:$0xff] %v8230_v20  ;;  %v2809_v20 = vrot.slane %v2795_v40, 6  ;;  %v4545_v40 = vrot.slane %v4531_v63, 1 }
 0x707   : > { %2772 = vrot.lane.b32.xlu0 %v2765_v37, %s5206_s4  ;;  %v8275_v63 = vpop.permute.xlu1 %3959 }
 0x708   : > { %4389 = vrot.lane.b32.xlu1 %v4377_v17, %s5206_s4  ;;  %v2810_v30 = vsel %vm1392_vm5, %v2804_v55, %v2809_v20  ;;  %v4547_v57 = vsel %vm1139_vm3, %v4545_v40, %v4546_v1  ;;  %v8273_v17 = vstv %s4936_s27  ;;  %10434 = vst [vmem:[#allocation341_spill] sm:$0xff] %v8275_v63  ;;  %vm1115_vm5 = vcmask 1039360   ;;  %s8478_s27 = sld [smem:[#allocation10 + $0x5a]] }
 0x709   : > { %v8240_v54 = vpop.permute.xlu0 %2139  ;;  %v4441_v20 = vmul.f32 %v7872_v29, %v8273_v17  ;;  %v4445_v40 = vmul.f32 %v7887_v31, %v8273_v17 }
 0x70a   : > { %10431 = vst [vmem:[#allocation271_spill] sm:$0xff] %v8240_v54  ;;  %v4031_v54 = vrot.slane %v4020_v28, 3  ;;  %v4443_v28 = vmul.f32 %v7876_v16, %v8273_v17 }
 0x70b   : > { %2813 = vrot.lane.b32.xlu0 %v2805_v48, %s5206_s4  ;;  %v4550_v48 = vrot.slane %v4535_v42, 1  ;;  %v4455_v42 = vrot.slane %v4441_v20, 1  ;;  %v4460_v20 = vrot.slane %v4445_v40, 1 }
 0x70c   : > { %4554 = vrot.lane.b32.xlu1 %v4547_v57, %s5206_s4  ;;  %v4456_v33 = vrot.slane %v4443_v28, 1 }
 0x70d   : > { %v8263_v37 = vpop.permute.xlu0 %2173  ;;  %v4551_v55 = vsel %vm1139_vm3, %v4546_v1, %v4550_v48  ;;  %v4037_v1 = vsel %vm1821_vm10, %v4031_v54, %v4036_v58 }
 0x70e   : > { %10433 = vst [vmem:[#allocation340_spill] sm:$0xff] %v8263_v37  ;;  %v8294_v37 = vpop.permute.xlu1 %3963 }
 0x70f   : > { %2817 = vrot.lane.b32.xlu0 %v2810_v30, %s5206_s4  ;;  %v4032_v30 = vsel %vm1821_vm10, %v4030_v6, %v4031_v54  ;;  %10437 = vst [vmem:[#allocation344_spill] sm:$0xff] %v8294_v37  ;;  %v4075_v54 = vrot.slane %v4063_v49, 3  ;;  %v1005_v49 = vld [vmem:[#allocation4 + $0x20] sm:$0x3f] }
 0x710   : > { %4558 = vrot.lane.b32.xlu1 %v4551_v55, %s5206_s4  ;;  %v4457_v55 = vsel %vm1139_vm3, %v4455_v42, %v4456_v33  ;;  %v4461_v42 = vsel %vm1139_vm3, %v4456_v33, %v4460_v20  ;;  %v1029_v8 = vmul.f32 %v1026_v3, %v1005_v49  ;;  %v1019_v43 = vmul.f32 %v8359_v50, %v1005_v49 }
 0x711   : > { %v8277_v47 = vpop.permute.xlu0 %2177 }
 0x712   : > { %10435 = vst [vmem:[#allocation342_spill] sm:$0xff] %v8277_v47  ;;  %v4065_v47 = vmul.f32 %v8243_v12, %v7909_v60 }
 0x713   : > { %4040 = vrot.lane.b32.xlu0 %v4032_v30, %s5210_s26  ;;  %v4067_v30 = vmul.f32 %v8268_v61, %v7909_v60 }
 0x714   : > { %4562 = vrot.lane.b32.xlu1 %v4550_v48, %s5206_s4  ;;  %v4076_v28 = vrot.slane %v4065_v47, 3  ;;  %v8313_v48 = vpop.permute.xlu1 %3997 }
 0x715   : > { %v8287_v57 = vpop.permute.xlu0 %2218  ;;  %10439 = vst [vmem:[#allocation346_spill] sm:$0xff] %v8313_v48  ;;  %v4081_v33 = vrot.slane %v4067_v30, 3  ;;  %v1043_v30 = vstv %s8303_s7  ;;  %s8576_s7 = sld [smem:[#allocation10 + $0x54]] }
 0x716   : > { %10436 = vst [vmem:[#allocation343_spill] sm:$0xff] %v8287_v57  ;;  %v4077_v60 = vsel %vm1821_vm10, %v4075_v54, %v4076_v28  ;;  %v8349_v57 = vld [vmem:[#allocation4] sm:$0xff]  ;;  %v1045_v15 = vmul.f32 %v1043_v30, %v8366_v53 }
 0x717   : > { %4044 = vrot.lane.b32.xlu0 %v4037_v1, %s5210_s26  ;;  %v8311_v1 = vstv %s4937_s6  ;;  %v1027_v9 = vmul.f32 %v1026_v3, %v8349_v57  ;;  %s8566_s6 = sld [smem:[#allocation10 + $0x38]] }
 0x718   : > { %4464 = vrot.lane.b32.xlu1 %v4457_v55, %s5206_s4  ;;  %v4488_v40 = vmul.f32 %v7876_v16, %v8311_v1  ;;  %v8339_v54 = vmul.f32 %v7887_v31, %v8311_v1  ;;  %v8342_v63 = vpop.permute.xlu1 %4001 }
 0x719   : > { %v8300_v6 = vpop.permute.xlu0 %2222  ;;  %10442 = vst [vmem:[#allocation349_spill] sm:$0xff] %v8342_v63 }
 0x71a   : > { %10438 = vst [vmem:[#allocation345_spill] sm:$0xff] %v8300_v6  ;;  %v4501_v37 = vrot.slane %v4488_v40, 1  ;;  %v1062_v40 = vstv %s4849_s9  ;;  %v4505_v63 = vrot.slane %v8339_v54, 1  ;;  %v1007_v6 = vstv %s8327_s29  ;;  %v8374_v54 = vld [vmem:[#allocation4 + $0x40] sm:$0xff] }
 0x71b   : > { %4048 = vrot.lane.b32.xlu0 %v4036_v58, %s5210_s26  ;;  %v4486_v58 = vmul.f32 %v7872_v29, %v8311_v1  ;;  %v1063_v62 = vmul.f32 %v1062_v40, %v8349_v57 }
 0x71c   : > { %4468 = vrot.lane.b32.xlu1 %v4461_v42, %s5206_s4  ;;  %v8346_v42 = vmul.f32 %v1043_v30, %v1005_v49  ;;  %v8381_v14 = vpop.permute.xlu1 %4005  ;;  %v4506_v4 = vsel %vm1139_vm3, %v4501_v37, %v4505_v63 }
 0x71d   : > { %v8317_v47 = vpop.permute.xlu0 %2259  ;;  %v4500_v48 = vrot.slane %v4486_v58, 1  ;;  %v1021_v58 = vstv %s8306_s12  ;;  %10444 = vst [vmem:[#allocation351_spill] sm:$0xff] %v8381_v14  ;;  %v1028_v14 = vmul.f32 %v1026_v3, %v8366_v53  ;;  %v8428_v3 = vmul.f32 %v7887_v31, %v8379_v44  ;;  %s8649_s12 = sld [smem:[#allocation10 + $0x46]] }
 0x71e   : > { %10440 = vst [vmem:[#allocation347_spill] sm:$0xff] %v8317_v47  ;;  %v8357_v47 = vstv %s8315_s28  ;;  %v10449_v56 = vrot.slane %v8346_v42, 4  ;;  %s4947_s28 = sshll.u32 %s5182_s17, 8  ;;  %s5214_s17 = smov [#allocation11]  }
 0x71f   : > { %4085 = vrot.lane.b32.xlu0 %v4077_v60, %s5210_s26  ;;  %v4082_v60 = vsel %vm1821_vm10, %v4076_v28, %v4081_v33  ;;  %v4502_v28 = vsel %vm1139_vm3, %v4500_v48, %v4501_v37  ;;  %v4614_v48 = vmul.f32 %v7872_v29, %v8379_v44  ;;  %v10447_v37 = vstv %s8324_s13  ;;  %s9784_s29 = scalar_lea.hbm %s9838_s3, %s4947_s28 }
 0x720   : > { %4472 = vrot.lane.b32.xlu1 %v4460_v20, %s5206_s4  ;;  %v8364_v20 = vstv %s4896_s2  ;;  %v8403_v10 = vmul.f32 %v10447_v37, %v8374_v54  ;;  %v8423_v24 = vpop.permute.xlu1 %4042 }
 0x721   : > { %v8335_v55 = vpop.permute.xlu0 %2301  ;;  %10452 = vst [vmem:[#allocation357_spill] sm:$0xff] %v8423_v24  ;;  %v1008_v24 = vmul.f32 %v1007_v6, %v8349_v57 }
 0x722   : > { %10441 = vst [vmem:[#allocation348_spill] sm:$0xff] %v8335_v55  ;;  %10448 = vst [vmem:[#allocation354_spill] sm:$0xff] %v8403_v10 }
 0x723   : > { %4089 = vrot.lane.b32.xlu0 %v4082_v60, %s5210_s26  ;;  %v8361_v60 = vmul.f32 %v1062_v40, %v1005_v49 }
 0x724   : > { %4509 = vrot.lane.b32.xlu1 %v4502_v28, %s5206_s4  ;;  %v1014_v28 = vmul.f32 %v8357_v47, %v1005_v49 }
 0x725   : > { %v8352_v55 = vpop.permute.xlu0 %2305  ;;  %v1072_v38 = vrot.slane %v8361_v60, 4  ;;  %v8411_v60 = vld [vmem:[#allocation4 + $0x50] sm:$0x3f] }
 0x726   : > { %10443 = vst [vmem:[#allocation350_spill] sm:$0xff] %v8352_v55  ;;  %v8371_v55 = vmul.f32 %v1021_v58, %v8349_v57  ;;  %v8409_v5 = vadd.f32 %v10449_v56, %v1014_v28  ;;  %v4628_v56 = vrot.slane %v4614_v48, 5  ;;  %v4629_v28 = vrot.slane %v8392_v45, 5 }
 0x727   : > { %4093 = vrot.lane.b32.xlu0 %v4081_v33, %s5210_s26  ;;  %v4108_v33 = vmul.f32 %v8258_v51, %v7953_v52  ;;  %s8417_s26 = sld [smem:[#allocation10 + $0x3e]]  ;;  %v8439_v48 = vmul.f32 %v1021_v58, %v8366_v53  ;;  %v1051_v45 = vrot.slane %v1045_v15, 4  ;;  %v4633_v15 = vrot.slane %v8428_v3, 5 }
 0x728   : > { %10450 = vst [vmem:[#allocation355_spill] sm:$0xff] %v8409_v5  ;;  %4513 = vrot.lane.b32.xlu1 %v4506_v4, %s5206_s4  ;;  %v1034_v5 = vrot.slane %v1028_v14, 4  ;;  %v1036_v4 = vrot.slane %v1029_v8, 4  ;;  %v1009_v14 = vmul.f32 %v1007_v6, %v8366_v53  ;;  %v1012_v6 = vmul.f32 %v8357_v47, %v8349_v57 }
 0x729   : > { %v8383_v2 = vpop.permute.xlu0 %2339  ;;  %v1018_v3 = vmul.f32 %v8359_v50, %v8366_v53 }
 0x72a   : > { %10445 = vst [vmem:[#allocation352_spill] sm:$0xff] %v8383_v2  ;;  %v8397_v2 = vmul.f32 %v1021_v58, %v1005_v49  ;;  %v1064_v49 = vmul.f32 %v1062_v40, %v8366_v53  ;;  %v4630_v58 = vsel %vm1096_vm2, %v4628_v56, %v4629_v28  ;;  %v1017_v56 = vmul.f32 %v8359_v50, %v8349_v57 }
 0x72b   : > { %4116 = vrot.lane.b32.xlu0 %v4108_v33, %s5211_s21  ;;  %v4110_v33 = vmul.f32 %v8243_v12, %v7953_v52  ;;  %v8436_v52 = vmul.f32 %v8364_v20, %v8411_v60  ;;  %v4134_v50 = vmul.f32 %v8243_v12, %v7975_v7 }
 0x72c   : > { %10446 = vst [vmem:[#allocation353_spill] sm:$0xff] %v8397_v2  ;;  %v1044_v2 = vmul.f32 %v1043_v30, %v8349_v57  ;;  %v8430_v30 = vadd.f32 %v1072_v38, %v1019_v43  ;;  %v1033_v43 = vrot.slane %v1027_v9, 4  ;;  %v1070_v8 = vrot.slane %v1064_v49, 4  ;;  %4517 = vrot.lane.b32.xlu1 %v4505_v63, %s5206_s4 }
 0x72d   : > { %v8419_v37 = vpop.permute.xlu0 %2343  ;;  %10454 = vst [vmem:[#allocation359_spill] sm:$0xff] %v8436_v52  ;;  %v1037_v9 = vsel %vm232_vm0, %v1034_v5, %v1036_v4  ;;  %v1069_v49 = vrot.slane %v1063_v62, 4  ;;  %v1013_v63 = vmul.f32 %v8357_v47, %v8366_v53  ;;  %v10457_v4 = vrot.slane %v8346_v42, 4  ;;  %v8574_v52 = vld [vmem:[#allocation4 + $0x30] sm:$0xff] }
 0x72e   : > { %10451 = vst [vmem:[#allocation356_spill] sm:$0xff] %v8419_v37  ;;  %10453 = vst [vmem:[#allocation358_spill] sm:$0xff] %v8430_v30  ;;  %v1050_v40 = vrot.slane %v1044_v2, 4  ;;  %v4132_v30 = vmul.f32 %v8258_v51, %v7975_v7  ;;  %v8476_v57 = vstv %s8417_s26  ;;  %v4634_v47 = vsel %vm1096_vm2, %v4629_v28, %v4633_v15  ;;  %s5108_s26 = sshll.u32 %s5214_s17, 4  ;;  %s5109_s26 = int_to_ptr.vmem [resolvable:$false] %s5108_s26 }
 0x72f   : > { %4120 = vrot.lane.b32.xlu0 %v4110_v33, %s5211_s21  ;;  %v1035_v33 = vsel %vm232_vm0, %v1033_v43, %v1034_v5  ;;  %v8465_v5 = vpop.permute.xlu1 %4046  ;;  %v1054_v62 = vsel %vm232_vm0, %v1051_v45, %v10457_v4  ;;  %v1071_v43 = vsel %vm232_vm0, %v1069_v49, %v1070_v8  ;;  %10458 = vst [vmem:[#allocation362_spill] sm:$0xff] %v8476_v57  ;;  %v10462_v49 = vld [vmem:[#allocation159_spill] sm:$0xff]  ;;  %v10463_v4 = vld [vmem:[#allocation198_spill] sm:$0xff] }
 0x730   : > { %v1052_v2 = vsel %vm232_vm0, %v1050_v40, %v1051_v45  ;;  %10456 = vst [vmem:[#allocation361_spill] sm:$0xff] %v8465_v5  ;;  %v1073_v40 = vsel %vm232_vm0, %v1070_v8, %v1072_v38  ;;  %4637 = vrot.lane.b32.xlu1 %v4630_v58, %s5206_s4  ;;  %v4403_v42 = vmul.f32 %v7872_v29, %v8476_v57 }
 0x731   : > { %v8445_v37 = vpop.permute.xlu0 %2384  ;;  %v4405_v38 = vmul.f32 %v7876_v16, %v8476_v57  ;;  %v8490_v45 = vadd.f32 %v1035_v33, %v1008_v24  ;;  %v8492_v8 = vadd.f32 %v1037_v9, %v1009_v14  ;;  %v8494_v58 = vadd.f32 %v1052_v2, %v1012_v6  ;;  %v10467_v24 = vld [vmem:[#allocation160_spill] sm:$0xff]  ;;  %v10468_v33 = vld [vmem:[#allocation199_spill] sm:$0xff] }
 0x732   : > { %10455 = vst [vmem:[#allocation360_spill] sm:$0xff] %v8445_v37  ;;  %v8499_v5 = vsel %vm1115_vm5, %v10463_v4, %v10462_v49  ;;  %v8501_v28 = vadd.f32 %v1054_v62, %v1013_v63  ;;  %v8503_v37 = vadd.f32 %v1071_v43, %v1017_v56  ;;  %v8511_v14 = vsel %vm1115_vm5, %v10468_v33, %v10467_v24  ;;  %v10470_v63 = vld [vmem:[#allocation164_spill] sm:$0xff]  ;;  %v10471_v56 = vld [vmem:[#allocation203_spill] sm:$0xff] }
 0x733   : > { %4144 = vrot.lane.b32.xlu0 %v4132_v30, %s5211_s21  ;;  %10460 = vst [vmem:[#allocation364_spill] sm:$0xff] %v8492_v8  ;;  %10461 = vst [vmem:[#allocation365_spill] sm:$0xff] %v8494_v58  ;;  %v4136_v9 = vmul.f32 %v8268_v61, %v7975_v7  ;;  %v4167_v6 = vmul.f32 %v8258_v51, %v8010_v39  ;;  %v4169_v2 = vmul.f32 %v8243_v12, %v8010_v39  ;;  %v8527_v43 = vpop.permute.xlu1 %4050 }
 0x734   : > { %10464 = vst [vmem:[#allocation159_spill] sm:$0xff] %v8499_v5  ;;  %10465 = vst [vmem:[#allocation198_spill] sm:$0xff] %v8501_v28  ;;  %4641 = vrot.lane.b32.xlu1 %v4634_v47, %s5206_s4  ;;  %v4418_v7 = vrot.slane %v4405_v38, 1  ;;  %v8533_v49 = vmul.f32 %v8268_v61, %v8010_v39  ;;  %v4237_v47 = vmul.f32 %v8258_v51, %v8083_v32  ;;  %v8540_v24 = vstv %s8455_s20  ;;  %v10478_v5 = vld [vmem:[#allocation165_spill] sm:$0xff]  ;;  %s5110_s20 = scalar_lea.vmem %s5109_s26, 512 }
 0x735   : > { %v8480_v53 = vpop.permute.xlu0 %2388  ;;  %10466 = vst [vmem:[#allocation366_spill] sm:$0xff] %v8503_v37  ;;  %10469 = vst [vmem:[#allocation160_spill] sm:$0xff] %v8511_v14  ;;  %v4239_v4 = vmul.f32 %v8243_v12, %v8083_v32  ;;  %v8549_v38 = vmul.f32 %v8243_v12, %v8049_v19  ;;  %v8553_v39 = vmul.f32 %v8540_v24, %v8374_v54  ;;  %v8570_v30 = vstv %s8478_s27 }
 0x736   : > { %10459 = vst [vmem:[#allocation363_spill] sm:$0xff] %v8480_v53  ;;  %v8505_v53 = vadd.f32 %v1073_v40, %v1018_v3  ;;  %v8523_v3 = vsel %vm1115_vm5, %v10471_v56, %v10470_v63  ;;  %10474 = vst [vmem:[#allocation203_spill] sm:$0xff] %v8527_v43  ;;  %v4417_v40 = vrot.slane %v4403_v42, 1  ;;  %v8545_v42 = vmul.f32 %v8258_v51, %v8049_v19 }
 0x737   : > { %4148 = vrot.lane.b32.xlu0 %v4134_v50, %s5211_s21  ;;  %10472 = vst [vmem:[#allocation199_spill] sm:$0xff] %v8523_v3  ;;  %v4407_v50 = vmul.f32 %v7887_v31, %v8476_v57  ;;  %v4241_v33 = vmul.f32 %v8268_v61, %v8083_v32  ;;  %v8559_v63 = vmul.f32 %v8268_v61, %v8049_v19  ;;  %v8564_v56 = vstv %s8472_s22 }
 0x738   : > { %4645 = vrot.lane.b32.xlu1 %v4633_v15, %s5206_s4  ;;  %10475 = vst [vmem:[#allocation367_spill] sm:$0xff] %v8570_v30  ;;  %v4419_v32 = vsel %vm1139_vm3, %v4417_v40, %v4418_v7  ;;  %v4576_v57 = vmul.f32 %v7872_v29, %v8570_v30  ;;  %v4578_v3 = vmul.f32 %v7876_v16, %v8570_v30  ;;  %v4249_v28 = vrot.slane %v4237_v47, 4  ;;  %v8598_v47 = vpop.permute.xlu1 %4087 }
 0x739   : > { %v8525_v62 = vpop.permute.xlu0 %2429  ;;  %v4422_v19 = vrot.slane %v4407_v50, 1  ;;  %v4250_v15 = vrot.slane %v4239_v4, 4  ;;  %v8585_v58 = vmul.f32 %v8564_v56, %v8411_v60  ;;  %v4277_v14 = vmul.f32 %v8243_v12, %v8124_v59 }
 0x73a   : > { %10473 = vst [vmem:[#allocation164_spill] sm:$0xff] %v8525_v62  ;;  %v4255_v50 = vrot.slane %v4241_v33, 4  ;;  %v4275_v16 = vmul.f32 %v8258_v51, %v8124_v59  ;;  %v8602_v37 = vmul.f32 %v8268_v61, %v8124_v59  ;;  %v10482_v62 = vstv %s8324_s13 }
 0x73b   : > { %4152 = vrot.lane.b32.xlu0 %v4136_v9, %s5211_s21  ;;  %v2868_v9 = vmul.f32 %v8540_v24, %v8411_v60  ;;  %10477 = vst [vmem:[#allocation369_spill] sm:$0xff] %v8585_v58  ;;  %v8607_v8 = vmul.f32 %v10482_v62, %v8574_v52  ;;  %v4590_v33 = vrot.slane %v4576_v57, 5  ;;  %v4580_v59 = vmul.f32 %v7887_v31, %v8570_v30 }
 0x73c   : > { %4426 = vrot.lane.b32.xlu1 %v4419_v32, %s5206_s4  ;;  %v8620_v29 = vsel %vm232_vm0, %v4249_v28, %v4250_v15  ;;  %v2902_v32 = vmul.f32 %v8364_v20, %v8574_v52  ;;  %v10489_v57 = vrot.slane %v8553_v39, 7  ;;  %v8637_v28 = vsel %vm232_vm0, %v4250_v15, %v4255_v50  ;;  %v8651_v15 = vpop.permute.xlu1 %4091 }
 0x73d   : > { %v8572_v43 = vpop.permute.xlu0 %2433  ;;  %v2875_v4 = vrot.slane %v2868_v9, 7  ;;  %10483 = vst [vmem:[#allocation370_spill] sm:$0xff] %v8607_v8  ;;  %v4591_v9 = vrot.slane %v4578_v3, 5  ;;  %v4287_v3 = vrot.slane %v4275_v16, 4  ;;  %10491 = vst [vmem:[#allocation373_spill] sm:$0xff] %v8651_v15  ;;  %v4595_v16 = vrot.slane %v4580_v59, 5 }
 0x73e   : > { %10476 = vst [vmem:[#allocation368_spill] sm:$0xff] %v8572_v43  ;;  %v10479_v43 = vld [vmem:[#allocation204_spill] sm:$0xff]  ;;  %v2908_v62 = vrot.slane %v2902_v32, 3  ;;  %v10493_v59 = vrot.slane %v8607_v8, 7 }
 0x73f   : > { %v8592_v40 = vsel %vm1115_vm5, %v10479_v43, %v10478_v5  ;;  %4179 = vrot.lane.b32.xlu0 %v4167_v6, %s5211_s21  ;;  %10481 = vst [vmem:[#allocation204_spill] sm:$0xff] %v8598_v47  ;;  %v8611_v5 = vmul.f32 %v8364_v20, %v8374_v54  ;;  %v4423_v43 = vsel %vm1139_vm3, %v4418_v7, %v4422_v19  ;;  %v4288_v47 = vrot.slane %v4277_v14, 4 }
 0x740   : > { %10480 = vst [vmem:[#allocation165_spill] sm:$0xff] %v8592_v40  ;;  %v10486_v40 = vld [vmem:[#allocation166_spill] sm:$0xff]  ;;  %v8634_v31 = vsel %vm1688_vm7, %v10489_v57, %v2875_v4  ;;  %v9960_v14 = vrot.slane %v8602_v37, 4  ;;  %v4322_v19 = vmul.f32 %v8243_v12, %v8170_v22  ;;  %4430 = vrot.lane.b32.xlu1 %v4423_v43, %s5206_s4  ;;  %v2920_v4 = vstv %s8576_s7 }
 0x741   : > { %10484 = vst [vmem:[#allocation371_spill] sm:$0xff] %v8611_v5  ;;  %v8614_v6 = vpop.permute.xlu0 %2474  ;;  %v4592_v50 = vsel %vm1096_vm2, %v4590_v33, %v4591_v9  ;;  %v8655_v57 = vsel %vm232_vm0, %v4287_v3, %v4288_v47  ;;  %v4320_v20 = vmul.f32 %v8258_v51, %v8170_v22  ;;  %v2922_v43 = vmul.f32 %v2920_v4, %v8374_v54 }
 0x742   : > { %10485 = vst [vmem:[#allocation372_spill] sm:$0xff] %v8614_v6  ;;  %v10487_v6 = vld [vmem:[#allocation205_spill] sm:$0xff]  ;;  %v10492_v33 = vrot.slane %v8403_v10, 7  ;;  %v10497_v10 = vld [vmem:[#allocation206_spill] sm:$0xff]  ;;  %v8698_v8 = vmul.f32 %v2920_v4, %v8411_v60 }
 0x743   : > { %v8628_v7 = vsel %vm1115_vm5, %v10487_v6, %v10486_v40  ;;  %4183 = vrot.lane.b32.xlu0 %v4169_v2, %s5211_s21  ;;  %10490 = vst [vmem:[#allocation205_spill] sm:$0xff] %v8634_v31  ;;  %v2846_v40 = vstv %s8566_s6  ;;  %v8665_v6 = vsel %vm232_vm0, %v4288_v47, %v9960_v14  ;;  %v4333_v31 = vrot.slane %v4322_v19, 4  ;;  %v10496_v14 = vld [vmem:[#allocation167_spill] sm:$0xff] }
 0x744   : > { %10488 = vst [vmem:[#allocation166_spill] sm:$0xff] %v8628_v7  ;;  %v8672_v3 = vsel %vm1688_vm7, %v10493_v59, %v10492_v33  ;;  %v8675_v32 = vmul.f32 %v2846_v40, %v8574_v52  ;;  %v2849_v30 = vmul.f32 %v2846_v40, %v8411_v60  ;;  %v8681_v7 = vmul.f32 %v8268_v61, %v8170_v22 }
 0x745   : > { %v8645_v2 = vpop.permute.xlu0 %2478  ;;  %10494 = vst [vmem:[#allocation374_spill] sm:$0xff] %v8672_v3  ;;  %v2848_v47 = vmul.f32 %v2846_v40, %v8374_v54  ;;  %4599 = vrot.lane.b32.xlu1 %v4592_v50, %s5206_s4  ;;  %v8688_v33 = vsel %vm1115_vm5, %v10497_v10, %v10496_v14  ;;  %v10499_v3 = vrot.slane %v8611_v5, 3  ;;  %10501 = vst [vmem:[#allocation376_spill] sm:$0xff] %v8698_v8  ;;  %v4332_v40 = vrot.slane %v4320_v20, 4  ;;  %v8716_v20 = vpop.permute.xlu1 %4095 }
 0x746   : > { %10495 = vst [vmem:[#allocation375_spill] sm:$0xff] %v8675_v32  ;;  %v4596_v22 = vsel %vm1096_vm2, %v4591_v9, %v4595_v16  ;;  %v2928_v15 = vrot.slane %v2922_v43, 3  ;;  %v8703_v50 = vmul.f32 %v8540_v24, %v8574_v52  ;;  %v2941_v10 = vmul.f32 %v8564_v56, %v8374_v54  ;;  %10502 = vst [vmem:[#allocation377_spill] sm:$0xff] %v8716_v20 }
 0x747   : > { %4187 = vrot.lane.b32.xlu0 %v8533_v49, %s5211_s21  ;;  %v2921_v49 = vmul.f32 %v2920_v4, %v8574_v52  ;;  %v8695_v19 = vsel %vm1821_vm10, %v2908_v62, %v10499_v3  ;;  %v2856_v14 = vrot.slane %v2849_v30, 7  ;;  %v2940_v4 = vmul.f32 %v8564_v56, %v8574_v52  ;;  %v10504_v30 = vld [vmem:[#allocation207_spill] sm:$0xff] }
 0x748   : > { %10500 = vst [vmem:[#allocation206_spill] sm:$0xff] %v8695_v19  ;;  %v8714_v9 = vmul.f32 %v8243_v12, %v8209_v46  ;;  %v8719_v24 = vsel %vm232_vm0, %v4332_v40, %v4333_v31  ;;  %v9964_v43 = vrot.slane %v8681_v7, 4  ;;  %v2854_v3 = vrot.slane %v2848_v47, 7 }
 0x749   : > { %v8690_v59 = vpop.permute.xlu0 %2512  ;;  %v2927_v16 = vrot.slane %v2921_v49, 3  ;;  %4603 = vrot.lane.b32.xlu1 %v4596_v22, %s5206_s4  ;;  %v8733_v20 = vmul.f32 %v8258_v51, %v8209_v46  ;;  %v2884_v40 = vstv %s8649_s12  ;;  %v10507_v19 = vrot.slane %v8675_v32, 7 }
 0x74a   : > { %10498 = vst [vmem:[#allocation167_spill] sm:$0xff] %v8690_v59  ;;  %v8742_v47 = vsel %vm232_vm0, %v4333_v31, %v9964_v43  ;;  %v2886_v46 = vmul.f32 %v2884_v40, %v8374_v54  ;;  %v2885_v43 = vmul.f32 %v2884_v40, %v8574_v52  ;;  %v8763_v54 = vsel %vm1688_vm7, %v2854_v3, %v2856_v14 }
 0x74b   : > { %4214 = vrot.lane.b32.xlu0 %v8545_v42, %s5211_s21  ;;  %v10503_v42 = vld [vmem:[#allocation168_spill] sm:$0xff]  ;;  %v8737_v49 = vsel %vm1821_vm10, %v2927_v16, %v2928_v15  ;;  %v4532_v16 = vmul.f32 %v8243_v12, %v8247_v26  ;;  %v8754_v31 = vsel %vm1688_vm7, %v10507_v19, %v2854_v3  ;;  %10508 = vst [vmem:[#allocation378_spill] sm:$0xff] %v8763_v54  ;;  %v10509_v5 = vrot.slane %v8698_v8, 3 }
 0x74c   : > { %v8726_v62 = vsel %vm1115_vm5, %v10504_v30, %v10503_v42  ;;  %10506 = vst [vmem:[#allocation207_spill] sm:$0xff] %v8737_v49  ;;  %v2947_v42 = vrot.slane %v2941_v10, 3  ;;  %v2946_v30 = vrot.slane %v2940_v4, 3  ;;  %v2887_v10 = vmul.f32 %v2884_v40, %v8411_v60  ;;  %v8775_v60 = vpop.permute.xlu1 %4118  ;;  %v10512_v40 = vld [vmem:[#allocation169_spill] sm:$0xff] }
 0x74d   : > { %v8728_v56 = vpop.permute.xlu0 %2516  ;;  %v8768_v22 = vsel %vm1821_vm10, %v2928_v15, %v10509_v5  ;;  %v8773_v52 = vmul.f32 %v8268_v61, %v8247_v26  ;;  %10511 = vst [vmem:[#allocation380_spill] sm:$0xff] %v8775_v60  ;;  %v10515_v3 = vrot.slane %v8553_v39, 7  ;;  %v10516_v5 = vrot.slane %v8703_v50, 7 }
 0x74e   : > { %10505 = vst [vmem:[#allocation168_spill] sm:$0xff] %v8728_v56  ;;  %v10513_v56 = vld [vmem:[#allocation208_spill] sm:$0xff]  ;;  %v8783_v14 = vsel %vm1821_vm10, %v2946_v30, %v2947_v42  ;;  %v10519_v30 = vrot.slane %v8733_v20, 5  ;;  %v2892_v39 = vrot.slane %v2886_v46, 3  ;;  %vm1707_vm0 = vcmask 1022976  }
 0x74f   : > { %4218 = vrot.lane.b32.xlu0 %v8549_v38, %s5211_s21  ;;  %v4530_v38 = vmul.f32 %v8258_v51, %v8247_v26  ;;  %10510 = vst [vmem:[#allocation379_spill] sm:$0xff] %v8773_v52  ;;  %v8780_v59 = vsel %vm1115_vm5, %v10513_v56, %v10512_v40  ;;  %v8790_v15 = vsel %vm1688_vm7, %v10516_v5, %v10515_v3  ;;  %v10517_v26 = vrot.slane %v8585_v58, 3 }
 0x750   : > { %10514 = vst [vmem:[#allocation169_spill] sm:$0xff] %v8780_v59  ;;  %v10518_v56 = vrot.slane %v8714_v9, 5  ;;  %v4543_v59 = vrot.slane %v4532_v16, 1  ;;  %v4442_v3 = vmul.f32 %v8243_v12, %v8273_v17  ;;  %vm1999_vm7 = vcmask 1014784   ;;  %v8845_v54 = vpop.permute.xlu1 %4122 }
 0x751   : > { %v8760_v4 = vpop.permute.xlu0 %2553  ;;  %v8795_v19 = vsel %vm1821_vm10, %v2947_v42, %v10517_v26  ;;  %v2891_v5 = vrot.slane %v2885_v43, 3  ;;  %v2894_v42 = vrot.slane %v2887_v10, 3  ;;  %v4542_v26 = vrot.slane %v4530_v38, 1  ;;  %v10522_v43 = vld [vmem:[#allocation17_spill] sm:$0xff]  ;;  %v10523_v10 = vld [vmem:[#allocation266_spill] sm:$0xff] }
 0x752   : > { %v8804_v40 = vsel %vm1096_vm2, %v10519_v30, %v10518_v56  ;;  %v4440_v56 = vmul.f32 %v8258_v51, %v8273_v17  ;;  %v8817_v46 = vmul.f32 %v8268_v61, %v8273_v17  ;;  %v8821_v16 = vmul.f32 %v8243_v12, %v8379_v44  ;;  %10525 = vst [vmem:[#allocation266_spill] sm:$0xff] %v8845_v54 }
 0x753   : > { %4222 = vrot.lane.b32.xlu0 %v8559_v63, %s5211_s21  ;;  %v4487_v63 = vmul.f32 %v8243_v12, %v8311_v1  ;;  %v1116_v38 = vsel %vm1115_vm5, %v10523_v10, %v10522_v43  ;;  %v4485_v30 = vmul.f32 %v8258_v51, %v8311_v1  ;;  %v8830_v60 = vmul.f32 %v8268_v61, %v8311_v1  ;;  %v10526_v1 = vld [vmem:[#allocation31_spill] sm:$0xff] }
 0x754   : > { %10520 = vst [vmem:[#allocation208_spill] sm:$0xff] %v8817_v46  ;;  %10521 = vst [vmem:[#allocation381_spill] sm:$0xff] %v8821_v16  ;;  %v4613_v8 = vmul.f32 %v8258_v51, %v8379_v44  ;;  %v8837_v12 = vsel %vm1821_vm10, %v2891_v5, %v2892_v39  ;;  %v8840_v17 = vsel %vm1821_vm10, %v2892_v39, %v2894_v42  ;;  %v4453_v10 = vrot.slane %v4442_v3, 1 }
 0x755   : > { %v8810_v58 = vpop.permute.xlu0 %2599  ;;  %10524 = vst [vmem:[#allocation17_spill] sm:$0xff] %v8830_v60  ;;  %v8843_v43 = vsel %vm1139_vm3, %v4542_v26, %v4543_v59  ;;  %v1290_v49 = vsel %vm1115_vm5, %v7836_v18, %v10526_v1  ;;  %v10527_v51 = vrot.slane %v8773_v52, 1  ;;  %v4498_v5 = vrot.slane %v4487_v63, 1  ;;  %v10530_v18 = vld [vmem:[#allocation177_spill] sm:$0xff]  ;;  %v10531_v1 = vld [vmem:[#allocation210_spill] sm:$0xff] }
 0x756   : > { %v8857_v39 = vmul.f32 %v8268_v61, %v8379_v44  ;;  %v1122_v42 = vadd.f32 %v1116_v38, %v8371_v55  ;;  %v4452_v3 = vrot.slane %v4440_v56, 1  ;;  %v9970_v54 = vrot.slane %v8817_v46, 1  ;;  %v10533_v44 = vld [vmem:[#allocation178_spill] sm:$0xff]  ;;  %v10534_v61 = vld [vmem:[#allocation211_spill] sm:$0xff]  ;;  %v10584_v46 = vld [vmem:[#allocation88_spill] sm:$0xff] }
 0x757   : > { %4259 = vrot.lane.b32.xlu0 %v8620_v29, %s5211_s21  ;;  %v8853_v29 = vsel %vm1139_vm3, %v4543_v59, %v10527_v51  ;;  %v9971_v32 = vrot.slane %v8821_v16, 5  ;;  %v8867_v52 = vsel %vm1115_vm5, %v10531_v1, %v10530_v18  ;;  %v4497_v59 = vrot.slane %v4485_v30, 1  ;;  %v10537_v30 = vld [vmem:[#allocation28_spill] sm:$0xff]  ;;  %v10561_v16 = vld [vmem:[#allocation241_spill] sm:$0xff] }
 0x758   : > { %10528 = vst [vmem:[#allocation31_spill] sm:$0xff] %v8857_v39  ;;  %10532 = vst [vmem:[#allocation177_spill] sm:$0xff] %v8867_v52  ;;  %v9969_v63 = vrot.slane %v8830_v60, 1  ;;  %v4625_v51 = vrot.slane %v4613_v8, 5  ;;  %v8873_v55 = vsel %vm1411_vm12, %v10534_v61, %v10533_v44  ;;  %v1296_v38 = vadd.f32 %v1290_v49, %v1122_v42  ;;  %v10540_v42 = vld [vmem:[#allocation219_spill] sm:$0xff]  ;;  %v10554_v52 = vld [vmem:[#allocation176_spill] sm:$0xff] }
 0x759   : > { %v8860_v26 = vpop.permute.xlu0 %2603  ;;  %v8878_v56 = vsel %vm1139_vm3, %v4452_v3, %v4453_v10  ;;  %v8883_v18 = vsel %vm1139_vm3, %v4453_v10, %v9970_v54  ;;  %v1246_v8 = vsel %vm1115_vm5, %v7828_v0, %v10537_v30  ;;  %v8889_v1 = vsel %vm1139_vm3, %v4497_v59, %v4498_v5  ;;  %v10541_v10 = vld [vmem:[#allocation226_spill] sm:$0xff]  ;;  %v10544_v59 = vld [vmem:[#allocation228_spill] sm:$0xff] }
 0x75a   : > { %10529 = vst [vmem:[#allocation382_spill] sm:$0xff] %v8860_v26  ;;  %10535 = vst [vmem:[#allocation210_spill] sm:$0xff] %v8878_v56  ;;  %v8894_v49 = vsel %vm1139_vm3, %v4498_v5, %v9969_v63  ;;  %v8900_v3 = vsel %vm1707_vm0, %v10540_v42, %v7815_v21  ;;  %v8905_v44 = vsel %vm1999_vm7, %v10541_v10, %v8211_v36  ;;  %v10543_v0 = vld [vmem:[#allocation170_spill] sm:$0xff]  ;;  %v8914_v5 = vpop.permute.xlu1 %4146  ;;  %v10548_v21 = vld [vmem:[#allocation171_spill] sm:$0xff] }
 0x75b   : > { %4263 = vrot.lane.b32.xlu0 %v8637_v28, %s5211_s21  ;;  %10536 = vst [vmem:[#allocation178_spill] sm:$0xff] %v8883_v18  ;;  %10538 = vst [vmem:[#allocation211_spill] sm:$0xff] %v8889_v1  ;;  %v8910_v61 = vsel %vm1115_vm5, %v10544_v59, %v10543_v0  ;;  %v8919_v28 = vsel %vm1096_vm2, %v4625_v51, %v9971_v32  ;;  %v10549_v42 = vld [vmem:[#allocation229_spill] sm:$0xff]  ;;  %v10552_v0 = vld [vmem:[#allocation42_spill] sm:$0xff] }
 0x75c   : > { %10539 = vst [vmem:[#allocation28_spill] sm:$0xff] %v8894_v49  ;;  %10542 = vst [vmem:[#allocation219_spill] sm:$0xff] %v8905_v44  ;;  %v8924_v63 = vsel %vm1115_vm5, %v10549_v42, %v10548_v21  ;;  %v10551_v36 = vld [vmem:[#allocation45_spill] sm:$0xff]  ;;  %v1413_v59 = vsel %vm1411_vm12, %v7904_v35, %v10552_v0  ;;  %v10553_v54 = vld [vmem:[#allocation60_spill] sm:$0xff] }
 0x75d   : > { %10545 = vst [vmem:[#allocation226_spill] sm:$0xff] %v8910_v61  ;;  %v8912_v30 = vpop.permute.xlu0 %2640  ;;  %10546 = vst [vmem:[#allocation170_spill] sm:$0xff] %v8914_v5  ;;  %v1457_v10 = vsel %vm1411_vm12, %v7602_v25, %v10551_v36  ;;  %v1631_v5 = vsel %vm1411_vm12, %v8017_v27, %v10553_v54  ;;  %v10555_v51 = vld [vmem:[#allocation233_spill] sm:$0xff]  ;;  %v10557_v21 = vld [vmem:[#allocation234_spill] sm:$0xff]  ;;  %v1252_v25 = vadd.f32 %v1246_v8, %v8505_v53 }
 0x75e   : > { %10547 = vst [vmem:[#allocation228_spill] sm:$0xff] %v8919_v28  ;;  %10550 = vst [vmem:[#allocation171_spill] sm:$0xff] %v8924_v63  ;;  %v8938_v32 = vsel %vm1115_vm5, %v10555_v51, %v10554_v52  ;;  %v10556_v28 = vld [vmem:[#allocation179_spill] sm:$0xff]  ;;  %v1463_v36 = vadd.f32 %v1457_v10, %v1296_v38  ;;  %v10559_v0 = vld [vmem:[#allocation240_spill] sm:$0xff] }
 0x75f   : > { %v8943_v42 = vsel %vm1411_vm12, %v10557_v21, %v10556_v28  ;;  %4297 = vrot.lane.b32.xlu0 %v8655_v57, %s5211_s21  ;;  %v10558_v35 = vld [vmem:[#allocation187_spill] sm:$0xff]  ;;  %v10560_v54 = vld [vmem:[#allocation189_spill] sm:$0xff]  ;;  %v10563_v53 = vld [vmem:[#allocation58_spill] sm:$0xff]  ;;  %v1419_v10 = vadd.f32 %v1413_v59, %v1252_v25 }
 0x760   : > { %v8951_v27 = vsel %vm1411_vm12, %v10559_v0, %v10558_v35  ;;  %v8956_v52 = vsel %vm1411_vm12, %v10561_v16, %v10560_v54  ;;  %v10562_v51 = vld [vmem:[#allocation247_spill] sm:$0xff]  ;;  %v1587_v38 = vsel %vm1411_vm12, %v8004_v11, %v10563_v53  ;;  %v1637_v21 = vadd.f32 %v1631_v5, %v1463_v36  ;;  %v10565_v16 = vld [vmem:[#allocation92_spill] sm:$0xff]  ;;  %v10566_v0 = vld [vmem:[#allocation57_spill] sm:$0xff] }
 0x761   : > { %v8961_v28 = vsel %vm1707_vm0, %v10562_v51, %v7793_v41  ;;  %v10564_v57 = vld [vmem:[#allocation255_spill] sm:$0xff]  ;;  %v8971_v35 = vpop.permute.xlu0 %2644  ;;  %v8976_v54 = vsel %vm1999_vm7, %v10566_v0, %v10565_v16  ;;  %v10567_v41 = vld [vmem:[#allocation94_spill] sm:$0xff]  ;;  %v10570_v53 = vld [vmem:[#allocation69_spill] sm:$0xff] }
 0x762   : > { %v8969_v8 = vsel %vm1707_vm0, %v10564_v57, %v7969_v34  ;;  %v10568_v51 = vld [vmem:[#allocation71_spill] sm:$0xff]  ;;  %v10569_v11 = vld [vmem:[#allocation18_spill] sm:$0xff]  ;;  %v1754_v5 = vsel %vm1707_vm0, %v8080_v23, %v10570_v53  ;;  %v10571_v59 = vld [vmem:[#allocation101_spill] sm:$0xff] }
 0x763   : > { %v8981_v39 = vsel %vm1999_vm7, %v10568_v51, %v10567_v41  ;;  %v1117_v34 = vsel %vm1115_vm5, %v7778_v13, %v10569_v11  ;;  %v10572_v25 = vld [vmem:[#allocation89_spill] sm:$0xff]  ;;  %v10573_v57 = vld [vmem:[#allocation30_spill] sm:$0xff]  ;;  %v10574_v16 = vld [vmem:[#allocation272_spill] sm:$0xff]  ;;  %v1593_v51 = vadd.f32 %v1587_v38, %v1419_v10  ;;  %4301 = vrot.lane.b32.xlu0 %v8665_v6, %s5211_s21  ;;  %v9000_v13 = vpop.permute.xlu1 %4150 }
 0x764   : > { %v2068_v36 = vsel %vm1999_vm7, %v10572_v25, %v10571_v59  ;;  %v1247_v0 = vsel %vm1115_vm5, %v10574_v16, %v10573_v57  ;;  %v10575_v60 = vld [vmem:[#allocation44_spill] sm:$0xff]  ;;  %v10576_v49 = vld [vmem:[#allocation275_spill] sm:$0xff]  ;;  %10577 = vst [vmem:[#allocation229_spill] sm:$0xff] %v9000_v13  ;;  %v10578_v11 = vld [vmem:[#allocation73_spill] sm:$0xff]  ;;  %v1123_v6 = vadd.f32 %v1117_v34, %v8439_v48 }
 0x765   : > { %v1414_v41 = vsel %vm1411_vm12, %v10576_v49, %v10575_v60  ;;  %v10579_v23 = vld [vmem:[#allocation281_spill] sm:$0xff]  ;;  %v10581_v59 = vld [vmem:[#allocation304_spill] sm:$0xff]  ;;  %v10582_v1 = vld [vmem:[#allocation86_spill] sm:$0xff]  ;;  %v9018_v18 = vpop.permute.xlu0 %2678 }
 0x766   : > { %v1798_v53 = vsel %vm1707_vm0, %v10579_v23, %v10578_v11  ;;  %v10580_v26 = vld [vmem:[#allocation33_spill] sm:$0xff]  ;;  %v10587_v10 = vld [vmem:[#allocation46_spill] sm:$0xff]  ;;  %v1760_v11 = vadd.f32 %v1754_v5, %v1593_v51  ;;  %10588 = vst [vmem:[#allocation45_spill] sm:$0xff] %v9018_v18  ;;  %v10595_v48 = vld [vmem:[#allocation312_spill] sm:$0xff] }
 0x767   : > { %v1291_v25 = vsel %vm1115_vm5, %v10581_v59, %v10580_v26  ;;  %v10583_v57 = vld [vmem:[#allocation337_spill] sm:$0xff]  ;;  %v1804_v23 = vadd.f32 %v1798_v53, %v1637_v21  ;;  %v10589_v26 = vld [vmem:[#allocation103_spill] sm:$0xff]  ;;  %v10590_v59 = vld [vmem:[#allocation100_spill] sm:$0xff] }
 0x768   : > { %v1928_v16 = vsel %vm1707_vm0, %v10583_v57, %v10582_v1  ;;  %v10585_v60 = vld [vmem:[#allocation125_spill] sm:$0xff]  ;;  %v2102_v44 = vsel %vm1999_vm7, %v10590_v59, %v10589_v26  ;;  %v10591_v1 = vld [vmem:[#allocation358_spill] sm:$0xff]  ;;  %v1297_v61 = vadd.f32 %v1291_v25, %v1123_v6  ;;  %v10599_v26 = vld [vmem:[#allocation59_spill] sm:$0xff] }
 0x769   : > { %v1972_v49 = vsel %vm1707_vm0, %v10585_v60, %v10584_v46  ;;  %v10586_v38 = vld [vmem:[#allocation21_spill] sm:$0xff]  ;;  %v1253_v57 = vadd.f32 %v1247_v0, %v10591_v1  ;;  %v10592_v56 = vld [vmem:[#allocation22_spill] sm:$0xff]  ;;  %v10594_v60 = vld [vmem:[#allocation47_spill] sm:$0xff]  ;;  %v1934_v51 = vadd.f32 %v1928_v16, %v1760_v11 }
 0x76a   : > { %v1158_v13 = vsel %vm1115_vm5, %v10587_v10, %v10586_v38  ;;  %v10593_v63 = vld [vmem:[#allocation297_spill] sm:$0xff]  ;;  %v1458_v34 = vsel %vm1411_vm12, %v10595_v48, %v10594_v60  ;;  %v10596_v38 = vld [vmem:[#allocation36_spill] sm:$0xff]  ;;  %v1978_v53 = vadd.f32 %v1972_v49, %v1804_v23  ;;  %v10598_v10 = vrot.slane %v8602_v37, 4  ;;  %v10602_v60 = vld [vmem:[#allocation323_spill] sm:$0xff] }
 0x76b   : > { %v1159_v46 = vsel %vm1115_vm5, %v10593_v63, %v10592_v56  ;;  %v10597_v5 = vld [vmem:[#allocation305_spill] sm:$0xff]  ;;  %v1420_v0 = vadd.f32 %v1414_v41, %v1253_v57  ;;  %v1162_v56 = vadd.f32 %v1158_v13, %v8490_v45  ;;  %v10603_v6 = vld [vmem:[#allocation118_spill] sm:$0xff]  ;;  %v10605_v49 = vld [vmem:[#allocation364_spill] sm:$0xff]  ;;  %v1464_v23 = vadd.f32 %v1458_v34, %v1297_v61  ;;  %v9050_v57 = vpop.permute.xlu0 %2682 }
 0x76c   : > { %v1331_v21 = vsel %vm1115_vm5, %v10597_v5, %v10596_v38  ;;  %4305 = vrot.lane.b32.xlu0 %v10598_v10, %s5211_s21  ;;  %v10600_v59 = vld [vmem:[#allocation277_spill] sm:$0xff]  ;;  %v10604_v48 = vld [vmem:[#allocation286_spill] sm:$0xff]  ;;  %v1163_v11 = vadd.f32 %v1159_v46, %v10605_v49  ;;  %10608 = vst [vmem:[#allocation42_spill] sm:$0xff] %v9050_v57  ;;  %v9052_v5 = vpop.permute.xlu1 %4154  ;;  %v10617_v49 = vld [vmem:[#allocation324_spill] sm:$0xff] }
 0x76d   : > { %v1588_v63 = vsel %vm1411_vm12, %v10600_v59, %v10599_v26  ;;  %v10601_v1 = vld [vmem:[#allocation61_spill] sm:$0xff]  ;;  %v2268_v16 = vsel %vm2267_vm13, %v10604_v48, %v10603_v6  ;;  %v10606_v37 = vld [vmem:[#allocation50_spill] sm:$0xff]  ;;  %10609 = vst [vmem:[#allocation60_spill] sm:$0xff] %v9052_v5  ;;  %v1335_v45 = vadd.f32 %v1331_v21, %v1162_v56  ;;  %v10612_v59 = vld [vmem:[#allocation75_spill] sm:$0xff]  ;;  %v2074_v5 = vadd.f32 %v2068_v36, %v1934_v51 }
 0x76e   : > { %v1632_v25 = vsel %vm1411_vm12, %v10602_v60, %v10601_v1  ;;  %v10607_v38 = vld [vmem:[#allocation82_spill] sm:$0xff]  ;;  %v10610_v13 = vld [vmem:[#allocation37_spill] sm:$0xff]  ;;  %v10613_v1 = vld [vmem:[#allocation331_spill] sm:$0xff] }
 0x76f   : > { %v1499_v41 = vsel %vm1411_vm12, %v10607_v38, %v10606_v37  ;;  %v10611_v10 = vld [vmem:[#allocation306_spill] sm:$0xff]  ;;  %v1799_v60 = vsel %vm1707_vm0, %v10613_v1, %v10612_v59  ;;  %v10614_v6 = vld [vmem:[#allocation115_spill] sm:$0xff]  ;;  %v10615_v46 = vld [vmem:[#allocation345_spill] sm:$0xff]  ;;  %v1638_v34 = vadd.f32 %v1632_v25, %v1464_v23  ;;  %v2108_v38 = vadd.f32 %v2102_v44, %v1978_v53 }
 0x770   : > { %v1332_v26 = vsel %vm1115_vm5, %v10611_v10, %v10610_v13  ;;  %v2231_v61 = vsel %vm1999_vm7, %v10615_v46, %v10614_v6  ;;  %v10616_v48 = vld [vmem:[#allocation63_spill] sm:$0xff]  ;;  %4342 = vrot.lane.b32.xlu0 %v8719_v24, %s5211_s21  ;;  %v10619_v56 = vld [vmem:[#allocation301_spill] sm:$0xff]  ;;  %v1503_v10 = vadd.f32 %v1499_v41, %v1335_v45  ;;  %v10620_v59 = vld [vmem:[#allocation90_spill] sm:$0xff] }
 0x771   : > { %v1672_v37 = vsel %vm1411_vm12, %v10617_v49, %v10616_v48  ;;  %v10618_v21 = vld [vmem:[#allocation27_spill] sm:$0xff]  ;;  %v10621_v1 = vld [vmem:[#allocation269_spill] sm:$0xff]  ;;  %v10622_v6 = vld [vmem:[#allocation130_spill] sm:$0xff]  ;;  %v1805_v36 = vadd.f32 %v1799_v60, %v1638_v34  ;;  %v2237_v49 = vadd.f32 %v2231_v61, %v2074_v5  ;;  %v1336_v41 = vadd.f32 %v1332_v26, %v1163_v11  ;;  %v9096_v11 = vpop.permute.xlu1 %4181 }
 0x772   : > { %v1245_v13 = vsel %vm1115_vm5, %v10619_v56, %v10618_v21  ;;  %v1973_v57 = vsel %vm1707_vm0, %v10621_v1, %v10620_v59  ;;  %v10623_v25 = vld [vmem:[#allocation363_spill] sm:$0xff]  ;;  %v10625_v48 = vld [vmem:[#allocation316_spill] sm:$0xff]  ;;  %v10626_v51 = vld [vmem:[#allocation77_spill] sm:$0xff]  ;;  %v9083_v21 = vpop.permute.xlu0 %2723  ;;  %v1676_v45 = vadd.f32 %v1672_v37, %v1503_v10  ;;  %10633 = vst [vmem:[#allocation176_spill] sm:$0xff] %v9096_v11 }
 0x773   : > { %v2397_v23 = vsel %vm2267_vm13, %v10623_v25, %v10622_v6  ;;  %v10624_v46 = vld [vmem:[#allocation51_spill] sm:$0xff]  ;;  %v10627_v24 = vld [vmem:[#allocation110_spill] sm:$0xff]  ;;  %v10628_v56 = vld [vmem:[#allocation132_spill] sm:$0xff]  ;;  %v1979_v34 = vadd.f32 %v1973_v57, %v1805_v36 }
 0x774   : > { %v1500_v44 = vsel %vm1411_vm12, %v10625_v48, %v10624_v46  ;;  %v1840_v53 = vsel %vm1707_vm0, %v10627_v24, %v10626_v51  ;;  %v10629_v59 = vld [vmem:[#allocation164_spill] sm:$0xff]  ;;  %v10630_v18 = vld [vmem:[#allocation141_spill] sm:$0xff]  ;;  %v2403_v48 = vadd.f32 %v2397_v23, %v2237_v49  ;;  %v2274_v51 = vadd.f32 %v2268_v16, %v2108_v38  ;;  %4346 = vrot.lane.b32.xlu0 %v8742_v47, %s5211_s21  ;;  %v10637_v10 = vld [vmem:[#allocation274_spill] sm:$0xff] }
 0x775   : > { %v2441_v1 = vsel %vm2267_vm13, %v10629_v59, %v10628_v56  ;;  %v2563_v6 = vsel %vm2561_vm14, %v8760_v4, %v10630_v18  ;;  %v10631_v25 = vld [vmem:[#allocation64_spill] sm:$0xff]  ;;  %v10632_v46 = vld [vmem:[#allocation325_spill] sm:$0xff]  ;;  %v1504_v18 = vadd.f32 %v1500_v44, %v1336_v41  ;;  %v1844_v24 = vadd.f32 %v1840_v53, %v1676_v45  ;;  %v10638_v59 = vld [vmem:[#allocation79_spill] sm:$0xff] }
 0x776   : > { %v1673_v60 = vsel %vm1411_vm12, %v10632_v46, %v10631_v25  ;;  %v10634_v5 = vld [vmem:[#allocation105_spill] sm:$0xff]  ;;  %v10635_v26 = vld [vmem:[#allocation264_spill] sm:$0xff]  ;;  %v1594_v56 = vadd.f32 %v1588_v63, %v1420_v0  ;;  %v2447_v38 = vadd.f32 %v2441_v1, %v2274_v51  ;;  %v2569_v23 = vadd.f32 %v2563_v6, %v2403_v48  ;;  %v2728_v47 = vpop.permute.xlu0 %2727  ;;  %v10640_v36 = vld [vmem:[#allocation366_spill] sm:$0xff] }
 0x777   : > { %v2103_v61 = vsel %vm1999_vm7, %v10635_v26, %v10634_v5  ;;  %v10636_v37 = vld [vmem:[#allocation41_spill] sm:$0xff]  ;;  %v1251_v49 = vadd.f32 %v1245_v13, %v10640_v36  ;;  %v1677_v25 = vadd.f32 %v1673_v60, %v1504_v18  ;;  %v10641_v46 = vld [vmem:[#allocation119_spill] sm:$0xff]  ;;  %v10643_v26 = vld [vmem:[#allocation152_spill] sm:$0xff]  ;;  %v10648_v13 = vrot.slane %v8681_v7, 4 }
 0x778   : > { %v1412_v4 = vsel %vm1411_vm12, %v10637_v10, %v10636_v37  ;;  %v10639_v57 = vld [vmem:[#allocation333_spill] sm:$0xff]  ;;  %v10642_v11 = vld [vmem:[#allocation347_spill] sm:$0xff]  ;;  %v2736_v37 = vsel %vm2561_vm14, %v2728_v47, %v10643_v26  ;;  %v10647_v41 = vld [vmem:[#allocation338_spill] sm:$0xff]  ;;  %v2109_v1 = vadd.f32 %v2103_v61, %v1979_v34  ;;  %v2004_v10 = vadd.f32 %v8976_v54, %v1844_v24  ;;  %v9133_v26 = vpop.permute.xlu1 %4185 }
 0x779   : > { %v1841_v16 = vsel %vm1707_vm0, %v10639_v57, %v10638_v59  ;;  %v2269_v5 = vsel %vm2267_vm13, %v10642_v11, %v10641_v46  ;;  %v10644_v44 = vld [vmem:[#allocation143_spill] sm:$0xff]  ;;  %v10645_v53 = vld [vmem:[#allocation293_spill] sm:$0xff]  ;;  %v2742_v6 = vadd.f32 %v2736_v37, %v2569_v23  ;;  %4350 = vrot.lane.b32.xlu0 %v10648_v13, %s5211_s21  ;;  %v10649_v60 = vld [vmem:[#allocation56_spill] sm:$0xff]  ;;  %v1418_v37 = vadd.f32 %v1412_v4, %v1251_v49  ;;  %s4821_s21 = sshll.u32 %s5374_s25, 4 }
 0x77a   : > { %v2607_v0 = vsel %vm2561_vm14, %v10645_v53, %v10644_v44  ;;  %v10646_v63 = vld [vmem:[#allocation107_spill] sm:$0xff]  ;;  %v10650_v48 = vld [vmem:[#allocation320_spill] sm:$0xff]  ;;  %v1845_v11 = vadd.f32 %v1841_v16, %v1677_v25  ;;  %v10651_v18 = vld [vmem:[#allocation133_spill] sm:$0xff]  ;;  %v2275_v47 = vadd.f32 %v2269_v5, %v2109_v1  ;;  %v2769_v23 = vpop.permute.xlu0 %2768  ;;  %s217_s9 = scalar_lea.vmem [#allocation11], %s4821_s21 }
 0x77b   : > { %v2143_v45 = vsel %vm1999_vm7, %v10647_v41, %v10646_v63  ;;  %v1586_v51 = vsel %vm1411_vm12, %v10650_v48, %v10649_v60  ;;  %v10652_v59 = vld [vmem:[#allocation368_spill] sm:$0xff]  ;;  %v10653_v36 = vld [vmem:[#allocation122_spill] sm:$0xff]  ;;  %v2862_v61 = vadd.f32 %v8754_v31, %v2742_v6  ;;  %v2613_v7 = vadd.f32 %v2607_v0, %v2447_v38  ;;  %v10658_v53 = vld [vmem:[#allocation271_spill] sm:$0xff]  ;;  %s4714_s11 = sshll.u32 %s217_s9, 4  ;;  %s9786_s11 = int_to_ptr.vmem [resolvable:$true] %s4714_s11 }
 0x77c   : > { %v2442_v57 = vsel %vm2267_vm13, %v10652_v59, %v10651_v18  ;;  %v10654_v46 = vld [vmem:[#allocation348_spill] sm:$0xff]  ;;  %v2147_v44 = vadd.f32 %v2143_v45, %v2004_v10  ;;  %v10656_v24 = vld [vmem:[#allocation154_spill] sm:$0xff]  ;;  %v10659_v0 = vrot.slane %v8733_v20, 5  ;;  %v1592_v4 = vadd.f32 %v1586_v51, %v1418_v37  ;;  %v10662_v13 = vld [vmem:[#allocation123_spill] sm:$0xff]  ;;  %s5104_s23 = scalar_lea.vmem %s9786_s11, 256  ;;  %p5111_p4 = scmp.lt.s32.totalorder %s9786_s11, %s5109_s26 }
 0x77d   : > { %v2309_v34 = vsel %vm2267_vm13, %v10654_v46, %v10653_v36  ;;  %v10655_v16 = vld [vmem:[#allocation144_spill] sm:$0xff]  ;;  %v2780_v25 = vsel %vm2561_vm14, %v2769_v23, %v10656_v24  ;;  %v2448_v41 = vadd.f32 %v2442_v57, %v2275_v47  ;;  %v2936_v31 = vadd.f32 %v8768_v22, %v2862_v61  ;;  %v10663_v60 = vld [vmem:[#allocation350_spill] sm:$0xff]  ;;  %v10664_v18 = vld [vmem:[#allocation165_spill] sm:$0xff]  ;;  %p5105_p8 = scmp.ne.s32.totalorder %s9786_s11, %s5104_s23  ;;  %p5112_p9 = scmp.lt.s32.totalorder %s5110_s20, %s5104_s23 }
 0x77e   : > { %v2608_v54 = vsel %vm2561_vm14, %v8810_v58, %v10655_v16  ;;  %v10657_v5 = vld [vmem:[#allocation108_spill] sm:$0xff]  ;;  %v2786_v38 = vadd.f32 %v2780_v25, %v2613_v7  ;;  %4379 = vrot.lane.b32.xlu0 %v10659_v0, %s5206_s4  ;;  %v2005_v49 = vadd.f32 %v8981_v39, %v1845_v11  ;;  %v2313_v45 = vadd.f32 %v2309_v34, %v2147_v44  ;;  %v10660_v58 = vld [vmem:[#allocation135_spill] sm:$0xff]  ;;  %v2773_v20 = vpop.permute.xlu0 %2772  ;;  %v10667_v51 = vld [vmem:[#allocation329_spill] sm:$0xff]  ;;  %v9169_v44 = vpop.permute.xlu1 %4189 }
 0x77f   : > { %v2144_v63 = vsel %vm1999_vm7, %v10658_v53, %v10657_v5  ;;  %v10661_v1 = vld [vmem:[#allocation372_spill] sm:$0xff]  ;;  %v2310_v48 = vsel %vm2267_vm13, %v10663_v60, %v10662_v13  ;;  %v2614_v10 = vadd.f32 %v2608_v54, %v2448_v41  ;;  %v3055_v22 = vadd.f32 %v10664_v18, %v2936_v31  ;;  %v10668_v36 = vld [vmem:[#allocation146_spill] sm:$0xff]  ;;  %v10669_v34 = vld [vmem:[#allocation155_spill] sm:$0xff]  ;;  %p5106_p12 = pnand %p5105_p8, %p10947_p2  ;;  %p5113_p13 = por %p5112_p9, %p5111_p4 }
 0x780   : > { %v2482_v6 = vsel %vm2267_vm13, %v10661_v1, %v10660_v58  ;;  %v10665_v59 = vrot.slane %v8703_v50, 7  ;;  %v10666_v47 = vld [vmem:[#allocation72_spill] sm:$0xff]  ;;  %v2148_v11 = vadd.f32 %v2144_v63, %v2005_v49  ;;  %v2648_v46 = vsel %vm2561_vm14, %v8912_v30, %v10668_v36  ;;  %v10676_v1 = vld [vmem:[#allocation157_spill] sm:$0xff]  ;;  %v10683_v18 = vld [vmem:[#allocation283_spill] sm:$0xff] }
 0x781   : > { %v1755_v39 = vsel %vm1707_vm0, %v10667_v51, %v10666_v47  ;;  %v2781_v61 = vsel %vm2561_vm14, %v2773_v20, %v10669_v34  ;;  %v2486_v7 = vadd.f32 %v2482_v6, %v2313_v45  ;;  %v3218_v23 = vadd.f32 %v8938_v32, %v3055_v22  ;;  %v10670_v16 = vld [vmem:[#allocation68_spill] sm:$0xff]  ;;  %v10675_v45 = vld [vmem:[#allocation147_spill] sm:$0xff]  ;;  %v10685_v36 = vld [vmem:[#allocation85_spill] sm:$0xff]  ;;  %p5107_p5 = pneg %p5106_p12 }
 0x782   : > { %v2880_v57 = vadd.f32 %v10665_v59, %v2786_v38  ;;  %v2787_v50 = vadd.f32 %v2781_v61, %v2614_v10  ;;  %4383 = vrot.lane.b32.xlu0 %v8804_v40, %s5206_s4  ;;  %v10671_v54 = vld [vmem:[#allocation280_spill] sm:$0xff]  ;;  %v2314_v53 = vadd.f32 %v2310_v48, %v2148_v11  ;;  %v2814_v31 = vpop.permute.xlu0 %2813  ;;  %v1761_v0 = vadd.f32 %v1755_v39, %v1594_v56  ;;  %v10680_v56 = vld [vmem:[#allocation34_spill] sm:$0xff]  ;;  %v9205_v39 = vpop.permute.xlu1 %4216  ;;  %v10684_v11 = vld [vmem:[#allocation99_spill] sm:$0xff] }
 0x783   : > { %v1753_v24 = vsel %vm1707_vm0, %v10671_v54, %v10670_v16  ;;  %v10672_v25 = vld [vmem:[#allocation84_spill] sm:$0xff]  ;;  %v3383_v38 = vadd.f32 %v8951_v27, %v3218_v23  ;;  %v2649_v58 = vsel %vm2561_vm14, %v8971_v35, %v10675_v45  ;;  %v2821_v6 = vsel %vm2561_vm14, %v2814_v31, %v10676_v1  ;;  %v10682_v35 = vld [vmem:[#allocation87_spill] sm:$0xff]  ;;  %v10686_v34 = vld [vmem:[#allocation353_spill] sm:$0xff]  ;;  %p5114_p11 = pnand %p5113_p13, %p5107_p5 }
 0x784   : > { %v2954_v37 = vadd.f32 %v8783_v14, %v2880_v57  ;;  %v10673_v30 = vld [vmem:[#allocation336_spill] sm:$0xff]  ;;  %v2652_v14 = vadd.f32 %v2648_v46, %v2486_v7  ;;  %v2881_v40 = vadd.f32 %v8790_v15, %v2787_v50  ;;  %v1759_v49 = vadd.f32 %v1753_v24, %v1592_v4  ;;  %v10681_v4 = vld [vmem:[#allocation15_spill] sm:$0xff]  ;;  %v10687_v23 = vld [vmem:[#allocation158_spill] sm:$0xff] }
 0x785   : > { %v1927_v5 = vsel %vm1707_vm0, %v10673_v30, %v10672_v25  ;;  %v10674_v63 = vld [vmem:[#allocation136_spill] sm:$0xff]  ;;  %v10679_v27 = vrot.slane %v8714_v9, 5  ;;  %v1292_v10 = vsel %vm1115_vm5, %v10681_v4, %v10680_v56  ;;  %v1929_v22 = vsel %vm1707_vm0, %v10683_v18, %v10682_v35  ;;  %v10689_v50 = vld [vmem:[#allocation93_spill] sm:$0xff]  ;;  %v10691_v16 = vld [vmem:[#allocation314_spill] sm:$0xff] }
 0x786   : > { %v2483_v32 = vsel %vm2267_vm13, %v8645_v2, %v10674_v63  ;;  %v3089_v41 = vadd.f32 %v8688_v33, %v2954_v37  ;;  %v10677_v13 = vld [vmem:[#allocation20_spill] sm:$0xff]  ;;  %v2955_v33 = vadd.f32 %v8795_v19, %v2881_v40  ;;  %v2825_v15 = vadd.f32 %v2821_v6, %v2652_v14  ;;  %v2818_v51 = vpop.permute.xlu0 %2817  ;;  %v10688_v37 = vld [vmem:[#allocation102_spill] sm:$0xff]  ;;  %v10692_v54 = vld [vmem:[#allocation113_spill] sm:$0xff]  ;;  %v9253_v35 = vpop.permute.xlu1 %4220 }
 0x787   : > { %v10678_v60 = vld [vmem:[#allocation268_spill] sm:$0xff]  ;;  %v2487_v48 = vadd.f32 %v2483_v32, %v2314_v53  ;;  %4387 = vrot.lane.b32.xlu0 %v10679_v27, %s5206_s4  ;;  %v1933_v59 = vadd.f32 %v1927_v5, %v1759_v49  ;;  %v3548_v9 = vadd.f32 %v8961_v28, %v3383_v38  ;;  %v2067_v46 = vsel %vm1999_vm7, %v10685_v36, %v10684_v11  ;;  %v10693_v24 = vld [vmem:[#allocation343_spill] sm:$0xff]  ;;  %v10704_v27 = vld [vmem:[#allocation261_spill] sm:$0xff] }
 0x788   : > { %v1118_v2 = vsel %vm1115_vm5, %v10678_v60, %v10677_v13  ;;  %v3254_v57 = vadd.f32 %v8873_v55, %v3089_v41  ;;  %v3090_v47 = vadd.f32 %v8726_v62, %v2955_v33  ;;  %v2898_v19 = vadd.f32 %v8837_v12, %v2825_v15  ;;  %v10690_v12 = vld [vmem:[#allocation48_spill] sm:$0xff]  ;;  %v10696_v31 = vld [vmem:[#allocation159_spill] sm:$0xff]  ;;  %v10702_v33 = vld [vmem:[#allocation242_spill] sm:$0xff] }
 0x789   : > { %v2653_v20 = vadd.f32 %v2649_v58, %v2487_v48  ;;  %v1124_v61 = vadd.f32 %v1118_v2, %v10686_v34  ;;  %v1935_v7 = vadd.f32 %v1929_v22, %v1761_v0  ;;  %v2822_v55 = vsel %vm2561_vm14, %v2818_v51, %v10687_v23  ;;  %v10694_v63 = vld [vmem:[#allocation128_spill] sm:$0xff]  ;;  %v10697_v58 = vld [vmem:[#allocation175_spill] sm:$0xff]  ;;  %v10699_v2 = vld [vmem:[#allocation181_spill] sm:$0xff] }
 0x78a   : > { %v2069_v62 = vsel %vm1999_vm7, %v10689_v50, %v10688_v37  ;;  %v1459_v28 = vsel %vm1411_vm12, %v10691_v16, %v10690_v12  ;;  %v2230_v25 = vsel %vm1999_vm7, %v10693_v24, %v10692_v54  ;;  %v2073_v53 = vadd.f32 %v2067_v46, %v1933_v59  ;;  %v10695_v32 = vld [vmem:[#allocation360_spill] sm:$0xff]  ;;  %v9231_v49 = vpop.permute.xlu0 %4040  ;;  %v10701_v48 = vld [vmem:[#allocation190_spill] sm:$0xff]  ;;  %v10703_v15 = vld [vmem:[#allocation121_spill] sm:$0xff] }
 0x78b   : > { %v2826_v30 = vadd.f32 %v2822_v55, %v2653_v20  ;;  %4552 = vrot.lane.b32.xlu0 %v8843_v43, %s5206_s4  ;;  %v1298_v5 = vadd.f32 %v1292_v10, %v1124_v61  ;;  %v2396_v14 = vsel %vm2267_vm13, %v10695_v32, %v10694_v63  ;;  %v3427_v41 = vadd.f32 %v8956_v52, %v3254_v57  ;;  %v10698_v43 = vld [vmem:[#allocation232_spill] sm:$0xff]  ;;  %v10700_v52 = vld [vmem:[#allocation235_spill] sm:$0xff]  ;;  %v10705_v56 = vld [vmem:[#allocation62_spill] sm:$0xff] }
 0x78c   : > { %v3255_v40 = vadd.f32 %v8943_v42, %v3090_v47  ;;  %v2985_v38 = vadd.f32 %v10696_v31, %v2898_v19  ;;  %v3721_v45 = vadd.f32 %v8969_v8, %v3548_v9  ;;  %v9237_v1 = vsel %vm1115_vm5, %v10698_v43, %v10697_v58  ;;  %v10706_v4 = vld [vmem:[#allocation278_spill] sm:$0xff]  ;;  %v10707_v18 = vld [vmem:[#allocation116_spill] sm:$0xff]  ;;  %v10708_v22 = vld [vmem:[#allocation285_spill] sm:$0xff] }
 0x78d   : > { %v2899_v0 = vadd.f32 %v8840_v17, %v2826_v30  ;;  %v1465_v6 = vadd.f32 %v1459_v28, %v1298_v5  ;;  %v2075_v13 = vadd.f32 %v2069_v62, %v1935_v7  ;;  %v2236_v60 = vadd.f32 %v2230_v25, %v2073_v53  ;;  %v10709_v57 = vld [vmem:[#allocation76_spill] sm:$0xff]  ;;  %v10711_v9 = vld [vmem:[#allocation226_spill] sm:$0xff]  ;;  %v10715_v62 = vld [vmem:[#allocation361_spill] sm:$0xff] }
 0x78e   : > { %v3289_v42 = vsel %vm1411_vm12, %v10700_v52, %v10699_v2  ;;  %v3422_v17 = vsel %vm1411_vm12, %v10702_v33, %v10701_v48  ;;  %v3880_v8 = vsel %vm1999_vm7, %v10704_v27, %v10703_v15  ;;  %v1633_v10 = vsel %vm1411_vm12, %v10706_v4, %v10705_v56  ;;  %v10710_v20 = vld [vmem:[#allocation332_spill] sm:$0xff]  ;;  %v4045_v61 = vpop.permute.xlu0 %4044  ;;  %v10713_v7 = vld [vmem:[#allocation182_spill] sm:$0xff]  ;;  %v10718_v54 = vld [vmem:[#allocation321_spill] sm:$0xff]  ;;  %v9292_v48 = vpop.permute.xlu1 %4224 }
 0x78f   : > { %4556 = vrot.lane.b32.xlu0 %v8853_v29, %s5206_s4  ;;  %v2232_v59 = vsel %vm1999_vm7, %v10708_v22, %v10707_v18  ;;  %v1800_v47 = vsel %vm1707_vm0, %v10710_v20, %v10709_v57  ;;  %v2402_v19 = vadd.f32 %v2396_v14, %v2236_v60  ;;  %v3592_v51 = vadd.f32 %v8900_v3, %v3427_v41  ;;  %v10712_v36 = vld [vmem:[#allocation160_spill] sm:$0xff]  ;;  %v10716_v16 = vld [vmem:[#allocation302_spill] sm:$0xff]  ;;  %v10721_v5 = vld [vmem:[#allocation29_spill] sm:$0xff] }
 0x790   : > { %v3128_v11 = vadd.f32 %v10711_v9, %v2985_v38  ;;  %v2986_v46 = vadd.f32 %v10712_v36, %v2899_v0  ;;  %v3886_v34 = vadd.f32 %v3880_v8, %v3721_v45  ;;  %v3428_v29 = vadd.f32 %v3422_v17, %v3255_v40  ;;  %v10714_v23 = vld [vmem:[#allocation236_spill] sm:$0xff]  ;;  %v10722_v32 = vld [vmem:[#allocation379_spill] sm:$0xff]  ;;  %v10725_v40 = vld [vmem:[#allocation289_spill] sm:$0xff] }
 0x791   : > { %v3290_v55 = vsel %vm1411_vm12, %v10714_v23, %v10713_v7  ;;  %v2238_v37 = vadd.f32 %v2232_v59, %v2075_v13  ;;  %v1639_v50 = vadd.f32 %v1633_v10, %v1465_v6  ;;  %v4053_v12 = vsel %vm1999_vm7, %v4045_v61, %v10715_v62  ;;  %v10717_v28 = vld [vmem:[#allocation248_spill] sm:$0xff]  ;;  %v10724_v41 = vld [vmem:[#allocation131_spill] sm:$0xff]  ;;  %v10728_v33 = vld [vmem:[#allocation186_spill] sm:$0xff] }
 0x792   : > { %v3587_v3 = vsel %vm1707_vm0, %v10717_v28, %v10716_v16  ;;  %v10719_v24 = vld [vmem:[#allocation256_spill] sm:$0xff]  ;;  %v9278_v63 = vadd.f32 %v4053_v12, %v3886_v34  ;;  %v10723_v14 = vrot.slane %v10722_v32, 1  ;;  %v2398_v31 = vsel %vm2267_vm13, %v10725_v40, %v10724_v41  ;;  %v10726_v45 = vld [vmem:[#allocation151_spill] sm:$0xff]  ;;  %v9290_v60 = vpop.permute.xlu0 %4048  ;;  %v10732_v4 = vld [vmem:[#allocation193_spill] sm:$0xff] }
 0x793   : > { %v3759_v25 = vsel %vm1707_vm0, %v10719_v24, %v10718_v54  ;;  %v10720_v30 = vld [vmem:[#allocation140_spill] sm:$0xff]  ;;  %v1806_v38 = vadd.f32 %v1800_v47, %v1639_v50  ;;  %v2735_v58 = vsel %vm2561_vm14, %v9083_v21, %v10726_v45  ;;  %v3293_v43 = vadd.f32 %v3289_v42, %v3128_v11  ;;  %v10727_v6 = vld [vmem:[#allocation171_spill] sm:$0xff]  ;;  %v10734_v18 = vld [vmem:[#allocation70_spill] sm:$0xff] }
 0x794   : > { %v2562_v53 = vsel %vm2561_vm14, %v10721_v5, %v10720_v30  ;;  %4560 = vrot.lane.b32.xlu0 %v10723_v14, %s5206_s4  ;;  %v3129_v13 = vadd.f32 %v10727_v6, %v2986_v46  ;;  %v3765_v2 = vadd.f32 %v3759_v25, %v3592_v51  ;;  %v3593_v52 = vadd.f32 %v3587_v3, %v3428_v29  ;;  %v10729_v17 = vld [vmem:[#allocation239_spill] sm:$0xff]  ;;  %v10730_v27 = vld [vmem:[#allocation192_spill] sm:$0xff]  ;;  %v10735_v22 = vld [vmem:[#allocation250_spill] sm:$0xff] }
 0x795   : > { %v2568_v0 = vadd.f32 %v2562_v53, %v2402_v19  ;;  %v9297_v15 = vsel %vm1411_vm12, %v10729_v17, %v10728_v33  ;;  %v10731_v8 = vld [vmem:[#allocation243_spill] sm:$0xff]  ;;  %v10733_v21 = vld [vmem:[#allocation244_spill] sm:$0xff]  ;;  %v2404_v10 = vadd.f32 %v2398_v31, %v2238_v37  ;;  %v3627_v59 = vsel %vm1707_vm0, %v10735_v22, %v10734_v18  ;;  %v10740_v36 = vld [vmem:[#allocation210_spill] sm:$0xff] }
 0x796   : > { %v3462_v56 = vsel %vm1411_vm12, %v10731_v8, %v10730_v27  ;;  %v3463_v42 = vsel %vm1411_vm12, %v10733_v21, %v10732_v4  ;;  %v10736_v57 = vld [vmem:[#allocation307_spill] sm:$0xff]  ;;  %v10739_v51 = vld [vmem:[#allocation284_spill] sm:$0xff]  ;;  %v10741_v46 = vld [vmem:[#allocation322_spill] sm:$0xff]  ;;  %v3294_v16 = vadd.f32 %v3290_v55, %v3129_v13  ;;  %v4086_v54 = vpop.permute.xlu0 %4085  ;;  %v9346_v27 = vpop.permute.xlu1 %4261 }
 0x797   : > { %v10737_v20 = vld [vmem:[#allocation251_spill] sm:$0xff]  ;;  %v2741_v11 = vadd.f32 %v2735_v58, %v2568_v0  ;;  %v10742_v34 = vld [vmem:[#allocation257_spill] sm:$0xff]  ;;  %v10743_v29 = vld [vmem:[#allocation142_spill] sm:$0xff]  ;;  %v3466_v25 = vadd.f32 %v3462_v56, %v3293_v43 }
 0x798   : > { %v3628_v47 = vsel %vm1707_vm0, %v10737_v20, %v10736_v57  ;;  %v10738_v19 = vld [vmem:[#allocation91_spill] sm:$0xff]  ;;  %4462 = vrot.lane.b32.xlu0 %v10740_v36, %s5206_s4  ;;  %v3760_v61 = vsel %vm1707_vm0, %v10742_v34, %v10741_v46  ;;  %v10744_v7 = vld [vmem:[#allocation292_spill] sm:$0xff]  ;;  %v10748_v30 = vld [vmem:[#allocation326_spill] sm:$0xff]  ;;  %v3467_v34 = vadd.f32 %v3463_v42, %v3294_v16 }
 0x799   : > { %v1974_v9 = vsel %vm1707_vm0, %v10739_v51, %v10738_v19  ;;  %v2564_v23 = vsel %vm2561_vm14, %v10744_v7, %v10743_v29  ;;  %v10745_v37 = vld [vmem:[#allocation23_spill] sm:$0xff]  ;;  %v3766_v24 = vadd.f32 %v3760_v61, %v3593_v52  ;;  %v10749_v5 = vld [vmem:[#allocation258_spill] sm:$0xff]  ;;  %v10750_v32 = vld [vmem:[#allocation129_spill] sm:$0xff]  ;;  %v3631_v46 = vadd.f32 %v3627_v59, %v3466_v25 }
 0x79a   : > { %v10746_v50 = vld [vmem:[#allocation299_spill] sm:$0xff]  ;;  %v1980_v12 = vadd.f32 %v1974_v9, %v1806_v38  ;;  %v3800_v53 = vsel %vm1707_vm0, %v10749_v5, %v10748_v30  ;;  %v10751_v14 = vld [vmem:[#allocation32_spill] sm:$0xff]  ;;  %v2570_v40 = vadd.f32 %v2564_v23, %v2404_v10  ;;  %v10753_v45 = vld [vmem:[#allocation106_spill] sm:$0xff]  ;;  %v4090_v36 = vpop.permute.xlu0 %4089 }
 0x79b   : > { %v1200_v62 = vsel %vm1115_vm5, %v10746_v50, %v10745_v37  ;;  %v10747_v28 = vld [vmem:[#allocation219_spill] sm:$0xff]  ;;  %v3925_v41 = vsel %vm1999_vm7, %v10751_v14, %v10750_v32  ;;  %v10752_v31 = vld [vmem:[#allocation204_spill] sm:$0xff]  ;;  %v10754_v38 = vld [vmem:[#allocation265_spill] sm:$0xff] }
 0x79c   : > { %v3930_v3 = vadd.f32 %v10747_v28, %v3765_v2  ;;  %v4097_v0 = vsel %vm1999_vm7, %v4086_v54, %v10752_v31  ;;  %v2104_v55 = vsel %vm1999_vm7, %v10754_v38, %v10753_v45  ;;  %v10755_v58 = vld [vmem:[#allocation38_spill] sm:$0xff]  ;;  %v10756_v6 = vld [vmem:[#allocation308_spill] sm:$0xff]  ;;  %v10757_v13 = vld [vmem:[#allocation375_spill] sm:$0xff] }
 0x79d   : > { %v1373_v43 = vsel %vm1115_vm5, %v10756_v6, %v10755_v58  ;;  %v10758_v2 = vrot.slane %v10757_v13, 7  ;;  %v10759_v17 = vld [vmem:[#allocation178_spill] sm:$0xff]  ;;  %v10760_v8 = vld [vmem:[#allocation25_spill] sm:$0xff]  ;;  %v10763_v10 = vld [vmem:[#allocation295_spill] sm:$0xff]  ;;  %v2110_v9 = vadd.f32 %v2104_v55, %v1980_v12 }
 0x79e   : > { %v9342_v33 = vadd.f32 %v4097_v0, %v3930_v3  ;;  %4466 = vrot.lane.b32.xlu0 %v10759_v17, %s5206_s4  ;;  %v10761_v56 = vld [vmem:[#allocation270_spill] sm:$0xff]  ;;  %v10762_v21 = vld [vmem:[#allocation153_spill] sm:$0xff]  ;;  %v10765_v20 = vld [vmem:[#allocation52_spill] sm:$0xff]  ;;  %v3632_v17 = vadd.f32 %v3628_v47, %v3467_v34 }
 0x79f   : > { %v2861_v52 = vadd.f32 %v10758_v2, %v2741_v11  ;;  %v1202_v4 = vsel %vm1115_vm5, %v10761_v56, %v10760_v8  ;;  %v2737_v18 = vsel %vm2561_vm14, %v10763_v10, %v10762_v21  ;;  %v10764_v22 = vld [vmem:[#allocation365_spill] sm:$0xff]  ;;  %v3931_v11 = vadd.f32 %v3925_v41, %v3766_v24  ;;  %v10767_v61 = vld [vmem:[#allocation328_spill] sm:$0xff]  ;;  %v10768_v29 = vld [vmem:[#allocation259_spill] sm:$0xff]  ;;  %v9385_v2 = vpop.permute.xlu0 %4093  ;;  %v9387_v8 = vpop.permute.xlu1 %4265 }
 0x7a0   : > { %v1206_v57 = vadd.f32 %v1200_v62, %v10764_v22  ;;  %v10766_v19 = vld [vmem:[#allocation317_spill] sm:$0xff]  ;;  %v3801_v7 = vsel %vm1707_vm0, %v10768_v29, %v10767_v61  ;;  %v2743_v37 = vadd.f32 %v2737_v18, %v2570_v40  ;;  %v10771_v62 = vld [vmem:[#allocation35_spill] sm:$0xff]  ;;  %v10772_v30 = vld [vmem:[#allocation40_spill] sm:$0xff] }
 0x7a1   : > { %v1541_v51 = vsel %vm1411_vm12, %v10766_v19, %v10765_v20  ;;  %v10769_v50 = vld [vmem:[#allocation373_spill] sm:$0xff]  ;;  %v10774_v24 = vld [vmem:[#allocation207_spill] sm:$0xff]  ;;  %v10775_v16 = vld [vmem:[#allocation208_spill] sm:$0xff] }
 0x7a2   : > { %v1379_v23 = vadd.f32 %v1373_v43, %v1206_v57  ;;  %v4098_v28 = vsel %vm1999_vm7, %v4090_v36, %v10769_v50  ;;  %v10770_v3 = vld [vmem:[#allocation341_spill] sm:$0xff]  ;;  %v2935_v59 = vadd.f32 %v10774_v24, %v2861_v52  ;;  %v10776_v25 = vrot.slane %v10775_v16, 1  ;;  %v10777_v32 = vld [vmem:[#allocation355_spill] sm:$0xff]  ;;  %v10778_v41 = vld [vmem:[#allocation120_spill] sm:$0xff] }
 0x7a3   : > { %v3965_v54 = vsel %vm1999_vm7, %v10771_v62, %v10770_v3  ;;  %v10773_v5 = vld [vmem:[#allocation273_spill] sm:$0xff]  ;;  %v9370_v42 = vadd.f32 %v4098_v28, %v3931_v11  ;;  %v1208_v14 = vadd.f32 %v1202_v4, %v10777_v32  ;;  %v10779_v40 = vld [vmem:[#allocation287_spill] sm:$0xff]  ;;  %v10780_v0 = vld [vmem:[#allocation24_spill] sm:$0xff]  ;;  %v3804_v52 = vadd.f32 %v3800_v53, %v3631_v46 }
 0x7a4   : > { %v1375_v12 = vsel %vm1115_vm5, %v10773_v5, %v10772_v30  ;;  %4470 = vrot.lane.b32.xlu0 %v10776_v25, %s5206_s4  ;;  %v2270_v31 = vsel %vm2267_vm13, %v10779_v40, %v10778_v41  ;;  %v10781_v45 = vld [vmem:[#allocation300_spill] sm:$0xff]  ;;  %v1547_v55 = vadd.f32 %v1541_v51, %v1379_v23  ;;  %v10783_v6 = vld [vmem:[#allocation43_spill] sm:$0xff]  ;;  %v10787_v22 = vld [vmem:[#allocation310_spill] sm:$0xff]  ;;  %v3805_v41 = vadd.f32 %v3801_v7, %v3632_v17  ;;  %v9427_v7 = vpop.permute.xlu1 %4299 }
 0x7a5   : > { %v1201_v38 = vsel %vm1115_vm5, %v10781_v45, %v10780_v0  ;;  %v10782_v58 = vld [vmem:[#allocation344_spill] sm:$0xff]  ;;  %v2276_v13 = vadd.f32 %v2270_v31, %v2110_v9  ;;  %v1381_v56 = vadd.f32 %v1375_v12, %v1208_v14  ;;  %v10784_v4 = vld [vmem:[#allocation55_spill] sm:$0xff]  ;;  %v10788_v20 = vld [vmem:[#allocation378_spill] sm:$0xff]  ;;  %v3969_v14 = vadd.f32 %v3965_v54, %v3804_v52 }
 0x7a6   : > { %v3966_v43 = vsel %vm1999_vm7, %v10783_v6, %v10782_v58  ;;  %v10785_v21 = vld [vmem:[#allocation276_spill] sm:$0xff]  ;;  %v10786_v18 = vld [vmem:[#allocation39_spill] sm:$0xff]  ;;  %v2863_v19 = vadd.f32 %v10788_v20, %v2743_v37  ;;  %v10789_v51 = vld [vmem:[#allocation65_spill] sm:$0xff] }
 0x7a7   : > { %v1543_v10 = vsel %vm1411_vm12, %v10785_v21, %v10784_v4  ;;  %v1374_v57 = vsel %vm1115_vm5, %v10787_v22, %v10786_v18  ;;  %v10790_v11 = vld [vmem:[#allocation16_spill] sm:$0xff]  ;;  %v10791_v36 = vld [vmem:[#allocation198_spill] sm:$0xff]  ;;  %v10794_v61 = vld [vmem:[#allocation199_spill] sm:$0xff] }
 0x7a8   : > { %v1708_v9 = vsel %vm1707_vm0, %v10790_v11, %v10789_v51  ;;  %v1207_v53 = vadd.f32 %v1201_v38, %v10791_v36  ;;  %v10792_v47 = vld [vmem:[#allocation80_spill] sm:$0xff]  ;;  %v10793_v46 = vld [vmem:[#allocation334_spill] sm:$0xff]  ;;  %v3054_v29 = vadd.f32 %v10794_v61, %v2935_v59  ;;  %v10795_v23 = vld [vmem:[#allocation211_spill] sm:$0xff]  ;;  %v4117_v59 = vpop.permute.xlu0 %4116  ;;  %v1549_v20 = vadd.f32 %v1543_v10, %v1381_v56 }
 0x7a9   : > { %v1882_v34 = vsel %vm1707_vm0, %v10793_v46, %v10792_v47  ;;  %4507 = vrot.lane.b32.xlu0 %v10795_v23, %s5206_s4  ;;  %v10796_v50 = vld [vmem:[#allocation134_spill] sm:$0xff]  ;;  %v1714_v5 = vadd.f32 %v1708_v9, %v1547_v55  ;;  %v10800_v12 = vld [vmem:[#allocation145_spill] sm:$0xff]  ;;  %v10803_v31 = vld [vmem:[#allocation327_spill] sm:$0xff] }
 0x7aa   : > { %v10797_v28 = vld [vmem:[#allocation290_spill] sm:$0xff]  ;;  %v1380_v25 = vadd.f32 %v1374_v57, %v1207_v53  ;;  %v10804_v38 = vld [vmem:[#allocation376_spill] sm:$0xff]  ;;  %v3217_v22 = vadd.f32 %v9237_v1, %v3054_v29  ;;  %v10811_v51 = vld [vmem:[#allocation279_spill] sm:$0xff] }
 0x7ab   : > { %v2443_v3 = vsel %vm2267_vm13, %v10797_v28, %v10796_v50  ;;  %v10798_v37 = vld [vmem:[#allocation54_spill] sm:$0xff]  ;;  %v1888_v45 = vadd.f32 %v1882_v34, %v1714_v5  ;;  %v10805_v58 = vrot.slane %v10804_v38, 3  ;;  %v10806_v4 = vld [vmem:[#allocation380_spill] sm:$0xff]  ;;  %v10812_v9 = vld [vmem:[#allocation81_spill] sm:$0xff]  ;;  %v3970_v50 = vadd.f32 %v3966_v43, %v3805_v41 }
 0x7ac   : > { %v10799_v62 = vld [vmem:[#allocation318_spill] sm:$0xff]  ;;  %v2449_v32 = vadd.f32 %v2443_v3, %v2276_v13  ;;  %v4124_v55 = vsel %vm2267_vm13, %v4117_v59, %v10806_v4  ;;  %v10807_v54 = vld [vmem:[#allocation28_spill] sm:$0xff]  ;;  %v10808_v13 = vld [vmem:[#allocation95_spill] sm:$0xff]  ;;  %v4121_v28 = vpop.permute.xlu0 %4120 }
 0x7ad   : > { %v1542_v30 = vsel %vm1411_vm12, %v10799_v62, %v10798_v37  ;;  %v10801_v24 = vld [vmem:[#allocation382_spill] sm:$0xff]  ;;  %v2937_v6 = vadd.f32 %v10805_v58, %v2863_v19  ;;  %v9423_v57 = vadd.f32 %v4124_v55, %v3969_v14  ;;  %4511 = vrot.lane.b32.xlu0 %v10807_v54, %s5206_s4  ;;  %v10810_v19 = vld [vmem:[#allocation67_spill] sm:$0xff]  ;;  %v10816_v34 = vld [vmem:[#allocation156_spill] sm:$0xff] }
 0x7ae   : > { %v2609_v16 = vsel %vm2561_vm14, %v10801_v24, %v10800_v12  ;;  %v10802_v40 = vld [vmem:[#allocation66_spill] sm:$0xff]  ;;  %v1548_v21 = vadd.f32 %v1542_v30, %v1380_v25  ;;  %v1710_v11 = vsel %vm1707_vm0, %v10811_v51, %v10810_v19  ;;  %v10813_v36 = vld [vmem:[#allocation335_spill] sm:$0xff]  ;;  %v10817_v61 = vld [vmem:[#allocation296_spill] sm:$0xff]  ;;  %v3382_v25 = vadd.f32 %v9297_v15, %v3217_v22 }
 0x7af   : > { %v1709_v0 = vsel %vm1707_vm0, %v10803_v31, %v10802_v40  ;;  %v2615_v18 = vadd.f32 %v2609_v16, %v2449_v32  ;;  %v10809_v52 = vld [vmem:[#allocation74_spill] sm:$0xff]  ;;  %v1883_v1 = vsel %vm1707_vm0, %v10813_v36, %v10812_v9  ;;  %v10814_v53 = vld [vmem:[#allocation83_spill] sm:$0xff]  ;;  %v2782_v29 = vsel %vm2561_vm14, %v10817_v61, %v10816_v34  ;;  %v10818_v10 = vld [vmem:[#allocation109_spill] sm:$0xff] }
 0x7b0   : > { %v2032_v17 = vsel %vm1999_vm7, %v10809_v52, %v10808_v13  ;;  %v10815_v47 = vld [vmem:[#allocation282_spill] sm:$0xff]  ;;  %v1715_v23 = vadd.f32 %v1709_v0, %v1548_v21  ;;  %v10819_v3 = vld [vmem:[#allocation340_spill] sm:$0xff]  ;;  %v10822_v14 = vld [vmem:[#allocation17_spill] sm:$0xff]  ;;  %v1716_v59 = vadd.f32 %v1710_v11, %v1549_v20  ;;  %v9477_v13 = vpop.permute.xlu0 %4144  ;;  %v9484_v11 = vpop.permute.xlu1 %4303 }
 0x7b1   : > { %v1884_v46 = vsel %vm1707_vm0, %v10815_v47, %v10814_v53  ;;  %v2038_v56 = vadd.f32 %v2032_v17, %v1888_v45  ;;  %v2185_v37 = vsel %vm1999_vm7, %v10819_v3, %v10818_v10  ;;  %v10820_v62 = vld [vmem:[#allocation166_spill] sm:$0xff]  ;;  %v2788_v16 = vadd.f32 %v2782_v29, %v2615_v18  ;;  %v10824_v41 = vld [vmem:[#allocation124_spill] sm:$0xff]  ;;  %v9459_v0 = vld [vmem:[#allocation4 + $0x30] sm:$0xff] }
 0x7b2   : > { %v3056_v30 = vadd.f32 %v10820_v62, %v2937_v6  ;;  %v10821_v5 = vld [vmem:[#allocation266_spill] sm:$0xff]  ;;  %v1889_v24 = vadd.f32 %v1883_v1, %v1715_v23  ;;  %v10823_v43 = vrot.slane %v10822_v14, 1  ;;  %v10825_v40 = vld [vmem:[#allocation352_spill] sm:$0xff]  ;;  %v9465_v58 = vld [vmem:[#allocation4 + $0x40] sm:$0xff]  ;;  %v1890_v9 = vadd.f32 %v1884_v46, %v1716_v59 }
 0x7b3   : > { %v4125_v12 = vsel %vm2267_vm13, %v4121_v28, %v10821_v5  ;;  %v2351_v31 = vsel %vm2267_vm13, %v10825_v40, %v10824_v41  ;;  %v10826_v45 = vld [vmem:[#allocation362_spill] sm:$0xff]  ;;  %v10827_v6 = vld [vmem:[#allocation197_spill] sm:$0xff]  ;;  %v10829_v21 = vld [vmem:[#allocation96_spill] sm:$0xff]  ;;  %v2191_v54 = vadd.f32 %v2185_v37, %v2038_v56 }
 0x7b4   : > { %v9451_v32 = vadd.f32 %v4125_v12, %v3970_v50  ;;  %4515 = vrot.lane.b32.xlu0 %v10823_v43, %s5206_s4  ;;  %v9463_v38 = vmul.f32 %v9459_v0, %v10826_v45  ;;  %v9469_v15 = vmul.f32 %v9465_v58, %v10826_v45  ;;  %v10828_v4 = vld [vmem:[#allocation217_spill] sm:$0xff]  ;;  %v10830_v18 = vld [vmem:[#allocation78_spill] sm:$0xff]  ;;  %v10831_v52 = vld [vmem:[#allocation31_spill] sm:$0xff] }
 0x7b5   : > { %v3541_v55 = vsel %vm1707_vm0, %v10828_v4, %v10827_v6  ;;  %v2033_v22 = vsel %vm1999_vm7, %v10830_v18, %v10829_v21  ;;  %v10832_v17 = vrot.slane %v10831_v52, 5  ;;  %v10833_v20 = vld [vmem:[#allocation381_spill] sm:$0xff]  ;;  %v10835_v36 = vld [vmem:[#allocation111_spill] sm:$0xff]  ;;  %v10836_v1 = vld [vmem:[#allocation342_spill] sm:$0xff]  ;;  %v2357_v28 = vadd.f32 %v2351_v31, %v2191_v54  ;;  %v9514_v54 = vpop.permute.xlu0 %4148 }
 0x7b6   : > { %v10834_v19 = vrot.slane %v10833_v20, 5  ;;  %v2186_v53 = vsel %vm1999_vm7, %v10836_v1, %v10835_v36  ;;  %v10837_v47 = vld [vmem:[#allocation137_spill] sm:$0xff]  ;;  %v10838_v34 = vld [vmem:[#allocation167_spill] sm:$0xff]  ;;  %v2039_v50 = vadd.f32 %v2033_v22, %v1889_v24  ;;  %v3547_v3 = vadd.f32 %v3541_v55, %v3382_v25  ;;  %v10841_v37 = vld [vmem:[#allocation228_spill] sm:$0xff] }
 0x7b7   : > { %v2524_v61 = vsel %vm2267_vm13, %v10838_v34, %v10837_v47  ;;  %v10839_v29 = vld [vmem:[#allocation177_spill] sm:$0xff]  ;;  %v10842_v62 = vld [vmem:[#allocation188_spill] sm:$0xff]  ;;  %v10843_v46 = vld [vmem:[#allocation214_spill] sm:$0xff] }
 0x7b8   : > { %v4632_v51 = vsel %vm1096_vm2, %v10834_v19, %v10832_v17  ;;  %v3219_v23 = vadd.f32 %v10839_v29, %v3056_v30  ;;  %v10840_v56 = vld [vmem:[#allocation205_spill] sm:$0xff]  ;;  %4635 = vrot.lane.b32.xlu0 %v10841_v37, %s5206_s4  ;;  %v3378_v5 = vsel %vm1411_vm12, %v10843_v46, %v10842_v62  ;;  %v10844_v12 = vld [vmem:[#allocation315_spill] sm:$0xff]  ;;  %v10845_v14 = vld [vmem:[#allocation254_spill] sm:$0xff]  ;;  %v2192_v18 = vadd.f32 %v2186_v53, %v2039_v50  ;;  %v9525_v53 = vpop.permute.xlu1 %4307 }
 0x7b9   : > { %v2882_v10 = vadd.f32 %v10840_v56, %v2788_v16  ;;  %v3714_v43 = vsel %vm1707_vm0, %v10845_v14, %v10844_v12  ;;  %v10846_v59 = vld [vmem:[#allocation126_spill] sm:$0xff]  ;;  %v10847_v41 = vld [vmem:[#allocation356_spill] sm:$0xff]  ;;  %v10849_v40 = vld [vmem:[#allocation45_spill] sm:$0xff]  ;;  %v2530_v22 = vadd.f32 %v2524_v61, %v2357_v28 }
 0x7ba   : > { %v2352_v30 = vsel %vm2267_vm13, %v10847_v41, %v10846_v59  ;;  %v10848_v24 = vld [vmem:[#allocation148_spill] sm:$0xff]  ;;  %v10850_v25 = vld [vmem:[#allocation98_spill] sm:$0xff]  ;;  %v10851_v31 = vld [vmem:[#allocation263_spill] sm:$0xff]  ;;  %v3384_v29 = vadd.f32 %v3378_v5, %v3219_v23  ;;  %v3720_v14 = vadd.f32 %v3714_v43, %v3547_v3  ;;  %v4415_v59 = vrot.slane %v9469_v15, 1 }
 0x7bb   : > { %v2690_v16 = vsel %vm2561_vm14, %v10849_v40, %v10848_v24  ;;  %v2034_v6 = vsel %vm1999_vm7, %v10851_v31, %v10850_v25  ;;  %v10852_v4 = vld [vmem:[#allocation112_spill] sm:$0xff]  ;;  %v10853_v55 = vld [vmem:[#allocation19_spill] sm:$0xff]  ;;  %v10856_v1 = vld [vmem:[#allocation138_spill] sm:$0xff]  ;;  %v2358_v56 = vadd.f32 %v2352_v30, %v2192_v18  ;;  %v9541_v31 = vpop.permute.xlu0 %4152 }
 0x7bc   : > { %v2187_v21 = vsel %vm1999_vm7, %v10853_v55, %v10852_v4  ;;  %v2040_v17 = vadd.f32 %v2034_v6, %v1890_v9  ;;  %v10854_v20 = vld [vmem:[#allocation127_spill] sm:$0xff]  ;;  %v10855_v19 = vld [vmem:[#allocation288_spill] sm:$0xff]  ;;  %v10858_v37 = vld [vmem:[#allocation369_spill] sm:$0xff]  ;;  %v2696_v12 = vadd.f32 %v2690_v16, %v2530_v22  ;;  %4639 = vrot.lane.b32.xlu0 %v4632_v51, %s5206_s4 }
 0x7bd   : > { %v2353_v36 = vsel %vm2267_vm13, %v10855_v19, %v10854_v20  ;;  %v10857_v47 = vld [vmem:[#allocation168_spill] sm:$0xff]  ;;  %v10859_v62 = vrot.slane %v10858_v37, 3  ;;  %v10860_v61 = vld [vmem:[#allocation149_spill] sm:$0xff]  ;;  %v10861_v50 = vld [vmem:[#allocation42_spill] sm:$0xff] }
 0x7be   : > { %v2525_v34 = vsel %vm2267_vm13, %v10857_v47, %v10856_v1  ;;  %v2193_v9 = vadd.f32 %v2187_v21, %v2040_v17  ;;  %v2691_v28 = vsel %vm2561_vm14, %v10861_v50, %v10860_v61  ;;  %v5058_v41 = vld [vmem:[#allocation4 + $0x50] sm:$0x3f]  ;;  %v10862_v5 = vld [vmem:[#allocation298_spill] sm:$0xff]  ;;  %v10864_v24 = vld [vmem:[#allocation117_spill] sm:$0xff]  ;;  %v4414_v61 = vrot.slane %v9463_v38, 1 }
 0x7bf   : > { %v2956_v46 = vadd.f32 %v10859_v62, %v2882_v10  ;;  %v4406_v23 = vmul.f32 %v5058_v41, %v10826_v45  ;;  %v10863_v30 = vld [vmem:[#allocation218_spill] sm:$0xff]  ;;  %v10865_v3 = vld [vmem:[#allocation225_spill] sm:$0xff]  ;;  %v10866_v43 = vld [vmem:[#allocation139_spill] sm:$0xff]  ;;  %v2531_v25 = vadd.f32 %v2525_v34, %v2358_v56  ;;  %v10874_v34 = vrot.slane %v10831_v52, 5 }
 0x7c0   : > { %v3543_v10 = vsel %vm1707_vm0, %v10863_v30, %v10862_v5  ;;  %v3879_v51 = vsel %vm1999_vm7, %v10865_v3, %v10864_v24  ;;  %v10867_v40 = vld [vmem:[#allocation291_spill] sm:$0xff]  ;;  %v2359_v6 = vadd.f32 %v2353_v36, %v2193_v9  ;;  %v10868_v15 = vld [vmem:[#allocation150_spill] sm:$0xff]  ;;  %v10870_v55 = vld [vmem:[#allocation357_spill] sm:$0xff]  ;;  %v9566_v30 = vpop.permute.xlu1 %4344 }
 0x7c1   : > { %v2526_v16 = vsel %vm2267_vm13, %v10867_v40, %v10866_v43  ;;  %v10869_v4 = vld [vmem:[#allocation294_spill] sm:$0xff]  ;;  %v4052_v21 = vsel %vm1999_vm7, %v9231_v49, %v10870_v55  ;;  %v3549_v18 = vadd.f32 %v3543_v10, %v3384_v29  ;;  %v10871_v22 = vld [vmem:[#allocation169_spill] sm:$0xff]  ;;  %v2697_v47 = vadd.f32 %v2691_v28, %v2531_v25  ;;  %4643 = vrot.lane.b32.xlu0 %v10874_v34, %s5206_s4  ;;  %v10875_v36 = vld [vmem:[#allocation180_spill] sm:$0xff] }
 0x7c2   : > { %v2692_v45 = vsel %vm2561_vm14, %v10869_v4, %v10868_v15  ;;  %v3091_v17 = vadd.f32 %v10871_v22, %v2956_v46  ;;  %v10872_v20 = vld [vmem:[#allocation370_spill] sm:$0xff]  ;;  %v3885_v37 = vadd.f32 %v3879_v51, %v3720_v14  ;;  %v10876_v56 = vld [vmem:[#allocation212_spill] sm:$0xff]  ;;  %v2532_v9 = vadd.f32 %v2526_v16, %v2359_v6  ;;  %v10877_v29 = vld [vmem:[#allocation319_spill] sm:$0xff] }
 0x7c3   : > { %v10873_v19 = vrot.slane %v10872_v20, 7  ;;  %v3250_v62 = vsel %vm1411_vm12, %v10876_v56, %v10875_v36  ;;  %v4420_v49 = vrot.slane %v4406_v23, 1  ;;  %v10878_v50 = vld [vmem:[#allocation221_spill] sm:$0xff]  ;;  %v10879_v28 = vld [vmem:[#allocation367_spill] sm:$0xff]  ;;  %v10880_v3 = vld [vmem:[#allocation176_spill] sm:$0xff]  ;;  %v4416_v23 = vsel %vm1139_vm3, %v4414_v61, %v4415_v59 }
 0x7c4   : > { %v3716_v46 = vsel %vm1707_vm0, %v10878_v50, %v10877_v29  ;;  %v4058_v5 = vadd.f32 %v4052_v21, %v3885_v37  ;;  %v4575_v14 = vmul.f32 %v9459_v0, %v10879_v28  ;;  %v4577_v52 = vmul.f32 %v9465_v58, %v10879_v28  ;;  %v10881_v51 = vld [vmem:[#allocation206_spill] sm:$0xff]  ;;  %v10883_v0 = vld [vmem:[#allocation161_spill] sm:$0xff]  ;;  %v10884_v58 = vld [vmem:[#allocation200_spill] sm:$0xff] }
 0x7c5   : > { %v2842_v1 = vadd.f32 %v10873_v19, %v2696_v12  ;;  %v4180_v12 = vpop.permute.xlu0 %4179  ;;  %v2698_v10 = vadd.f32 %v2692_v45, %v2532_v9  ;;  %v3722_v24 = vadd.f32 %v3716_v46, %v3549_v18  ;;  %v10882_v40 = vld [vmem:[#allocation374_spill] sm:$0xff]  ;;  %v3256_v25 = vadd.f32 %v3250_v62, %v3091_v17  ;;  %4424 = vrot.lane.b32.xlu0 %v4416_v23, %s5206_s4  ;;  %v10885_v4 = vld [vmem:[#allocation359_spill] sm:$0xff] }
 0x7c6   : > { %v4191_v38 = vsel %vm2267_vm13, %v4180_v12, %v10880_v3  ;;  %v2843_v16 = vadd.f32 %v10882_v40, %v2697_v47  ;;  %v3013_v15 = vsel %vm1115_vm5, %v10884_v58, %v10883_v0  ;;  %v10886_v45 = vrot.slane %v10885_v4, 3  ;;  %v10887_v55 = vld [vmem:[#allocation371_spill] sm:$0xff]  ;;  %v10892_v37 = vld [vmem:[#allocation26_spill] sm:$0xff] }
 0x7c7   : > { %v2916_v43 = vadd.f32 %v10881_v51, %v2842_v1  ;;  %v9573_v6 = vadd.f32 %v4191_v38, %v4058_v5  ;;  %v10888_v21 = vrot.slane %v10887_v55, 3  ;;  %v4421_v22 = vsel %vm1139_vm3, %v4415_v59, %v4420_v49  ;;  %v10889_v19 = vld [vmem:[#allocation191_spill] sm:$0xff]  ;;  %v10893_v9 = vld [vmem:[#allocation354_spill] sm:$0xff] }
 0x7c8   : > { %v4579_v20 = vmul.f32 %v5058_v41, %v10879_v28  ;;  %v10890_v17 = vld [vmem:[#allocation215_spill] sm:$0xff]  ;;  %v4587_v56 = vrot.slane %v4575_v14, 5  ;;  %v4588_v62 = vrot.slane %v4577_v52, 5  ;;  %v10894_v61 = vrot.slane %v10893_v9, 7  ;;  %v9603_v14 = vpop.permute.xlu1 %4348  ;;  %v10896_v52 = vld [vmem:[#allocation162_spill] sm:$0xff]  ;;  %v10910_v9 = vld [vmem:[#allocation237_spill] sm:$0xff] }
 0x7c9   : > { %v2912_v18 = vsel %vm1821_vm10, %v10888_v21, %v10886_v45  ;;  %v3423_v1 = vsel %vm1411_vm12, %v10890_v17, %v10889_v19  ;;  %v10891_v47 = vld [vmem:[#allocation267_spill] sm:$0xff]  ;;  %v4184_v36 = vpop.permute.xlu0 %4183  ;;  %v3019_v49 = vadd.f32 %v3013_v15, %v2916_v43  ;;  %4428 = vrot.lane.b32.xlu0 %v4421_v22, %s5206_s4  ;;  %v10899_v51 = vld [vmem:[#allocation230_spill] sm:$0xff]  ;;  %v10905_v19 = vld [vmem:[#allocation97_spill] sm:$0xff] }
 0x7ca   : > { %v3881_v34 = vsel %vm1999_vm7, %v10892_v37, %v10891_v47  ;;  %v2844_v29 = vadd.f32 %v10894_v61, %v2698_v10  ;;  %v10895_v46 = vld [vmem:[#allocation203_spill] sm:$0xff]  ;;  %v4192_v41 = vsel %vm2267_vm13, %v4184_v36, %v9133_v26  ;;  %v2917_v5 = vadd.f32 %v2912_v18, %v2843_v16  ;;  %v10897_v10 = vld [vmem:[#allocation201_spill] sm:$0xff]  ;;  %v10898_v26 = vld [vmem:[#allocation172_spill] sm:$0xff] }
 0x7cb   : > { %v3887_v50 = vadd.f32 %v3881_v34, %v3722_v24  ;;  %v4054_v59 = vsel %vm1999_vm7, %v9290_v60, %v10895_v46  ;;  %v3429_v12 = vadd.f32 %v3423_v1, %v3256_v25  ;;  %v9600_v28 = vadd.f32 %v4192_v41, %v9278_v63  ;;  %v10900_v40 = vld [vmem:[#allocation303_spill] sm:$0xff]  ;;  %v10901_v63 = vld [vmem:[#allocation249_spill] sm:$0xff]  ;;  %v10904_v22 = vld [vmem:[#allocation202_spill] sm:$0xff] }
 0x7cc   : > { %v3014_v24 = vsel %vm1115_vm5, %v10897_v10, %v10896_v52  ;;  %v4589_v60 = vsel %vm1096_vm2, %v4587_v56, %v4588_v62  ;;  %v4593_v23 = vrot.slane %v4579_v20, 5  ;;  %v3166_v43 = vsel %vm1115_vm5, %v10899_v51, %v10898_v26  ;;  %v10903_v18 = vld [vmem:[#allocation163_spill] sm:$0xff]  ;;  %v10906_v17 = vld [vmem:[#allocation222_spill] sm:$0xff]  ;;  %v9629_v37 = vpop.permute.xlu1 %4352  ;;  %v10913_v52 = vld [vmem:[#allocation184_spill] sm:$0xff] }
 0x7cd   : > { %v4060_v3 = vadd.f32 %v4054_v59, %v3887_v50  ;;  %v4188_v38 = vpop.permute.xlu0 %4187  ;;  %v3588_v16 = vsel %vm1707_vm0, %v10901_v63, %v10900_v40  ;;  %v10902_v25 = vmov %v10886_v45  ;;  %v3172_v15 = vadd.f32 %v3166_v43, %v3019_v49  ;;  %4597 = vrot.lane.b32.xlu0 %v4589_v60, %s5206_s4  ;;  %v10908_v34 = vld [vmem:[#allocation231_spill] sm:$0xff]  ;;  %v10914_v10 = vld [vmem:[#allocation238_spill] sm:$0xff]  ;;  %v10919_v43 = vld [vmem:[#allocation377_spill] sm:$0xff] }
 0x7ce   : > { %v2918_v0 = vadd.f32 %v10902_v25, %v2844_v29  ;;  %v4193_v58 = vsel %vm2267_vm13, %v4188_v38, %v9169_v44  ;;  %v3020_v45 = vadd.f32 %v3014_v24, %v2917_v5  ;;  %v3594_v55 = vadd.f32 %v3588_v16, %v3429_v12  ;;  %v10907_v44 = vld [vmem:[#allocation173_spill] sm:$0xff]  ;;  %v10909_v56 = vld [vmem:[#allocation183_spill] sm:$0xff]  ;;  %v10918_v26 = vld [vmem:[#allocation262_spill] sm:$0xff] }
 0x7cf   : > { %v9619_v21 = vadd.f32 %v4193_v58, %v4060_v3  ;;  %v3015_v20 = vsel %vm1115_vm5, %v10904_v22, %v10903_v18  ;;  %v3761_v1 = vsel %vm1707_vm0, %v10906_v17, %v10905_v19  ;;  %v4594_v47 = vsel %vm1096_vm2, %v4588_v62, %v4593_v23  ;;  %v10911_v62 = vld [vmem:[#allocation174_spill] sm:$0xff]  ;;  %v10912_v5 = vld [vmem:[#allocation209_spill] sm:$0xff]  ;;  %v10917_v23 = vld [vmem:[#allocation339_spill] sm:$0xff] }
 0x7d0   : > { %v3167_v36 = vsel %vm1115_vm5, %v10908_v34, %v10907_v44  ;;  %v3331_v61 = vsel %vm1411_vm12, %v10910_v9, %v10909_v56  ;;  %v3021_v29 = vadd.f32 %v3015_v20, %v2918_v0  ;;  %v3767_v59 = vadd.f32 %v3761_v1, %v3594_v55  ;;  %v10915_v3 = vld [vmem:[#allocation194_spill] sm:$0xff]  ;;  %v10916_v38 = vld [vmem:[#allocation245_spill] sm:$0xff]  ;;  %v10922_v19 = vld [vmem:[#allocation195_spill] sm:$0xff] }
 0x7d1   : > { %v4215_v4 = vpop.permute.xlu0 %4214  ;;  %v3173_v46 = vadd.f32 %v3167_v36, %v3020_v45  ;;  %v3337_v41 = vadd.f32 %v3331_v61, %v3172_v15  ;;  %4601 = vrot.lane.b32.xlu0 %v4594_v47, %s5206_s4  ;;  %v3168_v12 = vsel %vm1115_vm5, %v10912_v5, %v10911_v62  ;;  %v3332_v24 = vsel %vm1411_vm12, %v10914_v10, %v10913_v52  ;;  %v9663_v15 = vpop.permute.xlu1 %4381  ;;  %v10920_v18 = vld [vmem:[#allocation185_spill] sm:$0xff]  ;;  %v10923_v17 = vld [vmem:[#allocation246_spill] sm:$0xff]  ;;  %v10926_v61 = vld [vmem:[#allocation196_spill] sm:$0xff]  ;;  %s310_s4 = sld [smem:[#allocation5]] }
 0x7d2   : > { %v4226_v50 = vsel %vm2267_vm13, %v4215_v4, %v9205_v39  ;;  %v3504_v39 = vsel %vm1411_vm12, %v10916_v38, %v10915_v3  ;;  %v3174_v51 = vadd.f32 %v3168_v12, %v3021_v29  ;;  %v4099_v40 = vsel %vm1999_vm7, %v9385_v2, %v10919_v43  ;;  %v10921_v22 = vld [vmem:[#allocation213_spill] sm:$0xff]  ;;  %v10927_v29 = vld [vmem:[#allocation216_spill] sm:$0xff]  ;;  %v10930_v62 = vld [vmem:[#allocation311_spill] sm:$0xff] }
 0x7d3   : > { %v9640_v49 = vadd.f32 %v4226_v50, %v9342_v33  ;;  %v3926_v33 = vsel %vm1999_vm7, %v10918_v26, %v10917_v23  ;;  %v3510_v25 = vadd.f32 %v3504_v39, %v3337_v41  ;;  %v3338_v0 = vadd.f32 %v3332_v24, %v3173_v46  ;;  %v10924_v1 = vld [vmem:[#allocation309_spill] sm:$0xff]  ;;  %v10928_v46 = vld [vmem:[#allocation330_spill] sm:$0xff]  ;;  %v10933_v39 = vld [vmem:[#allocation220_spill] sm:$0xff] }
 0x7d4   : > { %v3932_v16 = vadd.f32 %v3926_v33, %v3767_v59  ;;  %v3333_v20 = vsel %vm1411_vm12, %v10921_v22, %v10920_v18  ;;  %v3505_v2 = vsel %vm1411_vm12, %v10923_v17, %v10922_v19  ;;  %v3506_v50 = vsel %vm1411_vm12, %v10927_v29, %v10926_v61  ;;  %v10929_v59 = vld [vmem:[#allocation223_spill] sm:$0xff]  ;;  %v10931_v5 = vld [vmem:[#allocation253_spill] sm:$0xff]  ;;  %v10934_v26 = vld [vmem:[#allocation104_spill] sm:$0xff] }
 0x7d5   : > { %v4219_v60 = vpop.permute.xlu0 %4218  ;;  %v3511_v44 = vadd.f32 %v3505_v2, %v3338_v0  ;;  %v3339_v34 = vadd.f32 %v3333_v20, %v3174_v51  ;;  %v4386_v9 = vpop.permute.xlu1 %4385  ;;  %v3834_v41 = vsel %vm1999_vm7, %v10929_v59, %v10928_v46  ;;  %v3670_v12 = vsel %vm1707_vm0, %v10931_v5, %v10930_v62  ;;  %v10932_v38 = vld [vmem:[#allocation313_spill] sm:$0xff]  ;;  %v10935_v33 = vld [vmem:[#allocation260_spill] sm:$0xff]  ;;  %v10936_v43 = vld [vmem:[#allocation346_spill] sm:$0xff] }
 0x7d6   : > { %v4227_v63 = vsel %vm2267_vm13, %v4219_v60, %v9253_v35  ;;  %v4105_v45 = vadd.f32 %v4099_v40, %v3932_v16  ;;  %v10925_v35 = vld [vmem:[#allocation252_spill] sm:$0xff]  ;;  %v3671_v60 = vsel %vm1707_vm0, %v10933_v39, %v10932_v38  ;;  %v3835_v51 = vsel %vm1999_vm7, %v10935_v33, %v10934_v26  ;;  %v10937_v40 = vld [vmem:[#allocation49_spill] sm:$0xff]  ;;  %v10939_v19 = vld [vmem:[#allocation114_spill] sm:$0xff] }
 0x7d7   : > { %v9661_v58 = vadd.f32 %v4227_v63, %v9370_v42  ;;  %v3669_v4 = vsel %vm1707_vm0, %v10925_v35, %v10924_v1  ;;  %v3676_v10 = vadd.f32 %v3670_v12, %v3511_v44  ;;  %v3512_v24 = vadd.f32 %v3506_v50, %v3339_v34  ;;  %v10940_v17 = vld [vmem:[#allocation224_spill] sm:$0xff]  ;;  %v10941_v1 = vld [vmem:[#allocation349_spill] sm:$0xff]  ;;  %v10944_v29 = vld [vmem:[#allocation351_spill] sm:$0xff] }
 0x7d8   : > { %v3675_v47 = vadd.f32 %v3669_v4, %v3510_v25  ;;  %v4007_v63 = vsel %vm1999_vm7, %v10937_v40, %v10936_v43  ;;  %v3836_v2 = vsel %vm1999_vm7, %v10940_v17, %v10939_v19  ;;  %v10942_v35 = vld [vmem:[#allocation53_spill] sm:$0xff]  ;;  %v10945_v50 = vld [vmem:[#allocation227_spill] sm:$0xff]  ;;  %v10946_v59 = vld [vmem:[#allocation60_spill] sm:$0xff]  ;;  %vm4697_vm2 = vcmask 130048  }
 0x7d9   : > { %v4223_v55 = vpop.permute.xlu0 %4222  ;;  %v3841_v0 = vadd.f32 %v3835_v51, %v3676_v10  ;;  %v4390_v18 = vpop.permute.xlu1 %4389  ;;  %v10943_v4 = vld [vmem:[#allocation229_spill] sm:$0xff]  ;;  %v4009_v46 = vsel %vm1999_vm7, %v10945_v50, %v10944_v29 }
 0x7da   : > { %v4228_v42 = vsel %vm2267_vm13, %v4223_v55, %v9292_v48  ;;  %v3840_v52 = vadd.f32 %v3834_v41, %v3675_v47  ;;  %v4158_v41 = vsel %vm2267_vm13, %v9541_v31, %v10946_v59 }
 0x7db   : > { %v9676_v36 = vadd.f32 %v4228_v42, %v4105_v45  ;;  %v3677_v45 = vadd.f32 %v3671_v60, %v3512_v24 }
 0x7dc   : > { %v4013_v25 = vadd.f32 %v4007_v63, %v3840_v52 }
 0x7dd   : > { %v4260_v56 = vpop.permute.xlu0 %4259  ;;  %v3842_v47 = vadd.f32 %v3836_v2, %v3677_v45  ;;  %v4555_v61 = vpop.permute.xlu1 %4554 }
 0x7de   : > { %v4267_v48 = vsel %vm2267_vm13, %v4260_v56, %v9346_v27  ;;  %v10938_v27 = vld [vmem:[#allocation170_spill] sm:$0xff] }
 0x7df   : > { %v9690_v3 = vadd.f32 %v4267_v48, %v9423_v57  ;;  %v4156_v16 = vsel %vm2267_vm13, %v9477_v13, %v10938_v27  ;;  %v4008_v13 = vsel %vm1999_vm7, %v10942_v35, %v10941_v1  ;;  %v4015_v62 = vadd.f32 %v4009_v46, %v3842_v47 }
 0x7e0   : > { %v4162_v22 = vadd.f32 %v4156_v16, %v4013_v25 }
 0x7e1   : > { %v4264_v23 = vpop.permute.xlu0 %4263  ;;  %v4164_v5 = vadd.f32 %v4158_v41, %v4015_v62  ;;  %v4559_v10 = vpop.permute.xlu1 %4558 }
 0x7e2   : > { %v4268_v57 = vsel %vm2267_vm13, %v4264_v23, %v9387_v8  ;;  %v4157_v8 = vsel %vm2267_vm13, %v9514_v54, %v10943_v4 }
 0x7e3   : > { %v9707_v55 = vadd.f32 %v4268_v57, %v9451_v32  ;;  %v4014_v32 = vadd.f32 %v4008_v13, %v3841_v0 }
 0x7e5   : > { %v4298_v20 = vpop.permute.xlu0 %4297  ;;  %v4163_v34 = vadd.f32 %v4157_v8, %v4014_v32  ;;  %v4563_v60 = vpop.permute.xlu1 %4562 }
 0x7e6   : > { %v4309_v42 = vsel %vm2267_vm13, %v4298_v20, %v9427_v7 }
 0x7e7   : > { %v9720_v44 = vadd.f32 %v4309_v42, %v4162_v22 }
 0x7e9   : > { %v4302_v56 = vpop.permute.xlu0 %4301  ;;  %v4465_v51 = vpop.permute.xlu1 %4464 }
 0x7ea   : > { %v4310_v54 = vsel %vm2267_vm13, %v4302_v56, %v9484_v11 }
 0x7eb   : > { %v9730_v7 = vadd.f32 %v4310_v54, %v4163_v34 }
 0x7ed   : > { %v4306_v12 = vpop.permute.xlu0 %4305  ;;  %v4469_v63 = vpop.permute.xlu1 %4468 }
 0x7ee   : > { %v4311_v48 = vsel %vm2267_vm13, %v4306_v12, %v9525_v53 }
 0x7ef   : > { %v9734_v52 = vadd.f32 %v4311_v48, %v4164_v5 }
 0x7f1   : > { %v4343_v24 = vpop.permute.xlu0 %4342  ;;  %v4473_v27 = vpop.permute.xlu1 %4472 }
 0x7f2   : > { %v4354_v38 = vsel %vm2267_vm13, %v4343_v24, %v9566_v30 }
 0x7f3   : > { %v4360_v31 = vadd.f32 %v4354_v38, %v9573_v6 }
 0x7f5   : > { %v4347_v39 = vpop.permute.xlu0 %4346  ;;  %v4510_v0 = vpop.permute.xlu1 %4509 }
 0x7f6   : > { %v4355_v11 = vsel %vm2267_vm13, %v4347_v39, %v9603_v14 }
 0x7f7   : > { %v4361_v23 = vadd.f32 %v4355_v11, %v9600_v28 }
 0x7f9   : > { %v4351_v26 = vpop.permute.xlu0 %4350  ;;  %v4514_v35 = vpop.permute.xlu1 %4513 }
 0x7fa   : > { %v4356_v53 = vsel %vm2267_vm13, %v4351_v26, %v9629_v37 }
 0x7fb   : > { %v4362_v33 = vadd.f32 %v4356_v53, %v9619_v21 }
 0x7fd   : > { %v4380_v43 = vpop.permute.xlu0 %4379 }
 0x7fe   : > { %v4391_v6 = vsel %vm2561_vm14, %v4380_v43, %v9663_v15 }
 0x7ff   : > { %v4397_v57 = vadd.f32 %v4391_v6, %v9640_v49 }
 0x801   : > { %v4384_v40 = vpop.permute.xlu0 %4383 }
 0x802   : > { %v4392_v14 = vsel %vm2561_vm14, %v4384_v40, %v4386_v9 }
 0x803   : > { %v4398_v37 = vadd.f32 %v4392_v14, %v9661_v58 }
 0x805   : > { %v4388_v30 = vpop.permute.xlu0 %4387 }
 0x806   : > { %v4393_v45 = vsel %vm2561_vm14, %v4388_v30, %v4390_v18  ;;  %v4518_v18 = vpop.permute.xlu1 %4517 }
 0x807   : > { %v4399_v19 = vadd.f32 %v4393_v45, %v9676_v36 }
 0x809   : > { %v4553_v16 = vpop.permute.xlu0 %4552 }
 0x80a   : > { %v4564_v28 = vsel %vm2561_vm14, %v4553_v16, %v4555_v61  ;;  %v4638_v32 = vpop.permute.xlu1 %4637 }
 0x80b   : > { %v4570_v25 = vadd.f32 %v4564_v28, %v4397_v57 }
 0x80d   : > { %v4557_v21 = vpop.permute.xlu0 %4556  ;;  %v4671_v15 = vrot.slane %v4570_v25, 1 }
 0x80e   : > { %v4565_v22 = vsel %vm2561_vm14, %v4557_v21, %v4559_v10  ;;  %v4642_v29 = vpop.permute.xlu1 %4641 }
 0x80f   : > { %v4571_v20 = vadd.f32 %v4565_v22, %v4398_v37 }
 0x811   : > { %v4672_v17 = vrot.slane %v4571_v20, 1  ;;  %v4561_v2 = vpop.permute.xlu0 %4560 }
 0x812   : > { %v4566_v9 = vsel %vm2561_vm14, %v4561_v2, %v4563_v60  ;;  %v4646_v48 = vpop.permute.xlu1 %4645 }
 0x813   : > { %v4572_v1 = vadd.f32 %v4566_v9, %v4399_v19  ;;  %v4673_v49 = vsel %vm1139_vm3, %v4671_v15, %v4672_v17 }
 0x815   : > { %v4674_v58 = vrot.slane %v4572_v1, 1  ;;  %v4463_v13 = vpop.permute.xlu0 %4462 }
 0x816   : > { %v4474_v10 = vsel %vm2561_vm14, %v4463_v13, %v4465_v51  ;;  %v4427_v40 = vpop.permute.xlu1 %4426 }
 0x817   : > { %v4675_v4 = vsel %vm1139_vm3, %v4672_v17, %v4674_v58  ;;  %v4480_v11 = vadd.f32 %v4474_v10, %v9720_v44 }
 0x819   : > { %v4467_v8 = vpop.permute.xlu0 %4466 }
 0x81a   : > { %v4475_v39 = vsel %vm2561_vm14, %v4467_v8, %v4469_v63  ;;  %v4431_v37 = vpop.permute.xlu1 %4430 }
 0x81b   : > { %v4481_v26 = vadd.f32 %v4475_v39, %v9730_v7 }
 0x81d   : > { %v4471_v42 = vpop.permute.xlu0 %4470 }
 0x81e   : > { %v4476_v51 = vsel %vm2561_vm14, %v4471_v42, %v4473_v27  ;;  %v4600_v45 = vpop.permute.xlu1 %4599 }
 0x81f   : > { %v4482_v16 = vadd.f32 %v4476_v51, %v9734_v52 }
 0x821   : > { %v4508_v47 = vpop.permute.xlu0 %4507 }
 0x822   : > { %v4519_v36 = vsel %vm2561_vm14, %v4508_v47, %v4510_v0  ;;  %v4604_v2 = vpop.permute.xlu1 %4603 }
 0x823   : > { %v4525_v34 = vadd.f32 %v4519_v36, %v4360_v31 }
 0x825   : > { %v4679_v56 = vadd.f32 %v4673_v49, %v4525_v34  ;;  %v4512_v61 = vpop.permute.xlu0 %4511 }
 0x826   : > { %v4520_v50 = vsel %vm2561_vm14, %v4512_v61, %v4514_v35  ;;  %v4694_v35 = vstv %s310_s4 }
 0x827   : > { %v4526_v46 = vadd.f32 %v4520_v50, %v4361_v23  ;;  %v4685_v62 = vrot.slane %v4679_v56, 2 }
 0x829   : > { %v4680_v59 = vadd.f32 %v4675_v4, %v4526_v46  ;;  %v4516_v41 = vpop.permute.xlu0 %4515 }
 0x82a   : > { %v4521_v54 = vsel %vm2561_vm14, %v4516_v41, %v4518_v18 }
 0x82b   : > { %v4686_v5 = vrot.slane %v4680_v59, 2  ;;  %v4527_v12 = vadd.f32 %v4521_v54, %v4362_v33 }
 0x82d   : > { %v4681_v24 = vadd.f32 %v4674_v58, %v4527_v12  ;;  %v4636_v38 = vpop.permute.xlu0 %4635  ;;  %v4687_v31 = vsel %vm1480_vm6, %v4685_v62, %v4686_v5 }
 0x82e   : > { %v4647_v60 = vsel %vm2561_vm14, %v4636_v38, %v4638_v32 }
 0x82f   : > { %v4688_v23 = vrot.slane %v4681_v24, 2  ;;  %v4653_v53 = vadd.f32 %v4647_v60, %v4480_v11 }
 0x831   : > { %v4640_v43 = vpop.permute.xlu0 %4639  ;;  %v4689_v33 = vsel %vm1480_vm6, %v4686_v5, %v4688_v23  ;;  %v4659_v63 = vrot.slane %v4653_v53, 1 }
 0x832   : > { %v4648_v30 = vsel %vm2561_vm14, %v4640_v43, %v4642_v29 }
 0x833   : > { %v4654_v6 = vadd.f32 %v4648_v30, %v4481_v26 }
 0x835   : > { %v4660_v14 = vrot.slane %v4654_v6, 1  ;;  %v4644_v28 = vpop.permute.xlu0 %4643 }
 0x836   : > { %v4649_v44 = vsel %vm2561_vm14, %v4644_v28, %v4646_v48 }
 0x837   : > { %v4655_v57 = vadd.f32 %v4649_v44, %v4482_v16  ;;  %v4661_v7 = vsel %vm1139_vm3, %v4659_v63, %v4660_v14 }
 0x839   : > { %v4662_v25 = vrot.slane %v4655_v57, 1  ;;  %v4425_v21 = vpop.permute.xlu0 %4424 }
 0x83a   : > { %v4432_v22 = vsel %vm2561_vm14, %v4425_v21, %v4427_v40 }
 0x83b   : > { %v4663_v0 = vsel %vm1139_vm3, %v4660_v14, %v4662_v25  ;;  %v4436_v52 = vadd.f32 %v4432_v22, %v9690_v3 }
 0x83d   : > { %v4429_v27 = vpop.permute.xlu0 %4428 }
 0x83e   : > { %v4433_v19 = vsel %vm2561_vm14, %v4429_v27, %v4431_v37 }
 0x83f   : > { %v4437_v9 = vadd.f32 %v4433_v19, %v9707_v55 }
 0x841   : > { %v4598_v20 = vpop.permute.xlu0 %4597 }
 0x842   : > { %v4605_v15 = vsel %vm2561_vm14, %v4598_v20, %v4600_v45 }
 0x843   : > { %v4609_v17 = vadd.f32 %v4605_v15, %v4436_v52 }
 0x845   : > { %v4666_v1 = vadd.f32 %v4661_v7, %v4609_v17  ;;  %v4602_v49 = vpop.permute.xlu0 %4601 }
 0x846   : > { %v4606_v58 = vsel %vm2561_vm14, %v4602_v49, %v4604_v2 }
 0x847   : > { %v4692_v13 = vadd.f32 %v4687_v31, %v4666_v1  ;;  %v4610_v4 = vadd.f32 %v4606_v58, %v4437_v9 }
 0x849   : > { %v4695_v3 = vadd.f32 %v4694_v35, %v4692_v13  ;;  %v4667_v8 = vadd.f32 %v4663_v0, %v4610_v4 }
 0x84b   : > { %v4693_v18 = vadd.f32 %v4689_v33, %v4667_v8  ;;  %4698 = vst.msk [vmem:[%s217_s9] sm:$0xff] %vm4697_vm2, %v4695_v3 }
 0x84d   : > { %v4696_v55 = vadd.f32 %v4694_v35, %v4693_v18 }
 0x84f   : > { %4699 = vst.msk [vmem:[%s217_s9 + $0x8] sm:$0xff] %vm4697_vm2, %v4696_v55 }
 0x850   : > { %5117 = shalt.err (!%p5114_p11)
}
 0x851   : > { %s5118_s22 = scalar_lea.hbm %s9784_s29, 256  ;;  %s5122_s7 = scalar_lea.hbm %s9838_s3, 512 }
 0x852   : > { %p5119_p3 = scmp.ne.s32.totalorder %s9784_s29, %s5118_s22  ;;  %p5123_p6 = scmp.lt.u32.totalorder %s9784_s29, %s9838_s3 }
 0x853   : > { %p5124_p1 = scmp.lt.u32.totalorder %s5122_s7, %s5118_s22  ;;  %p5126_p8 = scmp.lt.u32.totalorder %s5118_s22, %s9784_s29 }
 0x854   : > { %p5120_p7 = pnand %p5119_p3, %p10947_p2 }
 0x855   : > { %p5125_p0 = por %p5124_p1, %p5123_p6 }
 0x856   : > { %p5121_p10 = pneg %p5120_p7 }
 0x857   : > { %p5127_p12 = por %p5126_p8, %p5125_p0 }
 0x859   : > { %p5128_p5 = pnand %p5127_p12, %p5121_p10 }
 0x85b   : > { %5131 = shalt.err (!%p5128_p5)
}
 0x85c   : > { %s5215_s21 = smov 128   ;;  %s5216_s28 = smov 8  }
 0x85d   : > { %4954 = dma.vmem_to_hbm [thread:$0]  (%p10947_p2), %s9786_s11, 256, %s9784_s29, %s4701_s5, %s5215_s21, %s5215_s21, %s5216_s28  }
 0x85e PF: > { %s4729_s9 = sand.u32 1, %s5170_s14   ;;  %p10948_p4 = scmp.ne.s32.totalorder %s9980_s24, 0 }
 0x85f   : > { %p10949_p9 = scmp.ge.s32.totalorder %s5190_s19, 2  ;;  %s4730_s13 = scalar_lea.sflag [#allocation8], %s4729_s9 }
 0x861   : > { %p4965_p13 = pnand %p10949_p9, %p10948_p4 }
 0x863   : > { %5165 = dma.done.wait (!%p4965_p13), %s4730_s13, 256  }
 0x864   : > { %5167 = vsyncadd (!%p4965_p13), %s4730_s13, 4294967040  ;;  %s21_s19 = sadd.s32 1, %s5190_s19   ;;  %s10950_s14 = smov %s5174_s15 }
 0x865   : > { %p18_p11 = scmp.ge.s32.totalorder %s21_s19, 4   ;;  %s10951_s15 = smov %s5178_s16 }
 0x866   : > { %s10952_s16 = smov %s5332_s10  ;;  %s10953_s17 = smov %s5186_s18 }
 0x867   : > { %s10954_s18 = smov %s10956_s30  ;;  %20 = sbr.rel (!%p18_p11) target bundleno = 9 (0x9), region = 91 }
 0x86e   :  { %4735 = vsyncpa [#allocation7], 1 }
 0x86f   :  { %4737 = vsyncpa [#allocation7 + $0x1], 1 }
 0x870   :  { %4738 = vsyncpa [#allocation8], 1 }
 0x871   :  { %4740 = vsyncpa [#allocation8 + $0x1], 1 }
 0x872   :  { %4741 = vsyncpa [#allocation9], 1 }
 0x873   :  { %4743 = vsyncpa [#allocation9 + $0x1], 1 }

</bundles_post_ra>
